<compile_context>
chip_gen: v6e
topology: v6e:2x2x1
jax: 0.10.0
libtpu: 0.0.40
codegen_flags: <defaults>
</compile_context>

<pallas_src>
import functools
import math

import jax
import jax.numpy as jnp
from jax.experimental import pallas as pl
from jax.experimental.pallas import tpu as pltpu


_MIB = 1024 * 1024
_NEG_INF = -1e30


def _round_up(x, m):
    return (x + m - 1) // m * m


def _pick_tile(dim, candidates):
    """Largest candidate tile that divides dim, else the full dim."""
    for c in candidates:
        if dim >= c and dim % c == 0:
            return c
    return dim


@functools.lru_cache(maxsize=None)
def _vmem_budget():
    """Generation-aware scoped-VMEM budget (bytes).

    ~100 MiB on 128 MiB parts (v5e/v6e), ~36 MiB on 64 MiB parts (v7x); always
    leaves headroom for compiler scratch / semaphores."""
    cap = 64 * _MIB
    try:
        info = pltpu.get_tpu_info()
        cap = int(getattr(info, "vmem_capacity_bytes", cap) or cap)
    except Exception:
        pass
    return max(min(cap - 28 * _MIB, 100 * _MIB), 32 * _MIB)


# ------------------------------ linear kernel ------------------------------ #

def _linear_kernel(x_ref, w_ref, b_ref, *rest, activation, has_residual):
    """Grid (M//tm, N//tn, K//tk); K is the innermost 'arbitrary' axis."""
    if has_residual:
        res_ref, o_ref, acc_ref = rest
    else:
        o_ref, acc_ref = rest
    k = pl.program_id(2)

    @pl.when(k == 0)
    def _():
        acc_ref[...] = jnp.zeros_like(acc_ref)

    # bf16 operands -> native bf16 MXU path, f32 accumulation.
    acc_ref[...] += jnp.dot(x_ref[...], w_ref[...],
                            preferred_element_type=jnp.float32)

    @pl.when(k == pl.num_programs(2) - 1)
    def _():
        out = acc_ref[...] + b_ref[...].astype(jnp.float32)
        if activation == "gelu":
            out = jax.nn.gelu(out)
        if has_residual:
            out = out + res_ref[...].astype(jnp.float32)
        o_ref[...] = out.astype(o_ref.dtype)


def _allowed_tiles(dim, cands):
    """Legal tile sizes for `dim`, descending (full-dim block is always legal)."""
    out = {c for c in cands if c <= dim and dim % c == 0}
    out.add(dim)
    return sorted(out, reverse=True)


def _linear_tiles(M, N, K, *, budget, out_bytes, res_bytes):
    """Largest (tm, tn, tk) whose double-buffered footprint fits the budget."""
    big = budget >= 80 * _MIB
    m_c = _allowed_tiles(M, (512, 256, 128) if big else (256, 128))
    n_c = _allowed_tiles(N, (512, 256, 128) if big else (256, 128))
    k_c = _allowed_tiles(K, (1024, 512, 256, 128) if big else (512, 256, 128))

    def vmem_bytes(tm, tn, tk):
        b = 2 * (tm * tk * 2 + tk * tn * 2 + tn * 4)   # dbl-buf x, w (bf16), bias (f32)
        b += 2 * tm * tn * out_bytes                    # dbl-buf output block
        b += 2 * tm * tn * res_bytes                    # dbl-buf residual block (0 if none)
        b += tm * tn * 4                                # f32 accumulator scratch
        return b

    limit = budget - 8 * _MIB
    best = None
    for tm in m_c:
        for tn in n_c:
            for tk in k_c:
                if vmem_bytes(tm, tn, tk) > limit:
                    continue
                key = (tm * tn * tk, tk, tm)            # biggest tiles, prefer deep K
                if best is None or key > best[0]:
                    best = (key, (tm, tn, tk))
    if best is not None:
        return best[1]
    return m_c[-1], n_c[-1], k_c[-1]


def linear(x, w, b, *, residual=None, activation=None, out_dtype=jnp.float32):
    """out = act(x @ w + b) [+ residual].  x:(M,K) bf16, w:(K,N) bf16, b:(1,N) f32."""
    M, K = x.shape
    Kw, N = w.shape
    assert K == Kw
    # Producers already emit bf16; this is a no-op on the hot path.
    if x.dtype != jnp.bfloat16:
        x = x.astype(jnp.bfloat16)
    if w.dtype != jnp.bfloat16:
        w = w.astype(jnp.bfloat16)

    budget = _vmem_budget()
    out_bytes = jnp.dtype(out_dtype).itemsize
    res_bytes = residual.dtype.itemsize if residual is not None else 0
    tm, tn, tk = _linear_tiles(M, N, K, budget=budget,
                               out_bytes=out_bytes, res_bytes=res_bytes)

    in_arrays = [x, w, b]
    in_specs = [
        pl.BlockSpec((tm, tk), lambda i, j, k: (i, k)),
        pl.BlockSpec((tk, tn), lambda i, j, k: (k, j)),
        pl.BlockSpec((1, tn), lambda i, j, k: (0, j)),
    ]
    if residual is not None:
        in_arrays.append(residual)
        in_specs.append(pl.BlockSpec((tm, tn), lambda i, j, k: (i, j)))

    kernel = functools.partial(_linear_kernel, activation=activation,
                               has_residual=residual is not None)
    # TODO(synk): on v5e, pipeline_mode=pl.Buffered(3) on the weight spec can
    # further hide the weight-stream DMA latency; kept at the default depth here.
    return pl.pallas_call(
        kernel,
        out_shape=jax.ShapeDtypeStruct((M, N), out_dtype),
        grid=(M // tm, N // tn, K // tk),
        in_specs=in_specs,
        out_specs=pl.BlockSpec((tm, tn), lambda i, j, k: (i, j)),
        scratch_shapes=[pltpu.VMEM((tm, tn), jnp.float32)],
        compiler_params=pltpu.CompilerParams(
            dimension_semantics=("parallel", "parallel", "arbitrary"),
            vmem_limit_bytes=budget),
    )(*in_arrays)


# ----------------------------- layernorm kernel ----------------------------- #

def _layernorm_kernel(x_ref, g_ref, b_ref, o_ref):
    x = x_ref[...].astype(jnp.float32)
    mu = jnp.mean(x, axis=-1, keepdims=True)
    var = jnp.mean((x - mu) * (x - mu), axis=-1, keepdims=True)
    y = (x - mu) * jax.lax.rsqrt(var + 1e-5)
    o_ref[...] = (y * g_ref[...] + b_ref[...]).astype(o_ref.dtype)


def layernorm(x, g, b, *, out_dtype=jnp.bfloat16):
    """x: (M, D) with M a multiple of 128; VMEM-aware row tile, bf16 output."""
    M, D = x.shape
    budget = _vmem_budget()
    row_bytes = D * (x.dtype.itemsize + jnp.dtype(out_dtype).itemsize)
    tm = 128
    for cand in (2048, 1024, 512, 256, 128):
        # double-buffered in + out plus f32 working copy must fit comfortably.
        if cand <= M and M % cand == 0 and (2 * cand * row_bytes + cand * D * 4) <= budget // 2:
            tm = cand
            break
    return pl.pallas_call(
        _layernorm_kernel,
        out_shape=jax.ShapeDtypeStruct((M, D), out_dtype),
        grid=(M // tm,),
        in_specs=[
            pl.BlockSpec((tm, D), lambda i: (i, 0)),
            pl.BlockSpec((1, D), lambda i: (0, 0)),
            pl.BlockSpec((1, D), lambda i: (0, 0)),
        ],
        out_specs=pl.BlockSpec((tm, D), lambda i: (i, 0)),
        compiler_params=pltpu.CompilerParams(
            dimension_semantics=("parallel",),
            vmem_limit_bytes=budget),
    )(x, g, b)


# --------------------------- flash causal attention -------------------------- #

def _flash_kernel(q_ref, k_ref, v_ref, o_ref, m_sc, l_sc, acc_sc, *,
                  scale, tq, tk):
    qi = pl.program_id(1)
    ki = pl.program_id(2)

    @pl.when(ki == 0)
    def _():
        m_sc[...] = jnp.full_like(m_sc, -jnp.inf)
        l_sc[...] = jnp.zeros_like(l_sc)
        acc_sc[...] = jnp.zeros_like(acc_sc)

    def _scores():
        # Scale q (tq x Dh mults) instead of the score tile (tq x tk mults).
        q = q_ref[0] * scale                               # stays bf16
        return jnp.dot(q, k_ref[0].T, preferred_element_type=jnp.float32)

    def _update(s):
        m_new = jnp.maximum(m_sc[...], jnp.max(s, axis=-1, keepdims=True))
        alpha = jnp.exp(m_sc[...] - m_new)
        p = jnp.exp(s - m_new)
        l_sc[...] = alpha * l_sc[...] + jnp.sum(p, axis=-1, keepdims=True)
        acc_sc[...] = alpha * acc_sc[...] + jnp.dot(
            p.astype(v_ref.dtype), v_ref[0], preferred_element_type=jnp.float32)
        m_sc[...] = m_new

    # Interior tiles (strictly below the diagonal): fully visible, no mask.
    @pl.when(ki < qi)
    def _():
        _update(_scores())

    # Diagonal tile (ki == qi, tq == tk): causal mask; this also hides any
    # zero-padded key positions (padding only ever lands in the last tile).
    @pl.when(ki == qi)
    def _():
        s = _scores()
        row = jax.lax.broadcasted_iota(jnp.int32, (tq, tk), 0)
        col = jax.lax.broadcasted_iota(jnp.int32, (tq, tk), 1)
        _update(jnp.where(col <= row, s, _NEG_INF))

    # Tiles with ki > qi are fully masked: no compute, and their kv block index
    # is clamped in the BlockSpec so no DMA is issued either.

    @pl.when(ki == pl.num_programs(2) - 1)
    def _():
        inv_l = pl.reciprocal(l_sc[...], approx=True)
        o_ref[0] = (acc_sc[...] * inv_l).astype(o_ref.dtype)


def flash_causal_attention(q, k, v, *, scale, out_dtype=jnp.bfloat16):
    """q, k, v: (B*H, S, Dh) bf16 -> (B*H, S, Dh) bf16, online softmax.

    S must be a multiple of 128 (padded upstream).  Dh is used unpadded: a
    block whose last dim equals the full array dim is always legal, and zero
    padding Dh would double both the DMA bytes and the MXU work."""
    BH, S, Dh = q.shape
    tq = _pick_tile(S, (256, 128))
    tk = tq                                   # diag/interior split assumes tq == tk
    kernel = functools.partial(_flash_kernel, scale=scale, tq=tq, tk=tk)
    q_spec = pl.BlockSpec((1, tq, Dh), lambda b, qi, ki: (b, qi, 0))
    # Clamp the kv block index for causally-skipped tiles: the block index then
    # repeats across those steps, so Pallas elides the K/V DMA entirely.
    kv_spec = pl.BlockSpec((1, tk, Dh),
                           lambda b, qi, ki: (b, jnp.minimum(ki, qi), 0))
    out_spec = pl.BlockSpec((1, tq, Dh), lambda b, qi, ki: (b, qi, 0))
    return pl.pallas_call(
        kernel,
        out_shape=jax.ShapeDtypeStruct((BH, S, Dh), out_dtype),
        grid=(BH, S // tq, S // tk),
        in_specs=[q_spec, kv_spec, kv_spec],
        out_specs=out_spec,
        scratch_shapes=[
            pltpu.VMEM((tq, 1), jnp.float32),    # running max
            pltpu.VMEM((tq, 1), jnp.float32),    # running denom
            pltpu.VMEM((tq, Dh), jnp.float32),   # output accumulator
        ],
        compiler_params=pltpu.CompilerParams(
            dimension_semantics=("parallel", "parallel", "arbitrary"),
            vmem_limit_bytes=_vmem_budget()),
    )(q, k, v)


# ------------------------------- tiny causal LM ------------------------------ #

def init_params(key, *, vocab, d_model, n_heads, d_ff, max_seq):
    del n_heads
    ks = jax.random.split(key, 8)
    s = 0.02

    def w(k, shape):
        # Matmul weights stored bf16 once -> no per-forward f32->bf16 HBM round trip.
        return (jax.random.normal(k, shape, jnp.float32) * s).astype(jnp.bfloat16)

    return {
        "tok_emb": jax.random.normal(ks[0], (vocab, d_model), jnp.float32) * s,
        "pos_emb": jax.random.normal(ks[1], (max_seq, d_model), jnp.float32) * s,
        "ln1_g": jnp.ones((1, d_model), jnp.float32),
        "ln1_b": jnp.zeros((1, d_model), jnp.float32),
        "w_qkv": w(ks[2], (d_model, 3 * d_model)),
        "b_qkv": jnp.zeros((1, 3 * d_model), jnp.float32),
        "w_o": w(ks[3], (d_model, d_model)),
        "b_o": jnp.zeros((1, d_model), jnp.float32),
        "ln2_g": jnp.ones((1, d_model), jnp.float32),
        "ln2_b": jnp.zeros((1, d_model), jnp.float32),
        "w_ff1": w(ks[4], (d_model, d_ff)),
        "b_ff1": jnp.zeros((1, d_ff), jnp.float32),
        "w_ff2": w(ks[5], (d_ff, d_model)),
        "b_ff2": jnp.zeros((1, d_model), jnp.float32),
        "lnf_g": jnp.ones((1, d_model), jnp.float32),
        "lnf_b": jnp.zeros((1, d_model), jnp.float32),
        "w_lm": w(ks[6], (d_model, vocab)),
        "b_lm": jnp.zeros((1, vocab), jnp.float32),
    }


def base_agent_forward(params, input_ids, *, n_heads):
    """Equivalent of BaseAgent.forward: causal-LM logits for `input_ids`."""
    B, S = input_ids.shape
    D = params["tok_emb"].shape[1]
    V = params["w_lm"].shape[1]
    Dh = D // n_heads

    # Pad the sequence to a multiple of 128 once, up front: every downstream
    # kernel then sees 128-aligned rows and attention keeps 128/256 tiles
    # (padded rows are causally masked as keys and sliced off as queries).
    S_pad = _round_up(S, 128)
    M = B * S_pad

    # Embedding lookup + positional embedding (glue: plain-JAX gather).
    x = jnp.take(params["tok_emb"], input_ids, axis=0)            # (B, S, D) f32
    x = x + params["pos_emb"][:S][None, :, :]
    x = jnp.pad(x, ((0, 0), (0, S_pad - S), (0, 0)))              # (B, S_pad, D)
    x2 = x.reshape(M, D)                                          # f32 residual stream

    # --- attention block ---
    h = layernorm(x2, params["ln1_g"], params["ln1_b"])           # (M, D) bf16
    qkv = linear(h, params["w_qkv"], params["b_qkv"],
                 out_dtype=jnp.bfloat16)                          # (M, 3D) bf16
    qkv = qkv.reshape(B, S_pad, 3, n_heads, Dh)
    qkv = jnp.transpose(qkv, (2, 0, 3, 1, 4)).reshape(3, B * n_heads, S_pad, Dh)
    # TODO(synk): when Dh % 128 == 0 this transpose can be eliminated by having
    # the attention BlockSpecs index head columns straight out of (M, 3D).
    attn = flash_causal_attention(qkv[0], qkv[1], qkv[2],
                                  scale=1.0 / math.sqrt(Dh))      # (B*H, S_pad, Dh) bf16
    attn = attn.reshape(B, n_heads, S_pad, Dh)
    attn = jnp.transpose(attn, (0, 2, 1, 3)).reshape(M, D)        # bf16
    # residual add fused into the output-projection epilogue
    x2 = linear(attn, params["w_o"], params["b_o"], residual=x2)  # (M, D) f32

    # --- MLP block ---
    h = layernorm(x2, params["ln2_g"], params["ln2_b"])
    h = linear(h, params["w_ff1"], params["b_ff1"],
               activation="gelu", out_dtype=jnp.bfloat16)
    x2 = linear(h, params["w_ff2"], params["b_ff2"], residual=x2)

    # --- LM head ---
    h = layernorm(x2, params["lnf_g"], params["lnf_b"])
    logits = linear(h, params["w_lm"], params["b_lm"])            # (M, V) f32
    return logits.reshape(B, S_pad, V)[:, :S, :]


# ----------------------------------- driver ---------------------------------- #

if __name__ == "__main__":
    B, S = 2, 8
    # d_model chosen so head_dim = 128 (lane-native, no Dh padding needed).
    VOCAB, D_MODEL, N_HEADS, D_FF, MAX_SEQ = 128, 256, 2, 512, 16

    key = jax.random.PRNGKey(0)
    pkey, ikey = jax.random.split(key)
    params = init_params(pkey, vocab=VOCAB, d_model=D_MODEL,
                         n_heads=N_HEADS, d_ff=D_FF, max_seq=MAX_SEQ)
    input_ids = jax.random.randint(ikey, (B, S), 0, VOCAB, dtype=jnp.int32)

    fwd = jax.jit(functools.partial(base_agent_forward, n_heads=N_HEADS))
    logits = fwd(params, input_ids)
    jax.block_until_ready(logits)

    assert logits.shape == (B, S, VOCAB)
    assert logits.dtype == jnp.float32
    assert bool(jnp.all(jnp.isfinite(logits)))
    print("KERNEL_OK")
</pallas_src>

<mosaic_0001>
module attributes {stable_mosaic.version = 11 : i64} {
  func.func @_layernorm_kernel(%arg0: i32, %arg1: memref<256x256xf32, #tpu.memory_space<vmem>>, %arg2: memref<1x256xf32, #tpu.memory_space<vmem>>, %arg3: memref<1x256xf32, #tpu.memory_space<vmem>>, %arg4: memref<256x256xbf16, #tpu.memory_space<vmem>>) attributes {dimension_semantics = [#tpu.dimension_semantics<parallel>], iteration_bounds = array<i64: 1>, scalar_prefetch = 0 : i64, scratch_operands = 0 : i64, tpu.core_type = #tpu.core_type<tc>, window_params = [{transform_indices = @transform_0, window_bounds = array<i64: 256, 256>}, {pipeline_mode = #tpu.pipeline_mode<synchronous>, transform_indices = @transform_1, window_bounds = array<i64: 1, 256>}, {pipeline_mode = #tpu.pipeline_mode<synchronous>, transform_indices = @transform_2, window_bounds = array<i64: 1, 256>}, {transform_indices = @transform_3, window_bounds = array<i64: 256, 256>}]} {
    %c0 = arith.constant 0 : index
    %c0_0 = arith.constant 0 : index
    %0 = vector.load %arg1[%c0, %c0_0] : memref<256x256xf32, #tpu.memory_space<vmem>>, vector<256x256xf32>
    %cst = arith.constant dense<0.000000e+00> : vector<256xf32>
    %1 = vector.multi_reduction <add>, %0, %cst [1] : vector<256x256xf32> to vector<256xf32>
    %2 = vector.shape_cast %1 : vector<256xf32> to vector<256x1xf32>
    %cst_1 = arith.constant 2.560000e+02 : f32
    %3 = vector.broadcast %cst_1 : f32 to vector<256x1xf32>
    %4 = arith.divf %2, %3 : vector<256x1xf32>
    %5 = vector.broadcast %4 : vector<256x1xf32> to vector<256x256xf32>
    %6 = arith.subf %0, %5 : vector<256x256xf32>
    %7 = vector.broadcast %4 : vector<256x1xf32> to vector<256x256xf32>
    %8 = arith.subf %0, %7 : vector<256x256xf32>
    %9 = arith.mulf %6, %8 : vector<256x256xf32>
    %cst_2 = arith.constant dense<0.000000e+00> : vector<256xf32>
    %10 = vector.multi_reduction <add>, %9, %cst_2 [1] : vector<256x256xf32> to vector<256xf32>
    %11 = vector.shape_cast %10 : vector<256xf32> to vector<256x1xf32>
    %cst_3 = arith.constant 2.560000e+02 : f32
    %12 = vector.broadcast %cst_3 : f32 to vector<256x1xf32>
    %13 = arith.divf %11, %12 : vector<256x1xf32>
    %14 = vector.broadcast %4 : vector<256x1xf32> to vector<256x256xf32>
    %15 = arith.subf %0, %14 : vector<256x256xf32>
    %cst_4 = arith.constant 9.99999974E-6 : f32
    %16 = vector.broadcast %cst_4 : f32 to vector<256x1xf32>
    %17 = arith.addf %13, %16 : vector<256x1xf32>
    %18 = math.rsqrt %17 : vector<256x1xf32>
    %19 = vector.broadcast %18 : vector<256x1xf32> to vector<256x256xf32>
    %20 = arith.mulf %15, %19 : vector<256x256xf32>
    %c0_5 = arith.constant 0 : index
    %c0_6 = arith.constant 0 : index
    %21 = vector.load %arg2[%c0_5, %c0_6] : memref<1x256xf32, #tpu.memory_space<vmem>>, vector<1x256xf32>
    %22 = vector.broadcast %21 : vector<1x256xf32> to vector<256x256xf32>
    %23 = arith.mulf %20, %22 : vector<256x256xf32>
    %c0_7 = arith.constant 0 : index
    %c0_8 = arith.constant 0 : index
    %24 = vector.load %arg3[%c0_7, %c0_8] : memref<1x256xf32, #tpu.memory_space<vmem>>, vector<1x256xf32>
    %25 = vector.broadcast %24 : vector<1x256xf32> to vector<256x256xf32>
    %26 = arith.addf %23, %25 : vector<256x256xf32>
    %27 = arith.truncf %26 : vector<256x256xf32> to vector<256x256xbf16>
    %c0_9 = arith.constant 0 : index
    %c0_10 = arith.constant 0 : index
    %28 = vector.load %arg4[%c0_9, %c0_10] : memref<256x256xbf16, #tpu.memory_space<vmem>>, vector<256x256xbf16>
    tpu.vector_store %arg4[%c0_9, %c0_10], %27 {strides = array<i32>} : memref<256x256xbf16, #tpu.memory_space<vmem>>, vector<256x256xbf16>,
    return
  }
  func.func @transform_0(%arg0: i32) -> (i32, i32) {
    %c0_i32 = arith.constant 0 : i32
    %c0_i32_0 = arith.constant 0 : i32
    return %arg0, %c0_i32 : i32, i32
  }
  func.func @transform_1(%arg0: i32) -> (i32, i32) {
    %c0_i32 = arith.constant 0 : i32
    %c0_i32_0 = arith.constant 0 : i32
    %c0_i32_1 = arith.constant 0 : i32
    return %c0_i32, %c0_i32_0 : i32, i32
  }
  func.func @transform_2(%arg0: i32) -> (i32, i32) {
    %c0_i32 = arith.constant 0 : i32
    %c0_i32_0 = arith.constant 0 : i32
    %c0_i32_1 = arith.constant 0 : i32
    return %c0_i32, %c0_i32_0 : i32, i32
  }
  func.func @transform_3(%arg0: i32) -> (i32, i32) {
    %c0_i32 = arith.constant 0 : i32
    %c0_i32_0 = arith.constant 0 : i32
    return %arg0, %c0_i32 : i32, i32
  }
}

module attributes {stable_mosaic.version = 11 : i64} {
  func.func @_linear_kernel(%arg0: i32, %arg1: i32, %arg2: i32, %arg3: memref<256x256xbf16, #tpu.memory_space<vmem>>, %arg4: memref<256x768xbf16, #tpu.memory_space<vmem>>, %arg5: memref<1x768xf32, #tpu.memory_space<vmem>>, %arg6: memref<256x768xbf16, #tpu.memory_space<vmem>>, %arg7: memref<256x768xf32, #tpu.memory_space<vmem>>) attributes {dimension_semantics = [#tpu.dimension_semantics<parallel>, #tpu.dimension_semantics<parallel>, #tpu.dimension_semantics<arbitrary>], iteration_bounds = array<i64: 1, 1, 1>, scalar_prefetch = 0 : i64, scratch_operands = 1 : i64, tpu.core_type = #tpu.core_type<tc>, window_params = [{transform_indices = @transform_0, window_bounds = array<i64: 256, 256>}, {transform_indices = @transform_1, window_bounds = array<i64: 256, 768>}, {transform_indices = @transform_2, window_bounds = array<i64: 1, 768>}, {transform_indices = @transform_3, window_bounds = array<i64: 256, 768>}]} {
    %c0_i32 = arith.constant 0 : i32
    %0 = arith.cmpi eq, %arg2, %c0_i32 : i32
    %1 = arith.extui %0 : i1 to i32
    %c0_i32_0 = arith.constant 0 : i32
    %2 = arith.cmpi ne, %1, %c0_i32_0 : i32
    scf.if %2 {
      %cst_10 = arith.constant 0.000000e+00 : f32
      %12 = vector.broadcast %cst_10 : f32 to vector<256x768xf32>
      %c0_11 = arith.constant 0 : index
      %c0_12 = arith.constant 0 : index
      %13 = vector.load %arg7[%c0_11, %c0_12] : memref<256x768xf32, #tpu.memory_space<vmem>>, vector<256x768xf32>
      tpu.vector_store %arg7[%c0_11, %c0_12], %12 {strides = array<i32>} : memref<256x768xf32, #tpu.memory_space<vmem>>, vector<256x768xf32>,
    } else {
    }
    %c0 = arith.constant 0 : index
    %c0_1 = arith.constant 0 : index
    %3 = vector.load %arg7[%c0, %c0_1] : memref<256x768xf32, #tpu.memory_space<vmem>>, vector<256x768xf32>
    %c0_2 = arith.constant 0 : index
    %c0_3 = arith.constant 0 : index
    %4 = vector.load %arg3[%c0_2, %c0_3] : memref<256x256xbf16, #tpu.memory_space<vmem>>, vector<256x256xbf16>
    %c0_4 = arith.constant 0 : index
    %c0_5 = arith.constant 0 : index
    %5 = vector.load %arg4[%c0_4, %c0_5] : memref<256x768xbf16, #tpu.memory_space<vmem>>, vector<256x768xbf16>
    %cst = arith.constant dense<0.000000e+00> : vector<256x768xf32>
    %6 = tpu.matmul %4, %5, %cst {dimension_numbers = #tpu.dot_dimension_numbers<[1], [0], [0], [1], [0, 0, 1, 1], [], []>} : vector<256x256xbf16>, vector<256x768xbf16>, vector<256x768xf32> -> vector<256x768xf32>
    %7 = arith.addf %3, %6 : vector<256x768xf32>
    %c0_6 = arith.constant 0 : index
    %c0_7 = arith.constant 0 : index
    %8 = vector.load %arg7[%c0_6, %c0_7] : memref<256x768xf32, #tpu.memory_space<vmem>>, vector<256x768xf32>
    tpu.vector_store %arg7[%c0_6, %c0_7], %7 {strides = array<i32>} : memref<256x768xf32, #tpu.memory_space<vmem>>, vector<256x768xf32>,
    %c0_i32_8 = arith.constant 0 : i32
    %9 = arith.cmpi eq, %arg2, %c0_i32_8 : i32
    %10 = arith.extui %9 : i1 to i32
    %c0_i32_9 = arith.constant 0 : i32
    %11 = arith.cmpi ne, %10, %c0_i32_9 : i32
    scf.if %11 {
      %c0_10 = arith.constant 0 : index
      %c0_11 = arith.constant 0 : index
      %12 = vector.load %arg7[%c0_10, %c0_11] : memref<256x768xf32, #tpu.memory_space<vmem>>, vector<256x768xf32>
      %c0_12 = arith.constant 0 : index
      %c0_13 = arith.constant 0 : index
      %13 = vector.load %arg5[%c0_12, %c0_13] : memref<1x768xf32, #tpu.memory_space<vmem>>, vector<1x768xf32>
      %14 = vector.broadcast %13 : vector<1x768xf32> to vector<256x768xf32>
      %15 = arith.addf %12, %14 : vector<256x768xf32>
      %16 = arith.truncf %15 : vector<256x768xf32> to vector<256x768xbf16>
      %c0_14 = arith.constant 0 : index
      %c0_15 = arith.constant 0 : index
      %17 = vector.load %arg6[%c0_14, %c0_15] : memref<256x768xbf16, #tpu.memory_space<vmem>>, vector<256x768xbf16>
      tpu.vector_store %arg6[%c0_14, %c0_15], %16 {strides = array<i32>} : memref<256x768xbf16, #tpu.memory_space<vmem>>, vector<256x768xbf16>,
    } else {
    }
    return
  }
  func.func @transform_0(%arg0: i32, %arg1: i32, %arg2: i32) -> (i32, i32) {
    %c0_i32 = arith.constant 0 : i32
    return %arg0, %arg2 : i32, i32
  }
  func.func @transform_1(%arg0: i32, %arg1: i32, %arg2: i32) -> (i32, i32) {
    %c0_i32 = arith.constant 0 : i32
    return %arg2, %arg1 : i32, i32
  }
  func.func @transform_2(%arg0: i32, %arg1: i32, %arg2: i32) -> (i32, i32) {
    %c0_i32 = arith.constant 0 : i32
    %c0_i32_0 = arith.constant 0 : i32
    return %c0_i32, %arg1 : i32, i32
  }
  func.func @transform_3(%arg0: i32, %arg1: i32, %arg2: i32) -> (i32, i32) {
    %c0_i32 = arith.constant 0 : i32
    return %arg0, %arg1 : i32, i32
  }
}

module attributes {stable_mosaic.version = 11 : i64} {
  func.func @_flash_kernel(%arg0: i32, %arg1: i32, %arg2: i32, %arg3: memref<1x128x128xbf16, #tpu.memory_space<vmem>>, %arg4: memref<1x128x128xbf16, #tpu.memory_space<vmem>>, %arg5: memref<1x128x128xbf16, #tpu.memory_space<vmem>>, %arg6: memref<1x128x128xbf16, #tpu.memory_space<vmem>>, %arg7: memref<128x1xf32, #tpu.memory_space<vmem>>, %arg8: memref<128x1xf32, #tpu.memory_space<vmem>>, %arg9: memref<128x128xf32, #tpu.memory_space<vmem>>) attributes {dimension_semantics = [#tpu.dimension_semantics<parallel>, #tpu.dimension_semantics<parallel>, #tpu.dimension_semantics<arbitrary>], iteration_bounds = array<i64: 4, 1, 1>, scalar_prefetch = 0 : i64, scratch_operands = 3 : i64, tpu.core_type = #tpu.core_type<tc>, window_params = [{transform_indices = @transform_0, window_bounds = array<i64: 1, 128, 128>}, {transform_indices = @transform_1, window_bounds = array<i64: 1, 128, 128>}, {transform_indices = @transform_2, window_bounds = array<i64: 1, 128, 128>}, {transform_indices = @transform_3, window_bounds = array<i64: 1, 128, 128>}]} {
    %c0_i32 = arith.constant 0 : i32
    %0 = arith.cmpi eq, %arg2, %c0_i32 : i32
    %1 = arith.extui %0 : i1 to i32
    %c0_i32_0 = arith.constant 0 : i32
    %2 = arith.cmpi ne, %1, %c0_i32_0 : i32
    scf.if %2 {
      %cst = arith.constant 0xFF800000 : f32
      %12 = vector.broadcast %cst : f32 to vector<128x1xf32>
      %c0 = arith.constant 0 : index
      %c0_5 = arith.constant 0 : index
      %13 = vector.load %arg7[%c0, %c0_5] : memref<128x1xf32, #tpu.memory_space<vmem>>, vector<128x1xf32>
      tpu.vector_store %arg7[%c0, %c0_5], %12 {strides = array<i32>} : memref<128x1xf32, #tpu.memory_space<vmem>>, vector<128x1xf32>,
      %cst_6 = arith.constant 0.000000e+00 : f32
      %14 = vector.broadcast %cst_6 : f32 to vector<128x1xf32>
      %c0_7 = arith.constant 0 : index
      %c0_8 = arith.constant 0 : index
      %15 = vector.load %arg8[%c0_7, %c0_8] : memref<128x1xf32, #tpu.memory_space<vmem>>, vector<128x1xf32>
      tpu.vector_store %arg8[%c0_7, %c0_8], %14 {strides = array<i32>} : memref<128x1xf32, #tpu.memory_space<vmem>>, vector<128x1xf32>,
      %cst_9 = arith.constant 0.000000e+00 : f32
      %16 = vector.broadcast %cst_9 : f32 to vector<128x128xf32>
      %c0_10 = arith.constant 0 : index
      %c0_11 = arith.constant 0 : index
      %17 = vector.load %arg9[%c0_10, %c0_11] : memref<128x128xf32, #tpu.memory_space<vmem>>, vector<128x128xf32>
      tpu.vector_store %arg9[%c0_10, %c0_11], %16 {strides = array<i32>} : memref<128x128xf32, #tpu.memory_space<vmem>>, vector<128x128xf32>,
    } else {
    }
    %3 = arith.cmpi slt, %arg2, %arg1 : i32
    %4 = arith.extui %3 : i1 to i32
    %c0_i32_1 = arith.constant 0 : i32
    %5 = arith.cmpi ne, %4, %c0_i32_1 : i32
    scf.if %5 {
      %c0 = arith.constant 0 : index
      %c0_5 = arith.constant 0 : index
      %c0_6 = arith.constant 0 : index
      %12 = vector.load %arg3[%c0, %c0_5, %c0_6] : memref<1x128x128xbf16, #tpu.memory_space<vmem>>, vector<1x128x128xbf16>
      %13 = vector.shape_cast %12 : vector<1x128x128xbf16> to vector<128x128xbf16>
      %cst = arith.constant 8.837890e-02 : bf16
      %14 = vector.broadcast %cst : bf16 to vector<128x128xbf16>
      %15 = arith.mulf %13, %14 : vector<128x128xbf16>
      %c0_7 = arith.constant 0 : index
      %c0_8 = arith.constant 0 : index
      %c0_9 = arith.constant 0 : index
      %16 = vector.load %arg4[%c0_7, %c0_8, %c0_9] : memref<1x128x128xbf16, #tpu.memory_space<vmem>>, vector<1x128x128xbf16>
      %17 = vector.shape_cast %16 : vector<1x128x128xbf16> to vector<128x128xbf16>
      %18 = tpu.transpose %17, [1, 0] : vector<128x128xbf16> -> vector<128x128xbf16>
      %cst_10 = arith.constant dense<0.000000e+00> : vector<128x128xf32>
      %19 = tpu.matmul %15, %18, %cst_10 {dimension_numbers = #tpu.dot_dimension_numbers<[1], [0], [0], [1], [0, 0, 1, 1], [], []>} : vector<128x128xbf16>, vector<128x128xbf16>, vector<128x128xf32> -> vector<128x128xf32>
      %c0_11 = arith.constant 0 : index
      %c0_12 = arith.constant 0 : index
      %20 = vector.load %arg7[%c0_11, %c0_12] : memref<128x1xf32, #tpu.memory_space<vmem>>, vector<128x1xf32>
      %cst_13 = arith.constant dense<0xFF800000> : vector<128xf32>
      %21 = vector.multi_reduction <maximumf>, %19, %cst_13 [1] : vector<128x128xf32> to vector<128xf32>
      %22 = vector.shape_cast %21 : vector<128xf32> to vector<128x1xf32>
      %23 = arith.maximumf %20, %22 : vector<128x1xf32>
      %c0_14 = arith.constant 0 : index
      %c0_15 = arith.constant 0 : index
      %24 = vector.load %arg7[%c0_14, %c0_15] : memref<128x1xf32, #tpu.memory_space<vmem>>, vector<128x1xf32>
      %25 = arith.subf %24, %23 : vector<128x1xf32>
      %26 = math.exp %25 : vector<128x1xf32>
      %27 = vector.broadcast %23 : vector<128x1xf32> to vector<128x128xf32>
      %28 = arith.subf %19, %27 : vector<128x128xf32>
      %29 = math.exp %28 : vector<128x128xf32>
      %c0_16 = arith.constant 0 : index
      %c0_17 = arith.constant 0 : index
      %30 = vector.load %arg8[%c0_16, %c0_17] : memref<128x1xf32, #tpu.memory_space<vmem>>, vector<128x1xf32>
      %31 = arith.mulf %26, %30 : vector<128x1xf32>
      %cst_18 = arith.constant dense<0.000000e+00> : vector<128xf32>
      %32 = vector.multi_reduction <add>, %29, %cst_18 [1] : vector<128x128xf32> to vector<128xf32>
      %33 = vector.shape_cast %32 : vector<128xf32> to vector<128x1xf32>
      %34 = arith.addf %31, %33 : vector<128x1xf32>
      %c0_19 = arith.constant 0 : index
      %c0_20 = arith.constant 0 : index
      %35 = vector.load %arg8[%c0_19, %c0_20] : memref<128x1xf32, #tpu.memory_space<vmem>>, vector<128x1xf32>
      tpu.vector_store %arg8[%c0_19, %c0_20], %34 {strides = array<i32>} : memref<128x1xf32, #tpu.memory_space<vmem>>, vector<128x1xf32>,
      %c0_21 = arith.constant 0 : index
      %c0_22 = arith.constant 0 : index
      %36 = vector.load %arg9[%c0_21, %c0_22] : memref<128x128xf32, #tpu.memory_space<vmem>>, vector<128x128xf32>
      %37 = vector.broadcast %26 : vector<128x1xf32> to vector<128x128xf32>
      %38 = arith.mulf %37, %36 : vector<128x128xf32>
      %39 = arith.truncf %29 : vector<128x128xf32> to vector<128x128xbf16>
      %c0_23 = arith.constant 0 : index
      %c0_24 = arith.constant 0 : index
      %c0_25 = arith.constant 0 : index
      %40 = vector.load %arg5[%c0_23, %c0_24, %c0_25] : memref<1x128x128xbf16, #tpu.memory_space<vmem>>, vector<1x128x128xbf16>
      %41 = vector.shape_cast %40 : vector<1x128x128xbf16> to vector<128x128xbf16>
      %cst_26 = arith.constant dense<0.000000e+00> : vector<128x128xf32>
      %42 = tpu.matmul %39, %41, %cst_26 {dimension_numbers = #tpu.dot_dimension_numbers<[1], [0], [0], [1], [0, 0, 1, 1], [], []>} : vector<128x128xbf16>, vector<128x128xbf16>, vector<128x128xf32> -> vector<128x128xf32>
      %43 = arith.addf %38, %42 : vector<128x128xf32>
      %c0_27 = arith.constant 0 : index
      %c0_28 = arith.constant 0 : index
      %44 = vector.load %arg9[%c0_27, %c0_28] : memref<128x128xf32, #tpu.memory_space<vmem>>, vector<128x128xf32>
      tpu.vector_store %arg9[%c0_27, %c0_28], %43 {strides = array<i32>} : memref<128x128xf32, #tpu.memory_space<vmem>>, vector<128x128xf32>,
      %c0_29 = arith.constant 0 : index
      %c0_30 = arith.constant 0 : index
      %45 = vector.load %arg7[%c0_29, %c0_30] : memref<128x1xf32, #tpu.memory_space<vmem>>, vector<128x1xf32>
      tpu.vector_store %arg7[%c0_29, %c0_30], %23 {strides = array<i32>} : memref<128x1xf32, #tpu.memory_space<vmem>>, vector<128x1xf32>,
    } else {
    }
    %6 = arith.cmpi eq, %arg2, %arg1 : i32
    %7 = arith.extui %6 : i1 to i32
    %c0_i32_2 = arith.constant 0 : i32
    %8 = arith.cmpi ne, %7, %c0_i32_2 : i32
    scf.if %8 {
      %c0 = arith.constant 0 : index
      %c0_5 = arith.constant 0 : index
      %c0_6 = arith.constant 0 : index
      %12 = vector.load %arg3[%c0, %c0_5, %c0_6] : memref<1x128x128xbf16, #tpu.memory_space<vmem>>, vector<1x128x128xbf16>
      %13 = vector.shape_cast %12 : vector<1x128x128xbf16> to vector<128x128xbf16>
      %cst = arith.constant 8.837890e-02 : bf16
      %14 = vector.broadcast %cst : bf16 to vector<128x128xbf16>
      %15 = arith.mulf %13, %14 : vector<128x128xbf16>
      %c0_7 = arith.constant 0 : index
      %c0_8 = arith.constant 0 : index
      %c0_9 = arith.constant 0 : index
      %16 = vector.load %arg4[%c0_7, %c0_8, %c0_9] : memref<1x128x128xbf16, #tpu.memory_space<vmem>>, vector<1x128x128xbf16>
      %17 = vector.shape_cast %16 : vector<1x128x128xbf16> to vector<128x128xbf16>
      %18 = tpu.transpose %17, [1, 0] : vector<128x128xbf16> -> vector<128x128xbf16>
      %cst_10 = arith.constant dense<0.000000e+00> : vector<128x128xf32>
      %19 = tpu.matmul %15, %18, %cst_10 {dimension_numbers = #tpu.dot_dimension_numbers<[1], [0], [0], [1], [0, 0, 1, 1], [], []>} : vector<128x128xbf16>, vector<128x128xbf16>, vector<128x128xf32> -> vector<128x128xf32>
      %20 = tpu.iota {dimensions = array<i32: 0>} : vector<128x128xi32>
      %21 = tpu.iota {dimensions = array<i32: 1>} : vector<128x128xi32>
      %22 = arith.cmpi sle, %21, %20 : vector<128x128xi32>
      %cst_11 = arith.constant -1.000000e+30 : f32
      %23 = vector.broadcast %cst_11 : f32 to vector<128x128xf32>
      %24 = arith.select %22, %19, %23 : vector<128x128xi1>, vector<128x128xf32>
      %c0_12 = arith.constant 0 : index
      %c0_13 = arith.constant 0 : index
      %25 = vector.load %arg7[%c0_12, %c0_13] : memref<128x1xf32, #tpu.memory_space<vmem>>, vector<128x1xf32>
      %cst_14 = arith.constant dense<0xFF800000> : vector<128xf32>
      %26 = vector.multi_reduction <maximumf>, %24, %cst_14 [1] : vector<128x128xf32> to vector<128xf32>
      %27 = vector.shape_cast %26 : vector<128xf32> to vector<128x1xf32>
      %28 = arith.maximumf %25, %27 : vector<128x1xf32>
      %c0_15 = arith.constant 0 : index
      %c0_16 = arith.constant 0 : index
      %29 = vector.load %arg7[%c0_15, %c0_16] : memref<128x1xf32, #tpu.memory_space<vmem>>, vector<128x1xf32>
      %30 = arith.subf %29, %28 : vector<128x1xf32>
      %31 = math.exp %30 : vector<128x1xf32>
      %32 = vector.broadcast %28 : vector<128x1xf32> to vector<128x128xf32>
      %33 = arith.subf %24, %32 : vector<128x128xf32>
      %34 = math.exp %33 : vector<128x128xf32>
      %c0_17 = arith.constant 0 : index
      %c0_18 = arith.constant 0 : index
      %35 = vector.load %arg8[%c0_17, %c0_18] : memref<128x1xf32, #tpu.memory_space<vmem>>, vector<128x1xf32>
      %36 = arith.mulf %31, %35 : vector<128x1xf32>
      %cst_19 = arith.constant dense<0.000000e+00> : vector<128xf32>
      %37 = vector.multi_reduction <add>, %34, %cst_19 [1] : vector<128x128xf32> to vector<128xf32>
      %38 = vector.shape_cast %37 : vector<128xf32> to vector<128x1xf32>
      %39 = arith.addf %36, %38 : vector<128x1xf32>
      %c0_20 = arith.constant 0 : index
      %c0_21 = arith.constant 0 : index
      %40 = vector.load %arg8[%c0_20, %c0_21] : memref<128x1xf32, #tpu.memory_space<vmem>>, vector<128x1xf32>
      tpu.vector_store %arg8[%c0_20, %c0_21], %39 {strides = array<i32>} : memref<128x1xf32, #tpu.memory_space<vmem>>, vector<128x1xf32>,
      %c0_22 = arith.constant 0 : index
      %c0_23 = arith.constant 0 : index
      %41 = vector.load %arg9[%c0_22, %c0_23] : memref<128x128xf32, #tpu.memory_space<vmem>>, vector<128x128xf32>
      %42 = vector.broadcast %31 : vector<128x1xf32> to vector<128x128xf32>
      %43 = arith.mulf %42, %41 : vector<128x128xf32>
      %44 = arith.truncf %34 : vector<128x128xf32> to vector<128x128xbf16>
      %c0_24 = arith.constant 0 : index
      %c0_25 = arith.constant 0 : index
      %c0_26 = arith.constant 0 : index
      %45 = vector.load %arg5[%c0_24, %c0_25, %c0_26] : memref<1x128x128xbf16, #tpu.memory_space<vmem>>, vector<1x128x128xbf16>
      %46 = vector.shape_cast %45 : vector<1x128x128xbf16> to vector<128x128xbf16>
      %cst_27 = arith.constant dense<0.000000e+00> : vector<128x128xf32>
      %47 = tpu.matmul %44, %46, %cst_27 {dimension_numbers = #tpu.dot_dimension_numbers<[1], [0], [0], [1], [0, 0, 1, 1], [], []>} : vector<128x128xbf16>, vector<128x128xbf16>, vector<128x128xf32> -> vector<128x128xf32>
      %48 = arith.addf %43, %47 : vector<128x128xf32>
      %c0_28 = arith.constant 0 : index
      %c0_29 = arith.constant 0 : index
      %49 = vector.load %arg9[%c0_28, %c0_29] : memref<128x128xf32, #tpu.memory_space<vmem>>, vector<128x128xf32>
      tpu.vector_store %arg9[%c0_28, %c0_29], %48 {strides = array<i32>} : memref<128x128xf32, #tpu.memory_space<vmem>>, vector<128x128xf32>,
      %c0_30 = arith.constant 0 : index
      %c0_31 = arith.constant 0 : index
      %50 = vector.load %arg7[%c0_30, %c0_31] : memref<128x1xf32, #tpu.memory_space<vmem>>, vector<128x1xf32>
      tpu.vector_store %arg7[%c0_30, %c0_31], %28 {strides = array<i32>} : memref<128x1xf32, #tpu.memory_space<vmem>>, vector<128x1xf32>,
    } else {
    }
    %c0_i32_3 = arith.constant 0 : i32
    %9 = arith.cmpi eq, %arg2, %c0_i32_3 : i32
    %10 = arith.extui %9 : i1 to i32
    %c0_i32_4 = arith.constant 0 : i32
    %11 = arith.cmpi ne, %10, %c0_i32_4 : i32
    scf.if %11 {
      %c0 = arith.constant 0 : index
      %c0_5 = arith.constant 0 : index
      %12 = vector.load %arg8[%c0, %c0_5] : memref<128x1xf32, #tpu.memory_space<vmem>>, vector<128x1xf32>
      %13 = tpu.reciprocal %12 {approx = true} : vector<128x1xf32> -> vector<128x1xf32>
      %c0_6 = arith.constant 0 : index
      %c0_7 = arith.constant 0 : index
      %14 = vector.load %arg9[%c0_6, %c0_7] : memref<128x128xf32, #tpu.memory_space<vmem>>, vector<128x128xf32>
      %15 = vector.broadcast %13 : vector<128x1xf32> to vector<128x128xf32>
      %16 = arith.mulf %14, %15 : vector<128x128xf32>
      %17 = arith.truncf %16 : vector<128x128xf32> to vector<128x128xbf16>
      %c0_8 = arith.constant 0 : index
      %c0_9 = arith.constant 0 : index
      %c0_10 = arith.constant 0 : index
      %18 = vector.load %arg6[%c0_8, %c0_9, %c0_10] : memref<1x128x128xbf16, #tpu.memory_space<vmem>>, vector<1x128x128xbf16>
      %19 = vector.shape_cast %18 : vector<1x128x128xbf16> to vector<128x128xbf16>
      %20 = vector.shape_cast %17 : vector<128x128xbf16> to vector<1x128x128xbf16>
      tpu.vector_store %arg6[%c0_8, %c0_9, %c0_10], %20 {strides = array<i32>} : memref<1x128x128xbf16, #tpu.memory_space<vmem>>, vector<1x128x128xbf16>,
    } else {
    }
    return
  }
  func.func @transform_0(%arg0: i32, %arg1: i32, %arg2: i32) -> (i32, i32, i32) {
    %c0_i32 = arith.constant 0 : i32
    %c0_i32_0 = arith.constant 0 : i32
    return %arg0, %arg1, %c0_i32 : i32, i32, i32
  }
  func.func @transform_1(%arg0: i32, %arg1: i32, %arg2: i32) -> (i32, i32, i32) {
    %0 = arith.minsi %arg2, %arg1 : i32
    %c0_i32 = arith.constant 0 : i32
    %c0_i32_0 = arith.constant 0 : i32
    return %arg0, %0, %c0_i32 : i32, i32, i32
  }
  func.func @transform_2(%arg0: i32, %arg1: i32, %arg2: i32) -> (i32, i32, i32) {
    %0 = arith.minsi %arg2, %arg1 : i32
    %c0_i32 = arith.constant 0 : i32
    %c0_i32_0 = arith.constant 0 : i32
    return %arg0, %0, %c0_i32 : i32, i32, i32
  }
  func.func @transform_3(%arg0: i32, %arg1: i32, %arg2: i32) -> (i32, i32, i32) {
    %c0_i32 = arith.constant 0 : i32
    %c0_i32_0 = arith.constant 0 : i32
    return %arg0, %arg1, %c0_i32 : i32, i32, i32
  }
}

module attributes {stable_mosaic.version = 11 : i64} {
  func.func @_linear_kernel(%arg0: i32, %arg1: i32, %arg2: i32, %arg3: memref<256x256xbf16, #tpu.memory_space<vmem>>, %arg4: memref<256x256xbf16, #tpu.memory_space<vmem>>, %arg5: memref<1x256xf32, #tpu.memory_space<vmem>>, %arg6: memref<256x256xf32, #tpu.memory_space<vmem>>, %arg7: memref<256x256xf32, #tpu.memory_space<vmem>>, %arg8: memref<256x256xf32, #tpu.memory_space<vmem>>) attributes {dimension_semantics = [#tpu.dimension_semantics<parallel>, #tpu.dimension_semantics<parallel>, #tpu.dimension_semantics<arbitrary>], iteration_bounds = array<i64: 1, 1, 1>, scalar_prefetch = 0 : i64, scratch_operands = 1 : i64, tpu.core_type = #tpu.core_type<tc>, window_params = [{transform_indices = @transform_0, window_bounds = array<i64: 256, 256>}, {transform_indices = @transform_1, window_bounds = array<i64: 256, 256>}, {transform_indices = @transform_2, window_bounds = array<i64: 1, 256>}, {transform_indices = @transform_3, window_bounds = array<i64: 256, 256>}, {transform_indices = @transform_4, window_bounds = array<i64: 256, 256>}]} {
    %c0_i32 = arith.constant 0 : i32
    %0 = arith.cmpi eq, %arg2, %c0_i32 : i32
    %1 = arith.extui %0 : i1 to i32
    %c0_i32_0 = arith.constant 0 : i32
    %2 = arith.cmpi ne, %1, %c0_i32_0 : i32
    scf.if %2 {
      %cst_10 = arith.constant 0.000000e+00 : f32
      %12 = vector.broadcast %cst_10 : f32 to vector<256x256xf32>
      %c0_11 = arith.constant 0 : index
      %c0_12 = arith.constant 0 : index
      %13 = vector.load %arg8[%c0_11, %c0_12] : memref<256x256xf32, #tpu.memory_space<vmem>>, vector<256x256xf32>
      tpu.vector_store %arg8[%c0_11, %c0_12], %12 {strides = array<i32>} : memref<256x256xf32, #tpu.memory_space<vmem>>, vector<256x256xf32>,
    } else {
    }
    %c0 = arith.constant 0 : index
    %c0_1 = arith.constant 0 : index
    %3 = vector.load %arg8[%c0, %c0_1] : memref<256x256xf32, #tpu.memory_space<vmem>>, vector<256x256xf32>
    %c0_2 = arith.constant 0 : index
    %c0_3 = arith.constant 0 : index
    %4 = vector.load %arg3[%c0_2, %c0_3] : memref<256x256xbf16, #tpu.memory_space<vmem>>, vector<256x256xbf16>
    %c0_4 = arith.constant 0 : index
    %c0_5 = arith.constant 0 : index
    %5 = vector.load %arg4[%c0_4, %c0_5] : memref<256x256xbf16, #tpu.memory_space<vmem>>, vector<256x256xbf16>
    %cst = arith.constant dense<0.000000e+00> : vector<256x256xf32>
    %6 = tpu.matmul %4, %5, %cst {dimension_numbers = #tpu.dot_dimension_numbers<[1], [0], [0], [1], [0, 0, 1, 1], [], []>} : vector<256x256xbf16>, vector<256x256xbf16>, vector<256x256xf32> -> vector<256x256xf32>
    %7 = arith.addf %3, %6 : vector<256x256xf32>
    %c0_6 = arith.constant 0 : index
    %c0_7 = arith.constant 0 : index
    %8 = vector.load %arg8[%c0_6, %c0_7] : memref<256x256xf32, #tpu.memory_space<vmem>>, vector<256x256xf32>
    tpu.vector_store %arg8[%c0_6, %c0_7], %7 {strides = array<i32>} : memref<256x256xf32, #tpu.memory_space<vmem>>, vector<256x256xf32>,
    %c0_i32_8 = arith.constant 0 : i32
    %9 = arith.cmpi eq, %arg2, %c0_i32_8 : i32
    %10 = arith.extui %9 : i1 to i32
    %c0_i32_9 = arith.constant 0 : i32
    %11 = arith.cmpi ne, %10, %c0_i32_9 : i32
    scf.if %11 {
      %c0_10 = arith.constant 0 : index
      %c0_11 = arith.constant 0 : index
      %12 = vector.load %arg8[%c0_10, %c0_11] : memref<256x256xf32, #tpu.memory_space<vmem>>, vector<256x256xf32>
      %c0_12 = arith.constant 0 : index
      %c0_13 = arith.constant 0 : index
      %13 = vector.load %arg5[%c0_12, %c0_13] : memref<1x256xf32, #tpu.memory_space<vmem>>, vector<1x256xf32>
      %14 = vector.broadcast %13 : vector<1x256xf32> to vector<256x256xf32>
      %15 = arith.addf %12, %14 : vector<256x256xf32>
      %c0_14 = arith.constant 0 : index
      %c0_15 = arith.constant 0 : index
      %16 = vector.load %arg6[%c0_14, %c0_15] : memref<256x256xf32, #tpu.memory_space<vmem>>, vector<256x256xf32>
      %17 = arith.addf %15, %16 : vector<256x256xf32>
      %c0_16 = arith.constant 0 : index
      %c0_17 = arith.constant 0 : index
      %18 = vector.load %arg7[%c0_16, %c0_17] : memref<256x256xf32, #tpu.memory_space<vmem>>, vector<256x256xf32>
      tpu.vector_store %arg7[%c0_16, %c0_17], %17 {strides = array<i32>} : memref<256x256xf32, #tpu.memory_space<vmem>>, vector<256x256xf32>,
    } else {
    }
    return
  }
  func.func @transform_0(%arg0: i32, %arg1: i32, %arg2: i32) -> (i32, i32) {
    %c0_i32 = arith.constant 0 : i32
    return %arg0, %arg2 : i32, i32
  }
  func.func @transform_1(%arg0: i32, %arg1: i32, %arg2: i32) -> (i32, i32) {
    %c0_i32 = arith.constant 0 : i32
    return %arg2, %arg1 : i32, i32
  }
  func.func @transform_2(%arg0: i32, %arg1: i32, %arg2: i32) -> (i32, i32) {
    %c0_i32 = arith.constant 0 : i32
    %c0_i32_0 = arith.constant 0 : i32
    return %c0_i32, %arg1 : i32, i32
  }
  func.func @transform_3(%arg0: i32, %arg1: i32, %arg2: i32) -> (i32, i32) {
    %c0_i32 = arith.constant 0 : i32
    return %arg0, %arg1 : i32, i32
  }
  func.func @transform_4(%arg0: i32, %arg1: i32, %arg2: i32) -> (i32, i32) {
    %c0_i32 = arith.constant 0 : i32
    return %arg0, %arg1 : i32, i32
  }
}

module attributes {stable_mosaic.version = 11 : i64} {
  func.func @_linear_kernel(%arg0: i32, %arg1: i32, %arg2: i32, %arg3: memref<256x256xbf16, #tpu.memory_space<vmem>>, %arg4: memref<256x512xbf16, #tpu.memory_space<vmem>>, %arg5: memref<1x512xf32, #tpu.memory_space<vmem>>, %arg6: memref<256x512xbf16, #tpu.memory_space<vmem>>, %arg7: memref<256x512xf32, #tpu.memory_space<vmem>>) attributes {dimension_semantics = [#tpu.dimension_semantics<parallel>, #tpu.dimension_semantics<parallel>, #tpu.dimension_semantics<arbitrary>], iteration_bounds = array<i64: 1, 1, 1>, scalar_prefetch = 0 : i64, scratch_operands = 1 : i64, tpu.core_type = #tpu.core_type<tc>, window_params = [{transform_indices = @transform_0, window_bounds = array<i64: 256, 256>}, {transform_indices = @transform_1, window_bounds = array<i64: 256, 512>}, {transform_indices = @transform_2, window_bounds = array<i64: 1, 512>}, {transform_indices = @transform_3, window_bounds = array<i64: 256, 512>}]} {
    %c0_i32 = arith.constant 0 : i32
    %0 = arith.cmpi eq, %arg2, %c0_i32 : i32
    %1 = arith.extui %0 : i1 to i32
    %c0_i32_0 = arith.constant 0 : i32
    %2 = arith.cmpi ne, %1, %c0_i32_0 : i32
    scf.if %2 {
      %cst_10 = arith.constant 0.000000e+00 : f32
      %12 = vector.broadcast %cst_10 : f32 to vector<256x512xf32>
      %c0_11 = arith.constant 0 : index
      %c0_12 = arith.constant 0 : index
      %13 = vector.load %arg7[%c0_11, %c0_12] : memref<256x512xf32, #tpu.memory_space<vmem>>, vector<256x512xf32>
      tpu.vector_store %arg7[%c0_11, %c0_12], %12 {strides = array<i32>} : memref<256x512xf32, #tpu.memory_space<vmem>>, vector<256x512xf32>,
    } else {
    }
    %c0 = arith.constant 0 : index
    %c0_1 = arith.constant 0 : index
    %3 = vector.load %arg7[%c0, %c0_1] : memref<256x512xf32, #tpu.memory_space<vmem>>, vector<256x512xf32>
    %c0_2 = arith.constant 0 : index
    %c0_3 = arith.constant 0 : index
    %4 = vector.load %arg3[%c0_2, %c0_3] : memref<256x256xbf16, #tpu.memory_space<vmem>>, vector<256x256xbf16>
    %c0_4 = arith.constant 0 : index
    %c0_5 = arith.constant 0 : index
    %5 = vector.load %arg4[%c0_4, %c0_5] : memref<256x512xbf16, #tpu.memory_space<vmem>>, vector<256x512xbf16>
    %cst = arith.constant dense<0.000000e+00> : vector<256x512xf32>
    %6 = tpu.matmul %4, %5, %cst {dimension_numbers = #tpu.dot_dimension_numbers<[1], [0], [0], [1], [0, 0, 1, 1], [], []>} : vector<256x256xbf16>, vector<256x512xbf16>, vector<256x512xf32> -> vector<256x512xf32>
    %7 = arith.addf %3, %6 : vector<256x512xf32>
    %c0_6 = arith.constant 0 : index
    %c0_7 = arith.constant 0 : index
    %8 = vector.load %arg7[%c0_6, %c0_7] : memref<256x512xf32, #tpu.memory_space<vmem>>, vector<256x512xf32>
    tpu.vector_store %arg7[%c0_6, %c0_7], %7 {strides = array<i32>} : memref<256x512xf32, #tpu.memory_space<vmem>>, vector<256x512xf32>,
    %c0_i32_8 = arith.constant 0 : i32
    %9 = arith.cmpi eq, %arg2, %c0_i32_8 : i32
    %10 = arith.extui %9 : i1 to i32
    %c0_i32_9 = arith.constant 0 : i32
    %11 = arith.cmpi ne, %10, %c0_i32_9 : i32
    scf.if %11 {
      %c0_10 = arith.constant 0 : index
      %c0_11 = arith.constant 0 : index
      %12 = vector.load %arg7[%c0_10, %c0_11] : memref<256x512xf32, #tpu.memory_space<vmem>>, vector<256x512xf32>
      %c0_12 = arith.constant 0 : index
      %c0_13 = arith.constant 0 : index
      %13 = vector.load %arg5[%c0_12, %c0_13] : memref<1x512xf32, #tpu.memory_space<vmem>>, vector<1x512xf32>
      %14 = vector.broadcast %13 : vector<1x512xf32> to vector<256x512xf32>
      %15 = arith.addf %12, %14 : vector<256x512xf32>
      %16 = arith.mulf %15, %15 : vector<256x512xf32>
      %17 = arith.mulf %15, %16 : vector<256x512xf32>
      %cst_14 = arith.constant 4.471500e-02 : f32
      %18 = vector.broadcast %cst_14 : f32 to vector<256x512xf32>
      %19 = arith.mulf %18, %17 : vector<256x512xf32>
      %20 = arith.addf %15, %19 : vector<256x512xf32>
      %cst_15 = arith.constant 0.797884583 : f32
      %21 = vector.broadcast %cst_15 : f32 to vector<256x512xf32>
      %22 = arith.mulf %21, %20 : vector<256x512xf32>
      %23 = math.tanh %22 : vector<256x512xf32>
      %cst_16 = arith.constant 1.000000e+00 : f32
      %24 = vector.broadcast %cst_16 : f32 to vector<256x512xf32>
      %25 = arith.addf %24, %23 : vector<256x512xf32>
      %cst_17 = arith.constant 5.000000e-01 : f32
      %26 = vector.broadcast %cst_17 : f32 to vector<256x512xf32>
      %27 = arith.mulf %26, %25 : vector<256x512xf32>
      %28 = arith.mulf %15, %27 : vector<256x512xf32>
      %29 = arith.truncf %28 : vector<256x512xf32> to vector<256x512xbf16>
      %c0_18 = arith.constant 0 : index
      %c0_19 = arith.constant 0 : index
      %30 = vector.load %arg6[%c0_18, %c0_19] : memref<256x512xbf16, #tpu.memory_space<vmem>>, vector<256x512xbf16>
      tpu.vector_store %arg6[%c0_18, %c0_19], %29 {strides = array<i32>} : memref<256x512xbf16, #tpu.memory_space<vmem>>, vector<256x512xbf16>,
    } else {
    }
    return
  }
  func.func @transform_0(%arg0: i32, %arg1: i32, %arg2: i32) -> (i32, i32) {
    %c0_i32 = arith.constant 0 : i32
    return %arg0, %arg2 : i32, i32
  }
  func.func @transform_1(%arg0: i32, %arg1: i32, %arg2: i32) -> (i32, i32) {
    %c0_i32 = arith.constant 0 : i32
    return %arg2, %arg1 : i32, i32
  }
  func.func @transform_2(%arg0: i32, %arg1: i32, %arg2: i32) -> (i32, i32) {
    %c0_i32 = arith.constant 0 : i32
    %c0_i32_0 = arith.constant 0 : i32
    return %c0_i32, %arg1 : i32, i32
  }
  func.func @transform_3(%arg0: i32, %arg1: i32, %arg2: i32) -> (i32, i32) {
    %c0_i32 = arith.constant 0 : i32
    return %arg0, %arg1 : i32, i32
  }
}

module attributes {stable_mosaic.version = 11 : i64} {
  func.func @_linear_kernel(%arg0: i32, %arg1: i32, %arg2: i32, %arg3: memref<256x512xbf16, #tpu.memory_space<vmem>>, %arg4: memref<512x256xbf16, #tpu.memory_space<vmem>>, %arg5: memref<1x256xf32, #tpu.memory_space<vmem>>, %arg6: memref<256x256xf32, #tpu.memory_space<vmem>>, %arg7: memref<256x256xf32, #tpu.memory_space<vmem>>, %arg8: memref<256x256xf32, #tpu.memory_space<vmem>>) attributes {dimension_semantics = [#tpu.dimension_semantics<parallel>, #tpu.dimension_semantics<parallel>, #tpu.dimension_semantics<arbitrary>], iteration_bounds = array<i64: 1, 1, 1>, scalar_prefetch = 0 : i64, scratch_operands = 1 : i64, tpu.core_type = #tpu.core_type<tc>, window_params = [{transform_indices = @transform_0, window_bounds = array<i64: 256, 512>}, {transform_indices = @transform_1, window_bounds = array<i64: 512, 256>}, {transform_indices = @transform_2, window_bounds = array<i64: 1, 256>}, {transform_indices = @transform_3, window_bounds = array<i64: 256, 256>}, {transform_indices = @transform_4, window_bounds = array<i64: 256, 256>}]} {
    %c0_i32 = arith.constant 0 : i32
    %0 = arith.cmpi eq, %arg2, %c0_i32 : i32
    %1 = arith.extui %0 : i1 to i32
    %c0_i32_0 = arith.constant 0 : i32
    %2 = arith.cmpi ne, %1, %c0_i32_0 : i32
    scf.if %2 {
      %cst_10 = arith.constant 0.000000e+00 : f32
      %12 = vector.broadcast %cst_10 : f32 to vector<256x256xf32>
      %c0_11 = arith.constant 0 : index
      %c0_12 = arith.constant 0 : index
      %13 = vector.load %arg8[%c0_11, %c0_12] : memref<256x256xf32, #tpu.memory_space<vmem>>, vector<256x256xf32>
      tpu.vector_store %arg8[%c0_11, %c0_12], %12 {strides = array<i32>} : memref<256x256xf32, #tpu.memory_space<vmem>>, vector<256x256xf32>,
    } else {
    }
    %c0 = arith.constant 0 : index
    %c0_1 = arith.constant 0 : index
    %3 = vector.load %arg8[%c0, %c0_1] : memref<256x256xf32, #tpu.memory_space<vmem>>, vector<256x256xf32>
    %c0_2 = arith.constant 0 : index
    %c0_3 = arith.constant 0 : index
    %4 = vector.load %arg3[%c0_2, %c0_3] : memref<256x512xbf16, #tpu.memory_space<vmem>>, vector<256x512xbf16>
    %c0_4 = arith.constant 0 : index
    %c0_5 = arith.constant 0 : index
    %5 = vector.load %arg4[%c0_4, %c0_5] : memref<512x256xbf16, #tpu.memory_space<vmem>>, vector<512x256xbf16>
    %cst = arith.constant dense<0.000000e+00> : vector<256x256xf32>
    %6 = tpu.matmul %4, %5, %cst {dimension_numbers = #tpu.dot_dimension_numbers<[1], [0], [0], [1], [0, 0, 1, 1], [], []>} : vector<256x512xbf16>, vector<512x256xbf16>, vector<256x256xf32> -> vector<256x256xf32>
    %7 = arith.addf %3, %6 : vector<256x256xf32>
    %c0_6 = arith.constant 0 : index
    %c0_7 = arith.constant 0 : index
    %8 = vector.load %arg8[%c0_6, %c0_7] : memref<256x256xf32, #tpu.memory_space<vmem>>, vector<256x256xf32>
    tpu.vector_store %arg8[%c0_6, %c0_7], %7 {strides = array<i32>} : memref<256x256xf32, #tpu.memory_space<vmem>>, vector<256x256xf32>,
    %c0_i32_8 = arith.constant 0 : i32
    %9 = arith.cmpi eq, %arg2, %c0_i32_8 : i32
    %10 = arith.extui %9 : i1 to i32
    %c0_i32_9 = arith.constant 0 : i32
    %11 = arith.cmpi ne, %10, %c0_i32_9 : i32
    scf.if %11 {
      %c0_10 = arith.constant 0 : index
      %c0_11 = arith.constant 0 : index
      %12 = vector.load %arg8[%c0_10, %c0_11] : memref<256x256xf32, #tpu.memory_space<vmem>>, vector<256x256xf32>
      %c0_12 = arith.constant 0 : index
      %c0_13 = arith.constant 0 : index
      %13 = vector.load %arg5[%c0_12, %c0_13] : memref<1x256xf32, #tpu.memory_space<vmem>>, vector<1x256xf32>
      %14 = vector.broadcast %13 : vector<1x256xf32> to vector<256x256xf32>
      %15 = arith.addf %12, %14 : vector<256x256xf32>
      %c0_14 = arith.constant 0 : index
      %c0_15 = arith.constant 0 : index
      %16 = vector.load %arg6[%c0_14, %c0_15] : memref<256x256xf32, #tpu.memory_space<vmem>>, vector<256x256xf32>
      %17 = arith.addf %15, %16 : vector<256x256xf32>
      %c0_16 = arith.constant 0 : index
      %c0_17 = arith.constant 0 : index
      %18 = vector.load %arg7[%c0_16, %c0_17] : memref<256x256xf32, #tpu.memory_space<vmem>>, vector<256x256xf32>
      tpu.vector_store %arg7[%c0_16, %c0_17], %17 {strides = array<i32>} : memref<256x256xf32, #tpu.memory_space<vmem>>, vector<256x256xf32>,
    } else {
    }
    return
  }
  func.func @transform_0(%arg0: i32, %arg1: i32, %arg2: i32) -> (i32, i32) {
    %c0_i32 = arith.constant 0 : i32
    return %arg0, %arg2 : i32, i32
  }
  func.func @transform_1(%arg0: i32, %arg1: i32, %arg2: i32) -> (i32, i32) {
    %c0_i32 = arith.constant 0 : i32
    return %arg2, %arg1 : i32, i32
  }
  func.func @transform_2(%arg0: i32, %arg1: i32, %arg2: i32) -> (i32, i32) {
    %c0_i32 = arith.constant 0 : i32
    %c0_i32_0 = arith.constant 0 : i32
    return %c0_i32, %arg1 : i32, i32
  }
  func.func @transform_3(%arg0: i32, %arg1: i32, %arg2: i32) -> (i32, i32) {
    %c0_i32 = arith.constant 0 : i32
    return %arg0, %arg1 : i32, i32
  }
  func.func @transform_4(%arg0: i32, %arg1: i32, %arg2: i32) -> (i32, i32) {
    %c0_i32 = arith.constant 0 : i32
    return %arg0, %arg1 : i32, i32
  }
}

module attributes {stable_mosaic.version = 11 : i64} {
  func.func @_linear_kernel(%arg0: i32, %arg1: i32, %arg2: i32, %arg3: memref<256x256xbf16, #tpu.memory_space<vmem>>, %arg4: memref<256x128xbf16, #tpu.memory_space<vmem>>, %arg5: memref<1x128xf32, #tpu.memory_space<vmem>>, %arg6: memref<256x128xf32, #tpu.memory_space<vmem>>, %arg7: memref<256x128xf32, #tpu.memory_space<vmem>>) attributes {dimension_semantics = [#tpu.dimension_semantics<parallel>, #tpu.dimension_semantics<parallel>, #tpu.dimension_semantics<arbitrary>], iteration_bounds = array<i64: 1, 1, 1>, scalar_prefetch = 0 : i64, scratch_operands = 1 : i64, tpu.core_type = #tpu.core_type<tc>, window_params = [{transform_indices = @transform_0, window_bounds = array<i64: 256, 256>}, {transform_indices = @transform_1, window_bounds = array<i64: 256, 128>}, {transform_indices = @transform_2, window_bounds = array<i64: 1, 128>}, {transform_indices = @transform_3, window_bounds = array<i64: 256, 128>}]} {
    %c0_i32 = arith.constant 0 : i32
    %0 = arith.cmpi eq, %arg2, %c0_i32 : i32
    %1 = arith.extui %0 : i1 to i32
    %c0_i32_0 = arith.constant 0 : i32
    %2 = arith.cmpi ne, %1, %c0_i32_0 : i32
    scf.if %2 {
      %cst_10 = arith.constant 0.000000e+00 : f32
      %12 = vector.broadcast %cst_10 : f32 to vector<256x128xf32>
      %c0_11 = arith.constant 0 : index
      %c0_12 = arith.constant 0 : index
      %13 = vector.load %arg7[%c0_11, %c0_12] : memref<256x128xf32, #tpu.memory_space<vmem>>, vector<256x128xf32>
      tpu.vector_store %arg7[%c0_11, %c0_12], %12 {strides = array<i32>} : memref<256x128xf32, #tpu.memory_space<vmem>>, vector<256x128xf32>,
    } else {
    }
    %c0 = arith.constant 0 : index
    %c0_1 = arith.constant 0 : index
    %3 = vector.load %arg7[%c0, %c0_1] : memref<256x128xf32, #tpu.memory_space<vmem>>, vector<256x128xf32>
    %c0_2 = arith.constant 0 : index
    %c0_3 = arith.constant 0 : index
    %4 = vector.load %arg3[%c0_2, %c0_3] : memref<256x256xbf16, #tpu.memory_space<vmem>>, vector<256x256xbf16>
    %c0_4 = arith.constant 0 : index
    %c0_5 = arith.constant 0 : index
    %5 = vector.load %arg4[%c0_4, %c0_5] : memref<256x128xbf16, #tpu.memory_space<vmem>>, vector<256x128xbf16>
    %cst = arith.constant dense<0.000000e+00> : vector<256x128xf32>
    %6 = tpu.matmul %4, %5, %cst {dimension_numbers = #tpu.dot_dimension_numbers<[1], [0], [0], [1], [0, 0, 1, 1], [], []>} : vector<256x256xbf16>, vector<256x128xbf16>, vector<256x128xf32> -> vector<256x128xf32>
    %7 = arith.addf %3, %6 : vector<256x128xf32>
    %c0_6 = arith.constant 0 : index
    %c0_7 = arith.constant 0 : index
    %8 = vector.load %arg7[%c0_6, %c0_7] : memref<256x128xf32, #tpu.memory_space<vmem>>, vector<256x128xf32>
    tpu.vector_store %arg7[%c0_6, %c0_7], %7 {strides = array<i32>} : memref<256x128xf32, #tpu.memory_space<vmem>>, vector<256x128xf32>,
    %c0_i32_8 = arith.constant 0 : i32
    %9 = arith.cmpi eq, %arg2, %c0_i32_8 : i32
    %10 = arith.extui %9 : i1 to i32
    %c0_i32_9 = arith.constant 0 : i32
    %11 = arith.cmpi ne, %10, %c0_i32_9 : i32
    scf.if %11 {
      %c0_10 = arith.constant 0 : index
      %c0_11 = arith.constant 0 : index
      %12 = vector.load %arg7[%c0_10, %c0_11] : memref<256x128xf32, #tpu.memory_space<vmem>>, vector<256x128xf32>
      %c0_12 = arith.constant 0 : index
      %c0_13 = arith.constant 0 : index
      %13 = vector.load %arg5[%c0_12, %c0_13] : memref<1x128xf32, #tpu.memory_space<vmem>>, vector<1x128xf32>
      %14 = vector.broadcast %13 : vector<1x128xf32> to vector<256x128xf32>
      %15 = arith.addf %12, %14 : vector<256x128xf32>
      %c0_14 = arith.constant 0 : index
      %c0_15 = arith.constant 0 : index
      %16 = vector.load %arg6[%c0_14, %c0_15] : memref<256x128xf32, #tpu.memory_space<vmem>>, vector<256x128xf32>
      tpu.vector_store %arg6[%c0_14, %c0_15], %15 {strides = array<i32>} : memref<256x128xf32, #tpu.memory_space<vmem>>, vector<256x128xf32>,
    } else {
    }
    return
  }
  func.func @transform_0(%arg0: i32, %arg1: i32, %arg2: i32) -> (i32, i32) {
    %c0_i32 = arith.constant 0 : i32
    return %arg0, %arg2 : i32, i32
  }
  func.func @transform_1(%arg0: i32, %arg1: i32, %arg2: i32) -> (i32, i32) {
    %c0_i32 = arith.constant 0 : i32
    return %arg2, %arg1 : i32, i32
  }
  func.func @transform_2(%arg0: i32, %arg1: i32, %arg2: i32) -> (i32, i32) {
    %c0_i32 = arith.constant 0 : i32
    %c0_i32_0 = arith.constant 0 : i32
    return %c0_i32, %arg1 : i32, i32
  }
  func.func @transform_3(%arg0: i32, %arg1: i32, %arg2: i32) -> (i32, i32) {
    %c0_i32 = arith.constant 0 : i32
    return %arg0, %arg1 : i32, i32
  }
}

</mosaic_0001>

<bundles_post_ra>
// kernel: base_agent_forward.9
= control target key start
LH: loop header
LB: loop body
LE: loop exit
PB: predicated region body
PF: predicated region fallthrough
CT: control target
= control target key end

     0   :  { %s2137_s0 = inlined_call_operand.vmem [shape: f32[256,256], index: 0, kind: input, shape index: {}]   ;;  %s2138_s1 = inlined_call_operand.vmem [shape: f32[1,256], index: 1, kind: input, shape index: {}]   ;;  %s2139_s2 = inlined_call_operand.vmem [shape: f32[1,256], index: 2, kind: input, shape index: {}]   ;;  %s2140_s3 = inlined_call_operand.vmem [shape: bf16[256,256], index: 3, kind: output, shape index: {}]  }
   0x1   :  { %v1122_v0 = vld [vmem:[%s2137_s0] sm:$0xff]  ;;  %v1127_v1 = vld [vmem:[%s2137_s0 + $0x8] sm:$0xff]  ;;  %v1144_v5 = vld [vmem:[%s2137_s0 + $0x10] sm:$0xff] }
   0x2   :  { %v1132_v2 = vld [vmem:[%s2137_s0 + $0x20] sm:$0xff]  ;;  %v78_v3 = vadd.f32 %v1127_v1, %v1122_v0  ;;  %v1139_v4 = vld [vmem:[%s2137_s0 + $0x28] sm:$0xff]  ;;  %v1149_v6 = vld [vmem:[%s2137_s0 + $0x18] sm:$0xff] }
   0x3   :  { %v84_v7 = vadd.f32 %v1139_v4, %v1132_v2  ;;  %v1156_v8 = vld [vmem:[%s2137_s0 + $0x30] sm:$0xff]  ;;  %v1161_v9 = vld [vmem:[%s2137_s0 + $0x38] sm:$0xff]  ;;  %v81_v10 = vadd.f32 %v1149_v6, %v1144_v5  ;;  %v1170_v12 = vld [vmem:[%s2137_s0 + $0x40] sm:$0xff] }
   0x4   :  { %79 = vadd.xlane.f32.xlu0 %v78_v3  ;;  %v87_v11 = vadd.f32 %v1161_v9, %v1156_v8  ;;  %v1175_v13 = vld [vmem:[%s2137_s0 + $0x48] sm:$0xff]  ;;  %v1180_v14 = vld [vmem:[%s2137_s0 + $0x50] sm:$0xff]  ;;  %v1185_v15 = vld [vmem:[%s2137_s0 + $0x58] sm:$0xff] }
   0x5   :  { %85 = vadd.xlane.f32.xlu1 %v84_v7  ;;  %v90_v16 = vadd.f32 %v1175_v13, %v1170_v12  ;;  %v93_v17 = vadd.f32 %v1185_v15, %v1180_v14  ;;  %v1194_v18 = vld [vmem:[%s2137_s0 + $0x60] sm:$0xff]  ;;  %v1199_v19 = vld [vmem:[%s2137_s0 + $0x68] sm:$0xff]  ;;  %v1204_v20 = vld [vmem:[%s2137_s0 + $0x70] sm:$0xff] }
   0x6   :  { %v1209_v21 = vld [vmem:[%s2137_s0 + $0x78] sm:$0xff]  ;;  %v96_v22 = vadd.f32 %v1199_v19, %v1194_v18  ;;  %v1218_v24 = vld [vmem:[%s2137_s0 + $0x80] sm:$0xff]  ;;  %v1223_v25 = vld [vmem:[%s2137_s0 + $0x88] sm:$0xff] }
   0x7   :  { %v99_v23 = vadd.f32 %v1209_v21, %v1204_v20  ;;  %v1228_v26 = vld [vmem:[%s2137_s0 + $0x90] sm:$0xff]  ;;  %v1233_v27 = vld [vmem:[%s2137_s0 + $0x98] sm:$0xff]  ;;  %v102_v28 = vadd.f32 %v1223_v25, %v1218_v24  ;;  %v1242_v30 = vld [vmem:[%s2137_s0 + $0xa0] sm:$0xff] }
   0x8   :  { %82 = vadd.xlane.f32.xlu0 %v81_v10  ;;  %v105_v29 = vadd.f32 %v1233_v27, %v1228_v26  ;;  %v1247_v31 = vld [vmem:[%s2137_s0 + $0xa8] sm:$0xff]  ;;  %v1252_v32 = vld [vmem:[%s2137_s0 + $0xb0] sm:$0xff]  ;;  %v1257_v33 = vld [vmem:[%s2137_s0 + $0xb8] sm:$0xff] }
   0x9   :  { %88 = vadd.xlane.f32.xlu1 %v87_v11  ;;  %v108_v34 = vadd.f32 %v1247_v31, %v1242_v30  ;;  %v111_v35 = vadd.f32 %v1257_v33, %v1252_v32  ;;  %v1266_v36 = vld [vmem:[%s2137_s0 + $0xc0] sm:$0xff]  ;;  %v1271_v37 = vld [vmem:[%s2137_s0 + $0xc8] sm:$0xff]  ;;  %v1276_v38 = vld [vmem:[%s2137_s0 + $0xd0] sm:$0xff] }
   0xa   :  { %v1281_v39 = vld [vmem:[%s2137_s0 + $0xd8] sm:$0xff]  ;;  %v114_v40 = vadd.f32 %v1271_v37, %v1266_v36  ;;  %v1290_v42 = vld [vmem:[%s2137_s0 + $0xe0] sm:$0xff]  ;;  %v1295_v43 = vld [vmem:[%s2137_s0 + $0xe8] sm:$0xff] }
   0xb   :  { %v117_v41 = vadd.f32 %v1281_v39, %v1276_v38  ;;  %v1300_v44 = vld [vmem:[%s2137_s0 + $0xf0] sm:$0xff]  ;;  %v1305_v45 = vld [vmem:[%s2137_s0 + $0xf8] sm:$0xff]  ;;  %v120_v46 = vadd.f32 %v1295_v43, %v1290_v42  ;;  %v1314_v48 = vld [vmem:[%s2137_s0 + $0x100] sm:$0xff] }
   0xc   :  { %91 = vadd.xlane.f32.xlu0 %v90_v16  ;;  %v123_v47 = vadd.f32 %v1305_v45, %v1300_v44  ;;  %v1319_v49 = vld [vmem:[%s2137_s0 + $0x108] sm:$0xff]  ;;  %v1324_v50 = vld [vmem:[%s2137_s0 + $0x110] sm:$0xff]  ;;  %v1329_v51 = vld [vmem:[%s2137_s0 + $0x118] sm:$0xff] }
   0xd   :  { %94 = vadd.xlane.f32.xlu1 %v93_v17  ;;  %v126_v52 = vadd.f32 %v1319_v49, %v1314_v48  ;;  %v129_v53 = vadd.f32 %v1329_v51, %v1324_v50  ;;  %v1338_v54 = vld [vmem:[%s2137_s0 + $0x120] sm:$0xff]  ;;  %v1343_v55 = vld [vmem:[%s2137_s0 + $0x128] sm:$0xff]  ;;  %v1348_v56 = vld [vmem:[%s2137_s0 + $0x130] sm:$0xff] }
   0xe   :  { %v1353_v57 = vld [vmem:[%s2137_s0 + $0x138] sm:$0xff]  ;;  %v132_v58 = vadd.f32 %v1343_v55, %v1338_v54  ;;  %v1362_v60 = vld [vmem:[%s2137_s0 + $0x140] sm:$0xff]  ;;  %v1367_v61 = vld [vmem:[%s2137_s0 + $0x148] sm:$0xff] }
   0xf   :  { %v135_v59 = vadd.f32 %v1353_v57, %v1348_v56  ;;  %v1372_v62 = vld [vmem:[%s2137_s0 + $0x150] sm:$0xff]  ;;  %v1377_v63 = vld [vmem:[%s2137_s0 + $0x158] sm:$0xff]  ;;  %v138_v3 = vadd.f32 %v1367_v61, %v1362_v60  ;;  %v1386_v10 = vld [vmem:[%s2137_s0 + $0x160] sm:$0xff] }
  0x10   :  { %97 = vadd.xlane.f32.xlu0 %v96_v22  ;;  %v141_v7 = vadd.f32 %v1377_v63, %v1372_v62  ;;  %v1391_v11 = vld [vmem:[%s2137_s0 + $0x168] sm:$0xff]  ;;  %v1396_v16 = vld [vmem:[%s2137_s0 + $0x170] sm:$0xff]  ;;  %v1401_v17 = vld [vmem:[%s2137_s0 + $0x178] sm:$0xff] }
  0x11   :  { %100 = vadd.xlane.f32.xlu1 %v99_v23  ;;  %v144_v22 = vadd.f32 %v1391_v11, %v1386_v10  ;;  %v147_v23 = vadd.f32 %v1401_v17, %v1396_v16 }
  0x14   :  { %103 = vadd.xlane.f32.xlu0 %v102_v28  ;;  %v1410_v28 = vld [vmem:[%s2137_s0 + $0x180] sm:$0xff] }
  0x15   :  { %106 = vadd.xlane.f32.xlu1 %v105_v29  ;;  %v1415_v29 = vld [vmem:[%s2137_s0 + $0x188] sm:$0xff] }
  0x18   :  { %109 = vadd.xlane.f32.xlu0 %v108_v34  ;;  %v1420_v34 = vld [vmem:[%s2137_s0 + $0x190] sm:$0xff] }
  0x19   :  { %112 = vadd.xlane.f32.xlu1 %v111_v35  ;;  %2179 = vst [vmem:[#allocation2_spill] sm:$0xff] %v1420_v34  ;;  %v1425_v35 = vld [vmem:[%s2137_s0 + $0x198] sm:$0xff] }
  0x1a   :  { %2180 = vst [vmem:[#allocation3_spill] sm:$0xff] %v1425_v35 }
  0x1c   :  { %115 = vadd.xlane.f32.xlu0 %v114_v40  ;;  %v150_v40 = vadd.f32 %v1415_v29, %v1410_v28 }
  0x1d   :  { %118 = vadd.xlane.f32.xlu1 %v117_v41  ;;  %v153_v41 = vadd.f32 %v1425_v35, %v1420_v34 }
  0x20   :  { %121 = vadd.xlane.f32.xlu0 %v120_v46  ;;  %v1434_v46 = vld [vmem:[%s2137_s0 + $0x1a0] sm:$0xff] }
  0x21   :  { %124 = vadd.xlane.f32.xlu1 %v123_v47  ;;  %2181 = vst [vmem:[#allocation4_spill] sm:$0xff] %v1434_v46  ;;  %v1439_v47 = vld [vmem:[%s2137_s0 + $0x1a8] sm:$0xff] }
  0x22   :  { %2182 = vst [vmem:[#allocation5_spill] sm:$0xff] %v1439_v47 }
  0x24   :  { %127 = vadd.xlane.f32.xlu0 %v126_v52  ;;  %v1444_v52 = vld [vmem:[%s2137_s0 + $0x1b0] sm:$0xff] }
  0x25   :  { %130 = vadd.xlane.f32.xlu1 %v129_v53  ;;  %2183 = vst [vmem:[#allocation6_spill] sm:$0xff] %v1444_v52  ;;  %v1449_v53 = vld [vmem:[%s2137_s0 + $0x1b8] sm:$0xff] }
  0x26   :  { %2184 = vst [vmem:[#allocation7_spill] sm:$0xff] %v1449_v53 }
  0x28   :  { %133 = vadd.xlane.f32.xlu0 %v132_v58  ;;  %v156_v58 = vadd.f32 %v1439_v47, %v1434_v46 }
  0x29   :  { %136 = vadd.xlane.f32.xlu1 %v135_v59  ;;  %v159_v59 = vadd.f32 %v1449_v53, %v1444_v52  ;;  %v1482_v53 = vld [vmem:[%s2137_s0 + $0x1e0] sm:$0xff]  ;;  %v1487_v52 = vld [vmem:[%s2137_s0 + $0x1e8] sm:$0xff] }
  0x2a   :  { %2189 = vst [vmem:[#allocation12_spill] sm:$0xff] %v1487_v52 }
  0x2c   :  { %139 = vadd.xlane.f32.xlu0 %v138_v3  ;;  %v1458_v3 = vld [vmem:[%s2137_s0 + $0x1c0] sm:$0xff] }
  0x2d   :  { %142 = vadd.xlane.f32.xlu1 %v141_v7  ;;  %2185 = vst [vmem:[#allocation8_spill] sm:$0xff] %v1458_v3  ;;  %v1463_v7 = vld [vmem:[%s2137_s0 + $0x1c8] sm:$0xff] }
  0x2e   :  { %2186 = vst [vmem:[#allocation9_spill] sm:$0xff] %v1463_v7 }
  0x30   :  { %145 = vadd.xlane.f32.xlu0 %v144_v22  ;;  %v1468_v22 = vld [vmem:[%s2137_s0 + $0x1d0] sm:$0xff] }
  0x31   :  { %148 = vadd.xlane.f32.xlu1 %v147_v23  ;;  %2187 = vst [vmem:[#allocation10_spill] sm:$0xff] %v1468_v22  ;;  %v1473_v23 = vld [vmem:[%s2137_s0 + $0x1d8] sm:$0xff] }
  0x32   :  { %2188 = vst [vmem:[#allocation11_spill] sm:$0xff] %v1473_v23 }
  0x34   :  { %151 = vadd.xlane.f32.xlu0 %v150_v40  ;;  %v162_v40 = vadd.f32 %v1463_v7, %v1458_v3 }
  0x35   :  { %154 = vadd.xlane.f32.xlu1 %v153_v41  ;;  %v165_v41 = vadd.f32 %v1473_v23, %v1468_v22  ;;  %v168_v23 = vadd.f32 %v1487_v52, %v1482_v53 }
  0x38   :  { %157 = vadd.xlane.f32.xlu0 %v156_v58  ;;  %v1492_v58 = vld [vmem:[%s2137_s0 + $0x1f0] sm:$0xff] }
  0x39   :  { %160 = vadd.xlane.f32.xlu1 %v159_v59  ;;  %v1497_v59 = vld [vmem:[%s2137_s0 + $0x1f8] sm:$0xff] }
  0x3a   :  { %2190 = vst [vmem:[#allocation13_spill] sm:$0xff] %v1497_v59  ;;  %v171_v22 = vadd.f32 %v1497_v59, %v1492_v58 }
  0x3c   :  { %163 = vadd.xlane.f32.xlu0 %v162_v40 }
  0x3d   :  { %166 = vadd.xlane.f32.xlu1 %v165_v41 }
  0x40   :  { %169 = vadd.xlane.f32.xlu0 %v168_v23 }
  0x41   :  { %172 = vadd.xlane.f32.xlu1 %v171_v22 }
  0x8d   :  { %v80_v7 = vpop.xlane.xlu0 %79 }
  0x8e   :  { %v175_v3 = vmul.f32 0.00390625, %v80_v7  ;;  %v86_v47 = vpop.xlane.xlu1 %85 }
  0x8f   :  { %v177_v46 = vmul.f32 0.00390625, %v86_v47 }
  0x90   :  { %v1504_v35 = vsub.f32 %v1122_v0, %v175_v3  ;;  %v1507_v34 = vsub.f32 %v1127_v1, %v175_v3 }
  0x91   :  { %v1510_v40 = vsub.f32 %v1132_v2, %v177_v46  ;;  %v1513_v41 = vsub.f32 %v1139_v4, %v177_v46  ;;  %v83_v52 = vpop.xlane.xlu0 %82 }
  0x92   :  { %2191 = vst [vmem:[#allocation14_spill] sm:$0xff] %v1504_v35  ;;  %2192 = vst [vmem:[#allocation15_spill] sm:$0xff] %v1507_v34  ;;  %v176_v59 = vmul.f32 0.00390625, %v83_v52  ;;  %v89_v23 = vpop.xlane.xlu1 %88  ;;  %v271_v7 = vmul.f32 %v1504_v35, %v1504_v35  ;;  %v272_v47 = vmul.f32 %v1507_v34, %v1507_v34 }
  0x93   :  { %2193 = vst [vmem:[#allocation16_spill] sm:$0xff] %v1510_v40  ;;  %2194 = vst [vmem:[#allocation17_spill] sm:$0xff] %v1513_v41  ;;  %v178_v0 = vmul.f32 0.00390625, %v89_v23  ;;  %v275_v1 = vmul.f32 %v1510_v40, %v1510_v40  ;;  %v276_v2 = vmul.f32 %v1513_v41, %v1513_v41 }
  0x94   :  { %v1524_v3 = vsub.f32 %v1144_v5, %v176_v59  ;;  %v1527_v4 = vsub.f32 %v1149_v6, %v176_v59  ;;  %v335_v46 = vadd.f32 %v272_v47, %v271_v7 }
  0x95   :  { %v1530_v52 = vsub.f32 %v1156_v8, %v178_v0  ;;  %v1533_v22 = vsub.f32 %v1161_v9, %v178_v0  ;;  %v92_v23 = vpop.xlane.xlu0 %91  ;;  %v341_v35 = vadd.f32 %v276_v2, %v275_v1 }
  0x96   :  { %v179_v34 = vmul.f32 0.00390625, %v92_v23  ;;  %336 = vadd.xlane.f32.xlu0 %v335_v46  ;;  %v95_v40 = vpop.xlane.xlu1 %94  ;;  %v273_v41 = vmul.f32 %v1524_v3, %v1524_v3  ;;  %v274_v5 = vmul.f32 %v1527_v4, %v1527_v4 }
  0x97   :  { %v180_v6 = vmul.f32 0.00390625, %v95_v40  ;;  %v277_v59 = vmul.f32 %v1530_v52, %v1530_v52  ;;  %v278_v8 = vmul.f32 %v1533_v22, %v1533_v22 }
  0x98   :  { %v1544_v9 = vsub.f32 %v1170_v12, %v179_v34  ;;  %v1547_v7 = vsub.f32 %v1175_v13, %v179_v34  ;;  %v338_v47 = vadd.f32 %v274_v5, %v273_v41 }
  0x99   :  { %v1550_v0 = vsub.f32 %v1180_v14, %v180_v6  ;;  %v1553_v1 = vsub.f32 %v1185_v15, %v180_v6  ;;  %v98_v40 = vpop.xlane.xlu0 %97  ;;  %v344_v23 = vadd.f32 %v278_v8, %v277_v59 }
  0x9a   :  { %v181_v2 = vmul.f32 0.00390625, %v98_v40  ;;  %342 = vadd.xlane.f32.xlu0 %v341_v35  ;;  %339 = vadd.xlane.f32.xlu1 %v338_v47  ;;  %v101_v46 = vpop.xlane.xlu1 %100  ;;  %v279_v12 = vmul.f32 %v1544_v9, %v1544_v9  ;;  %v280_v13 = vmul.f32 %v1547_v7, %v1547_v7 }
  0x9b   :  { %v182_v34 = vmul.f32 0.00390625, %v101_v46  ;;  %v281_v14 = vmul.f32 %v1550_v0, %v1550_v0  ;;  %v282_v15 = vmul.f32 %v1553_v1, %v1553_v1 }
  0x9c   :  { %v1564_v41 = vsub.f32 %v1194_v18, %v181_v2  ;;  %v1567_v35 = vsub.f32 %v1199_v19, %v181_v2  ;;  %v347_v5 = vadd.f32 %v280_v13, %v279_v12 }
  0x9d   :  { %v1570_v6 = vsub.f32 %v1204_v20, %v182_v34  ;;  %v1573_v59 = vsub.f32 %v1209_v21, %v182_v34  ;;  %v104_v8 = vpop.xlane.xlu0 %103  ;;  %v350_v46 = vadd.f32 %v282_v15, %v281_v14 }
  0x9e   :  { %v183_v47 = vmul.f32 0.00390625, %v104_v8  ;;  %345 = vadd.xlane.f32.xlu1 %v344_v23  ;;  %348 = vadd.xlane.f32.xlu0 %v347_v5  ;;  %v107_v40 = vpop.xlane.xlu1 %106  ;;  %v283_v18 = vmul.f32 %v1564_v41, %v1564_v41  ;;  %v284_v19 = vmul.f32 %v1567_v35, %v1567_v35 }
  0x9f   :  { %v184_v2 = vmul.f32 0.00390625, %v107_v40  ;;  %v285_v20 = vmul.f32 %v1570_v6, %v1570_v6  ;;  %v286_v21 = vmul.f32 %v1573_v59, %v1573_v59 }
  0xa0   :  { %v1584_v12 = vsub.f32 %v1218_v24, %v183_v47  ;;  %v1587_v23 = vsub.f32 %v1223_v25, %v183_v47  ;;  %v353_v13 = vadd.f32 %v284_v19, %v283_v18 }
  0xa1   :  { %v1590_v34 = vsub.f32 %v1228_v26, %v184_v2  ;;  %v1593_v14 = vsub.f32 %v1233_v27, %v184_v2  ;;  %v110_v15 = vpop.xlane.xlu0 %109  ;;  %v356_v40 = vadd.f32 %v286_v21, %v285_v20 }
  0xa2   :  { %v185_v5 = vmul.f32 0.00390625, %v110_v15  ;;  %351 = vadd.xlane.f32.xlu1 %v350_v46  ;;  %354 = vadd.xlane.f32.xlu0 %v353_v13  ;;  %v113_v8 = vpop.xlane.xlu1 %112  ;;  %v287_v24 = vmul.f32 %v1584_v12, %v1584_v12  ;;  %v288_v25 = vmul.f32 %v1587_v23, %v1587_v23 }
  0xa3   :  { %v186_v47 = vmul.f32 0.00390625, %v113_v8  ;;  %v289_v26 = vmul.f32 %v1590_v34, %v1590_v34  ;;  %v290_v27 = vmul.f32 %v1593_v14, %v1593_v14 }
  0xa4   :  { %v1604_v18 = vsub.f32 %v1242_v30, %v185_v5  ;;  %v1607_v46 = vsub.f32 %v1247_v31, %v185_v5  ;;  %v359_v19 = vadd.f32 %v288_v25, %v287_v24 }
  0xa5   :  { %v1610_v2 = vsub.f32 %v1252_v32, %v186_v47  ;;  %v1613_v20 = vsub.f32 %v1257_v33, %v186_v47  ;;  %v116_v21 = vpop.xlane.xlu0 %115  ;;  %v362_v8 = vadd.f32 %v290_v27, %v289_v26 }
  0xa6   :  { %v187_v13 = vmul.f32 0.00390625, %v116_v21  ;;  %357 = vadd.xlane.f32.xlu1 %v356_v40  ;;  %360 = vadd.xlane.f32.xlu0 %v359_v19  ;;  %v119_v15 = vpop.xlane.xlu1 %118  ;;  %v291_v30 = vmul.f32 %v1604_v18, %v1604_v18  ;;  %v292_v31 = vmul.f32 %v1607_v46, %v1607_v46 }
  0xa7   :  { %v188_v5 = vmul.f32 0.00390625, %v119_v15  ;;  %v293_v32 = vmul.f32 %v1610_v2, %v1610_v2  ;;  %v294_v33 = vmul.f32 %v1613_v20, %v1613_v20 }
  0xa8   :  { %v1624_v24 = vsub.f32 %v1266_v36, %v187_v13  ;;  %v1627_v40 = vsub.f32 %v1271_v37, %v187_v13  ;;  %v365_v25 = vadd.f32 %v292_v31, %v291_v30 }
  0xa9   :  { %v1630_v47 = vsub.f32 %v1276_v38, %v188_v5  ;;  %v1633_v26 = vsub.f32 %v1281_v39, %v188_v5  ;;  %v122_v27 = vpop.xlane.xlu0 %121  ;;  %v368_v15 = vadd.f32 %v294_v33, %v293_v32 }
  0xaa   :  { %v189_v19 = vmul.f32 0.00390625, %v122_v27  ;;  %363 = vadd.xlane.f32.xlu1 %v362_v8  ;;  %366 = vadd.xlane.f32.xlu0 %v365_v25  ;;  %v125_v21 = vpop.xlane.xlu1 %124  ;;  %v295_v36 = vmul.f32 %v1624_v24, %v1624_v24  ;;  %v296_v37 = vmul.f32 %v1627_v40, %v1627_v40 }
  0xab   :  { %v190_v13 = vmul.f32 0.00390625, %v125_v21  ;;  %v297_v38 = vmul.f32 %v1630_v47, %v1630_v47  ;;  %v298_v39 = vmul.f32 %v1633_v26, %v1633_v26 }
  0xac   :  { %v1644_v30 = vsub.f32 %v1290_v42, %v189_v19  ;;  %v1647_v8 = vsub.f32 %v1295_v43, %v189_v19  ;;  %v371_v31 = vadd.f32 %v296_v37, %v295_v36 }
  0xad   :  { %v1650_v5 = vsub.f32 %v1300_v44, %v190_v13  ;;  %v1653_v32 = vsub.f32 %v1305_v45, %v190_v13  ;;  %v128_v33 = vpop.xlane.xlu0 %127  ;;  %v374_v21 = vadd.f32 %v298_v39, %v297_v38 }
  0xae   :  { %v191_v25 = vmul.f32 0.00390625, %v128_v33  ;;  %369 = vadd.xlane.f32.xlu1 %v368_v15  ;;  %372 = vadd.xlane.f32.xlu0 %v371_v31  ;;  %v131_v27 = vpop.xlane.xlu1 %130  ;;  %v299_v42 = vmul.f32 %v1644_v30, %v1644_v30  ;;  %v300_v43 = vmul.f32 %v1647_v8, %v1647_v8 }
  0xaf   :  { %v192_v19 = vmul.f32 0.00390625, %v131_v27  ;;  %v301_v44 = vmul.f32 %v1650_v5, %v1650_v5  ;;  %v302_v45 = vmul.f32 %v1653_v32, %v1653_v32 }
  0xb0   :  { %v1664_v36 = vsub.f32 %v1314_v48, %v191_v25  ;;  %v1667_v15 = vsub.f32 %v1319_v49, %v191_v25  ;;  %v377_v37 = vadd.f32 %v300_v43, %v299_v42 }
  0xb1   :  { %v1670_v13 = vsub.f32 %v1324_v50, %v192_v19  ;;  %v1673_v38 = vsub.f32 %v1329_v51, %v192_v19  ;;  %v134_v39 = vpop.xlane.xlu0 %133  ;;  %v380_v27 = vadd.f32 %v302_v45, %v301_v44 }
  0xb2   :  { %v193_v31 = vmul.f32 0.00390625, %v134_v39  ;;  %375 = vadd.xlane.f32.xlu1 %v374_v21  ;;  %378 = vadd.xlane.f32.xlu0 %v377_v37  ;;  %v137_v33 = vpop.xlane.xlu1 %136  ;;  %v303_v48 = vmul.f32 %v1664_v36, %v1664_v36  ;;  %v304_v49 = vmul.f32 %v1667_v15, %v1667_v15 }
  0xb3   :  { %v194_v25 = vmul.f32 0.00390625, %v137_v33  ;;  %v305_v50 = vmul.f32 %v1670_v13, %v1670_v13  ;;  %v306_v51 = vmul.f32 %v1673_v38, %v1673_v38 }
  0xb4   :  { %v1684_v42 = vsub.f32 %v1338_v54, %v193_v31  ;;  %v1687_v21 = vsub.f32 %v1343_v55, %v193_v31  ;;  %v383_v43 = vadd.f32 %v304_v49, %v303_v48 }
  0xb5   :  { %v1690_v19 = vsub.f32 %v1348_v56, %v194_v25  ;;  %v1693_v44 = vsub.f32 %v1353_v57, %v194_v25  ;;  %v140_v45 = vpop.xlane.xlu0 %139  ;;  %v386_v33 = vadd.f32 %v306_v51, %v305_v50 }
  0xb6   :  { %v195_v37 = vmul.f32 0.00390625, %v140_v45  ;;  %381 = vadd.xlane.f32.xlu1 %v380_v27  ;;  %384 = vadd.xlane.f32.xlu0 %v383_v43  ;;  %v143_v39 = vpop.xlane.xlu1 %142  ;;  %v307_v54 = vmul.f32 %v1684_v42, %v1684_v42  ;;  %v308_v55 = vmul.f32 %v1687_v21, %v1687_v21 }
  0xb7   :  { %v196_v31 = vmul.f32 0.00390625, %v143_v39  ;;  %v309_v56 = vmul.f32 %v1690_v19, %v1690_v19  ;;  %v310_v57 = vmul.f32 %v1693_v44, %v1693_v44 }
  0xb8   :  { %v1704_v48 = vsub.f32 %v1362_v60, %v195_v37  ;;  %v1707_v27 = vsub.f32 %v1367_v61, %v195_v37  ;;  %v389_v49 = vadd.f32 %v308_v55, %v307_v54 }
  0xb9   :  { %v1710_v25 = vsub.f32 %v1372_v62, %v196_v31  ;;  %v1713_v50 = vsub.f32 %v1377_v63, %v196_v31  ;;  %v146_v51 = vpop.xlane.xlu0 %145  ;;  %v392_v39 = vadd.f32 %v310_v57, %v309_v56 }
  0xba   :  { %v197_v43 = vmul.f32 0.00390625, %v146_v51  ;;  %387 = vadd.xlane.f32.xlu1 %v386_v33  ;;  %390 = vadd.xlane.f32.xlu0 %v389_v49  ;;  %v149_v45 = vpop.xlane.xlu1 %148  ;;  %v311_v60 = vmul.f32 %v1704_v48, %v1704_v48  ;;  %v312_v61 = vmul.f32 %v1707_v27, %v1707_v27 }
  0xbb   :  { %2195 = vst [vmem:[#allocation18_spill] sm:$0xff] %v1710_v25  ;;  %2196 = vst [vmem:[#allocation19_spill] sm:$0xff] %v1713_v50  ;;  %v198_v37 = vmul.f32 0.00390625, %v149_v45  ;;  %v313_v62 = vmul.f32 %v1710_v25, %v1710_v25  ;;  %v314_v63 = vmul.f32 %v1713_v50, %v1713_v50 }
  0xbc   :  { %v1724_v54 = vsub.f32 %v1386_v10, %v197_v43  ;;  %v1727_v33 = vsub.f32 %v1391_v11, %v197_v43  ;;  %v395_v55 = vadd.f32 %v312_v61, %v311_v60 }
  0xbd   :  { %v1730_v31 = vsub.f32 %v1396_v16, %v198_v37  ;;  %v1733_v56 = vsub.f32 %v1401_v17, %v198_v37  ;;  %v152_v57 = vpop.xlane.xlu0 %151  ;;  %v398_v45 = vadd.f32 %v314_v63, %v313_v62  ;;  %v2203_v37 = vld [vmem:[#allocation2_spill] sm:$0xff]  ;;  %v2205_v63 = vld [vmem:[#allocation3_spill] sm:$0xff] }
  0xbe   :  { %2197 = vst [vmem:[#allocation20_spill] sm:$0xff] %v1724_v54  ;;  %2198 = vst [vmem:[#allocation21_spill] sm:$0xff] %v1727_v33  ;;  %v199_v49 = vmul.f32 0.00390625, %v152_v57  ;;  %393 = vadd.xlane.f32.xlu1 %v392_v39  ;;  %396 = vadd.xlane.f32.xlu0 %v395_v55  ;;  %v155_v51 = vpop.xlane.xlu1 %154  ;;  %v315_v10 = vmul.f32 %v1724_v54, %v1724_v54  ;;  %v316_v11 = vmul.f32 %v1727_v33, %v1727_v33 }
  0xbf   :  { %2199 = vst [vmem:[#allocation22_spill] sm:$0xff] %v1730_v31  ;;  %2200 = vst [vmem:[#allocation23_spill] sm:$0xff] %v1733_v56  ;;  %v200_v43 = vmul.f32 0.00390625, %v155_v51  ;;  %v317_v16 = vmul.f32 %v1730_v31, %v1730_v31  ;;  %v318_v17 = vmul.f32 %v1733_v56, %v1733_v56 }
  0xc0   :  { %v1744_v60 = vsub.f32 %v1410_v28, %v199_v49  ;;  %v1747_v39 = vsub.f32 %v1415_v29, %v199_v49  ;;  %v401_v61 = vadd.f32 %v316_v11, %v315_v10 }
  0xc1   :  { %v1750_v62 = vsub.f32 %v2203_v37, %v200_v43  ;;  %v1753_v55 = vsub.f32 %v2205_v63, %v200_v43  ;;  %v158_v57 = vpop.xlane.xlu0 %157  ;;  %v404_v33 = vadd.f32 %v318_v17, %v317_v16  ;;  %v2207_v43 = vld [vmem:[#allocation4_spill] sm:$0xff]  ;;  %v2211_v17 = vld [vmem:[#allocation6_spill] sm:$0xff] }
  0xc2   :  { %2201 = vst [vmem:[#allocation24_spill] sm:$0xff] %v1744_v60  ;;  %2202 = vst [vmem:[#allocation25_spill] sm:$0xff] %v1747_v39  ;;  %v201_v51 = vmul.f32 0.00390625, %v158_v57  ;;  %399 = vadd.xlane.f32.xlu1 %v398_v45  ;;  %402 = vadd.xlane.f32.xlu0 %v401_v61  ;;  %v161_v31 = vpop.xlane.xlu1 %160  ;;  %v319_v28 = vmul.f32 %v1744_v60, %v1744_v60  ;;  %v320_v29 = vmul.f32 %v1747_v39, %v1747_v39  ;;  %v2209_v45 = vld [vmem:[#allocation5_spill] sm:$0xff]  ;;  %v2213_v57 = vld [vmem:[#allocation7_spill] sm:$0xff] }
  0xc3   :  { %2204 = vst [vmem:[#allocation2_spill] sm:$0xff] %v1750_v62  ;;  %2206 = vst [vmem:[#allocation3_spill] sm:$0xff] %v1753_v55  ;;  %v202_v49 = vmul.f32 0.00390625, %v161_v31  ;;  %v321_v10 = vmul.f32 %v1750_v62, %v1750_v62  ;;  %v322_v11 = vmul.f32 %v1753_v55, %v1753_v55 }
  0xc4   :  { %v1764_v37 = vsub.f32 %v2207_v43, %v201_v51  ;;  %v1767_v61 = vsub.f32 %v2209_v45, %v201_v51  ;;  %v407_v16 = vadd.f32 %v320_v29, %v319_v28 }
  0xc5   :  { %v1770_v63 = vsub.f32 %v2211_v17, %v202_v49  ;;  %v1773_v60 = vsub.f32 %v2213_v57, %v202_v49  ;;  %v164_v31 = vpop.xlane.xlu0 %163  ;;  %v410_v56 = vadd.f32 %v322_v11, %v321_v10  ;;  %v2215_v49 = vld [vmem:[#allocation8_spill] sm:$0xff]  ;;  %v2219_v11 = vld [vmem:[#allocation10_spill] sm:$0xff] }
  0xc6   :  { %2208 = vst [vmem:[#allocation4_spill] sm:$0xff] %v1764_v37  ;;  %2210 = vst [vmem:[#allocation5_spill] sm:$0xff] %v1767_v61  ;;  %v203_v39 = vmul.f32 0.00390625, %v164_v31  ;;  %405 = vadd.xlane.f32.xlu1 %v404_v33  ;;  %408 = vadd.xlane.f32.xlu0 %v407_v16  ;;  %v167_v62 = vpop.xlane.xlu1 %166  ;;  %v323_v43 = vmul.f32 %v1764_v37, %v1764_v37  ;;  %v324_v51 = vmul.f32 %v1767_v61, %v1767_v61  ;;  %v2217_v33 = vld [vmem:[#allocation9_spill] sm:$0xff]  ;;  %v2221_v31 = vld [vmem:[#allocation11_spill] sm:$0xff] }
  0xc7   :  { %2212 = vst [vmem:[#allocation6_spill] sm:$0xff] %v1770_v63  ;;  %2214 = vst [vmem:[#allocation7_spill] sm:$0xff] %v1773_v60  ;;  %v204_v45 = vmul.f32 0.00390625, %v167_v62  ;;  %v325_v28 = vmul.f32 %v1770_v63, %v1770_v63  ;;  %v326_v29 = vmul.f32 %v1773_v60, %v1773_v60 }
  0xc8   :  { %v1784_v17 = vsub.f32 %v2215_v49, %v203_v39  ;;  %v1787_v16 = vsub.f32 %v2217_v33, %v203_v39  ;;  %v413_v10 = vadd.f32 %v324_v51, %v323_v43 }
  0xc9   :  { %v1790_v57 = vsub.f32 %v2219_v11, %v204_v45  ;;  %v1793_v37 = vsub.f32 %v2221_v31, %v204_v45  ;;  %v170_v62 = vpop.xlane.xlu0 %169  ;;  %v416_v55 = vadd.f32 %v326_v29, %v325_v28  ;;  %v2227_v11 = vld [vmem:[#allocation13_spill] sm:$0xff] }
  0xca   :  { %2216 = vst [vmem:[#allocation8_spill] sm:$0xff] %v1784_v17  ;;  %2218 = vst [vmem:[#allocation9_spill] sm:$0xff] %v1787_v16  ;;  %v205_v61 = vmul.f32 0.00390625, %v170_v62  ;;  %411 = vadd.xlane.f32.xlu1 %v410_v56  ;;  %414 = vadd.xlane.f32.xlu0 %v413_v10  ;;  %v173_v63 = vpop.xlane.xlu1 %172  ;;  %v327_v49 = vmul.f32 %v1784_v17, %v1784_v17  ;;  %v328_v39 = vmul.f32 %v1787_v16, %v1787_v16  ;;  %v2224_v56 = vld [vmem:[#allocation12_spill] sm:$0xff] }
  0xcb   :  { %2220 = vst [vmem:[#allocation10_spill] sm:$0xff] %v1790_v57  ;;  %2222 = vst [vmem:[#allocation11_spill] sm:$0xff] %v1793_v37  ;;  %v206_v33 = vmul.f32 0.00390625, %v173_v63  ;;  %v329_v43 = vmul.f32 %v1790_v57, %v1790_v57  ;;  %v330_v51 = vmul.f32 %v1793_v37, %v1793_v37 }
  0xcc   :  { %v1804_v45 = vsub.f32 %v1482_v53, %v205_v61  ;;  %v1807_v10 = vsub.f32 %v2224_v56, %v205_v61  ;;  %v419_v28 = vadd.f32 %v328_v39, %v327_v49 }
  0xcd   :  { %v1810_v29 = vsub.f32 %v1492_v58, %v206_v33  ;;  %v1813_v31 = vsub.f32 %v2227_v11, %v206_v33  ;;  %v422_v63 = vadd.f32 %v330_v51, %v329_v43  ;;  %v593_v51 = vlaneseq }
  0xce   :  { %2223 = vst [vmem:[#allocation26_spill] sm:$0xff] %v1804_v45  ;;  %2225 = vst [vmem:[#allocation12_spill] sm:$0xff] %v1807_v10  ;;  %417 = vadd.xlane.f32.xlu1 %v416_v55  ;;  %420 = vadd.xlane.f32.xlu0 %v419_v28  ;;  %v331_v62 = vmul.f32 %v1804_v45, %v1804_v45  ;;  %v332_v53 = vmul.f32 %v1807_v10, %v1807_v10 }
  0xcf   :  { %2226 = vst [vmem:[#allocation27_spill] sm:$0xff] %v1810_v29  ;;  %2228 = vst [vmem:[#allocation13_spill] sm:$0xff] %v1813_v31  ;;  %v333_v61 = vmul.f32 %v1810_v29, %v1810_v29  ;;  %v334_v49 = vmul.f32 %v1813_v31, %v1813_v31  ;;  %v594_v29 = vshrl.u32 %v593_v51, 7 }
  0xd0   :  { %v425_v58 = vadd.f32 %v332_v53, %v331_v62 }
  0xd1   :  { %v428_v39 = vadd.f32 %v334_v49, %v333_v61  ;;  %v595_v49 = vsub.s32 0, %v594_v29 }
  0xd2   :  { %423 = vadd.xlane.f32.xlu1 %v422_v63  ;;  %426 = vadd.xlane.f32.xlu0 %v425_v58 }
  0xd6   :  { %429 = vadd.xlane.f32.xlu1 %v428_v39 }
 0x11f   :  { %v337_v55 = vpop.xlane.xlu0 %336 }
 0x120   :  { %v431_v33 = vmul.f32 0.00390625, %v337_v55  ;;  %v591_v55 = vld [vmem:[%s2138_s1] sm:$0x3] }
 0x122   :  { %v463_v43 = vadd.f32 1e-05, %v431_v33  ;;  %v599_v33 = vsub.s32 1, %v594_v29 }
 0x123   :  { %v340_v56 = vpop.xlane.xlu1 %339  ;;  %v343_v28 = vpop.xlane.xlu0 %342 }
 0x124   :  { %1035 = vrsqrt.f32 %v463_v43  ;;  %v432_v11 = vmul.f32 0.00390625, %v340_v56  ;;  %v433_v10 = vmul.f32 0.00390625, %v343_v28  ;;  %v1831_v28 = vrot.slane %v591_v55, %v599_v33 }
 0x126   :  { %v464_v45 = vadd.f32 1e-05, %v432_v11  ;;  %v465_v37 = vadd.f32 1e-05, %v433_v10 }
 0x127   :  { %v346_v57 = vpop.xlane.xlu1 %345  ;;  %v349_v16 = vpop.xlane.xlu0 %348 }
 0x128   :  { %1037 = vrsqrt.f32 %v464_v45  ;;  %v434_v62 = vmul.f32 0.00390625, %v346_v57  ;;  %v435_v63 = vmul.f32 0.00390625, %v349_v16  ;;  %v667_v57 = vld [vmem:[%s2139_s2] sm:$0x3]  ;;  %v1829_v45 = vrot.slane %v591_v55, %v595_v49 }
 0x129   :  { %1039 = vrsqrt.f32 %v465_v37 }
 0x12a   :  { %v466_v53 = vadd.f32 1e-05, %v434_v62  ;;  %v467_v61 = vadd.f32 1e-05, %v435_v63  ;;  %v1833_v63 = vrot.slane %v667_v57, %v595_v49 }
 0x12b   :  { %v352_v58 = vpop.xlane.xlu1 %351  ;;  %v355_v39 = vpop.xlane.xlu0 %354 }
 0x12c   :  { %1041 = vrsqrt.f32 %v466_v53  ;;  %v436_v43 = vmul.f32 0.00390625, %v352_v58  ;;  %v437_v10 = vmul.f32 0.00390625, %v355_v39  ;;  %v1835_v53 = vrot.slane %v667_v57, %v599_v33  ;;  %v2230_v39 = vld [vmem:[#allocation15_spill] sm:$0xff] }
 0x12d   :  { %1043 = vrsqrt.f32 %v467_v61  ;;  %v2229_v61 = vld [vmem:[#allocation14_spill] sm:$0xff] }
 0x12e   :  { %v468_v16 = vadd.f32 1e-05, %v436_v43  ;;  %v469_v37 = vadd.f32 1e-05, %v437_v10 }
 0x12f   :  { %v358_v51 = vpop.xlane.xlu1 %357  ;;  %v361_v56 = vpop.xlane.xlu0 %360 }
 0x130   :  { %1045 = vrsqrt.f32 %v468_v16  ;;  %v438_v11 = vmul.f32 0.00390625, %v358_v51  ;;  %v439_v62 = vmul.f32 0.00390625, %v361_v56 }
 0x131   :  { %v1036_v29 = vpop.eup %1035  ;;  %1047 = vrsqrt.f32 %v469_v37 }
 0x132   :  { %v527_v58 = vmul.f32 %v1036_v29, %v2229_v61  ;;  %v528_v43 = vmul.f32 %v1036_v29, %v2230_v39  ;;  %v470_v10 = vadd.f32 1e-05, %v438_v11  ;;  %v471_v31 = vadd.f32 1e-05, %v439_v62  ;;  %v2231_v62 = vld [vmem:[#allocation16_spill] sm:$0xff]  ;;  %v2232_v39 = vld [vmem:[#allocation17_spill] sm:$0xff] }
 0x133   :  { %v364_v17 = vpop.xlane.xlu1 %363  ;;  %v367_v60 = vpop.xlane.xlu0 %366 }
 0x134   :  { %v603_v55 = vmul.f32 %v1829_v45, %v527_v58  ;;  %v604_v16 = vmul.f32 %v1831_v28, %v528_v43  ;;  %1049 = vrsqrt.f32 %v470_v10  ;;  %v440_v51 = vmul.f32 0.00390625, %v364_v17 }
 0x135   :  { %v1038_v56 = vpop.eup %1037  ;;  %1051 = vrsqrt.f32 %v471_v31  ;;  %v441_v49 = vmul.f32 0.00390625, %v367_v60 }
 0x136   :  { %v1040_v33 = vpop.eup %1039  ;;  %v679_v57 = vadd.f32 %v1833_v63, %v603_v55  ;;  %v680_v37 = vadd.f32 %v1835_v53, %v604_v16  ;;  %v529_v29 = vmul.f32 %v1038_v56, %v1524_v3  ;;  %v530_v11 = vmul.f32 %v1038_v56, %v1527_v4 }
 0x137   :  { %v531_v61 = vmul.f32 %v1040_v33, %v2231_v62  ;;  %v532_v58 = vmul.f32 %v1040_v33, %v2232_v39  ;;  %v472_v54 = vadd.f32 1e-05, %v440_v51  ;;  %v473_v43 = vadd.f32 1e-05, %v441_v49  ;;  %v370_v10 = vpop.xlane.xlu1 %369  ;;  %v373_v17 = vpop.xlane.xlu0 %372 }
 0x138   :  { %v1003_v50 = vpack.c.bf16 %v680_v37, %v679_v57  ;;  %v605_v60 = vmul.f32 %v1829_v45, %v529_v29  ;;  %v606_v31 = vmul.f32 %v1831_v28, %v530_v11  ;;  %v442_v55 = vmul.f32 0.00390625, %v370_v10 }
 0x139   :  { %v1042_v25 = vpop.eup %1041  ;;  %v607_v16 = vmul.f32 %v1829_v45, %v531_v61  ;;  %v608_v3 = vmul.f32 %v1831_v28, %v532_v58  ;;  %1053 = vrsqrt.f32 %v472_v54  ;;  %v443_v4 = vmul.f32 0.00390625, %v373_v17 }
 0x13a   :  { %v1044_v56 = vpop.eup %1043  ;;  %935 = vst [vmem:[%s2140_s3] sm:$0xff] %v1003_v50  ;;  %v681_v51 = vadd.f32 %v1833_v63, %v605_v60  ;;  %v682_v49 = vadd.f32 %v1835_v53, %v606_v31  ;;  %v533_v33 = vmul.f32 %v1042_v25, %v1530_v52  ;;  %v534_v57 = vmul.f32 %v1042_v25, %v1533_v22 }
 0x13b   :  { %v683_v37 = vadd.f32 %v1833_v63, %v607_v16  ;;  %v684_v29 = vadd.f32 %v1835_v53, %v608_v3  ;;  %v535_v54 = vmul.f32 %v1044_v56, %v1544_v9  ;;  %v536_v11 = vmul.f32 %v1044_v56, %v1547_v7  ;;  %v376_v62 = vpop.xlane.xlu1 %375  ;;  %v379_v61 = vpop.xlane.xlu0 %378 }
 0x13c   :  { %v1004_v39 = vpack.c.bf16 %v682_v49, %v681_v51  ;;  %v609_v50 = vmul.f32 %v1829_v45, %v533_v33  ;;  %v610_v58 = vmul.f32 %v1831_v28, %v534_v57  ;;  %1055 = vrsqrt.f32 %v473_v43 }
 0x13d   :  { %v1046_v10 = vpop.eup %1045  ;;  %v1005_v52 = vpack.c.bf16 %v684_v29, %v683_v37  ;;  %v611_v22 = vmul.f32 %v1829_v45, %v535_v54  ;;  %v612_v25 = vmul.f32 %v1831_v28, %v536_v11  ;;  %v474_v17 = vadd.f32 1e-05, %v442_v55 }
 0x13e   :  { %v1048_v60 = vpop.eup %1047  ;;  %936 = vst [vmem:[%s2140_s3 + $0x8] sm:$0xff] %v1004_v39  ;;  %v685_v9 = vadd.f32 %v1833_v63, %v609_v50  ;;  %v686_v7 = vadd.f32 %v1835_v53, %v610_v58  ;;  %v537_v31 = vmul.f32 %v1046_v10, %v1550_v0  ;;  %v538_v43 = vmul.f32 %v1046_v10, %v1553_v1 }
 0x13f   :  { %937 = vst [vmem:[%s2140_s3 + $0x10] sm:$0xff] %v1005_v52  ;;  %v687_v16 = vadd.f32 %v1833_v63, %v611_v22  ;;  %v688_v55 = vadd.f32 %v1835_v53, %v612_v25  ;;  %v539_v3 = vmul.f32 %v1048_v60, %v1564_v41  ;;  %v540_v56 = vmul.f32 %v1048_v60, %v1567_v35  ;;  %v382_v51 = vpop.xlane.xlu1 %381  ;;  %v385_v49 = vpop.xlane.xlu0 %384 }
 0x140   :  { %v1006_v33 = vpack.c.bf16 %v686_v7, %v685_v9  ;;  %v613_v57 = vmul.f32 %v1829_v45, %v537_v31  ;;  %v614_v0 = vmul.f32 %v1831_v28, %v538_v43  ;;  %1057 = vrsqrt.f32 %v474_v17 }
 0x141   :  { %v1050_v1 = vpop.eup %1049  ;;  %v1007_v37 = vpack.c.bf16 %v688_v55, %v687_v16  ;;  %v615_v29 = vmul.f32 %v1829_v45, %v539_v3  ;;  %v616_v54 = vmul.f32 %v1831_v28, %v540_v56  ;;  %v475_v11 = vadd.f32 1e-05, %v443_v4 }
 0x142   :  { %v1052_v39 = vpop.eup %1051  ;;  %938 = vst [vmem:[%s2140_s3 + $0x18] sm:$0xff] %v1006_v33  ;;  %v689_v41 = vadd.f32 %v1833_v63, %v613_v57  ;;  %v690_v35 = vadd.f32 %v1835_v53, %v614_v0  ;;  %v541_v50 = vmul.f32 %v1050_v1, %v1570_v6  ;;  %v542_v58 = vmul.f32 %v1050_v1, %v1573_v59 }
 0x143   :  { %939 = vst [vmem:[%s2140_s3 + $0x20] sm:$0xff] %v1007_v37  ;;  %v691_v10 = vadd.f32 %v1833_v63, %v615_v29  ;;  %v692_v4 = vadd.f32 %v1835_v53, %v616_v54  ;;  %v543_v52 = vmul.f32 %v1052_v39, %v1584_v12  ;;  %v544_v22 = vmul.f32 %v1052_v39, %v1587_v23  ;;  %v388_v25 = vpop.xlane.xlu1 %387  ;;  %v391_v17 = vpop.xlane.xlu0 %390 }
 0x144   :  { %v1008_v60 = vpack.c.bf16 %v690_v35, %v689_v41  ;;  %v617_v9 = vmul.f32 %v1829_v45, %v541_v50  ;;  %v618_v6 = vmul.f32 %v1831_v28, %v542_v58  ;;  %1059 = vrsqrt.f32 %v475_v11 }
 0x145   :  { %v1009_v59 = vpack.c.bf16 %v692_v4, %v691_v10  ;;  %v619_v7 = vmul.f32 %v1829_v45, %v543_v52  ;;  %v620_v31 = vmul.f32 %v1831_v28, %v544_v22  ;;  %v444_v43 = vmul.f32 0.00390625, %v376_v62 }
 0x146   :  { %v1054_v16 = vpop.eup %1053  ;;  %940 = vst [vmem:[%s2140_s3 + $0x28] sm:$0xff] %v1008_v60  ;;  %v693_v12 = vadd.f32 %v1833_v63, %v617_v9  ;;  %v694_v23 = vadd.f32 %v1835_v53, %v618_v6  ;;  %v445_v55 = vmul.f32 0.00390625, %v379_v61  ;;  %v446_v3 = vmul.f32 0.00390625, %v382_v51 }
 0x147   :  { %941 = vst [vmem:[%s2140_s3 + $0x30] sm:$0xff] %v1009_v59  ;;  %v695_v56 = vadd.f32 %v1833_v63, %v619_v7  ;;  %v696_v33 = vadd.f32 %v1835_v53, %v620_v31  ;;  %v545_v62 = vmul.f32 %v1054_v16, %v1590_v34  ;;  %v546_v57 = vmul.f32 %v1054_v16, %v1593_v14  ;;  %v394_v0 = vpop.xlane.xlu1 %393  ;;  %v397_v1 = vpop.xlane.xlu0 %396 }
 0x148   :  { %v1010_v37 = vpack.c.bf16 %v694_v23, %v693_v12  ;;  %v476_v29 = vadd.f32 1e-05, %v444_v43  ;;  %v477_v54 = vadd.f32 1e-05, %v445_v55  ;;  %v478_v11 = vadd.f32 1e-05, %v446_v3 }
 0x149   :  { %v1056_v61 = vpop.eup %1055  ;;  %v1011_v51 = vpack.c.bf16 %v696_v33, %v695_v56  ;;  %v621_v39 = vmul.f32 %v1829_v45, %v545_v62  ;;  %v622_v41 = vmul.f32 %v1831_v28, %v546_v57  ;;  %v447_v35 = vmul.f32 0.00390625, %v385_v49 }
 0x14a   :  { %942 = vst [vmem:[%s2140_s3 + $0x38] sm:$0xff] %v1010_v37  ;;  %v547_v34 = vmul.f32 %v1056_v61, %v1604_v18  ;;  %v548_v14 = vmul.f32 %v1056_v61, %v1607_v46  ;;  %1061 = vrsqrt.f32 %v476_v29  ;;  %v448_v50 = vmul.f32 0.00390625, %v388_v25 }
 0x14b   :  { %943 = vst [vmem:[%s2140_s3 + $0x40] sm:$0xff] %v1011_v51  ;;  %v697_v58 = vadd.f32 %v1833_v63, %v621_v39  ;;  %v698_v10 = vadd.f32 %v1835_v53, %v622_v41  ;;  %1063 = vrsqrt.f32 %v477_v54  ;;  %v479_v49 = vadd.f32 1e-05, %v447_v35  ;;  %v400_v4 = vpop.xlane.xlu1 %399  ;;  %v403_v52 = vpop.xlane.xlu0 %402 }
 0x14c   :  { %v623_v22 = vmul.f32 %v1829_v45, %v547_v34  ;;  %v624_v18 = vmul.f32 %v1831_v28, %v548_v14  ;;  %1065 = vrsqrt.f32 %v478_v11  ;;  %v480_v46 = vadd.f32 1e-05, %v448_v50 }
 0x14d   :  { %v1058_v60 = vpop.eup %1057  ;;  %v1012_v25 = vpack.c.bf16 %v698_v10, %v697_v58  ;;  %1067 = vrsqrt.f32 %v479_v49  ;;  %v449_v9 = vmul.f32 0.00390625, %v391_v17  ;;  %v450_v6 = vmul.f32 0.00390625, %v394_v0 }
 0x14e   :  { %v699_v59 = vadd.f32 %v1833_v63, %v623_v22  ;;  %v700_v7 = vadd.f32 %v1835_v53, %v624_v18  ;;  %v549_v31 = vmul.f32 %v1058_v60, %v1610_v2  ;;  %v550_v43 = vmul.f32 %v1058_v60, %v1613_v20 }
 0x14f   :  { %944 = vst [vmem:[%s2140_s3 + $0x48] sm:$0xff] %v1012_v25  ;;  %1069 = vrsqrt.f32 %v480_v46  ;;  %v481_v16 = vadd.f32 1e-05, %v449_v9  ;;  %v482_v12 = vadd.f32 1e-05, %v450_v6  ;;  %v451_v23 = vmul.f32 0.00390625, %v397_v1  ;;  %v406_v55 = vpop.xlane.xlu1 %405  ;;  %v409_v3 = vpop.xlane.xlu0 %408 }
 0x150   :  { %v1013_v17 = vpack.c.bf16 %v700_v7, %v699_v59  ;;  %v625_v56 = vmul.f32 %v1829_v45, %v549_v31  ;;  %v626_v33 = vmul.f32 %v1831_v28, %v550_v43  ;;  %v452_v62 = vmul.f32 0.00390625, %v400_v4 }
 0x151   :  { %v1060_v57 = vpop.eup %1059  ;;  %1071 = vrsqrt.f32 %v481_v16  ;;  %v483_v2 = vadd.f32 1e-05, %v451_v23  ;;  %v453_v20 = vmul.f32 0.00390625, %v403_v52  ;;  %v454_v0 = vmul.f32 0.00390625, %v406_v55 }
 0x152   :  { %945 = vst [vmem:[%s2140_s3 + $0x50] sm:$0xff] %v1013_v17  ;;  %v701_v37 = vadd.f32 %v1833_v63, %v625_v56  ;;  %v702_v1 = vadd.f32 %v1835_v53, %v626_v33  ;;  %v551_v29 = vmul.f32 %v1060_v57, %v1624_v24  ;;  %v552_v54 = vmul.f32 %v1060_v57, %v1627_v40 }
 0x153   :  { %1073 = vrsqrt.f32 %v482_v12  ;;  %v484_v11 = vadd.f32 1e-05, %v452_v62  ;;  %v485_v61 = vadd.f32 1e-05, %v453_v20  ;;  %v486_v51 = vadd.f32 1e-05, %v454_v0  ;;  %v412_v39 = vpop.xlane.xlu1 %411  ;;  %v415_v41 = vpop.xlane.xlu0 %414 }
 0x154   :  { %v1014_v35 = vpack.c.bf16 %v702_v1, %v701_v37  ;;  %v627_v34 = vmul.f32 %v1829_v45, %v551_v29  ;;  %v628_v14 = vmul.f32 %v1831_v28, %v552_v54  ;;  %1075 = vrsqrt.f32 %v483_v2 }
 0x155   :  { %1077 = vrsqrt.f32 %v484_v11  ;;  %v455_v50 = vmul.f32 0.00390625, %v409_v3  ;;  %v456_v58 = vmul.f32 0.00390625, %v412_v39  ;;  %v457_v10 = vmul.f32 0.00390625, %v415_v41 }
 0x156   :  { %946 = vst [vmem:[%s2140_s3 + $0x58] sm:$0xff] %v1014_v35  ;;  %v703_v24 = vadd.f32 %v1833_v63, %v627_v34  ;;  %v704_v40 = vadd.f32 %v1835_v53, %v628_v14  ;;  %1079 = vrsqrt.f32 %v485_v61 }
 0x157   :  { %v1062_v49 = vpop.eup %1061  ;;  %1081 = vrsqrt.f32 %v486_v51  ;;  %v487_v4 = vadd.f32 1e-05, %v455_v50  ;;  %v1951_v52 = vadd.f32 1e-05, %v456_v58  ;;  %v1953_v22 = vadd.f32 1e-05, %v457_v10  ;;  %v418_v18 = vpop.xlane.xlu1 %417 }
 0x158   :  { %v421_v46 = vpop.xlane.xlu0 %420  ;;  %v1064_v60 = vpop.eup %1063  ;;  %v1015_v25 = vpack.c.bf16 %v704_v40, %v703_v24  ;;  %v553_v9 = vmul.f32 %v1062_v49, %v1630_v47  ;;  %v554_v6 = vmul.f32 %v1062_v49, %v1633_v26  ;;  %v1957_v59 = vmul.f32 0.00390625, %v418_v18 }
 0x159   :  { %v1066_v7 = vpop.eup %1065  ;;  %v555_v31 = vmul.f32 %v1064_v60, %v1644_v30  ;;  %v556_v43 = vmul.f32 %v1064_v60, %v1647_v8  ;;  %1083 = vrsqrt.f32 %v487_v4  ;;  %v1961_v16 = vmul.f32 0.00390625, %v421_v46 }
 0x15a   :  { %v1068_v12 = vpop.eup %1067  ;;  %947 = vst [vmem:[%s2140_s3 + $0x60] sm:$0xff] %v1015_v25  ;;  %v629_v23 = vmul.f32 %v1829_v45, %v553_v9  ;;  %v630_v47 = vmul.f32 %v1831_v28, %v554_v6  ;;  %v557_v26 = vmul.f32 %v1066_v7, %v1650_v5  ;;  %v558_v55 = vmul.f32 %v1066_v7, %v1653_v32  ;;  %v2233_v6 = vld [vmem:[#allocation18_spill] sm:$0xff] }
 0x15b   :  { %v631_v30 = vmul.f32 %v1829_v45, %v555_v31  ;;  %v632_v8 = vmul.f32 %v1831_v28, %v556_v43  ;;  %v559_v3 = vmul.f32 %v1068_v12, %v1664_v36  ;;  %v560_v17 = vmul.f32 %v1068_v12, %v1667_v15 }
 0x15c   :  { %v1070_v56 = vpop.eup %1069  ;;  %v705_v33 = vadd.f32 %v1833_v63, %v629_v23  ;;  %v706_v62 = vadd.f32 %v1835_v53, %v630_v47  ;;  %v633_v57 = vmul.f32 %v1829_v45, %v557_v26  ;;  %v634_v2 = vmul.f32 %v1831_v28, %v558_v55  ;;  %v2234_v55 = vld [vmem:[#allocation19_spill] sm:$0xff] }
 0x15d   :  { %v707_v5 = vadd.f32 %v1833_v63, %v631_v30  ;;  %v708_v32 = vadd.f32 %v1835_v53, %v632_v8  ;;  %v635_v20 = vmul.f32 %v1829_v45, %v559_v3  ;;  %v636_v0 = vmul.f32 %v1831_v28, %v560_v17  ;;  %v424_v3 = vpop.xlane.xlu1 %423 }
 0x15e   :  { %v1072_v36 = vpop.eup %1071  ;;  %v1016_v37 = vpack.c.bf16 %v706_v62, %v705_v33  ;;  %v709_v15 = vadd.f32 %v1833_v63, %v633_v57  ;;  %v710_v1 = vadd.f32 %v1835_v53, %v634_v2  ;;  %v561_v29 = vmul.f32 %v1070_v56, %v1670_v13  ;;  %v2235_v33 = vld [vmem:[#allocation20_spill] sm:$0xff]  ;;  %v2236_v57 = vld [vmem:[#allocation21_spill] sm:$0xff] }
 0x15f   :  { %v1017_v54 = vpack.c.bf16 %v708_v32, %v707_v5  ;;  %v711_v11 = vadd.f32 %v1833_v63, %v635_v20  ;;  %v712_v61 = vadd.f32 %v1835_v53, %v636_v0  ;;  %v562_v51 = vmul.f32 %v1070_v56, %v1673_v38  ;;  %v2237_v20 = vld [vmem:[#allocation22_spill] sm:$0xff] }
 0x160   :  { %v1074_v39 = vpop.eup %1073  ;;  %948 = vst [vmem:[%s2140_s3 + $0x68] sm:$0xff] %v1016_v37  ;;  %v1018_v41 = vpack.c.bf16 %v710_v1, %v709_v15  ;;  %v637_v35 = vmul.f32 %v1829_v45, %v561_v29  ;;  %v563_v34 = vmul.f32 %v1072_v36, %v1684_v42  ;;  %v564_v14 = vmul.f32 %v1072_v36, %v1687_v21  ;;  %v2238_v36 = vld [vmem:[#allocation23_spill] sm:$0xff] }
 0x161   :  { %v1076_v13 = vpop.eup %1075  ;;  %949 = vst [vmem:[%s2140_s3 + $0x70] sm:$0xff] %v1017_v54  ;;  %v1019_v50 = vpack.c.bf16 %v712_v61, %v711_v11  ;;  %v638_v38 = vmul.f32 %v1831_v28, %v562_v51  ;;  %v565_v58 = vmul.f32 %v1074_v39, %v1690_v19  ;;  %v566_v10 = vmul.f32 %v1074_v39, %v1693_v44  ;;  %v2239_v54 = vld [vmem:[#allocation24_spill] sm:$0xff] }
 0x162   :  { %v1078_v24 = vpop.eup %1077  ;;  %950 = vst [vmem:[%s2140_s3 + $0x78] sm:$0xff] %v1018_v41  ;;  %v713_v42 = vadd.f32 %v1833_v63, %v637_v35  ;;  %v639_v21 = vmul.f32 %v1829_v45, %v563_v34  ;;  %v640_v40 = vmul.f32 %v1831_v28, %v564_v14  ;;  %v567_v49 = vmul.f32 %v1076_v13, %v1704_v48  ;;  %v2240_v41 = vld [vmem:[#allocation25_spill] sm:$0xff] }
 0x163   :  { %v1080_v4 = vpop.eup %1079  ;;  %951 = vst [vmem:[%s2140_s3 + $0x80] sm:$0xff] %v1019_v50  ;;  %v714_v19 = vadd.f32 %v1835_v53, %v638_v38  ;;  %v641_v44 = vmul.f32 %v1829_v45, %v565_v58  ;;  %v642_v18 = vmul.f32 %v1831_v28, %v566_v10  ;;  %v568_v46 = vmul.f32 %v1076_v13, %v1707_v27 }
 0x164   :  { %v1082_v60 = vpop.eup %1081  ;;  %v715_v25 = vadd.f32 %v1833_v63, %v639_v21  ;;  %v716_v9 = vadd.f32 %v1835_v53, %v640_v40  ;;  %v643_v48 = vmul.f32 %v1829_v45, %v567_v49  ;;  %v569_v7 = vmul.f32 %v1078_v24, %v2233_v6  ;;  %v2242_v6 = vld [vmem:[#allocation3_spill] sm:$0xff] }
 0x165   :  { %v1020_v31 = vpack.c.bf16 %v714_v19, %v713_v42  ;;  %v717_v43 = vadd.f32 %v1833_v63, %v641_v44  ;;  %v718_v12 = vadd.f32 %v1835_v53, %v642_v18  ;;  %v644_v23 = vmul.f32 %v1831_v28, %v568_v46  ;;  %v430_v42 = vpop.xlane.xlu1 %429 }
 0x166   :  { %v1084_v47 = vpop.eup %1083  ;;  %v1021_v26 = vpack.c.bf16 %v716_v9, %v715_v25  ;;  %v719_v27 = vadd.f32 %v1833_v63, %v643_v48  ;;  %v570_v30 = vmul.f32 %v1078_v24, %v2234_v55  ;;  %v645_v8 = vmul.f32 %v1829_v45, %v569_v7  ;;  %v427_v24 = vpop.xlane.xlu0 %426  ;;  %v2241_v9 = vld [vmem:[#allocation2_spill] sm:$0xff] }
 0x167   :  { %952 = vst [vmem:[%s2140_s3 + $0x88] sm:$0xff] %v1020_v31  ;;  %v1022_v17 = vpack.c.bf16 %v718_v12, %v717_v43  ;;  %v720_v56 = vadd.f32 %v1835_v53, %v644_v23  ;;  %v571_v62 = vmul.f32 %v1080_v4, %v2235_v33  ;;  %v572_v2 = vmul.f32 %v1080_v4, %v2236_v57  ;;  %v2243_v23 = vld [vmem:[#allocation4_spill] sm:$0xff]  ;;  %v2245_v33 = vld [vmem:[#allocation6_spill] sm:$0xff]  ;;  %v2246_v57 = vld [vmem:[#allocation7_spill] sm:$0xff] }
 0x168   :  { %953 = vst [vmem:[%s2140_s3 + $0x90] sm:$0xff] %v1021_v26  ;;  %v646_v5 = vmul.f32 %v1831_v28, %v570_v30  ;;  %v721_v32 = vadd.f32 %v1833_v63, %v645_v8  ;;  %v573_v0 = vmul.f32 %v1082_v60, %v2237_v20  ;;  %v574_v37 = vmul.f32 %v1082_v60, %v2238_v36  ;;  %v2244_v26 = vld [vmem:[#allocation5_spill] sm:$0xff] }
 0x169   :  { %954 = vst [vmem:[%s2140_s3 + $0x98] sm:$0xff] %v1022_v17  ;;  %v1023_v15 = vpack.c.bf16 %v720_v56, %v719_v27  ;;  %v647_v1 = vmul.f32 %v1829_v45, %v571_v62  ;;  %v648_v29 = vmul.f32 %v1831_v28, %v572_v2  ;;  %v575_v11 = vmul.f32 %v1084_v47, %v2239_v54  ;;  %v2248_v20 = vld [vmem:[#allocation9_spill] sm:$0xff] }
 0x16a   :  { %v722_v61 = vadd.f32 %v1835_v53, %v646_v5  ;;  %v649_v51 = vmul.f32 %v1829_v45, %v573_v0  ;;  %v650_v39 = vmul.f32 %v1831_v28, %v574_v37  ;;  %v576_v35 = vmul.f32 %v1084_v47, %v2240_v41  ;;  %v2247_v5 = vld [vmem:[#allocation8_spill] sm:$0xff] }
 0x16b   :  { %955 = vst [vmem:[%s2140_s3 + $0xa0] sm:$0xff] %v1023_v15  ;;  %v723_v34 = vadd.f32 %v1833_v63, %v647_v1  ;;  %v724_v14 = vadd.f32 %v1835_v53, %v648_v29  ;;  %v651_v13 = vmul.f32 %v1829_v45, %v575_v11  ;;  %1085 = vrsqrt.f32 %v1951_v52 }
 0x16c   :  { %v1024_v50 = vpack.c.bf16 %v722_v61, %v721_v32  ;;  %v725_v38 = vadd.f32 %v1833_v63, %v649_v51  ;;  %v726_v58 = vadd.f32 %v1835_v53, %v650_v39  ;;  %v652_v10 = vmul.f32 %v1831_v28, %v576_v35  ;;  %v2249_v35 = vld [vmem:[#allocation10_spill] sm:$0xff] }
 0x16d   :  { %v1025_v21 = vpack.c.bf16 %v724_v14, %v723_v34  ;;  %v727_v40 = vadd.f32 %v1833_v63, %v651_v13  ;;  %1087 = vrsqrt.f32 %v1953_v22  ;;  %v490_v49 = vadd.f32 1e-05, %v1957_v59  ;;  %v2250_v14 = vld [vmem:[#allocation11_spill] sm:$0xff] }
 0x16e   :  { %956 = vst [vmem:[%s2140_s3 + $0xa8] sm:$0xff] %v1024_v50  ;;  %v1026_v52 = vpack.c.bf16 %v726_v58, %v725_v38  ;;  %v728_v4 = vadd.f32 %v1835_v53, %v652_v10  ;;  %v491_v19 = vadd.f32 1e-05, %v1961_v16  ;;  %v460_v44 = vmul.f32 0.00390625, %v424_v3  ;;  %v2251_v50 = vld [vmem:[#allocation26_spill] sm:$0xff] }
 0x16f   :  { %957 = vst [vmem:[%s2140_s3 + $0xb0] sm:$0xff] %v1025_v21  ;;  %1089 = vrsqrt.f32 %v490_v49  ;;  %v461_v18 = vmul.f32 0.00390625, %v427_v24  ;;  %v462_v46 = vmul.f32 0.00390625, %v430_v42  ;;  %v2252_v49 = vld [vmem:[#allocation12_spill] sm:$0xff] }
 0x170   :  { %958 = vst [vmem:[%s2140_s3 + $0xb8] sm:$0xff] %v1026_v52  ;;  %v1027_v22 = vpack.c.bf16 %v728_v4, %v727_v40  ;;  %1091 = vrsqrt.f32 %v491_v19  ;;  %v492_v59 = vadd.f32 1e-05, %v460_v44 }
 0x171   :  { %v493_v60 = vadd.f32 1e-05, %v461_v18  ;;  %v494_v25 = vadd.f32 1e-05, %v462_v46  ;;  %v2253_v18 = vld [vmem:[#allocation27_spill] sm:$0xff] }
 0x172   :  { %959 = vst [vmem:[%s2140_s3 + $0xc0] sm:$0xff] %v1027_v22  ;;  %1093 = vrsqrt.f32 %v492_v59  ;;  %v2254_v22 = vld [vmem:[#allocation13_spill] sm:$0xff] }
 0x173   :  { %1095 = vrsqrt.f32 %v493_v60 }
 0x174   :  { %1097 = vrsqrt.f32 %v494_v25 }
 0x178   :  { %v1086_v16 = vpop.eup %1085 }
 0x179   :  { %v577_v48 = vmul.f32 %v1086_v16, %v2241_v9  ;;  %v578_v7 = vmul.f32 %v1086_v16, %v2242_v6 }
 0x17a   :  { %v1088_v31 = vpop.eup %1087 }
 0x17b   :  { %v653_v43 = vmul.f32 %v1829_v45, %v577_v48  ;;  %v654_v12 = vmul.f32 %v1831_v28, %v578_v7  ;;  %v579_v47 = vmul.f32 %v1088_v31, %v2243_v23  ;;  %v580_v27 = vmul.f32 %v1088_v31, %v2244_v26 }
 0x17c   :  { %v1090_v55 = vpop.eup %1089 }
 0x17d   :  { %v1092_v30 = vpop.eup %1091  ;;  %v729_v8 = vadd.f32 %v1833_v63, %v653_v43  ;;  %v730_v3 = vadd.f32 %v1835_v53, %v654_v12  ;;  %v655_v17 = vmul.f32 %v1829_v45, %v579_v47  ;;  %v656_v56 = vmul.f32 %v1831_v28, %v580_v27 }
 0x17e   :  { %v581_v62 = vmul.f32 %v1090_v55, %v2245_v33  ;;  %v582_v2 = vmul.f32 %v1090_v55, %v2246_v57  ;;  %v583_v32 = vmul.f32 %v1092_v30, %v2247_v5  ;;  %v584_v0 = vmul.f32 %v1092_v30, %v2248_v20 }
 0x17f   :  { %v1094_v36 = vpop.eup %1093  ;;  %v1028_v37 = vpack.c.bf16 %v730_v3, %v729_v8  ;;  %v731_v15 = vadd.f32 %v1833_v63, %v655_v17  ;;  %v732_v1 = vadd.f32 %v1835_v53, %v656_v56 }
 0x180   :  { %v1096_v29 = vpop.eup %1095  ;;  %v657_v54 = vmul.f32 %v1829_v45, %v581_v62  ;;  %v658_v11 = vmul.f32 %v1831_v28, %v582_v2  ;;  %v659_v61 = vmul.f32 %v1829_v45, %v583_v32  ;;  %v660_v51 = vmul.f32 %v1831_v28, %v584_v0 }
 0x181   :  { %v1098_v39 = vpop.eup %1097  ;;  %960 = vst [vmem:[%s2140_s3 + $0xc8] sm:$0xff] %v1028_v37  ;;  %v1029_v41 = vpack.c.bf16 %v732_v1, %v731_v15  ;;  %v585_v34 = vmul.f32 %v1094_v36, %v2249_v35  ;;  %v586_v13 = vmul.f32 %v1094_v36, %v2250_v14  ;;  %v587_v38 = vmul.f32 %v1096_v29, %v2251_v50 }
 0x182   :  { %v733_v58 = vadd.f32 %v1833_v63, %v657_v54  ;;  %v734_v10 = vadd.f32 %v1835_v53, %v658_v11  ;;  %v735_v24 = vadd.f32 %v1833_v63, %v659_v61  ;;  %v736_v42 = vadd.f32 %v1835_v53, %v660_v51 }
 0x183   :  { %961 = vst [vmem:[%s2140_s3 + $0xd0] sm:$0xff] %v1029_v41  ;;  %v661_v21 = vmul.f32 %v1829_v45, %v585_v34  ;;  %v662_v40 = vmul.f32 %v1831_v28, %v586_v13  ;;  %v588_v52 = vmul.f32 %v1096_v29, %v2252_v49  ;;  %v663_v4 = vmul.f32 %v1829_v45, %v587_v38 }
 0x184   :  { %v1030_v19 = vpack.c.bf16 %v734_v10, %v733_v58  ;;  %v1031_v44 = vpack.c.bf16 %v736_v42, %v735_v24  ;;  %v589_v46 = vmul.f32 %v1098_v39, %v2253_v18  ;;  %v590_v59 = vmul.f32 %v1098_v39, %v2254_v22 }
 0x185   :  { %v737_v60 = vadd.f32 %v1833_v63, %v661_v21  ;;  %v738_v25 = vadd.f32 %v1835_v53, %v662_v40  ;;  %v664_v16 = vmul.f32 %v1831_v28, %v588_v52  ;;  %v739_v9 = vadd.f32 %v1833_v63, %v663_v4 }
 0x186   :  { %962 = vst [vmem:[%s2140_s3 + $0xd8] sm:$0xff] %v1030_v19  ;;  %963 = vst [vmem:[%s2140_s3 + $0xe0] sm:$0xff] %v1031_v44  ;;  %v665_v48 = vmul.f32 %v1829_v45, %v589_v46  ;;  %v666_v6 = vmul.f32 %v1831_v28, %v590_v59 }
 0x187   :  { %v1032_v7 = vpack.c.bf16 %v738_v25, %v737_v60  ;;  %v740_v31 = vadd.f32 %v1835_v53, %v664_v16 }
 0x188   :  { %v741_v43 = vadd.f32 %v1833_v63, %v665_v48  ;;  %v742_v12 = vadd.f32 %v1835_v53, %v666_v6 }
 0x189   :  { %964 = vst [vmem:[%s2140_s3 + $0xe8] sm:$0xff] %v1032_v7  ;;  %v1033_v23 = vpack.c.bf16 %v740_v31, %v739_v9 }
 0x18a   :  { %v1034_v47 = vpack.c.bf16 %v742_v12, %v741_v43 }
 0x18b   :  { %965 = vst [vmem:[%s2140_s3 + $0xf0] sm:$0xff] %v1033_v23 }
 0x18c   :  { %966 = vst [vmem:[%s2140_s3 + $0xf8] sm:$0xff] %v1034_v47 }

// kernel: base_agent_forward.10
= control target key start
LH: loop header
LB: loop body
LE: loop exit
PB: predicated region body
PF: predicated region fallthrough
CT: control target
= control target key end

     0   :  { %s4821_s1 = inlined_call_operand.vmem [shape: bf16[256,768], index: 1, kind: input, shape index: {}]   ;;  %s4822_s0 = inlined_call_operand.vmem [shape: bf16[256,256], index: 0, kind: input, shape index: {}]   ;;  %s4823_s2 = inlined_call_operand.vmem [shape: f32[1,768], index: 2, kind: input, shape index: {}]   ;;  %s4824_s3 = inlined_call_operand.vmem [shape: bf16[256,768], index: 3, kind: output, shape index: {}]  }
   0x1   :  { %v3580_v0 = vld [vmem:[%s4821_s1 + $0x154] ss:$24 sps:$4 sm:$0xff]   ;;  %v3582_v1 = vld [vmem:[%s4821_s1 + $0x150] ss:$24 sps:$4 sm:$0xff]   ;;  %v3583_v2 = vld [vmem:[%s4821_s1 + $0x124] ss:$24 sps:$4 sm:$0xff]  }
   0x2   :  { %1170 = vmatprep.subr.bf16.mxu0 %v3580_v0  ;;  %3548 = vmatprep.subr.bf16.mxu1 %v3580_v0  ;;  %v3585_v3 = vld [vmem:[%s4821_s1 + $0x120] ss:$24 sps:$4 sm:$0xff]   ;;  %v3586_v4 = vld [vmem:[%s4821_s1 + $0xf4] ss:$24 sps:$4 sm:$0xff]   ;;  %v3588_v5 = vld [vmem:[%s4821_s1 + $0xf0] ss:$24 sps:$4 sm:$0xff]  }
   0x3   :  { %1171 = vmatpush1.bf16.msra.mxu0 %v3582_v1  ;;  %3564 = vmatpush1.bf16.msra.mxu1 %v3582_v1  ;;  %v3589_v6 = vld [vmem:[%s4821_s1 + $0xc4] ss:$24 sps:$4 sm:$0xff]   ;;  %v3591_v7 = vld [vmem:[%s4821_s1 + $0xc0] ss:$24 sps:$4 sm:$0xff]   ;;  %v3592_v8 = vld [vmem:[%s4821_s1 + $0x94] ss:$24 sps:$4 sm:$0xff]  }
   0x4   :  { %1172 = vmatprep.subr.bf16.mxu0 %v3583_v2  ;;  %3549 = vmatprep.subr.bf16.mxu1 %v3583_v2  ;;  %v3594_v9 = vld [vmem:[%s4821_s1 + $0x90] ss:$24 sps:$4 sm:$0xff]   ;;  %v3595_v10 = vld [vmem:[%s4821_s1 + $0x64] ss:$24 sps:$4 sm:$0xff]   ;;  %v3597_v11 = vld [vmem:[%s4821_s1 + $0x60] ss:$24 sps:$4 sm:$0xff]  }
   0x5   :  { %v3598_v12 = vld [vmem:[%s4821_s1 + $0x34] ss:$24 sps:$4 sm:$0xff]   ;;  %v3600_v14 = vld [vmem:[%s4821_s1 + $0x30] ss:$24 sps:$4 sm:$0xff]   ;;  %v3601_v16 = vld [vmem:[%s4821_s1 + $0x4] ss:$24 sps:$4 sm:$0xff]  }
   0x6   :  { %v3834_v13 = vld [vmem:[%s4822_s0 + $0x4] ss:$8 sps:$4 sm:$0xff]   ;;  %v3603_v17 = vld [vmem:[%s4821_s1] ss:$24 sps:$4 sm:$0xff]   ;;  %v3606_v19 = vld [vmem:[%s4821_s1 + $0x2d0] ss:$24 sps:$4 sm:$0xff]  }
   0x7   :  { %1173 = vmatpush1.bf16.msra.mxu0 %v3585_v3  ;;  %3565 = vmatpush1.bf16.msra.mxu1 %v3585_v3  ;;  %v3842_v15 = vld [vmem:[%s4822_s0 + $0x84] ss:$8 sps:$4 sm:$0xff]   ;;  %v3609_v21 = vld [vmem:[%s4821_s1 + $0x2a0] ss:$24 sps:$4 sm:$0xff]   ;;  %v3612_v23 = vld [vmem:[%s4821_s1 + $0x270] ss:$24 sps:$4 sm:$0xff]  }
   0x8   :  { %1174 = vmatprep.subr.bf16.mxu0 %v3586_v4  ;;  %3550 = vmatprep.subr.bf16.mxu1 %v3586_v4  ;;  %v3604_v18 = vld [vmem:[%s4821_s1 + $0x2d4] ss:$24 sps:$4 sm:$0xff]   ;;  %v3607_v20 = vld [vmem:[%s4821_s1 + $0x2a4] ss:$24 sps:$4 sm:$0xff]   ;;  %v3615_v25 = vld [vmem:[%s4821_s1 + $0x240] ss:$24 sps:$4 sm:$0xff]  }
   0x9   :  { %1202 = vmatprep.mubr.bf16.mxu0 %v3834_v13  ;;  %1282 = vmatprep.mubr.bf16.mxu1 %v3842_v15  ;;  %v3610_v22 = vld [vmem:[%s4821_s1 + $0x274] ss:$24 sps:$4 sm:$0xff]   ;;  %v3613_v24 = vld [vmem:[%s4821_s1 + $0x244] ss:$24 sps:$4 sm:$0xff]   ;;  %v3618_v27 = vld [vmem:[%s4821_s1 + $0x210] ss:$24 sps:$4 sm:$0xff]  }
   0xa   :  { %v3616_v26 = vld [vmem:[%s4821_s1 + $0x214] ss:$24 sps:$4 sm:$0xff]   ;;  %v3619_v28 = vld [vmem:[%s4821_s1 + $0x1e4] ss:$24 sps:$4 sm:$0xff]   ;;  %v3621_v29 = vld [vmem:[%s4821_s1 + $0x1e0] ss:$24 sps:$4 sm:$0xff]  }
   0xb   :  { %1175 = vmatpush1.bf16.msra.mxu0 %v3588_v5  ;;  %3566 = vmatpush1.bf16.msra.mxu1 %v3588_v5  ;;  %v3622_v30 = vld [vmem:[%s4821_s1 + $0x1b4] ss:$24 sps:$4 sm:$0xff]   ;;  %v3624_v31 = vld [vmem:[%s4821_s1 + $0x1b0] ss:$24 sps:$4 sm:$0xff]   ;;  %v3625_v32 = vld [vmem:[%s4821_s1 + $0x184] ss:$24 sps:$4 sm:$0xff]  }
   0xc   :  { %1176 = vmatprep.subr.bf16.mxu0 %v3589_v6  ;;  %3551 = vmatprep.subr.bf16.mxu1 %v3589_v6  ;;  %v3627_v33 = vld [vmem:[%s4821_s1 + $0x180] ss:$24 sps:$4 sm:$0xff]   ;;  %v3636_v34 = vld [vmem:[%s4821_s1 + $0x15c] ss:$24 sps:$4 sm:$0xff]   ;;  %v3642_v40 = vld [vmem:[%s4821_s1 + $0x12c] ss:$24 sps:$4 sm:$0xff]  }
   0xd   :  { %v3906_v35 = vld [vmem:[%s4822_s0] ss:$8 sps:$4 sm:$0xff]   ;;  %v3639_v36 = vld [vmem:[%s4821_s1 + $0x164] ss:$24 sps:$4 sm:$0xff]   ;;  %v3634_v38 = vld [vmem:[%s4821_s1 + $0x158] ss:$24 sps:$4 sm:$0xff]  }
   0xe   :  { %v3914_v37 = vld [vmem:[%s4822_s0 + $0x80] ss:$8 sps:$4 sm:$0xff]   ;;  %v3645_v41 = vld [vmem:[%s4821_s1 + $0x134] ss:$24 sps:$4 sm:$0xff]   ;;  %v3952_v47 = vld [vmem:[%s4822_s0 + $0x10] ss:$8 sps:$4 sm:$0xff]  }
   0xf   :  { %1177 = vmatpush1.bf16.msra.mxu0 %v3591_v7  ;;  %3567 = vmatpush1.bf16.msra.mxu1 %v3591_v7  ;;  %v3637_v39 = vld [vmem:[%s4821_s1 + $0x160] ss:$24 sps:$4 sm:$0xff]   ;;  %v3931_v42 = vld [vmem:[%s4822_s0 + $0x14] ss:$8 sps:$4 sm:$0xff]   ;;  %v3643_v45 = vld [vmem:[%s4821_s1 + $0x130] ss:$24 sps:$4 sm:$0xff]  }
  0x10   :  { %1178 = vmatprep.subr.bf16.mxu0 %v3592_v8  ;;  %3552 = vmatprep.subr.bf16.mxu1 %v3592_v8  ;;  %v3936_v43 = vld [vmem:[%s4822_s0 + $0x94] ss:$8 sps:$4 sm:$0xff]   ;;  %v3640_v44 = vld [vmem:[%s4821_s1 + $0x128] ss:$24 sps:$4 sm:$0xff]   ;;  %v3962_v49 = vld [vmem:[%s4822_s0 + $0x90] ss:$8 sps:$4 sm:$0xff]  }
  0x11   :  { %v3654_v46 = vld [vmem:[%s4821_s1 + $0xfc] ss:$24 sps:$4 sm:$0xff]   ;;  %v3652_v50 = vld [vmem:[%s4821_s1 + $0xf8] ss:$24 sps:$4 sm:$0xff]   ;;  %v3660_v52 = vld [vmem:[%s4821_s1 + $0xcc] ss:$24 sps:$4 sm:$0xff]  }
  0x12   :  { %v3657_v48 = vld [vmem:[%s4821_s1 + $0x104] ss:$24 sps:$4 sm:$0xff]   ;;  %v3655_v51 = vld [vmem:[%s4821_s1 + $0x100] ss:$24 sps:$4 sm:$0xff]   ;;  %v3663_v53 = vld [vmem:[%s4821_s1 + $0xd4] ss:$24 sps:$4 sm:$0xff]  }
  0x13   :  { %1179 = vmatpush1.bf16.msra.mxu0 %v3594_v9  ;;  %3568 = vmatpush1.bf16.msra.mxu1 %v3594_v9  ;;  %v3979_v54 = vld [vmem:[%s4822_s0 + $0x24] ss:$8 sps:$4 sm:$0xff]   ;;  %v3658_v56 = vld [vmem:[%s4821_s1 + $0xc8] ss:$24 sps:$4 sm:$0xff]   ;;  %v3672_v58 = vld [vmem:[%s4821_s1 + $0x9c] ss:$24 sps:$4 sm:$0xff]  }
  0x14   :  { %1180 = vmatprep.subr.bf16.mxu0 %v3595_v10  ;;  %3553 = vmatprep.subr.bf16.mxu1 %v3595_v10  ;;  %v3984_v55 = vld [vmem:[%s4822_s0 + $0xa4] ss:$8 sps:$4 sm:$0xff]   ;;  %v3661_v57 = vld [vmem:[%s4821_s1 + $0xd0] ss:$24 sps:$4 sm:$0xff]   ;;  %v3673_v63 = vld [vmem:[%s4821_s1 + $0xa0] ss:$24 sps:$4 sm:$0xff]  }
  0x15   :  { %v4000_v59 = vld [vmem:[%s4822_s0 + $0x20] ss:$8 sps:$4 sm:$0xff]   ;;  %v3675_v60 = vld [vmem:[%s4821_s1 + $0xa4] ss:$24 sps:$4 sm:$0xff]   ;;  %v3670_v62 = vld [vmem:[%s4821_s1 + $0x98] ss:$24 sps:$4 sm:$0xff]  }
  0x16   :  { %v4010_v61 = vld [vmem:[%s4822_s0 + $0xa0] ss:$8 sps:$4 sm:$0xff]   ;;  %v3678_v0 = vld [vmem:[%s4821_s1 + $0x6c] ss:$24 sps:$4 sm:$0xff]   ;;  %v4027_v2 = vld [vmem:[%s4822_s0 + $0x34] ss:$8 sps:$4 sm:$0xff]  }
  0x17   :  { %1181 = vmatpush1.bf16.msra.mxu0 %v3597_v11  ;;  %3569 = vmatpush1.bf16.msra.mxu1 %v3597_v11  ;;  %v3681_v1 = vld [vmem:[%s4821_s1 + $0x74] ss:$24 sps:$4 sm:$0xff]   ;;  %v3676_v4 = vld [vmem:[%s4821_s1 + $0x68] ss:$24 sps:$4 sm:$0xff]   ;;  %v3693_v7 = vld [vmem:[%s4821_s1 + $0x44] ss:$24 sps:$4 sm:$0xff]  }
  0x18   :  { %1182 = vmatprep.subr.bf16.mxu0 %v3598_v12  ;;  %3554 = vmatprep.subr.bf16.mxu1 %v3598_v12  ;;  %v4032_v3 = vld [vmem:[%s4822_s0 + $0xb4] ss:$8 sps:$4 sm:$0xff]   ;;  %v3679_v5 = vld [vmem:[%s4821_s1 + $0x70] ss:$24 sps:$4 sm:$0xff]   ;;  %v3691_v11 = vld [vmem:[%s4821_s1 + $0x40] ss:$24 sps:$4 sm:$0xff]  }
  0x19   :  { %v3690_v6 = vld [vmem:[%s4821_s1 + $0x3c] ss:$24 sps:$4 sm:$0xff]   ;;  %v4053_v8 = vld [vmem:[%s4822_s0 + $0x30] ss:$8 sps:$4 sm:$0xff]   ;;  %v3696_v12 = vld [vmem:[%s4821_s1 + $0xc] ss:$24 sps:$4 sm:$0xff]  }
  0x1a   :  { %v4058_v9 = vld [vmem:[%s4822_s0 + $0xb0] ss:$8 sps:$4 sm:$0xff]  }
  0x1b   :  { %1183 = vmatpush1.bf16.msra.mxu0 %v3600_v14  ;;  %3570 = vmatpush1.bf16.msra.mxu1 %v3600_v14  ;;  %v3688_v10 = vld [vmem:[%s4821_s1 + $0x38] ss:$24 sps:$4 sm:$0xff]   ;;  %v3699_v14 = vld [vmem:[%s4821_s1 + $0x14] ss:$24 sps:$4 sm:$0xff]  }
  0x1c   :  { %1184 = vmatprep.subr.bf16.mxu0 %v3601_v16  ;;  %3555 = vmatprep.subr.bf16.mxu1 %v3601_v16  ;;  %v4075_v16 = vld [vmem:[%s4822_s0 + $0x44] ss:$8 sps:$4 sm:$0xff]  }
  0x1f   :  { %1185 = vmatpush1.bf16.msra.mxu0 %v3603_v17  ;;  %3571 = vmatpush1.bf16.msra.mxu1 %v3603_v17  ;;  %v4080_v17 = vld [vmem:[%s4822_s0 + $0xc4] ss:$8 sps:$4 sm:$0xff]  }
  0x20   :  { %1186 = vmatprep.subr.bf16.mxu0 %v3604_v18  ;;  %3556 = vmatprep.subr.bf16.mxu1 %v3604_v18  ;;  %v3694_v18 = vld [vmem:[%s4821_s1 + $0x8] ss:$24 sps:$4 sm:$0xff]  }
  0x23   :  { %1187 = vmatpush2.bf16.msra.mxu0 %v3606_v19  ;;  %3572 = vmatpush2.bf16.msra.mxu1 %v3606_v19  ;;  %v3697_v19 = vld [vmem:[%s4821_s1 + $0x10] ss:$24 sps:$4 sm:$0xff]  }
  0x24   :  { %1188 = vmatprep.subr.bf16.mxu0 %v3607_v20  ;;  %3557 = vmatprep.subr.bf16.mxu1 %v3607_v20  ;;  %v3708_v20 = vld [vmem:[%s4821_s1 + $0x2dc] ss:$24 sps:$4 sm:$0xff]  }
  0x27   :  { %1189 = vmatpush2.bf16.msra.mxu0 %v3609_v21  ;;  %3573 = vmatpush2.bf16.msra.mxu1 %v3609_v21  ;;  %v3711_v21 = vld [vmem:[%s4821_s1 + $0x2e4] ss:$24 sps:$4 sm:$0xff]  }
  0x28   :  { %1190 = vmatprep.subr.bf16.mxu0 %v3610_v22  ;;  %3558 = vmatprep.subr.bf16.mxu1 %v3610_v22  ;;  %v4101_v22 = vld [vmem:[%s4822_s0 + $0x40] ss:$8 sps:$4 sm:$0xff]  }
  0x2b   :  { %1191 = vmatpush2.bf16.msra.mxu0 %v3612_v23  ;;  %3574 = vmatpush2.bf16.msra.mxu1 %v3612_v23  ;;  %v4106_v23 = vld [vmem:[%s4822_s0 + $0xc0] ss:$8 sps:$4 sm:$0xff]  }
  0x2c   :  { %1192 = vmatprep.subr.bf16.mxu0 %v3613_v24  ;;  %3559 = vmatprep.subr.bf16.mxu1 %v3613_v24  ;;  %v3706_v24 = vld [vmem:[%s4821_s1 + $0x2d8] ss:$24 sps:$4 sm:$0xff]  }
  0x2f   :  { %1193 = vmatpush2.bf16.msra.mxu0 %v3615_v25  ;;  %3575 = vmatpush2.bf16.msra.mxu1 %v3615_v25  ;;  %v3709_v25 = vld [vmem:[%s4821_s1 + $0x2e0] ss:$24 sps:$4 sm:$0xff]  }
  0x30   :  { %1194 = vmatprep.subr.bf16.mxu0 %v3616_v26  ;;  %3560 = vmatprep.subr.bf16.mxu1 %v3616_v26  ;;  %v3714_v26 = vld [vmem:[%s4821_s1 + $0x2ac] ss:$24 sps:$4 sm:$0xff]  }
  0x33   :  { %1195 = vmatpush2.bf16.msra.mxu0 %v3618_v27  ;;  %3576 = vmatpush2.bf16.msra.mxu1 %v3618_v27  ;;  %v3717_v27 = vld [vmem:[%s4821_s1 + $0x2b4] ss:$24 sps:$4 sm:$0xff]  }
  0x34   :  { %1196 = vmatprep.subr.bf16.mxu0 %v3619_v28  ;;  %3561 = vmatprep.subr.bf16.mxu1 %v3619_v28  ;;  %v4123_v28 = vld [vmem:[%s4822_s0 + $0x54] ss:$8 sps:$4 sm:$0xff]  }
  0x37   :  { %1197 = vmatpush2.bf16.msra.mxu0 %v3621_v29  ;;  %3577 = vmatpush2.bf16.msra.mxu1 %v3621_v29  ;;  %v4128_v29 = vld [vmem:[%s4822_s0 + $0xd4] ss:$8 sps:$4 sm:$0xff]  }
  0x38   :  { %1198 = vmatprep.subr.bf16.mxu0 %v3622_v30  ;;  %3562 = vmatprep.subr.bf16.mxu1 %v3622_v30  ;;  %v3712_v30 = vld [vmem:[%s4821_s1 + $0x2a8] ss:$24 sps:$4 sm:$0xff]  }
  0x3b   :  { %1199 = vmatpush2.bf16.msra.mxu0 %v3624_v31  ;;  %3578 = vmatpush2.bf16.msra.mxu1 %v3624_v31  ;;  %v3715_v31 = vld [vmem:[%s4821_s1 + $0x2b0] ss:$24 sps:$4 sm:$0xff]  }
  0x3c   :  { %1200 = vmatprep.subr.bf16.mxu0 %v3625_v32  ;;  %3563 = vmatprep.subr.bf16.mxu1 %v3625_v32  ;;  %v3726_v32 = vld [vmem:[%s4821_s1 + $0x27c] ss:$24 sps:$4 sm:$0xff]  }
  0x3f   :  { %1201 = vmatpush2.bf16.msra.mxu0 %v3627_v33  ;;  %3579 = vmatpush2.bf16.msra.mxu1 %v3627_v33  ;;  %v3729_v33 = vld [vmem:[%s4821_s1 + $0x284] ss:$24 sps:$4 sm:$0xff]  }
  0x40   :  { %1363 = vmatprep.subr.bf16.mxu1 %v3636_v34  ;;  %1556 = vmatprep.subr.bf16.mxu0 %v3639_v36  ;;  %v4149_v34 = vld [vmem:[%s4822_s0 + $0x50] ss:$8 sps:$4 sm:$0xff]  }
  0x41   :  { %v4154_v36 = vld [vmem:[%s4822_s0 + $0xd0] ss:$8 sps:$4 sm:$0xff]  }
  0x42   :  { %1203 = vmatmul.mubr.bf16.vlgmr.msra.gmra.mxu0 %v3906_v35  ;;  %1283 = vmatmul.mubr.bf16.vlgmr.msra.gmra.mxu1 %v3914_v37 }
  0x43   :  { %1364 = vmatpush1.bf16.msra.mxu1 %v3634_v38  ;;  %1557 = vmatpush1.bf16.msra.mxu0 %v3637_v39  ;;  %v3724_v38 = vld [vmem:[%s4821_s1 + $0x278] ss:$24 sps:$4 sm:$0xff]  }
  0x44   :  { %1365 = vmatprep.subr.bf16.mxu1 %v3642_v40  ;;  %1558 = vmatprep.subr.bf16.mxu0 %v3645_v41  ;;  %v3727_v39 = vld [vmem:[%s4821_s1 + $0x280] ss:$24 sps:$4 sm:$0xff]   ;;  %v3732_v40 = vld [vmem:[%s4821_s1 + $0x24c] ss:$24 sps:$4 sm:$0xff]  }
  0x45   :  { %1212 = vmatprep.mubr.bf16.mxu0 %v3931_v42  ;;  %1292 = vmatprep.mubr.bf16.mxu1 %v3936_v43  ;;  %v3735_v41 = vld [vmem:[%s4821_s1 + $0x254] ss:$24 sps:$4 sm:$0xff]  }
  0x47   :  { %1366 = vmatpush1.bf16.msra.mxu1 %v3640_v44  ;;  %1559 = vmatpush1.bf16.msra.mxu0 %v3643_v45  ;;  %v4171_v44 = vld [vmem:[%s4822_s0 + $0x64] ss:$8 sps:$4 sm:$0xff]  }
  0x48   :  { %1367 = vmatprep.subr.bf16.mxu1 %v3654_v46  ;;  %1560 = vmatprep.subr.bf16.mxu0 %v3657_v48  ;;  %v4176_v45 = vld [vmem:[%s4822_s0 + $0xe4] ss:$8 sps:$4 sm:$0xff]   ;;  %v3730_v46 = vld [vmem:[%s4821_s1 + $0x248] ss:$24 sps:$4 sm:$0xff]  }
  0x49   :  { %v3733_v48 = vld [vmem:[%s4821_s1 + $0x250] ss:$24 sps:$4 sm:$0xff]  }
  0x4a   :  { %1213 = vmatmul.mubr.bf16.gmra.mxu0 %v3952_v47  ;;  %1293 = vmatmul.mubr.bf16.gmra.mxu1 %v3962_v49 }
  0x4b   :  { %1368 = vmatpush1.bf16.msra.mxu1 %v3652_v50  ;;  %1561 = vmatpush1.bf16.msra.mxu0 %v3655_v51  ;;  %v3744_v50 = vld [vmem:[%s4821_s1 + $0x21c] ss:$24 sps:$4 sm:$0xff]  }
  0x4c   :  { %1369 = vmatprep.subr.bf16.mxu1 %v3660_v52  ;;  %1562 = vmatprep.subr.bf16.mxu0 %v3663_v53  ;;  %v3747_v51 = vld [vmem:[%s4821_s1 + $0x224] ss:$24 sps:$4 sm:$0xff]   ;;  %v4197_v52 = vld [vmem:[%s4822_s0 + $0x60] ss:$8 sps:$4 sm:$0xff]  }
  0x4d   :  { %1222 = vmatprep.mubr.bf16.mxu0 %v3979_v54  ;;  %1302 = vmatprep.mubr.bf16.mxu1 %v3984_v55  ;;  %v4202_v53 = vld [vmem:[%s4822_s0 + $0xe0] ss:$8 sps:$4 sm:$0xff]  }
  0x4f   :  { %1370 = vmatpush1.bf16.msra.mxu1 %v3658_v56  ;;  %1563 = vmatpush1.bf16.msra.mxu0 %v3661_v57  ;;  %v3742_v56 = vld [vmem:[%s4821_s1 + $0x218] ss:$24 sps:$4 sm:$0xff]  }
  0x50   :  { %1371 = vmatprep.subr.bf16.mxu1 %v3672_v58  ;;  %1564 = vmatprep.subr.bf16.mxu0 %v3675_v60  ;;  %v3745_v57 = vld [vmem:[%s4821_s1 + $0x220] ss:$24 sps:$4 sm:$0xff]   ;;  %v3750_v58 = vld [vmem:[%s4821_s1 + $0x1ec] ss:$24 sps:$4 sm:$0xff]  }
  0x51   :  { %v3753_v60 = vld [vmem:[%s4821_s1 + $0x1f4] ss:$24 sps:$4 sm:$0xff]  }
  0x52   :  { %1223 = vmatmul.mubr.bf16.gmra.mxu0 %v4000_v59  ;;  %1303 = vmatmul.mubr.bf16.gmra.mxu1 %v4010_v61 }
  0x53   :  { %1372 = vmatpush1.bf16.msra.mxu1 %v3670_v62  ;;  %1565 = vmatpush1.bf16.msra.mxu0 %v3673_v63  ;;  %v3754_v62 = vld [vmem:[%s4822_s0 + $0x74] ss:$8 sps:$4 sm:$0xff]  }
  0x54   :  { %1373 = vmatprep.subr.bf16.mxu1 %v3678_v0  ;;  %1566 = vmatprep.subr.bf16.mxu0 %v3681_v1  ;;  %v4222_v63 = vld [vmem:[%s4822_s0 + $0xf4] ss:$8 sps:$4 sm:$0xff]   ;;  %v3748_v0 = vld [vmem:[%s4821_s1 + $0x1e8] ss:$24 sps:$4 sm:$0xff]  }
  0x55   :  { %1232 = vmatprep.mubr.bf16.mxu0 %v4027_v2  ;;  %1312 = vmatprep.mubr.bf16.mxu1 %v4032_v3  ;;  %v3751_v1 = vld [vmem:[%s4821_s1 + $0x1f0] ss:$24 sps:$4 sm:$0xff]  }
  0x57   :  { %1374 = vmatpush1.bf16.msra.mxu1 %v3676_v4  ;;  %1567 = vmatpush1.bf16.msra.mxu0 %v3679_v5  ;;  %v3762_v4 = vld [vmem:[%s4821_s1 + $0x1bc] ss:$24 sps:$4 sm:$0xff]  }
  0x58   :  { %1375 = vmatprep.subr.bf16.mxu1 %v3690_v6  ;;  %1568 = vmatprep.subr.bf16.mxu0 %v3693_v7  ;;  %v3765_v5 = vld [vmem:[%s4821_s1 + $0x1c4] ss:$24 sps:$4 sm:$0xff]   ;;  %v3758_v6 = vld [vmem:[%s4822_s0 + $0x70] ss:$8 sps:$4 sm:$0xff]  }
  0x59   :  { %v4245_v7 = vld [vmem:[%s4822_s0 + $0xf0] ss:$8 sps:$4 sm:$0xff]  }
  0x5a   :  { %1233 = vmatmul.mubr.bf16.gmra.mxu0 %v4053_v8  ;;  %1313 = vmatmul.mubr.bf16.gmra.mxu1 %v4058_v9 }
  0x5b   :  { %1376 = vmatpush1.bf16.msra.mxu1 %v3688_v10  ;;  %1569 = vmatpush1.bf16.msra.mxu0 %v3691_v11  ;;  %v3760_v10 = vld [vmem:[%s4821_s1 + $0x1b8] ss:$24 sps:$4 sm:$0xff]  }
  0x5c   :  { %1377 = vmatprep.subr.bf16.mxu1 %v3696_v12  ;;  %1570 = vmatprep.subr.bf16.mxu0 %v3699_v14  ;;  %v3763_v11 = vld [vmem:[%s4821_s1 + $0x1c0] ss:$24 sps:$4 sm:$0xff]   ;;  %v3768_v12 = vld [vmem:[%s4821_s1 + $0x18c] ss:$24 sps:$4 sm:$0xff]  }
  0x5d   :  { %1242 = vmatprep.mubr.bf16.mxu0 %v4075_v16  ;;  %1322 = vmatprep.mubr.bf16.mxu1 %v4080_v17  ;;  %v3771_v14 = vld [vmem:[%s4821_s1 + $0x194] ss:$24 sps:$4 sm:$0xff]  }
  0x5f   :  { %1378 = vmatpush1.bf16.msra.mxu1 %v3694_v18  ;;  %1571 = vmatpush1.bf16.msra.mxu0 %v3697_v19  ;;  %v3766_v18 = vld [vmem:[%s4821_s1 + $0x188] ss:$24 sps:$4 sm:$0xff]  }
  0x60   :  { %1379 = vmatprep.subr.bf16.mxu1 %v3708_v20  ;;  %1572 = vmatprep.subr.bf16.mxu0 %v3711_v21  ;;  %v3769_v19 = vld [vmem:[%s4821_s1 + $0x190] ss:$24 sps:$4 sm:$0xff]  }
  0x62   :  { %1243 = vmatmul.mubr.bf16.gmra.mxu0 %v4101_v22  ;;  %1323 = vmatmul.mubr.bf16.gmra.mxu1 %v4106_v23 }
  0x63   :  { %1380 = vmatpush2.bf16.msra.mxu1 %v3706_v24  ;;  %1573 = vmatpush2.bf16.msra.mxu0 %v3709_v25 }
  0x64   :  { %1381 = vmatprep.subr.bf16.mxu1 %v3714_v26  ;;  %1574 = vmatprep.subr.bf16.mxu0 %v3717_v27 }
  0x65   :  { %1252 = vmatprep.mubr.bf16.mxu0 %v4123_v28  ;;  %1332 = vmatprep.mubr.bf16.mxu1 %v4128_v29 }
  0x67   :  { %1382 = vmatpush2.bf16.msra.mxu1 %v3712_v30  ;;  %1575 = vmatpush2.bf16.msra.mxu0 %v3715_v31 }
  0x68   :  { %1383 = vmatprep.subr.bf16.mxu1 %v3726_v32  ;;  %1576 = vmatprep.subr.bf16.mxu0 %v3729_v33 }
  0x6a   :  { %1253 = vmatmul.mubr.bf16.gmra.mxu0 %v4149_v34  ;;  %1333 = vmatmul.mubr.bf16.gmra.mxu1 %v4154_v36 }
  0x6b   :  { %1384 = vmatpush2.bf16.msra.mxu1 %v3724_v38  ;;  %1577 = vmatpush2.bf16.msra.mxu0 %v3727_v39 }
  0x6c   :  { %1385 = vmatprep.subr.bf16.mxu1 %v3732_v40  ;;  %1578 = vmatprep.subr.bf16.mxu0 %v3735_v41 }
  0x6d   :  { %1262 = vmatprep.mubr.bf16.mxu0 %v4171_v44  ;;  %1342 = vmatprep.mubr.bf16.mxu1 %v4176_v45 }
  0x6f   :  { %1386 = vmatpush2.bf16.msra.mxu1 %v3730_v46  ;;  %1579 = vmatpush2.bf16.msra.mxu0 %v3733_v48 }
  0x70   :  { %1387 = vmatprep.subr.bf16.mxu1 %v3744_v50  ;;  %1580 = vmatprep.subr.bf16.mxu0 %v3747_v51 }
  0x72   :  { %1263 = vmatmul.mubr.bf16.gmra.mxu0 %v4197_v52  ;;  %1343 = vmatmul.mubr.bf16.gmra.mxu1 %v4202_v53 }
  0x73   :  { %1388 = vmatpush2.bf16.msra.mxu1 %v3742_v56  ;;  %1581 = vmatpush2.bf16.msra.mxu0 %v3745_v57 }
  0x74   :  { %1389 = vmatprep.subr.bf16.mxu1 %v3750_v58  ;;  %1582 = vmatprep.subr.bf16.mxu0 %v3753_v60 }
  0x75   :  { %1272 = vmatprep.mubr.bf16.mxu0 %v3754_v62  ;;  %1352 = vmatprep.mubr.bf16.mxu1 %v4222_v63 }
  0x77   :  { %1390 = vmatpush2.bf16.msra.mxu1 %v3748_v0  ;;  %1583 = vmatpush2.bf16.msra.mxu0 %v3751_v1 }
  0x78   :  { %1391 = vmatprep.subr.bf16.mxu1 %v3762_v4  ;;  %1584 = vmatprep.subr.bf16.mxu0 %v3765_v5 }
  0x7a   :  { %1273 = vmatmul.mubr.bf16.gmra.mxu0 %v3758_v6  ;;  %1353 = vmatmul.mubr.bf16.gmra.mxu1 %v4245_v7 }
  0x7b   :  { %1392 = vmatpush2.bf16.msra.mxu1 %v3760_v10  ;;  %1585 = vmatpush2.bf16.msra.mxu0 %v3763_v11 }
  0x7c   :  { %1393 = vmatprep.subr.bf16.mxu1 %v3768_v12  ;;  %1586 = vmatprep.subr.bf16.mxu0 %v3771_v14 }
  0x7d   :  { %1395 = vmatprep.mubr.bf16.mxu1 %v3834_v13  ;;  %1588 = vmatprep.mubr.bf16.mxu0 %v3834_v13  ;;  %v2330_v13 = vlaneseq }
  0x7f   :  { %1394 = vmatpush2.bf16.msra.mxu1 %v3766_v18  ;;  %1587 = vmatpush2.bf16.msra.mxu0 %v3769_v19 }
  0x82   :  { %1396 = vmatmul.mubr.bf16.vlgmr.msra.gmra.mxu1 %v3906_v35  ;;  %1589 = vmatmul.mubr.bf16.vlgmr.msra.gmra.mxu0 %v3906_v35  ;;  %v2331_v35 = vshrl.u32 %v2330_v13, 7 }
  0x83   :  { %1405 = vmatprep.mubr.bf16.mxu1 %v3931_v42  ;;  %1598 = vmatprep.mubr.bf16.mxu0 %v3931_v42 }
  0x84   :  { %v2340_v42 = vsub.s32 2, %v2331_v35 }
  0x8a   :  { %1406 = vmatmul.mubr.bf16.gmra.mxu1 %v3952_v47  ;;  %1599 = vmatmul.mubr.bf16.gmra.mxu0 %v3952_v47  ;;  %v2348_v47 = vsub.s32 4, %v2331_v35 }
  0x8b   :  { %1415 = vmatprep.mubr.bf16.mxu1 %v3979_v54  ;;  %1608 = vmatprep.mubr.bf16.mxu0 %v3979_v54  ;;  %v2328_v54 = vld [vmem:[%s4823_s2] sm:$0x3f] }
  0x92   :  { %1416 = vmatmul.mubr.bf16.gmra.mxu1 %v4000_v59  ;;  %1609 = vmatmul.mubr.bf16.gmra.mxu0 %v4000_v59  ;;  %v4299_v59 = vrot.slane %v2328_v54, %v2340_v42 }
  0x93   :  { %1425 = vmatprep.mubr.bf16.mxu1 %v4027_v2  ;;  %1618 = vmatprep.mubr.bf16.mxu0 %v4027_v2  ;;  %v4301_v2 = vrot.slane %v2328_v54, %v2348_v47 }
  0x9a   :  { %1426 = vmatmul.mubr.bf16.gmra.mxu1 %v4053_v8  ;;  %1619 = vmatmul.mubr.bf16.gmra.mxu0 %v4053_v8  ;;  %v2344_v8 = vsub.s32 3, %v2331_v35 }
  0x9b   :  { %1435 = vmatprep.mubr.bf16.mxu1 %v4075_v16  ;;  %1628 = vmatprep.mubr.bf16.mxu0 %v4075_v16  ;;  %v2352_v16 = vsub.s32 5, %v2331_v35 }
  0x9d   :  { %v4309_v20 = vrot.slane %v2328_v54, %v2352_v16 }
  0xa2   :  { %1436 = vmatmul.mubr.bf16.gmra.mxu1 %v4101_v22  ;;  %1629 = vmatmul.mubr.bf16.gmra.mxu0 %v4101_v22 }
  0xa3   :  { %1445 = vmatprep.mubr.bf16.mxu1 %v4123_v28  ;;  %1638 = vmatprep.mubr.bf16.mxu0 %v4123_v28 }
  0xaa   :  { %1446 = vmatmul.mubr.bf16.gmra.mxu1 %v4149_v34  ;;  %1639 = vmatmul.mubr.bf16.gmra.mxu0 %v4149_v34 }
  0xab   :  { %1455 = vmatprep.mubr.bf16.mxu1 %v4171_v44  ;;  %1648 = vmatprep.mubr.bf16.mxu0 %v4171_v44 }
  0xb2   :  { %1456 = vmatmul.mubr.bf16.gmra.mxu1 %v4197_v52  ;;  %1649 = vmatmul.mubr.bf16.gmra.mxu0 %v4197_v52 }
  0xb3   :  { %1465 = vmatprep.mubr.bf16.mxu1 %v3754_v62  ;;  %1658 = vmatprep.mubr.bf16.mxu0 %v3754_v62 }
  0xba   :  { %1466 = vmatmul.mubr.bf16.gmra.mxu1 %v3758_v6  ;;  %1659 = vmatmul.mubr.bf16.gmra.mxu0 %v3758_v6 }
  0xbb   :  { %1475 = vmatprep.mubr.bf16.mxu1 %v3842_v15  ;;  %1668 = vmatprep.mubr.bf16.mxu0 %v3842_v15  ;;  %v4307_v15 = vrot.slane %v2328_v54, %v2344_v8 }
  0xc2   :  { %1476 = vmatmul.mubr.bf16.gmra.mxu1 %v3914_v37  ;;  %1669 = vmatmul.mubr.bf16.gmra.mxu0 %v3914_v37  ;;  %v2332_v37 = vsub.s32 0, %v2331_v35 }
  0xc3   :  { %1485 = vmatprep.mubr.bf16.mxu1 %v3936_v43  ;;  %1678 = vmatprep.mubr.bf16.mxu0 %v3936_v43  ;;  %v2336_v43 = vsub.s32 1, %v2331_v35 }
  0xca   :  { %1486 = vmatmul.mubr.bf16.gmra.mxu1 %v3962_v49  ;;  %1679 = vmatmul.mubr.bf16.gmra.mxu0 %v3962_v49  ;;  %v4337_v49 = vrot.slane %v2328_v54, %v2332_v37 }
  0xcb   :  { %1495 = vmatprep.mubr.bf16.mxu1 %v3984_v55  ;;  %1688 = vmatprep.mubr.bf16.mxu0 %v3984_v55  ;;  %v4339_v55 = vrot.slane %v2328_v54, %v2336_v43 }
  0xd2   :  { %1496 = vmatmul.mubr.bf16.gmra.mxu1 %v4010_v61  ;;  %1689 = vmatmul.mubr.bf16.gmra.mxu0 %v4010_v61 }
  0xd3   :  { %1505 = vmatprep.mubr.bf16.mxu1 %v4032_v3  ;;  %1698 = vmatprep.mubr.bf16.mxu0 %v4032_v3 }
  0xda   :  { %1506 = vmatmul.mubr.bf16.gmra.mxu1 %v4058_v9  ;;  %1699 = vmatmul.mubr.bf16.gmra.mxu0 %v4058_v9 }
  0xdb   :  { %1515 = vmatprep.mubr.bf16.mxu1 %v4080_v17  ;;  %1708 = vmatprep.mubr.bf16.mxu0 %v4080_v17 }
  0xe2   :  { %1516 = vmatmul.mubr.bf16.gmra.mxu1 %v4106_v23  ;;  %1709 = vmatmul.mubr.bf16.gmra.mxu0 %v4106_v23 }
  0xe3   :  { %1525 = vmatprep.mubr.bf16.mxu1 %v4128_v29  ;;  %1718 = vmatprep.mubr.bf16.mxu0 %v4128_v29 }
  0xea   :  { %1526 = vmatmul.mubr.bf16.gmra.mxu1 %v4154_v36  ;;  %1719 = vmatmul.mubr.bf16.gmra.mxu0 %v4154_v36 }
  0xeb   :  { %1535 = vmatprep.mubr.bf16.mxu1 %v4176_v45  ;;  %1728 = vmatprep.mubr.bf16.mxu0 %v4176_v45 }
  0xf2   :  { %1536 = vmatmul.mubr.bf16.gmra.mxu1 %v4202_v53  ;;  %1729 = vmatmul.mubr.bf16.gmra.mxu0 %v4202_v53 }
  0xf3   :  { %1545 = vmatprep.mubr.bf16.mxu1 %v4222_v63  ;;  %1738 = vmatprep.mubr.bf16.mxu0 %v4222_v63 }
  0xfa   :  { %1546 = vmatmul.mubr.bf16.gmra.mxu1 %v4245_v7  ;;  %1739 = vmatmul.mubr.bf16.gmra.mxu0 %v4245_v7 }
 0x102   :  { %v1204_v61 = vpop.f32.mrf.mxu0  ;;  %v1284_v3 = vpop.f32.mrf.mxu1 }
 0x103   :  { %v2360_v21 = vadd.f32 %v4337_v49, %v1204_v61  ;;  %v2456_v22 = vadd.f32 %v4337_v49, %v1284_v3 }
 0x104   :  { %v1206_v9 = vpop.f32.mrf.mxu0  ;;  %v1286_v17 = vpop.f32.mrf.mxu1 }
 0x105   :  { %v2361_v23 = vadd.f32 %v4339_v55, %v1206_v9  ;;  %v2457_v24 = vadd.f32 %v4339_v55, %v1286_v17 }
 0x106   :  { %v1208_v25 = vpop.f32.mrf.mxu0  ;;  %v1288_v26 = vpop.f32.mrf.mxu1 }
 0x107   :  { %v3452_v27 = vpack.c.bf16 %v2361_v23, %v2360_v21  ;;  %v3500_v28 = vpack.c.bf16 %v2457_v24, %v2456_v22  ;;  %v2366_v31 = vadd.f32 %v4337_v49, %v1208_v25  ;;  %v2462_v32 = vadd.f32 %v4337_v49, %v1288_v26 }
 0x108   :  { %v1210_v29 = vpop.f32.mrf.mxu0  ;;  %v1290_v30 = vpop.f32.mrf.mxu1 }
 0x109   :  { %3128 = vst [vmem:[%s4824_s3] sm:$0xff] %v3452_v27  ;;  %3176 = vst [vmem:[%s4824_s3 + $0x180] sm:$0xff] %v3500_v28  ;;  %v2367_v33 = vadd.f32 %v4339_v55, %v1210_v29  ;;  %v2463_v34 = vadd.f32 %v4339_v55, %v1290_v30 }
 0x10a   :  { %v1214_v36 = vpop.f32.mrf.mxu0  ;;  %v1294_v38 = vpop.f32.mrf.mxu1 }
 0x10b   :  { %v3455_v39 = vpack.c.bf16 %v2367_v33, %v2366_v31  ;;  %v3503_v40 = vpack.c.bf16 %v2463_v34, %v2462_v32  ;;  %v2372_v45 = vadd.f32 %v4337_v49, %v1214_v36  ;;  %v2468_v46 = vadd.f32 %v4337_v49, %v1294_v38 }
 0x10c   :  { %v1216_v41 = vpop.f32.mrf.mxu0  ;;  %v1296_v44 = vpop.f32.mrf.mxu1 }
 0x10d   :  { %3131 = vst [vmem:[%s4824_s3 + $0x18] sm:$0xff] %v3455_v39  ;;  %3179 = vst [vmem:[%s4824_s3 + $0x198] sm:$0xff] %v3503_v40  ;;  %v2373_v48 = vadd.f32 %v4339_v55, %v1216_v41  ;;  %v2469_v50 = vadd.f32 %v4339_v55, %v1296_v44 }
 0x10e   :  { %v1218_v51 = vpop.f32.mrf.mxu0  ;;  %v1298_v52 = vpop.f32.mrf.mxu1 }
 0x10f   :  { %v3458_v53 = vpack.c.bf16 %v2373_v48, %v2372_v45  ;;  %v3506_v56 = vpack.c.bf16 %v2469_v50, %v2468_v46  ;;  %v2378_v60 = vadd.f32 %v4337_v49, %v1218_v51  ;;  %v2474_v62 = vadd.f32 %v4337_v49, %v1298_v52 }
 0x110   :  { %v1220_v57 = vpop.f32.mrf.mxu0  ;;  %v1300_v58 = vpop.f32.mrf.mxu1 }
 0x111   :  { %3134 = vst [vmem:[%s4824_s3 + $0x30] sm:$0xff] %v3458_v53  ;;  %3182 = vst [vmem:[%s4824_s3 + $0x1b0] sm:$0xff] %v3506_v56  ;;  %v2379_v63 = vadd.f32 %v4339_v55, %v1220_v57  ;;  %v2475_v0 = vadd.f32 %v4339_v55, %v1300_v58 }
 0x112   :  { %v1224_v1 = vpop.f32.mrf.mxu0  ;;  %v1304_v4 = vpop.f32.mrf.mxu1 }
 0x113   :  { %v3461_v5 = vpack.c.bf16 %v2379_v63, %v2378_v60  ;;  %v3509_v6 = vpack.c.bf16 %v2475_v0, %v2474_v62  ;;  %v2384_v11 = vadd.f32 %v4337_v49, %v1224_v1  ;;  %v2480_v12 = vadd.f32 %v4337_v49, %v1304_v4 }
 0x114   :  { %v1226_v7 = vpop.f32.mrf.mxu0  ;;  %v1306_v10 = vpop.f32.mrf.mxu1 }
 0x115   :  { %3137 = vst [vmem:[%s4824_s3 + $0x48] sm:$0xff] %v3461_v5  ;;  %3185 = vst [vmem:[%s4824_s3 + $0x1c8] sm:$0xff] %v3509_v6  ;;  %v2385_v14 = vadd.f32 %v4339_v55, %v1226_v7  ;;  %v2481_v18 = vadd.f32 %v4339_v55, %v1306_v10 }
 0x116   :  { %v1228_v19 = vpop.f32.mrf.mxu0  ;;  %v1308_v13 = vpop.f32.mrf.mxu1 }
 0x117   :  { %v3464_v35 = vpack.c.bf16 %v2385_v14, %v2384_v11  ;;  %v3512_v42 = vpack.c.bf16 %v2481_v18, %v2480_v12  ;;  %v2390_v8 = vadd.f32 %v4337_v49, %v1228_v19  ;;  %v2486_v16 = vadd.f32 %v4337_v49, %v1308_v13 }
 0x118   :  { %v1230_v47 = vpop.f32.mrf.mxu0  ;;  %v1310_v54 = vpop.f32.mrf.mxu1 }
 0x119   :  { %3140 = vst [vmem:[%s4824_s3 + $0x60] sm:$0xff] %v3464_v35  ;;  %3188 = vst [vmem:[%s4824_s3 + $0x1e0] sm:$0xff] %v3512_v42  ;;  %v2391_v37 = vadd.f32 %v4339_v55, %v1230_v47  ;;  %v2487_v43 = vadd.f32 %v4339_v55, %v1310_v54 }
 0x11a   :  { %v1234_v61 = vpop.f32.mrf.mxu0  ;;  %v1314_v3 = vpop.f32.mrf.mxu1 }
 0x11b   :  { %v3467_v9 = vpack.c.bf16 %v2391_v37, %v2390_v8  ;;  %v3515_v17 = vpack.c.bf16 %v2487_v43, %v2486_v16  ;;  %v2396_v23 = vadd.f32 %v4337_v49, %v1234_v61  ;;  %v2492_v24 = vadd.f32 %v4337_v49, %v1314_v3 }
 0x11c   :  { %v1236_v21 = vpop.f32.mrf.mxu0  ;;  %v1316_v22 = vpop.f32.mrf.mxu1 }
 0x11d   :  { %3143 = vst [vmem:[%s4824_s3 + $0x78] sm:$0xff] %v3467_v9  ;;  %3191 = vst [vmem:[%s4824_s3 + $0x1f8] sm:$0xff] %v3515_v17  ;;  %v2397_v25 = vadd.f32 %v4339_v55, %v1236_v21  ;;  %v2493_v26 = vadd.f32 %v4339_v55, %v1316_v22 }
 0x11e   :  { %v1238_v27 = vpop.f32.mrf.mxu0  ;;  %v1318_v28 = vpop.f32.mrf.mxu1 }
 0x11f   :  { %v3470_v29 = vpack.c.bf16 %v2397_v25, %v2396_v23  ;;  %v3518_v30 = vpack.c.bf16 %v2493_v26, %v2492_v24  ;;  %v2402_v33 = vadd.f32 %v4337_v49, %v1238_v27  ;;  %v2498_v34 = vadd.f32 %v4337_v49, %v1318_v28 }
 0x120   :  { %v1240_v31 = vpop.f32.mrf.mxu0  ;;  %v1320_v32 = vpop.f32.mrf.mxu1 }
 0x121   :  { %3146 = vst [vmem:[%s4824_s3 + $0x90] sm:$0xff] %v3470_v29  ;;  %3194 = vst [vmem:[%s4824_s3 + $0x210] sm:$0xff] %v3518_v30  ;;  %v2403_v36 = vadd.f32 %v4339_v55, %v1240_v31  ;;  %v2499_v38 = vadd.f32 %v4339_v55, %v1320_v32 }
 0x122   :  { %v1244_v39 = vpop.f32.mrf.mxu0  ;;  %v1324_v40 = vpop.f32.mrf.mxu1 }
 0x123   :  { %v3473_v41 = vpack.c.bf16 %v2403_v36, %v2402_v33  ;;  %v3521_v44 = vpack.c.bf16 %v2499_v38, %v2498_v34  ;;  %v2408_v48 = vadd.f32 %v4337_v49, %v1244_v39  ;;  %v2504_v50 = vadd.f32 %v4337_v49, %v1324_v40 }
 0x124   :  { %v1246_v45 = vpop.f32.mrf.mxu0  ;;  %v1326_v46 = vpop.f32.mrf.mxu1 }
 0x125   :  { %3149 = vst [vmem:[%s4824_s3 + $0xa8] sm:$0xff] %v3473_v41  ;;  %3197 = vst [vmem:[%s4824_s3 + $0x228] sm:$0xff] %v3521_v44  ;;  %v2409_v51 = vadd.f32 %v4339_v55, %v1246_v45  ;;  %v2505_v52 = vadd.f32 %v4339_v55, %v1326_v46 }
 0x126   :  { %v1248_v53 = vpop.f32.mrf.mxu0  ;;  %v1328_v56 = vpop.f32.mrf.mxu1 }
 0x127   :  { %v3476_v57 = vpack.c.bf16 %v2409_v51, %v2408_v48  ;;  %v3524_v58 = vpack.c.bf16 %v2505_v52, %v2504_v50  ;;  %v2414_v63 = vadd.f32 %v4337_v49, %v1248_v53  ;;  %v2510_v0 = vadd.f32 %v4337_v49, %v1328_v56 }
 0x128   :  { %v1250_v60 = vpop.f32.mrf.mxu0  ;;  %v1330_v62 = vpop.f32.mrf.mxu1 }
 0x129   :  { %3152 = vst [vmem:[%s4824_s3 + $0xc0] sm:$0xff] %v3476_v57  ;;  %3200 = vst [vmem:[%s4824_s3 + $0x240] sm:$0xff] %v3524_v58  ;;  %v2415_v1 = vadd.f32 %v4339_v55, %v1250_v60  ;;  %v2511_v4 = vadd.f32 %v4339_v55, %v1330_v62 }
 0x12a   :  { %v1254_v5 = vpop.f32.mrf.mxu0  ;;  %v1334_v6 = vpop.f32.mrf.mxu1 }
 0x12b   :  { %v3479_v7 = vpack.c.bf16 %v2415_v1, %v2414_v63  ;;  %v3527_v10 = vpack.c.bf16 %v2511_v4, %v2510_v0  ;;  %v2420_v14 = vadd.f32 %v4337_v49, %v1254_v5  ;;  %v2516_v18 = vadd.f32 %v4337_v49, %v1334_v6 }
 0x12c   :  { %v1256_v11 = vpop.f32.mrf.mxu0  ;;  %v1336_v12 = vpop.f32.mrf.mxu1 }
 0x12d   :  { %3155 = vst [vmem:[%s4824_s3 + $0xd8] sm:$0xff] %v3479_v7  ;;  %3203 = vst [vmem:[%s4824_s3 + $0x258] sm:$0xff] %v3527_v10  ;;  %v2421_v19 = vadd.f32 %v4339_v55, %v1256_v11  ;;  %v2517_v13 = vadd.f32 %v4339_v55, %v1336_v12 }
 0x12e   :  { %v1258_v35 = vpop.f32.mrf.mxu0  ;;  %v1338_v42 = vpop.f32.mrf.mxu1 }
 0x12f   :  { %v3482_v47 = vpack.c.bf16 %v2421_v19, %v2420_v14  ;;  %v3530_v54 = vpack.c.bf16 %v2517_v13, %v2516_v18  ;;  %v2426_v37 = vadd.f32 %v4337_v49, %v1258_v35  ;;  %v2522_v43 = vadd.f32 %v4337_v49, %v1338_v42 }
 0x130   :  { %v1260_v8 = vpop.f32.mrf.mxu0  ;;  %v1340_v16 = vpop.f32.mrf.mxu1 }
 0x131   :  { %3158 = vst [vmem:[%s4824_s3 + $0xf0] sm:$0xff] %v3482_v47  ;;  %3206 = vst [vmem:[%s4824_s3 + $0x270] sm:$0xff] %v3530_v54  ;;  %v2427_v61 = vadd.f32 %v4339_v55, %v1260_v8  ;;  %v2523_v3 = vadd.f32 %v4339_v55, %v1340_v16 }
 0x132   :  { %v1264_v9 = vpop.f32.mrf.mxu0  ;;  %v1344_v17 = vpop.f32.mrf.mxu1 }
 0x133   :  { %v3485_v21 = vpack.c.bf16 %v2427_v61, %v2426_v37  ;;  %v3533_v22 = vpack.c.bf16 %v2523_v3, %v2522_v43  ;;  %v2432_v25 = vadd.f32 %v4337_v49, %v1264_v9  ;;  %v2528_v26 = vadd.f32 %v4337_v49, %v1344_v17 }
 0x134   :  { %v1266_v23 = vpop.f32.mrf.mxu0  ;;  %v1346_v24 = vpop.f32.mrf.mxu1 }
 0x135   :  { %3161 = vst [vmem:[%s4824_s3 + $0x108] sm:$0xff] %v3485_v21  ;;  %3209 = vst [vmem:[%s4824_s3 + $0x288] sm:$0xff] %v3533_v22  ;;  %v2433_v27 = vadd.f32 %v4339_v55, %v1266_v23  ;;  %v2529_v28 = vadd.f32 %v4339_v55, %v1346_v24 }
 0x136   :  { %v1268_v29 = vpop.f32.mrf.mxu0  ;;  %v1348_v30 = vpop.f32.mrf.mxu1 }
 0x137   :  { %v3488_v31 = vpack.c.bf16 %v2433_v27, %v2432_v25  ;;  %v3536_v32 = vpack.c.bf16 %v2529_v28, %v2528_v26  ;;  %v2438_v36 = vadd.f32 %v4337_v49, %v1268_v29  ;;  %v2534_v38 = vadd.f32 %v4337_v49, %v1348_v30 }
 0x138   :  { %v1270_v33 = vpop.f32.mrf.mxu0  ;;  %v1350_v34 = vpop.f32.mrf.mxu1 }
 0x139   :  { %3164 = vst [vmem:[%s4824_s3 + $0x120] sm:$0xff] %v3488_v31  ;;  %3212 = vst [vmem:[%s4824_s3 + $0x2a0] sm:$0xff] %v3536_v32  ;;  %v2439_v39 = vadd.f32 %v4339_v55, %v1270_v33  ;;  %v2535_v40 = vadd.f32 %v4339_v55, %v1350_v34 }
 0x13a   :  { %v1274_v41 = vpop.f32.mrf.mxu0  ;;  %v1354_v44 = vpop.f32.mrf.mxu1 }
 0x13b   :  { %v3491_v45 = vpack.c.bf16 %v2439_v39, %v2438_v36  ;;  %v3539_v46 = vpack.c.bf16 %v2535_v40, %v2534_v38  ;;  %v2444_v51 = vadd.f32 %v4337_v49, %v1274_v41  ;;  %v2540_v52 = vadd.f32 %v4337_v49, %v1354_v44 }
 0x13c   :  { %v1276_v48 = vpop.f32.mrf.mxu0  ;;  %v1356_v50 = vpop.f32.mrf.mxu1 }
 0x13d   :  { %3167 = vst [vmem:[%s4824_s3 + $0x138] sm:$0xff] %v3491_v45  ;;  %3215 = vst [vmem:[%s4824_s3 + $0x2b8] sm:$0xff] %v3539_v46  ;;  %v2445_v53 = vadd.f32 %v4339_v55, %v1276_v48  ;;  %v2541_v56 = vadd.f32 %v4339_v55, %v1356_v50 }
 0x13e   :  { %v1278_v57 = vpop.f32.mrf.mxu0  ;;  %v1358_v58 = vpop.f32.mrf.mxu1 }
 0x13f   :  { %v3494_v60 = vpack.c.bf16 %v2445_v53, %v2444_v51  ;;  %v3542_v62 = vpack.c.bf16 %v2541_v56, %v2540_v52  ;;  %v2450_v1 = vadd.f32 %v4337_v49, %v1278_v57  ;;  %v2546_v4 = vadd.f32 %v4337_v49, %v1358_v58 }
 0x140   :  { %v1280_v63 = vpop.f32.mrf.mxu0  ;;  %v1360_v0 = vpop.f32.mrf.mxu1 }
 0x141   :  { %3170 = vst [vmem:[%s4824_s3 + $0x150] sm:$0xff] %v3494_v60  ;;  %3218 = vst [vmem:[%s4824_s3 + $0x2d0] sm:$0xff] %v3542_v62  ;;  %v2451_v5 = vadd.f32 %v4339_v55, %v1280_v63  ;;  %v2547_v6 = vadd.f32 %v4339_v55, %v1360_v0 }
 0x142   :  { %v1397_v7 = vpop.f32.mrf.mxu1  ;;  %v1590_v10 = vpop.f32.mrf.mxu0 }
 0x143   :  { %v3497_v11 = vpack.c.bf16 %v2451_v5, %v2450_v1  ;;  %v3545_v12 = vpack.c.bf16 %v2547_v6, %v2546_v4  ;;  %v2362_v49 = vadd.f32 %v4299_v59, %v1397_v7  ;;  %v2364_v19 = vadd.f32 %v4301_v2, %v1590_v10 }
 0x144   :  { %v1399_v14 = vpop.f32.mrf.mxu1  ;;  %v1592_v18 = vpop.f32.mrf.mxu0 }
 0x145   :  { %3173 = vst [vmem:[%s4824_s3 + $0x168] sm:$0xff] %v3497_v11  ;;  %3221 = vst [vmem:[%s4824_s3 + $0x2e8] sm:$0xff] %v3545_v12  ;;  %v2363_v55 = vadd.f32 %v4307_v15, %v1399_v14  ;;  %v2365_v13 = vadd.f32 %v4309_v20, %v1592_v18 }
 0x146   :  { %v1401_v35 = vpop.f32.mrf.mxu1  ;;  %v1594_v42 = vpop.f32.mrf.mxu0 }
 0x147   :  { %v3453_v47 = vpack.c.bf16 %v2363_v55, %v2362_v49  ;;  %v3454_v54 = vpack.c.bf16 %v2365_v13, %v2364_v19  ;;  %v2368_v37 = vadd.f32 %v4299_v59, %v1401_v35  ;;  %v2370_v43 = vadd.f32 %v4301_v2, %v1594_v42 }
 0x148   :  { %v1403_v8 = vpop.f32.mrf.mxu1  ;;  %v1596_v16 = vpop.f32.mrf.mxu0 }
 0x149   :  { %3129 = vst [vmem:[%s4824_s3 + $0x8] sm:$0xff] %v3453_v47  ;;  %3130 = vst [vmem:[%s4824_s3 + $0x10] sm:$0xff] %v3454_v54  ;;  %v2369_v61 = vadd.f32 %v4307_v15, %v1403_v8  ;;  %v2371_v3 = vadd.f32 %v4309_v20, %v1596_v16 }
 0x14a   :  { %v1407_v9 = vpop.f32.mrf.mxu1  ;;  %v1600_v17 = vpop.f32.mrf.mxu0 }
 0x14b   :  { %v3456_v21 = vpack.c.bf16 %v2369_v61, %v2368_v37  ;;  %v3457_v22 = vpack.c.bf16 %v2371_v3, %v2370_v43  ;;  %v2374_v25 = vadd.f32 %v4299_v59, %v1407_v9  ;;  %v2376_v26 = vadd.f32 %v4301_v2, %v1600_v17 }
 0x14c   :  { %v1409_v23 = vpop.f32.mrf.mxu1  ;;  %v1602_v24 = vpop.f32.mrf.mxu0 }
 0x14d   :  { %3132 = vst [vmem:[%s4824_s3 + $0x20] sm:$0xff] %v3456_v21  ;;  %3133 = vst [vmem:[%s4824_s3 + $0x28] sm:$0xff] %v3457_v22  ;;  %v2375_v27 = vadd.f32 %v4307_v15, %v1409_v23  ;;  %v2377_v28 = vadd.f32 %v4309_v20, %v1602_v24 }
 0x14e   :  { %v1411_v29 = vpop.f32.mrf.mxu1  ;;  %v1604_v30 = vpop.f32.mrf.mxu0 }
 0x14f   :  { %v3459_v31 = vpack.c.bf16 %v2375_v27, %v2374_v25  ;;  %v3460_v32 = vpack.c.bf16 %v2377_v28, %v2376_v26  ;;  %v2380_v36 = vadd.f32 %v4299_v59, %v1411_v29  ;;  %v2382_v38 = vadd.f32 %v4301_v2, %v1604_v30 }
 0x150   :  { %v1413_v33 = vpop.f32.mrf.mxu1  ;;  %v1606_v34 = vpop.f32.mrf.mxu0 }
 0x151   :  { %3135 = vst [vmem:[%s4824_s3 + $0x38] sm:$0xff] %v3459_v31  ;;  %3136 = vst [vmem:[%s4824_s3 + $0x40] sm:$0xff] %v3460_v32  ;;  %v2381_v39 = vadd.f32 %v4307_v15, %v1413_v33  ;;  %v2383_v40 = vadd.f32 %v4309_v20, %v1606_v34 }
 0x152   :  { %v1417_v41 = vpop.f32.mrf.mxu1  ;;  %v1610_v44 = vpop.f32.mrf.mxu0 }
 0x153   :  { %v3462_v45 = vpack.c.bf16 %v2381_v39, %v2380_v36  ;;  %v3463_v46 = vpack.c.bf16 %v2383_v40, %v2382_v38  ;;  %v2386_v51 = vadd.f32 %v4299_v59, %v1417_v41  ;;  %v2388_v52 = vadd.f32 %v4301_v2, %v1610_v44 }
 0x154   :  { %v1419_v48 = vpop.f32.mrf.mxu1  ;;  %v1612_v50 = vpop.f32.mrf.mxu0 }
 0x155   :  { %3138 = vst [vmem:[%s4824_s3 + $0x50] sm:$0xff] %v3462_v45  ;;  %3139 = vst [vmem:[%s4824_s3 + $0x58] sm:$0xff] %v3463_v46  ;;  %v2387_v53 = vadd.f32 %v4307_v15, %v1419_v48  ;;  %v2389_v56 = vadd.f32 %v4309_v20, %v1612_v50 }
 0x156   :  { %v1421_v57 = vpop.f32.mrf.mxu1  ;;  %v1614_v58 = vpop.f32.mrf.mxu0 }
 0x157   :  { %v3465_v60 = vpack.c.bf16 %v2387_v53, %v2386_v51  ;;  %v3466_v62 = vpack.c.bf16 %v2389_v56, %v2388_v52  ;;  %v2392_v1 = vadd.f32 %v4299_v59, %v1421_v57  ;;  %v2394_v4 = vadd.f32 %v4301_v2, %v1614_v58 }
 0x158   :  { %v1423_v63 = vpop.f32.mrf.mxu1  ;;  %v1616_v0 = vpop.f32.mrf.mxu0 }
 0x159   :  { %3141 = vst [vmem:[%s4824_s3 + $0x68] sm:$0xff] %v3465_v60  ;;  %3142 = vst [vmem:[%s4824_s3 + $0x70] sm:$0xff] %v3466_v62  ;;  %v2393_v5 = vadd.f32 %v4307_v15, %v1423_v63  ;;  %v2395_v6 = vadd.f32 %v4309_v20, %v1616_v0 }
 0x15a   :  { %v1427_v7 = vpop.f32.mrf.mxu1  ;;  %v1620_v10 = vpop.f32.mrf.mxu0 }
 0x15b   :  { %v3468_v11 = vpack.c.bf16 %v2393_v5, %v2392_v1  ;;  %v3469_v12 = vpack.c.bf16 %v2395_v6, %v2394_v4  ;;  %v2398_v49 = vadd.f32 %v4299_v59, %v1427_v7  ;;  %v2400_v19 = vadd.f32 %v4301_v2, %v1620_v10 }
 0x15c   :  { %v1429_v14 = vpop.f32.mrf.mxu1  ;;  %v1622_v18 = vpop.f32.mrf.mxu0 }
 0x15d   :  { %3144 = vst [vmem:[%s4824_s3 + $0x80] sm:$0xff] %v3468_v11  ;;  %3145 = vst [vmem:[%s4824_s3 + $0x88] sm:$0xff] %v3469_v12  ;;  %v2399_v55 = vadd.f32 %v4307_v15, %v1429_v14  ;;  %v2401_v13 = vadd.f32 %v4309_v20, %v1622_v18 }
 0x15e   :  { %v1431_v35 = vpop.f32.mrf.mxu1  ;;  %v1624_v42 = vpop.f32.mrf.mxu0 }
 0x15f   :  { %v3471_v47 = vpack.c.bf16 %v2399_v55, %v2398_v49  ;;  %v3472_v54 = vpack.c.bf16 %v2401_v13, %v2400_v19  ;;  %v2404_v37 = vadd.f32 %v4299_v59, %v1431_v35  ;;  %v2406_v43 = vadd.f32 %v4301_v2, %v1624_v42 }
 0x160   :  { %v1433_v8 = vpop.f32.mrf.mxu1  ;;  %v1626_v16 = vpop.f32.mrf.mxu0 }
 0x161   :  { %3147 = vst [vmem:[%s4824_s3 + $0x98] sm:$0xff] %v3471_v47  ;;  %3148 = vst [vmem:[%s4824_s3 + $0xa0] sm:$0xff] %v3472_v54  ;;  %v2405_v61 = vadd.f32 %v4307_v15, %v1433_v8  ;;  %v2407_v3 = vadd.f32 %v4309_v20, %v1626_v16 }
 0x162   :  { %v1437_v9 = vpop.f32.mrf.mxu1  ;;  %v1630_v17 = vpop.f32.mrf.mxu0 }
 0x163   :  { %v3474_v21 = vpack.c.bf16 %v2405_v61, %v2404_v37  ;;  %v3475_v22 = vpack.c.bf16 %v2407_v3, %v2406_v43  ;;  %v2410_v25 = vadd.f32 %v4299_v59, %v1437_v9  ;;  %v2412_v26 = vadd.f32 %v4301_v2, %v1630_v17 }
 0x164   :  { %v1439_v23 = vpop.f32.mrf.mxu1  ;;  %v1632_v24 = vpop.f32.mrf.mxu0 }
 0x165   :  { %3150 = vst [vmem:[%s4824_s3 + $0xb0] sm:$0xff] %v3474_v21  ;;  %3151 = vst [vmem:[%s4824_s3 + $0xb8] sm:$0xff] %v3475_v22  ;;  %v2411_v27 = vadd.f32 %v4307_v15, %v1439_v23  ;;  %v2413_v28 = vadd.f32 %v4309_v20, %v1632_v24 }
 0x166   :  { %v1441_v29 = vpop.f32.mrf.mxu1  ;;  %v1634_v30 = vpop.f32.mrf.mxu0 }
 0x167   :  { %v3477_v31 = vpack.c.bf16 %v2411_v27, %v2410_v25  ;;  %v3478_v32 = vpack.c.bf16 %v2413_v28, %v2412_v26  ;;  %v2416_v36 = vadd.f32 %v4299_v59, %v1441_v29  ;;  %v2418_v38 = vadd.f32 %v4301_v2, %v1634_v30 }
 0x168   :  { %v1443_v33 = vpop.f32.mrf.mxu1  ;;  %v1636_v34 = vpop.f32.mrf.mxu0 }
 0x169   :  { %3153 = vst [vmem:[%s4824_s3 + $0xc8] sm:$0xff] %v3477_v31  ;;  %3154 = vst [vmem:[%s4824_s3 + $0xd0] sm:$0xff] %v3478_v32  ;;  %v2417_v39 = vadd.f32 %v4307_v15, %v1443_v33  ;;  %v2419_v40 = vadd.f32 %v4309_v20, %v1636_v34 }
 0x16a   :  { %v1447_v41 = vpop.f32.mrf.mxu1  ;;  %v1640_v44 = vpop.f32.mrf.mxu0 }
 0x16b   :  { %v3480_v45 = vpack.c.bf16 %v2417_v39, %v2416_v36  ;;  %v3481_v46 = vpack.c.bf16 %v2419_v40, %v2418_v38  ;;  %v2422_v51 = vadd.f32 %v4299_v59, %v1447_v41  ;;  %v2424_v52 = vadd.f32 %v4301_v2, %v1640_v44 }
 0x16c   :  { %v1449_v48 = vpop.f32.mrf.mxu1  ;;  %v1642_v50 = vpop.f32.mrf.mxu0 }
 0x16d   :  { %3156 = vst [vmem:[%s4824_s3 + $0xe0] sm:$0xff] %v3480_v45  ;;  %3157 = vst [vmem:[%s4824_s3 + $0xe8] sm:$0xff] %v3481_v46  ;;  %v2423_v53 = vadd.f32 %v4307_v15, %v1449_v48  ;;  %v2425_v56 = vadd.f32 %v4309_v20, %v1642_v50 }
 0x16e   :  { %v1451_v57 = vpop.f32.mrf.mxu1  ;;  %v1644_v58 = vpop.f32.mrf.mxu0 }
 0x16f   :  { %v3483_v60 = vpack.c.bf16 %v2423_v53, %v2422_v51  ;;  %v3484_v62 = vpack.c.bf16 %v2425_v56, %v2424_v52  ;;  %v2428_v1 = vadd.f32 %v4299_v59, %v1451_v57  ;;  %v2430_v4 = vadd.f32 %v4301_v2, %v1644_v58 }
 0x170   :  { %v1453_v63 = vpop.f32.mrf.mxu1  ;;  %v1646_v0 = vpop.f32.mrf.mxu0 }
 0x171   :  { %3159 = vst [vmem:[%s4824_s3 + $0xf8] sm:$0xff] %v3483_v60  ;;  %3160 = vst [vmem:[%s4824_s3 + $0x100] sm:$0xff] %v3484_v62  ;;  %v2429_v5 = vadd.f32 %v4307_v15, %v1453_v63  ;;  %v2431_v6 = vadd.f32 %v4309_v20, %v1646_v0 }
 0x172   :  { %v1457_v7 = vpop.f32.mrf.mxu1  ;;  %v1650_v10 = vpop.f32.mrf.mxu0 }
 0x173   :  { %v3486_v11 = vpack.c.bf16 %v2429_v5, %v2428_v1  ;;  %v3487_v12 = vpack.c.bf16 %v2431_v6, %v2430_v4  ;;  %v2434_v49 = vadd.f32 %v4299_v59, %v1457_v7  ;;  %v2436_v19 = vadd.f32 %v4301_v2, %v1650_v10 }
 0x174   :  { %v1459_v14 = vpop.f32.mrf.mxu1  ;;  %v1652_v18 = vpop.f32.mrf.mxu0 }
 0x175   :  { %3162 = vst [vmem:[%s4824_s3 + $0x110] sm:$0xff] %v3486_v11  ;;  %3163 = vst [vmem:[%s4824_s3 + $0x118] sm:$0xff] %v3487_v12  ;;  %v2435_v55 = vadd.f32 %v4307_v15, %v1459_v14  ;;  %v2437_v13 = vadd.f32 %v4309_v20, %v1652_v18 }
 0x176   :  { %v1461_v35 = vpop.f32.mrf.mxu1  ;;  %v1654_v42 = vpop.f32.mrf.mxu0 }
 0x177   :  { %v3489_v47 = vpack.c.bf16 %v2435_v55, %v2434_v49  ;;  %v3490_v54 = vpack.c.bf16 %v2437_v13, %v2436_v19  ;;  %v2440_v37 = vadd.f32 %v4299_v59, %v1461_v35  ;;  %v2442_v43 = vadd.f32 %v4301_v2, %v1654_v42 }
 0x178   :  { %v1463_v8 = vpop.f32.mrf.mxu1  ;;  %v1656_v16 = vpop.f32.mrf.mxu0 }
 0x179   :  { %3165 = vst [vmem:[%s4824_s3 + $0x128] sm:$0xff] %v3489_v47  ;;  %3166 = vst [vmem:[%s4824_s3 + $0x130] sm:$0xff] %v3490_v54  ;;  %v2441_v61 = vadd.f32 %v4307_v15, %v1463_v8  ;;  %v2443_v3 = vadd.f32 %v4309_v20, %v1656_v16 }
 0x17a   :  { %v1467_v9 = vpop.f32.mrf.mxu1  ;;  %v1660_v17 = vpop.f32.mrf.mxu0 }
 0x17b   :  { %v3492_v21 = vpack.c.bf16 %v2441_v61, %v2440_v37  ;;  %v3493_v22 = vpack.c.bf16 %v2443_v3, %v2442_v43  ;;  %v2446_v25 = vadd.f32 %v4299_v59, %v1467_v9  ;;  %v2448_v26 = vadd.f32 %v4301_v2, %v1660_v17 }
 0x17c   :  { %v1469_v23 = vpop.f32.mrf.mxu1  ;;  %v1662_v24 = vpop.f32.mrf.mxu0 }
 0x17d   :  { %3168 = vst [vmem:[%s4824_s3 + $0x140] sm:$0xff] %v3492_v21  ;;  %3169 = vst [vmem:[%s4824_s3 + $0x148] sm:$0xff] %v3493_v22  ;;  %v2447_v27 = vadd.f32 %v4307_v15, %v1469_v23  ;;  %v2449_v28 = vadd.f32 %v4309_v20, %v1662_v24 }
 0x17e   :  { %v1471_v29 = vpop.f32.mrf.mxu1  ;;  %v1664_v30 = vpop.f32.mrf.mxu0 }
 0x17f   :  { %v3495_v31 = vpack.c.bf16 %v2447_v27, %v2446_v25  ;;  %v3496_v32 = vpack.c.bf16 %v2449_v28, %v2448_v26  ;;  %v2452_v36 = vadd.f32 %v4299_v59, %v1471_v29  ;;  %v2454_v38 = vadd.f32 %v4301_v2, %v1664_v30 }
 0x180   :  { %v1473_v33 = vpop.f32.mrf.mxu1  ;;  %v1666_v34 = vpop.f32.mrf.mxu0 }
 0x181   :  { %3171 = vst [vmem:[%s4824_s3 + $0x158] sm:$0xff] %v3495_v31  ;;  %3172 = vst [vmem:[%s4824_s3 + $0x160] sm:$0xff] %v3496_v32  ;;  %v2453_v39 = vadd.f32 %v4307_v15, %v1473_v33  ;;  %v2455_v40 = vadd.f32 %v4309_v20, %v1666_v34 }
 0x182   :  { %v1477_v41 = vpop.f32.mrf.mxu1  ;;  %v1670_v44 = vpop.f32.mrf.mxu0 }
 0x183   :  { %v3498_v45 = vpack.c.bf16 %v2453_v39, %v2452_v36  ;;  %v3499_v46 = vpack.c.bf16 %v2455_v40, %v2454_v38  ;;  %v2458_v51 = vadd.f32 %v4299_v59, %v1477_v41  ;;  %v2460_v52 = vadd.f32 %v4301_v2, %v1670_v44 }
 0x184   :  { %v1479_v48 = vpop.f32.mrf.mxu1  ;;  %v1672_v50 = vpop.f32.mrf.mxu0 }
 0x185   :  { %3174 = vst [vmem:[%s4824_s3 + $0x170] sm:$0xff] %v3498_v45  ;;  %3175 = vst [vmem:[%s4824_s3 + $0x178] sm:$0xff] %v3499_v46  ;;  %v2459_v53 = vadd.f32 %v4307_v15, %v1479_v48  ;;  %v2461_v56 = vadd.f32 %v4309_v20, %v1672_v50 }
 0x186   :  { %v1481_v57 = vpop.f32.mrf.mxu1  ;;  %v1674_v58 = vpop.f32.mrf.mxu0 }
 0x187   :  { %v3501_v60 = vpack.c.bf16 %v2459_v53, %v2458_v51  ;;  %v3502_v62 = vpack.c.bf16 %v2461_v56, %v2460_v52  ;;  %v2464_v1 = vadd.f32 %v4299_v59, %v1481_v57  ;;  %v2466_v4 = vadd.f32 %v4301_v2, %v1674_v58 }
 0x188   :  { %v1483_v63 = vpop.f32.mrf.mxu1  ;;  %v1676_v0 = vpop.f32.mrf.mxu0 }
 0x189   :  { %3177 = vst [vmem:[%s4824_s3 + $0x188] sm:$0xff] %v3501_v60  ;;  %3178 = vst [vmem:[%s4824_s3 + $0x190] sm:$0xff] %v3502_v62  ;;  %v2465_v5 = vadd.f32 %v4307_v15, %v1483_v63  ;;  %v2467_v6 = vadd.f32 %v4309_v20, %v1676_v0 }
 0x18a   :  { %v1487_v7 = vpop.f32.mrf.mxu1  ;;  %v1680_v10 = vpop.f32.mrf.mxu0 }
 0x18b   :  { %v3504_v11 = vpack.c.bf16 %v2465_v5, %v2464_v1  ;;  %v3505_v12 = vpack.c.bf16 %v2467_v6, %v2466_v4  ;;  %v2470_v49 = vadd.f32 %v4299_v59, %v1487_v7  ;;  %v2472_v19 = vadd.f32 %v4301_v2, %v1680_v10 }
 0x18c   :  { %v1489_v14 = vpop.f32.mrf.mxu1  ;;  %v1682_v18 = vpop.f32.mrf.mxu0 }
 0x18d   :  { %3180 = vst [vmem:[%s4824_s3 + $0x1a0] sm:$0xff] %v3504_v11  ;;  %3181 = vst [vmem:[%s4824_s3 + $0x1a8] sm:$0xff] %v3505_v12  ;;  %v2471_v55 = vadd.f32 %v4307_v15, %v1489_v14  ;;  %v2473_v13 = vadd.f32 %v4309_v20, %v1682_v18 }
 0x18e   :  { %v1491_v35 = vpop.f32.mrf.mxu1  ;;  %v1684_v42 = vpop.f32.mrf.mxu0 }
 0x18f   :  { %v3507_v47 = vpack.c.bf16 %v2471_v55, %v2470_v49  ;;  %v3508_v54 = vpack.c.bf16 %v2473_v13, %v2472_v19  ;;  %v2476_v37 = vadd.f32 %v4299_v59, %v1491_v35  ;;  %v2478_v43 = vadd.f32 %v4301_v2, %v1684_v42 }
 0x190   :  { %v1493_v8 = vpop.f32.mrf.mxu1  ;;  %v1686_v16 = vpop.f32.mrf.mxu0 }
 0x191   :  { %3183 = vst [vmem:[%s4824_s3 + $0x1b8] sm:$0xff] %v3507_v47  ;;  %3184 = vst [vmem:[%s4824_s3 + $0x1c0] sm:$0xff] %v3508_v54  ;;  %v2477_v61 = vadd.f32 %v4307_v15, %v1493_v8  ;;  %v2479_v3 = vadd.f32 %v4309_v20, %v1686_v16 }
 0x192   :  { %v1497_v9 = vpop.f32.mrf.mxu1  ;;  %v1690_v17 = vpop.f32.mrf.mxu0 }
 0x193   :  { %v3510_v21 = vpack.c.bf16 %v2477_v61, %v2476_v37  ;;  %v3511_v22 = vpack.c.bf16 %v2479_v3, %v2478_v43  ;;  %v2482_v25 = vadd.f32 %v4299_v59, %v1497_v9  ;;  %v2484_v26 = vadd.f32 %v4301_v2, %v1690_v17 }
 0x194   :  { %v1499_v23 = vpop.f32.mrf.mxu1  ;;  %v1692_v24 = vpop.f32.mrf.mxu0 }
 0x195   :  { %3186 = vst [vmem:[%s4824_s3 + $0x1d0] sm:$0xff] %v3510_v21  ;;  %3187 = vst [vmem:[%s4824_s3 + $0x1d8] sm:$0xff] %v3511_v22  ;;  %v2483_v27 = vadd.f32 %v4307_v15, %v1499_v23  ;;  %v2485_v28 = vadd.f32 %v4309_v20, %v1692_v24 }
 0x196   :  { %v1501_v29 = vpop.f32.mrf.mxu1  ;;  %v1694_v30 = vpop.f32.mrf.mxu0 }
 0x197   :  { %v3513_v31 = vpack.c.bf16 %v2483_v27, %v2482_v25  ;;  %v3514_v32 = vpack.c.bf16 %v2485_v28, %v2484_v26  ;;  %v2488_v36 = vadd.f32 %v4299_v59, %v1501_v29  ;;  %v2490_v38 = vadd.f32 %v4301_v2, %v1694_v30 }
 0x198   :  { %v1503_v33 = vpop.f32.mrf.mxu1  ;;  %v1696_v34 = vpop.f32.mrf.mxu0 }
 0x199   :  { %3189 = vst [vmem:[%s4824_s3 + $0x1e8] sm:$0xff] %v3513_v31  ;;  %3190 = vst [vmem:[%s4824_s3 + $0x1f0] sm:$0xff] %v3514_v32  ;;  %v2489_v39 = vadd.f32 %v4307_v15, %v1503_v33  ;;  %v2491_v40 = vadd.f32 %v4309_v20, %v1696_v34 }
 0x19a   :  { %v1507_v41 = vpop.f32.mrf.mxu1  ;;  %v1700_v44 = vpop.f32.mrf.mxu0 }
 0x19b   :  { %v3516_v45 = vpack.c.bf16 %v2489_v39, %v2488_v36  ;;  %v3517_v46 = vpack.c.bf16 %v2491_v40, %v2490_v38  ;;  %v2494_v51 = vadd.f32 %v4299_v59, %v1507_v41  ;;  %v2496_v52 = vadd.f32 %v4301_v2, %v1700_v44 }
 0x19c   :  { %v1509_v48 = vpop.f32.mrf.mxu1  ;;  %v1702_v50 = vpop.f32.mrf.mxu0 }
 0x19d   :  { %3192 = vst [vmem:[%s4824_s3 + $0x200] sm:$0xff] %v3516_v45  ;;  %3193 = vst [vmem:[%s4824_s3 + $0x208] sm:$0xff] %v3517_v46  ;;  %v2495_v53 = vadd.f32 %v4307_v15, %v1509_v48  ;;  %v2497_v56 = vadd.f32 %v4309_v20, %v1702_v50 }
 0x19e   :  { %v1511_v57 = vpop.f32.mrf.mxu1  ;;  %v1704_v58 = vpop.f32.mrf.mxu0 }
 0x19f   :  { %v3519_v60 = vpack.c.bf16 %v2495_v53, %v2494_v51  ;;  %v3520_v62 = vpack.c.bf16 %v2497_v56, %v2496_v52  ;;  %v2500_v1 = vadd.f32 %v4299_v59, %v1511_v57  ;;  %v2502_v4 = vadd.f32 %v4301_v2, %v1704_v58 }
 0x1a0   :  { %v1513_v63 = vpop.f32.mrf.mxu1  ;;  %v1706_v0 = vpop.f32.mrf.mxu0 }
 0x1a1   :  { %3195 = vst [vmem:[%s4824_s3 + $0x218] sm:$0xff] %v3519_v60  ;;  %3196 = vst [vmem:[%s4824_s3 + $0x220] sm:$0xff] %v3520_v62  ;;  %v2501_v5 = vadd.f32 %v4307_v15, %v1513_v63  ;;  %v2503_v6 = vadd.f32 %v4309_v20, %v1706_v0 }
 0x1a2   :  { %v1517_v7 = vpop.f32.mrf.mxu1  ;;  %v1710_v10 = vpop.f32.mrf.mxu0 }
 0x1a3   :  { %v3522_v11 = vpack.c.bf16 %v2501_v5, %v2500_v1  ;;  %v3523_v12 = vpack.c.bf16 %v2503_v6, %v2502_v4  ;;  %v2506_v49 = vadd.f32 %v4299_v59, %v1517_v7  ;;  %v2508_v19 = vadd.f32 %v4301_v2, %v1710_v10 }
 0x1a4   :  { %v1519_v14 = vpop.f32.mrf.mxu1  ;;  %v1712_v18 = vpop.f32.mrf.mxu0 }
 0x1a5   :  { %3198 = vst [vmem:[%s4824_s3 + $0x230] sm:$0xff] %v3522_v11  ;;  %3199 = vst [vmem:[%s4824_s3 + $0x238] sm:$0xff] %v3523_v12  ;;  %v2507_v55 = vadd.f32 %v4307_v15, %v1519_v14  ;;  %v2509_v13 = vadd.f32 %v4309_v20, %v1712_v18 }
 0x1a6   :  { %v1521_v35 = vpop.f32.mrf.mxu1  ;;  %v1714_v42 = vpop.f32.mrf.mxu0 }
 0x1a7   :  { %v3525_v47 = vpack.c.bf16 %v2507_v55, %v2506_v49  ;;  %v3526_v54 = vpack.c.bf16 %v2509_v13, %v2508_v19  ;;  %v2512_v37 = vadd.f32 %v4299_v59, %v1521_v35  ;;  %v2514_v43 = vadd.f32 %v4301_v2, %v1714_v42 }
 0x1a8   :  { %v1523_v8 = vpop.f32.mrf.mxu1  ;;  %v1716_v16 = vpop.f32.mrf.mxu0 }
 0x1a9   :  { %3201 = vst [vmem:[%s4824_s3 + $0x248] sm:$0xff] %v3525_v47  ;;  %3202 = vst [vmem:[%s4824_s3 + $0x250] sm:$0xff] %v3526_v54  ;;  %v2513_v61 = vadd.f32 %v4307_v15, %v1523_v8  ;;  %v2515_v3 = vadd.f32 %v4309_v20, %v1716_v16 }
 0x1aa   :  { %v1527_v9 = vpop.f32.mrf.mxu1  ;;  %v1720_v17 = vpop.f32.mrf.mxu0 }
 0x1ab   :  { %v3528_v21 = vpack.c.bf16 %v2513_v61, %v2512_v37  ;;  %v3529_v22 = vpack.c.bf16 %v2515_v3, %v2514_v43  ;;  %v2518_v25 = vadd.f32 %v4299_v59, %v1527_v9  ;;  %v2520_v26 = vadd.f32 %v4301_v2, %v1720_v17 }
 0x1ac   :  { %v1529_v23 = vpop.f32.mrf.mxu1  ;;  %v1722_v24 = vpop.f32.mrf.mxu0 }
 0x1ad   :  { %3204 = vst [vmem:[%s4824_s3 + $0x260] sm:$0xff] %v3528_v21  ;;  %3205 = vst [vmem:[%s4824_s3 + $0x268] sm:$0xff] %v3529_v22  ;;  %v2519_v27 = vadd.f32 %v4307_v15, %v1529_v23  ;;  %v2521_v28 = vadd.f32 %v4309_v20, %v1722_v24 }
 0x1ae   :  { %v1531_v29 = vpop.f32.mrf.mxu1  ;;  %v1724_v30 = vpop.f32.mrf.mxu0 }
 0x1af   :  { %v3531_v31 = vpack.c.bf16 %v2519_v27, %v2518_v25  ;;  %v3532_v32 = vpack.c.bf16 %v2521_v28, %v2520_v26  ;;  %v2524_v36 = vadd.f32 %v4299_v59, %v1531_v29  ;;  %v2526_v38 = vadd.f32 %v4301_v2, %v1724_v30 }
 0x1b0   :  { %v1533_v33 = vpop.f32.mrf.mxu1  ;;  %v1726_v34 = vpop.f32.mrf.mxu0 }
 0x1b1   :  { %3207 = vst [vmem:[%s4824_s3 + $0x278] sm:$0xff] %v3531_v31  ;;  %3208 = vst [vmem:[%s4824_s3 + $0x280] sm:$0xff] %v3532_v32  ;;  %v2525_v39 = vadd.f32 %v4307_v15, %v1533_v33  ;;  %v2527_v40 = vadd.f32 %v4309_v20, %v1726_v34 }
 0x1b2   :  { %v1537_v41 = vpop.f32.mrf.mxu1  ;;  %v1730_v44 = vpop.f32.mrf.mxu0 }
 0x1b3   :  { %v3534_v45 = vpack.c.bf16 %v2525_v39, %v2524_v36  ;;  %v3535_v46 = vpack.c.bf16 %v2527_v40, %v2526_v38  ;;  %v2530_v51 = vadd.f32 %v4299_v59, %v1537_v41  ;;  %v2532_v52 = vadd.f32 %v4301_v2, %v1730_v44 }
 0x1b4   :  { %v1539_v48 = vpop.f32.mrf.mxu1  ;;  %v1732_v50 = vpop.f32.mrf.mxu0 }
 0x1b5   :  { %3210 = vst [vmem:[%s4824_s3 + $0x290] sm:$0xff] %v3534_v45  ;;  %3211 = vst [vmem:[%s4824_s3 + $0x298] sm:$0xff] %v3535_v46  ;;  %v2531_v53 = vadd.f32 %v4307_v15, %v1539_v48  ;;  %v2533_v56 = vadd.f32 %v4309_v20, %v1732_v50 }
 0x1b6   :  { %v1541_v57 = vpop.f32.mrf.mxu1  ;;  %v1734_v58 = vpop.f32.mrf.mxu0 }
 0x1b7   :  { %v3537_v60 = vpack.c.bf16 %v2531_v53, %v2530_v51  ;;  %v3538_v62 = vpack.c.bf16 %v2533_v56, %v2532_v52  ;;  %v2536_v1 = vadd.f32 %v4299_v59, %v1541_v57  ;;  %v2538_v4 = vadd.f32 %v4301_v2, %v1734_v58 }
 0x1b8   :  { %v1543_v63 = vpop.f32.mrf.mxu1  ;;  %v1736_v0 = vpop.f32.mrf.mxu0 }
 0x1b9   :  { %3213 = vst [vmem:[%s4824_s3 + $0x2a8] sm:$0xff] %v3537_v60  ;;  %3214 = vst [vmem:[%s4824_s3 + $0x2b0] sm:$0xff] %v3538_v62  ;;  %v2537_v5 = vadd.f32 %v4307_v15, %v1543_v63  ;;  %v2539_v6 = vadd.f32 %v4309_v20, %v1736_v0 }
 0x1ba   :  { %v1547_v7 = vpop.f32.mrf.mxu1  ;;  %v1740_v10 = vpop.f32.mrf.mxu0 }
 0x1bb   :  { %v3540_v11 = vpack.c.bf16 %v2537_v5, %v2536_v1  ;;  %v3541_v12 = vpack.c.bf16 %v2539_v6, %v2538_v4  ;;  %v2542_v49 = vadd.f32 %v4299_v59, %v1547_v7  ;;  %v2544_v19 = vadd.f32 %v4301_v2, %v1740_v10 }
 0x1bc   :  { %v1549_v14 = vpop.f32.mrf.mxu1  ;;  %v1742_v18 = vpop.f32.mrf.mxu0 }
 0x1bd   :  { %3216 = vst [vmem:[%s4824_s3 + $0x2c0] sm:$0xff] %v3540_v11  ;;  %3217 = vst [vmem:[%s4824_s3 + $0x2c8] sm:$0xff] %v3541_v12  ;;  %v2543_v55 = vadd.f32 %v4307_v15, %v1549_v14  ;;  %v2545_v13 = vadd.f32 %v4309_v20, %v1742_v18 }
 0x1be   :  { %v1551_v35 = vpop.f32.mrf.mxu1  ;;  %v1744_v42 = vpop.f32.mrf.mxu0 }
 0x1bf   :  { %v3543_v47 = vpack.c.bf16 %v2543_v55, %v2542_v49  ;;  %v3544_v54 = vpack.c.bf16 %v2545_v13, %v2544_v19  ;;  %v2548_v37 = vadd.f32 %v4299_v59, %v1551_v35  ;;  %v2550_v43 = vadd.f32 %v4301_v2, %v1744_v42 }
 0x1c0   :  { %v1553_v8 = vpop.f32.mrf.mxu1  ;;  %v1746_v16 = vpop.f32.mrf.mxu0 }
 0x1c1   :  { %3219 = vst [vmem:[%s4824_s3 + $0x2d8] sm:$0xff] %v3543_v47  ;;  %3220 = vst [vmem:[%s4824_s3 + $0x2e0] sm:$0xff] %v3544_v54  ;;  %v2549_v61 = vadd.f32 %v4307_v15, %v1553_v8  ;;  %v2551_v3 = vadd.f32 %v4309_v20, %v1746_v16 }
 0x1c3   :  { %v3546_v9 = vpack.c.bf16 %v2549_v61, %v2548_v37  ;;  %v3547_v17 = vpack.c.bf16 %v2551_v3, %v2550_v43 }
 0x1c5   :  { %3222 = vst [vmem:[%s4824_s3 + $0x2f0] sm:$0xff] %v3546_v9  ;;  %3223 = vst [vmem:[%s4824_s3 + $0x2f8] sm:$0xff] %v3547_v17 }

// kernel: base_agent_forward.11
= control target key start
LH: loop header
LB: loop body
LE: loop exit
PB: predicated region body
PF: predicated region fallthrough
CT: control target
= control target key end

     0   :  { %s3028_s12 = smov 0   ;;  %s3030_s13 = smov 0   ;;  %s3533_s0 = inlined_call_operand.vmem [shape: bf16[4,128,128], index: 0, kind: input, shape index: {}]   ;;  %s3534_s1 = inlined_call_operand.vmem [shape: bf16[4,128,128], index: 1, kind: input, shape index: {}]   ;;  %s3535_s2 = inlined_call_operand.vmem [shape: bf16[4,128,128], index: 2, kind: input, shape index: {}]   ;;  %s3536_s3 = inlined_call_operand.vmem [shape: bf16[4,128,128], index: 3, kind: output, shape index: {}]  }
   0x1   :  { %s3032_s14 = smov 0  }
   0x2 LB: > { %s32_s15 = sadd.s32 1, %s2999_s13  ;;  %p2602_p0 = scmp.ge.s32.totalorder %s3003_s14, 1  ;;  %s3003_s14 = sphi %s3032_s14, %s13_s14   ;;  %s2999_s13 = sphi %s3030_s13, %s3552_s13   ;;  %s2995_s12 = sphi %s3028_s12, %s3551_s12  }
   0x3   : > { %p34_p1 = scmp.ge.s32.totalorder %s32_s15, 4  ;;  %p215_p2 = scmp.lt.s32.totalorder %s3003_s14, 5 }
   0x5   : > { %s3554_s15 = smov (%p34_p1, %s32_s15), 0  ;;  %p216_p3 = pnand %p2602_p0, %p215_p2 }
   0x6   : > { %p270_p4 = scmp.lt.s32.totalorder (!%p216_p3), %s2995_s12, 3 }
   0x7   : > { %219 = sbr.rel (%p216_p3) target bundleno = 898 (0x382), region = 32 }
   0xc   : > { %s3556_s12 = smov (!%p270_p4, %s2995_s12), 3  ;;  %vm323_vm0 = vcmask 7168   ;;  %v3005_v48 = vmov -inf   ;;  %v1528_v49 = vlaneseq }
   0xd   : > { %s3046_s16 = sshll.u32 %s3556_s12, 6  ;;  %326 = vst.msk [vmem:[#allocation2 + $0x10] sm:$0xff] %vm323_vm0, %v3005_v48  ;;  %324 = vst.msk [vmem:[#allocation2] sm:$0xff] %vm323_vm0, %v3005_v48 }
   0xe   : > { %s289_s19 = scalar_lea.vmem %s3534_s1, %s3046_s16  ;;  %s3056_s22 = scalar_lea.vmem %s3533_s0, %s3046_s16  ;;  %325 = vst.msk [vmem:[#allocation2 + $0x8] sm:$0xff] %vm323_vm0, %v3005_v48  ;;  %327 = vst.msk [vmem:[#allocation2 + $0x18] sm:$0xff] %vm323_vm0, %v3005_v48  ;;  %v3090_v50 = vshrl.u32 %v1528_v49, 7  ;;  %v3093_v52 = vand.u32 127, %v1528_v49 }
   0xf   : > { %v2869_v0 = vld [vmem:[%s289_s19 + $0x38] sm:$0xff]   ;;  %v2870_v1 = vld [vmem:[%s289_s19 + $0x30] sm:$0xff]   ;;  %v2871_v2 = vld [vmem:[%s289_s19 + $0x28] sm:$0xff]   ;;  %328 = vst.msk [vmem:[#allocation2 + $0x20] sm:$0xff] %vm323_vm0, %v3005_v48  ;;  %s3198_s25 = scalar_lea.vmem %s3535_s2, %s3046_s16  ;;  %s3508_s28 = scalar_lea.vmem %s3536_s3, %s3046_s16 }
  0x10   : > { %2776 = vmatprep.subr.bf16.mxu0 %v2869_v0  ;;  %v1287_v3 = vld [vmem:[%s3056_s22] sm:$0xf]  ;;  %v1288_v4 = vld [vmem:[%s3056_s22 + $0x4] sm:$0xf]  ;;  %v2873_v9 = vld [vmem:[%s289_s19 + $0x18] sm:$0xff]   ;;  %329 = vst.msk [vmem:[#allocation2 + $0x28] sm:$0xff] %vm323_vm0, %v3005_v48  ;;  %vm1547_vm2 = vcmp.le.s32.totalorder %v3093_v52, %v3090_v50 }
  0x11   : > { %2777 = vmatpush3.bf16.xpose.msra.mxu0 %v2869_v0  ;;  %v1303_v5 = vmul.bf16 1035287989, %v1287_v3  ;;  %v1304_v6 = vmul.bf16 1035287989, %v1288_v4  ;;  %v2872_v8 = vld [vmem:[%s289_s19 + $0x20] sm:$0xff]   ;;  %v2874_v10 = vld [vmem:[%s289_s19 + $0x10] sm:$0xff]  }
  0x12   : > { %2778 = vmatprep.subr.bf16.mxu0 %v2870_v1  ;;  %v2875_v11 = vld [vmem:[%s289_s19 + $0x8] sm:$0xff]   ;;  %v2876_v12 = vld [vmem:[%s289_s19] sm:$0xff]   ;;  %v1291_v15 = vld [vmem:[%s3056_s22 + $0x10] sm:$0xf]  ;;  %330 = vst.msk [vmem:[#allocation2 + $0x30] sm:$0xff] %vm323_vm0, %v3005_v48  ;;  %v1531_v51 = vadd.s32 16, %v3090_v50 }
  0x13   : > { %v2635_v7 = vcombine.low %v1303_v5, %v1304_v6  ;;  %v1289_v13 = vld [vmem:[%s3056_s22 + $0x8] sm:$0xf]  ;;  %v1290_v14 = vld [vmem:[%s3056_s22 + $0xc] sm:$0xf]  ;;  %v1292_v16 = vld [vmem:[%s3056_s22 + $0x14] sm:$0xf] }
  0x14   : > { %v1305_v17 = vmul.bf16 1035287989, %v1289_v13  ;;  %v1306_v18 = vmul.bf16 1035287989, %v1290_v14  ;;  %v1307_v19 = vmul.bf16 1035287989, %v1291_v15  ;;  %vm1549_vm1 = vcmp.le.s32.totalorder %v3093_v52, %v1531_v51 }
  0x15   : > { %2792 = vmatprep.mubr.bf16.mxu0 %v2635_v7  ;;  %v1308_v20 = vmul.bf16 1035287989, %v1292_v16  ;;  %v1293_v23 = vld [vmem:[%s3056_s22 + $0x18] sm:$0xf]  ;;  %v1294_v24 = vld [vmem:[%s3056_s22 + $0x1c] sm:$0xf] }
  0x16   : > { %v2636_v21 = vcombine.low %v1305_v17, %v1306_v18  ;;  %v1295_v25 = vld [vmem:[%s3056_s22 + $0x20] sm:$0xf]  ;;  %v1296_v26 = vld [vmem:[%s3056_s22 + $0x24] sm:$0xf]  ;;  %v1309_v27 = vmul.bf16 1035287989, %v1293_v23 }
  0x17   : > { %v2637_v22 = vcombine.low %v1307_v19, %v1308_v20  ;;  %v1310_v28 = vmul.bf16 1035287989, %v1294_v24  ;;  %v1311_v29 = vmul.bf16 1035287989, %v1295_v25  ;;  %v1312_v30 = vmul.bf16 1035287989, %v1296_v26 }
  0x18   : > { %v1297_v33 = vld [vmem:[%s3056_s22 + $0x28] sm:$0xf]  ;;  %v1298_v34 = vld [vmem:[%s3056_s22 + $0x2c] sm:$0xf]  ;;  %v1299_v35 = vld [vmem:[%s3056_s22 + $0x30] sm:$0xf] }
  0x19   : > { %2779 = vmatpush3.bf16.xpose.msra.mxu0 %v2870_v1  ;;  %v2638_v31 = vcombine.low %v1309_v27, %v1310_v28  ;;  %v2639_v32 = vcombine.low %v1311_v29, %v1312_v30  ;;  %v1300_v36 = vld [vmem:[%s3056_s22 + $0x34] sm:$0xf]  ;;  %v1313_v37 = vmul.bf16 1035287989, %v1297_v33  ;;  %v1314_v38 = vmul.bf16 1035287989, %v1298_v34 }
  0x1a   : > { %2780 = vmatprep.subr.bf16.mxu0 %v2871_v2  ;;  %v1315_v39 = vmul.bf16 1035287989, %v1299_v35  ;;  %v1316_v40 = vmul.bf16 1035287989, %v1300_v36  ;;  %v1301_v43 = vld [vmem:[%s3056_s22 + $0x38] sm:$0xf] }
  0x1b   : > { %v2640_v41 = vcombine.low %v1313_v37, %v1314_v38  ;;  %v1302_v44 = vld [vmem:[%s3056_s22 + $0x3c] sm:$0xf]  ;;  %v1317_v45 = vmul.bf16 1035287989, %v1301_v43  ;;  %331 = vst.msk [vmem:[#allocation2 + $0x38] sm:$0xff] %vm323_vm0, %v3005_v48  ;;  %332 = vst.msk [vmem:[#allocation2 + $0x40] sm:$0xff] %vm323_vm0, %v3005_v48 }
  0x1c   : > { %v2641_v42 = vcombine.low %v1315_v39, %v1316_v40  ;;  %v1318_v46 = vmul.bf16 1035287989, %v1302_v44  ;;  %333 = vst.msk [vmem:[#allocation2 + $0x48] sm:$0xff] %vm323_vm0, %v3005_v48  ;;  %334 = vst.msk [vmem:[#allocation2 + $0x50] sm:$0xff] %vm323_vm0, %v3005_v48  ;;  %v1532_v53 = vadd.s32 24, %v3090_v50  ;;  %v1530_v55 = vadd.s32 8, %v3090_v50 }
  0x1d   : > { %335 = vst.msk [vmem:[#allocation2 + $0x58] sm:$0xff] %vm323_vm0, %v3005_v48  ;;  %336 = vst.msk [vmem:[#allocation2 + $0x60] sm:$0xff] %vm323_vm0, %v3005_v48  ;;  %v1533_v60 = vadd.s32 32, %v3090_v50  ;;  %v1536_v63 = vadd.s32 56, %v3090_v50  ;;  %v1534_v4 = vadd.s32 40, %v3090_v50  ;;  %v1537_v7 = vadd.s32 64, %v3090_v50 }
  0x1e   : > { %v2642_v47 = vcombine.low %v1317_v45, %v1318_v46  ;;  %337 = vst.msk [vmem:[#allocation2 + $0x68] sm:$0xff] %vm323_vm0, %v3005_v48  ;;  %338 = vst.msk [vmem:[#allocation2 + $0x70] sm:$0xff] %vm323_vm0, %v3005_v48  ;;  %vm1550_vm3 = vcmp.le.s32.totalorder %v3093_v52, %v1532_v53  ;;  %vm1548_vm4 = vcmp.le.s32.totalorder %v3093_v52, %v1530_v55  ;;  %v1538_v17 = vadd.s32 72, %v3090_v50  ;;  %v2877_v37 = vld [vmem:[%s3198_s25 + $0x38] sm:$0xff]   ;;  %v3201_v38 = vld [vmem:[#allocation2 + $0x10] sm:$0xff] }
  0x1f   : > { %339 = vst.msk [vmem:[#allocation2 + $0x78] sm:$0xff] %vm323_vm0, %v3005_v48  ;;  %vm1551_vm5 = vcmp.le.s32.totalorder %v3093_v52, %v1533_v60  ;;  %vm1554_vm6 = vcmp.le.s32.totalorder %v3093_v52, %v1536_v63  ;;  %vm1552_vm8 = vcmp.le.s32.totalorder %v3093_v52, %v1534_v4  ;;  %vm1555_vm9 = vcmp.le.s32.totalorder %v3093_v52, %v1537_v7  ;;  %v2878_v39 = vld [vmem:[%s3198_s25 + $0x30] sm:$0xff]   ;;  %v3209_v44 = vld [vmem:[#allocation2 + $0x18] sm:$0xff]  ;;  %v2879_v45 = vld [vmem:[%s3198_s25 + $0x28] sm:$0xff]  }
  0x20   : > { %v1541_v20 = vadd.s32 96, %v3090_v50  ;;  %vm1556_vm12 = vcmp.le.s32.totalorder %v3093_v52, %v1538_v17  ;;  %v1544_v24 = vadd.s32 120, %v3090_v50  ;;  %v1543_v25 = vadd.s32 112, %v3090_v50  ;;  %2808 = vmatprep.subr.bf16.mxu1 %v2877_v37  ;;  %v3220_v49 = vld [vmem:[#allocation2 + $0x8] sm:$0xff]  ;;  %v2880_v53 = vld [vmem:[%s3198_s25 + $0x20] sm:$0xff]   ;;  %v2881_v63 = vld [vmem:[%s3198_s25 + $0x18] sm:$0xff]  }
  0x21   : > { %2781 = vmatpush3.bf16.xpose.msra.mxu0 %v2871_v2  ;;  %v1535_v2 = vadd.s32 48, %v3090_v50  ;;  %v3007_v27 = vmov 0.0   ;;  %v1542_v30 = vadd.s32 104, %v3090_v50  ;;  %2809 = vmatpush3.bf16.msra.mxu1 %v2877_v37 }
  0x22   : > { %2782 = vmatprep.subr.bf16.mxu0 %v2872_v8  ;;  %vm1559_vm13 = vcmp.le.s32.totalorder %v3093_v52, %v1541_v20  ;;  %342 = vst.msk [vmem:[#allocation3 + $0x10] sm:$0xff] %vm323_vm0, %v3007_v27  ;;  %340 = vst.msk [vmem:[#allocation3] sm:$0xff] %vm323_vm0, %v3007_v27  ;;  %vm1562_vm14 = vcmp.le.s32.totalorder %v3093_v52, %v1544_v24  ;;  %vm1561_vm15 = vcmp.le.s32.totalorder %v3093_v52, %v1543_v25  ;;  %v2883_v24 = vld [vmem:[%s3198_s25 + $0x8] sm:$0xff]  }
  0x23   : > { %vm1553_vm7 = vcmp.le.s32.totalorder %v3093_v52, %v1535_v2  ;;  %341 = vst.msk [vmem:[#allocation3 + $0x8] sm:$0xff] %vm323_vm0, %v3007_v27  ;;  %343 = vst.msk [vmem:[#allocation3 + $0x18] sm:$0xff] %vm323_vm0, %v3007_v27  ;;  %2810 = vmatprep.subr.bf16.mxu1 %v2878_v39  ;;  %v3301_v37 = vld [vmem:[#allocation2 + $0x48] sm:$0xff] }
  0x24   : > { %344 = vst.msk [vmem:[#allocation3 + $0x20] sm:$0xff] %vm323_vm0, %v3007_v27  ;;  %345 = vst.msk [vmem:[#allocation3 + $0x28] sm:$0xff] %vm323_vm0, %v3007_v27 }
  0x25   : > { %346 = vst.msk [vmem:[#allocation3 + $0x30] sm:$0xff] %vm323_vm0, %v3007_v27  ;;  %347 = vst.msk [vmem:[#allocation3 + $0x38] sm:$0xff] %vm323_vm0, %v3007_v27  ;;  %2811 = vmatpush3.bf16.msra.mxu1 %v2878_v39  ;;  %v2884_v39 = vld [vmem:[%s3198_s25] sm:$0xff]  }
  0x26   : > { %348 = vst.msk [vmem:[#allocation3 + $0x40] sm:$0xff] %vm323_vm0, %v3007_v27  ;;  %349 = vst.msk [vmem:[#allocation3 + $0x48] sm:$0xff] %vm323_vm0, %v3007_v27  ;;  %2812 = vmatprep.subr.bf16.mxu1 %v2879_v45 }
  0x27   : > { %350 = vst.msk [vmem:[#allocation3 + $0x50] sm:$0xff] %vm323_vm0, %v3007_v27  ;;  %351 = vst.msk [vmem:[#allocation3 + $0x58] sm:$0xff] %vm323_vm0, %v3007_v27 }
  0x28   : > { %352 = vst.msk [vmem:[#allocation3 + $0x60] sm:$0xff] %vm323_vm0, %v3007_v27  ;;  %353 = vst.msk [vmem:[#allocation3 + $0x68] sm:$0xff] %vm323_vm0, %v3007_v27 }
  0x29   : > { %2783 = vmatpush3.bf16.xpose.msra.mxu0 %v2872_v8  ;;  %354 = vst.msk [vmem:[#allocation3 + $0x70] sm:$0xff] %vm323_vm0, %v3007_v27  ;;  %355 = vst.msk [vmem:[#allocation3 + $0x78] sm:$0xff] %vm323_vm0, %v3007_v27  ;;  %2813 = vmatpush3.bf16.msra.mxu1 %v2879_v45 }
  0x2a   : > { %2784 = vmatprep.subr.bf16.mxu0 %v2873_v9  ;;  %2814 = vmatprep.subr.bf16.mxu1 %v2880_v53 }
  0x2d   : > { %2815 = vmatpush3.bf16.msra.mxu1 %v2880_v53 }
  0x2e   : > { %2816 = vmatprep.subr.bf16.mxu1 %v2881_v63 }
  0x31   : > { %2785 = vmatpush3.bf16.xpose.msra.mxu0 %v2873_v9  ;;  %v3006_v9 = vmov 0   ;;  %2817 = vmatpush3.bf16.msra.mxu1 %v2881_v63  ;;  %v3321_v63 = vld [vmem:[#allocation2 + $0x78] sm:$0xff] }
  0x32   : > { %2786 = vmatprep.subr.bf16.mxu0 %v2874_v10  ;;  %2868 = vset.pattern.permute.xlu1 %v3006_v9 }
  0x33   : > { %2867 = vset.pattern.permute.xlu0 %v3006_v9  ;;  %v3261_v9 = vld [vmem:[#allocation2 + $0x28] sm:$0xff] }
  0x39   : > { %2787 = vmatpush3.bf16.xpose.msra.mxu0 %v2874_v10 }
  0x3a   : > { %2788 = vmatprep.subr.bf16.mxu0 %v2875_v11 }
  0x41   : > { %2789 = vmatpush3.bf16.xpose.msra.mxu0 %v2875_v11  ;;  %v1540_v11 = vadd.s32 88, %v3090_v50 }
  0x42   : > { %2790 = vmatprep.subr.bf16.mxu0 %v2876_v12 }
  0x43   : > { %vm1558_vm10 = vcmp.le.s32.totalorder %v3093_v52, %v1540_v11 }
  0x49   : > { %2791 = vmatpush3.bf16.xpose.msra.mxu0 %v2876_v12  ;;  %v1539_v12 = vadd.s32 80, %v3090_v50 }
  0x4b   : > { %vm1557_vm11 = vcmp.le.s32.totalorder %v3093_v52, %v1539_v12 }
  0x50   : > { %2793 = vmatmul.mubr.bf16.vlgmr.msra.gmra.mxu0 %v2636_v21 }
  0x51   : > { %2796 = vmatprep.mubr.bf16.mxu0 %v2637_v22 }
  0x58   : > { %2797 = vmatmul.mubr.bf16.gmra.mxu0 %v2638_v31 }
  0x59   : > { %2800 = vmatprep.mubr.bf16.mxu0 %v2639_v32 }
  0x60   : > { %2801 = vmatmul.mubr.bf16.gmra.mxu0 %v2640_v41  ;;  %v3204_v41 = vld [vmem:[#allocation2] sm:$0xff] }
  0x61   : > { %2804 = vmatprep.mubr.bf16.mxu0 %v2641_v42 }
  0x68   : > { %2805 = vmatmul.mubr.bf16.gmra.mxu0 %v2642_v47 }
 0x110   : > { %v2794_v54 = vpop.f32.mrf.mxu0 }
 0x111   : > { %v3100_v56 = vsel %vm1549_vm1, %v2794_v54, -1e+30  ;;  %vm1560_vm1 = vcmp.le.s32.totalorder %v3093_v52, %v1542_v30 }
 0x112   : > { %1599 = vmax.xlane.f32.xlu1 %v3100_v56  ;;  %v1465_v57 = vpop.f32.mrf.mxu0 }
 0x113   : > { %v3104_v58 = vsel %vm1547_vm2, %v1465_v57, -1e+30  ;;  %v3239_v57 = vld [vmem:[#allocation2 + $0x20] sm:$0xff] }
 0x114   : > { %1595 = vmax.xlane.f32.xlu0 %v3104_v58  ;;  %v2795_v59 = vpop.f32.mrf.mxu0 }
 0x115   : > { %v3109_v61 = vsel %vm1550_vm3, %v2795_v59, -1e+30 }
 0x116   : > { %1601 = vmax.xlane.f32.xlu1 %v3109_v61  ;;  %v1468_v62 = vpop.f32.mrf.mxu0 }
 0x117   : > { %v3113_v0 = vsel %vm1548_vm4, %v1468_v62, -1e+30  ;;  %v3245_v62 = vld [vmem:[#allocation2 + $0x38] sm:$0xff] }
 0x118   : > { %1597 = vmax.xlane.f32.xlu0 %v3113_v0  ;;  %v2798_v1 = vpop.f32.mrf.mxu0 }
 0x119   : > { %v3131_v13 = vsel %vm1553_vm7, %v2798_v1, -1e+30 }
 0x11a   : > { %v1481_v3 = vpop.f32.mrf.mxu0 }
 0x11b   : > { %v3120_v5 = vsel %vm1551_vm5, %v1481_v3, -1e+30  ;;  %v3252_v3 = vld [vmem:[#allocation2 + $0x30] sm:$0xff] }
 0x11c   : > { %1603 = vmax.xlane.f32.xlu0 %v3120_v5  ;;  %v2799_v6 = vpop.f32.mrf.mxu0 }
 0x11d   : > { %v3125_v8 = vsel %vm1554_vm6, %v2799_v6, -1e+30 }
 0x11e   : > { %1609 = vmax.xlane.f32.xlu1 %v3125_v8  ;;  %v1484_v10 = vpop.f32.mrf.mxu0 }
 0x11f   : > { %v3135_v15 = vsel %vm1552_vm8, %v1484_v10, -1e+30  ;;  %v2882_v10 = vld [vmem:[%s3198_s25 + $0x10] sm:$0xff]  }
 0x120   : > { %1607 = vmax.xlane.f32.xlu0 %v3131_v13  ;;  %v2802_v14 = vpop.f32.mrf.mxu0  ;;  %2818 = vmatprep.subr.bf16.mxu1 %v2882_v10 }
 0x121   : > { %v3147_v22 = vsel %vm1557_vm11, %v2802_v14, -1e+30  ;;  %2819 = vmatpush3.bf16.msra.mxu1 %v2882_v10 }
 0x122   : > { %1605 = vmax.xlane.f32.xlu1 %v3135_v15  ;;  %v1497_v16 = vpop.f32.mrf.mxu0  ;;  %2820 = vmatprep.subr.bf16.mxu1 %v2883_v24 }
 0x123   : > { %v3141_v18 = vsel %vm1555_vm9, %v1497_v16, -1e+30  ;;  %v3271_v16 = vld [vmem:[#allocation2 + $0x40] sm:$0xff] }
 0x124   : > { %1611 = vmax.xlane.f32.xlu0 %v3141_v18  ;;  %v2803_v19 = vpop.f32.mrf.mxu0 }
 0x125   : > { %v3145_v21 = vsel %vm1558_vm10, %v2803_v19, -1e+30  ;;  %2821 = vmatpush3.bf16.msra.mxu1 %v2883_v24 }
 0x126   : > { %1617 = vmax.xlane.f32.xlu1 %v3145_v21  ;;  %v1500_v23 = vpop.f32.mrf.mxu0  ;;  %2822 = vmatprep.subr.bf16.mxu1 %v2884_v39 }
 0x127   : > { %v3173_v28 = vsel %vm1556_vm12, %v1500_v23, -1e+30  ;;  %v3281_v23 = vld [vmem:[#allocation2 + $0x58] sm:$0xff] }
 0x128   : > { %1615 = vmax.xlane.f32.xlu0 %v3147_v22  ;;  %v2806_v26 = vpop.f32.mrf.mxu0 }
 0x129   : > { %v3186_v34 = vsel %vm1561_vm15, %v2806_v26, -1e+30  ;;  %2823 = vmatpush3.bf16.msra.mxu1 %v2884_v39 }
 0x12a   : > { %1613 = vmax.xlane.f32.xlu1 %v3173_v28  ;;  %v1513_v29 = vpop.f32.mrf.mxu0 }
 0x12b   : > { %v3181_v31 = vsel %vm1559_vm13, %v1513_v29, -1e+30  ;;  %v3291_v29 = vld [vmem:[#allocation2 + $0x50] sm:$0xff] }
 0x12c   : > { %1619 = vmax.xlane.f32.xlu0 %v3181_v31  ;;  %v2807_v32 = vpop.f32.mrf.mxu0 }
 0x12d   : > { %v3184_v33 = vsel %vm1562_vm14, %v2807_v32, -1e+30 }
 0x12e   : > { %1625 = vmax.xlane.f32.xlu1 %v3184_v33  ;;  %v1516_v35 = vpop.f32.mrf.mxu0 }
 0x12f   : > { %v3191_v36 = vsel %vm1560_vm1, %v1516_v35, -1e+30 }
 0x130   : > { %1623 = vmax.xlane.f32.xlu0 %v3186_v34 }
 0x132   : > { %1621 = vmax.xlane.f32.xlu1 %v3191_v36 }
 0x19b   : > { %v1600_v40 = vpop.xlane.xlu1 %1599 }
 0x19c   : > { %v3207_v42 = vmax.f32 %v3201_v38, %v1600_v40 }
 0x19d   : > { %v1596_v43 = vpop.xlane.xlu0 %1595 }
 0x19e   : > { %v1645_v46 = vsub.f32 %v3201_v38, %v3207_v42  ;;  %2231 = vst.msk [vmem:[#allocation2 + $0x10] sm:$0xff] %vm323_vm0, %v3207_v42  ;;  %v3217_v47 = vmax.f32 %v3204_v41, %v1596_v43  ;;  %1703 = vperm.xlu1 %2868, %v3207_v42  }
 0x19f   : > { %v1602_v48 = vpop.xlane.xlu1 %1601 }
 0x1a0   : > { %2229 = vst.msk [vmem:[#allocation2] sm:$0xff] %vm323_vm0, %v3217_v47  ;;  %v3227_v51 = vmax.f32 %v3209_v44, %v1602_v48  ;;  %1693 = vperm.xlu0 %2867, %v3217_v47   ;;  %v3311_v48 = vld [vmem:[#allocation2 + $0x60] sm:$0xff] }
 0x1a1   : > { %v1598_v52 = vpop.xlane.xlu0 %1597 }
 0x1a2   : > { %2232 = vst.msk [vmem:[#allocation2 + $0x18] sm:$0xff] %vm323_vm0, %v3227_v51  ;;  %v3236_v55 = vmax.f32 %v3220_v49, %v1598_v52  ;;  %1708 = vperm.xlu1 %2868, %v3227_v51  }
 0x1a4   : > { %v1644_v59 = vsub.f32 %v3220_v49, %v3236_v55  ;;  %2230 = vst.msk [vmem:[#allocation2 + $0x8] sm:$0xff] %vm323_vm0, %v3236_v55  ;;  %v3539_v49 = vsub.f32 %v3209_v44, %v3227_v51 }
 0x1a5   : > { %v1604_v60 = vpop.xlane.xlu0 %1603 }
 0x1a6   : > { %v3249_v1 = vmax.f32 %v3239_v57, %v1604_v60  ;;  %1698 = vperm.xlu1 %2868, %v3236_v55   ;;  %v1665_v55 = vmul.f32 1.442695, %v3539_v49 }
 0x1a7   : > { %v1610_v2 = vpop.xlane.xlu1 %1609 }
 0x1a8   : > { %2233 = vst.msk [vmem:[#allocation2 + $0x20] sm:$0xff] %vm323_vm0, %v3249_v1  ;;  %v3259_v6 = vmax.f32 %v3245_v62, %v1610_v2 }
 0x1a9   : > { %v1608_v7 = vpop.xlane.xlu0 %1607 }
 0x1aa   : > { %2236 = vst.msk [vmem:[#allocation2 + $0x38] sm:$0xff] %vm323_vm0, %v3259_v6  ;;  %v3269_v12 = vmax.f32 %v3252_v3, %v1608_v7  ;;  %v3543_v44 = vsub.f32 %v3245_v62, %v3259_v6 }
 0x1ab   : > { %v1606_v14 = vpop.xlane.xlu1 %1605 }
 0x1ac   : > { %2235 = vst.msk [vmem:[#allocation2 + $0x30] sm:$0xff] %vm323_vm0, %v3269_v12  ;;  %v3278_v19 = vmax.f32 %v3261_v9, %v1606_v14  ;;  %1723 = vperm.xlu1 %2868, %v3269_v12   ;;  %v3331_v14 = vld [vmem:[#allocation2 + $0x70] sm:$0xff]  ;;  %v3540_v38 = vsub.f32 %v3252_v3, %v3269_v12  ;;  %v1673_v51 = vmul.f32 1.442695, %v3543_v44  ;;  %v1824_v44 = vld [vmem:[#allocation3 + $0x28] sm:$0xff] }
 0x1ad   : > { %v1612_v20 = vpop.xlane.xlu0 %1611 }
 0x1ae   : > { %2234 = vst.msk [vmem:[#allocation2 + $0x28] sm:$0xff] %vm323_vm0, %v3278_v19  ;;  %v3289_v26 = vmax.f32 %v3271_v16, %v1612_v20  ;;  %v1671_v42 = vmul.f32 1.442695, %v3540_v38 }
 0x1af   : > { %v1618_v27 = vpop.xlane.xlu1 %1617 }
 0x1b0   : > { %2237 = vst.msk [vmem:[#allocation2 + $0x40] sm:$0xff] %vm323_vm0, %v3289_v26  ;;  %v3298_v32 = vmax.f32 %v3281_v23, %v1618_v27  ;;  %1713 = vperm.xlu1 %2868, %v3249_v1  }
 0x1b1   : > { %v1616_v35 = vpop.xlane.xlu0 %1615 }
 0x1b2   : > { %2240 = vst.msk [vmem:[#allocation2 + $0x58] sm:$0xff] %vm323_vm0, %v3298_v32  ;;  %v3309_v43 = vmax.f32 %v3291_v29, %v1616_v35  ;;  %v3341_v35 = vld [vmem:[#allocation2 + $0x68] sm:$0xff] }
 0x1b3   : > { %v1614_v45 = vpop.xlane.xlu1 %1613 }
 0x1b4   : > { %2239 = vst.msk [vmem:[#allocation2 + $0x50] sm:$0xff] %vm323_vm0, %v3309_v43  ;;  %v3318_v53 = vmax.f32 %v3301_v37, %v1614_v45  ;;  %1718 = vperm.xlu1 %2868, %v3278_v19  }
 0x1b5   : > { %v1620_v60 = vpop.xlane.xlu0 %1619 }
 0x1b6   : > { %2238 = vst.msk [vmem:[#allocation2 + $0x48] sm:$0xff] %vm323_vm0, %v3318_v53  ;;  %v3328_v7 = vmax.f32 %v3311_v48, %v1620_v60  ;;  %1738 = vperm.xlu0 %2867, %v3318_v53   ;;  %v3545_v12 = vsub.f32 %v3301_v37, %v3318_v53 }
 0x1b7   : > { %v1626_v10 = vpop.xlane.xlu1 %1625 }
 0x1b8   : > { %2241 = vst.msk [vmem:[#allocation2 + $0x60] sm:$0xff] %vm323_vm0, %v3328_v7  ;;  %v3338_v24 = vmax.f32 %v3321_v63, %v1626_v10  ;;  %1728 = vperm.xlu1 %2868, %v3259_v6   ;;  %v3546_v62 = vsub.f32 %v3311_v48, %v3328_v7 }
 0x1b9   : > { %v1624_v27 = vpop.xlane.xlu0 %1623 }
 0x1ba   : > { %2244 = vst.msk [vmem:[#allocation2 + $0x78] sm:$0xff] %vm323_vm0, %v3338_v24  ;;  %v3348_v45 = vmax.f32 %v3331_v14, %v1624_v27  ;;  %1748 = vperm.xlu0 %2867, %v3298_v32   ;;  %v1683_v6 = vmul.f32 1.442695, %v3546_v62  ;;  %v1830_v62 = vld [vmem:[#allocation3 + $0x58] sm:$0xff] }
 0x1bb   : > { %v1622_v60 = vpop.xlane.xlu1 %1621 }
 0x1bc   : > { %2243 = vst.msk [vmem:[#allocation2 + $0x70] sm:$0xff] %vm323_vm0, %v3348_v45  ;;  %v3356_v40 = vmax.f32 %v3341_v35, %v1622_v60  ;;  %1733 = vperm.xlu1 %2868, %v3289_v26   ;;  %v3548_v37 = vsub.f32 %v3331_v14, %v3348_v45 }
 0x1be   : > { %2242 = vst.msk [vmem:[#allocation2 + $0x68] sm:$0xff] %vm323_vm0, %v3356_v40  ;;  %1758 = vperm.xlu0 %2867, %v3356_v40   ;;  %v1687_v53 = vmul.f32 1.442695, %v3548_v37  ;;  %v3549_v48 = vsub.f32 %v3341_v35, %v3356_v40 }
 0x1c0   : > { %1743 = vperm.xlu1 %2868, %v3309_v43  }
 0x1c2   : > { %1768 = vperm.xlu0 %2867, %v3338_v24  }
 0x1c4   : > { %1753 = vperm.xlu1 %2868, %v3328_v7   ;;  %v1685_v7 = vmul.f32 1.442695, %v3549_v48 }
 0x1c8   : > { %1763 = vperm.xlu1 %2868, %v3348_v45  }
 0x219   : > { %v1704_v27 = vpop.permute.xlu1 %1703 }
 0x21a   : > { %v1773_v60 = vsub.f32 %v3100_v56, %v1704_v27 }
 0x21b   : > { %v1694_v10 = vpop.permute.xlu0 %1693 }
 0x21c   : > { %v1791_v20 = vmul.f32 1.442695, %v1773_v60  ;;  %v1771_v39 = vsub.f32 %v3104_v58, %v1694_v10 }
 0x21d   : > { %v1709_v2 = vpop.permute.xlu1 %1708 }
 0x21e   : > { %2885 = vpow2.f32 %v1791_v20  ;;  %v1787_v52 = vmul.f32 1.442695, %v1771_v39  ;;  %v1774_v11 = vsub.f32 %v3109_v61, %v1709_v2 }
 0x220   : > { %2887 = vpow2.f32 %v1787_v52  ;;  %v1793_v30 = vmul.f32 1.442695, %v1774_v11 }
 0x221   : > { %v1699_v25 = vpop.permute.xlu1 %1698 }
 0x222   : > { %v1772_v17 = vsub.f32 %v3113_v0, %v1699_v25  ;;  %2889 = vpow2.f32 %v1793_v30 }
 0x224   : > { %v1789_v54 = vmul.f32 1.442695, %v1772_v17 }
 0x226   : > { %2891 = vpow2.f32 %v1789_v54 }
 0x227   : > { %v1724_v4 = vpop.permute.xlu1 %1723 }
 0x228   : > { %v1777_v56 = vsub.f32 %v3131_v13, %v1724_v4 }
 0x22a   : > { %v1799_v27 = vmul.f32 1.442695, %v1777_v56 }
 0x22b   : > { %v2886_v60 = vpop.eup %2885  ;;  %v1714_v50 = vpop.permute.xlu1 %1713 }
 0x22c   : > { %2893 = vpow2.f32 %v1799_v27  ;;  %v1775_v58 = vsub.f32 %v3120_v5, %v1714_v50  ;;  %1855 = vadd.xlane.f32.xlu0 %v2886_v60 }
 0x22d   : > { %v2888_v20 = vpop.eup %2887 }
 0x22e   : > { %v1795_v61 = vmul.f32 1.442695, %v1775_v58  ;;  %1851 = vadd.xlane.f32.xlu1 %v2888_v20 }
 0x22f   : > { %v1719_v11 = vpop.permute.xlu1 %1718  ;;  %v2890_v25 = vpop.eup %2889 }
 0x230   : > { %2895 = vpow2.f32 %v1795_v61  ;;  %v1776_v0 = vsub.f32 %v3135_v15, %v1719_v11  ;;  %v2029_v2 = vpack.c.bf16 %v2890_v25, %v2886_v60 }
 0x231   : > { %v1739_v17 = vpop.permute.xlu0 %1738 }
 0x232   : > { %v1797_v54 = vmul.f32 1.442695, %v1776_v0  ;;  %1857 = vadd.xlane.f32.xlu1 %v2890_v25  ;;  %v1780_v13 = vsub.f32 %v3173_v28, %v1739_v17 }
 0x233   : > { %v2892_v30 = vpop.eup %2891  ;;  %v1729_v4 = vpop.permute.xlu1 %1728 }
 0x234   : > { %2897 = vpow2.f32 %v1797_v54  ;;  %v1778_v52 = vsub.f32 %v3125_v8, %v1729_v4  ;;  %1853 = vadd.xlane.f32.xlu0 %v2892_v30  ;;  %v2028_v5 = vpack.c.bf16 %v2892_v30, %v2888_v20  ;;  %v1805_v10 = vmul.f32 1.442695, %v1780_v13 }
 0x235   : > { %v1749_v50 = vpop.permute.xlu0 %1748 }
 0x236   : > { %v1801_v39 = vmul.f32 1.442695, %v1778_v52  ;;  %2824 = vmatprep.mubr.bf16.mxu1 %v2028_v5  ;;  %v1782_v15 = vsub.f32 %v3145_v21, %v1749_v50 }
 0x237   : > { %2825 = vmatmul.mubr.bf16.vlgmr.msra.gmra.mxu1 %v2029_v2  ;;  %v1734_v56 = vpop.permute.xlu1 %1733 }
 0x238   : > { %2899 = vpow2.f32 %v1801_v39  ;;  %v1779_v27 = vsub.f32 %v3141_v18, %v1734_v56  ;;  %v1809_v8 = vmul.f32 1.442695, %v1782_v15 }
 0x239   : > { %v2894_v58 = vpop.eup %2893  ;;  %v1759_v28 = vpop.permute.xlu0 %1758  ;;  %2901 = vpow2.f32 %v1805_v10 }
 0x23a   : > { %v1803_v61 = vmul.f32 1.442695, %v1779_v27  ;;  %1863 = vadd.xlane.f32.xlu0 %v2894_v58  ;;  %v1784_v20 = vsub.f32 %v3191_v36, %v1759_v28 }
 0x23b   : > { %v1744_v11 = vpop.permute.xlu1 %1743 }
 0x23c   : > { %2903 = vpow2.f32 %v1803_v61  ;;  %v1781_v60 = vsub.f32 %v3147_v22, %v1744_v11  ;;  %v1813_v17 = vmul.f32 1.442695, %v1784_v20  ;;  %v1661_v11 = vmul.f32 1.442695, %v1644_v59 }
 0x23d   : > { %v2896_v0 = vpop.eup %2895  ;;  %v1769_v25 = vpop.permute.xlu0 %1768  ;;  %2905 = vpow2.f32 %v1809_v8 }
 0x23e   : > { %v1807_v21 = vmul.f32 1.442695, %v1781_v60  ;;  %1859 = vadd.xlane.f32.xlu0 %v2896_v0  ;;  %v1786_v18 = vsub.f32 %v3184_v33, %v1769_v25  ;;  %v1663_v60 = vmul.f32 1.442695, %v1645_v46 }
 0x23f   : > { %v1754_v54 = vpop.permute.xlu1 %1753 }
 0x240   : > { %2907 = vpow2.f32 %v1807_v21  ;;  %v1783_v30 = vsub.f32 %v3181_v31, %v1754_v54  ;;  %v1817_v36 = vmul.f32 1.442695, %v1786_v18  ;;  %v3538_v21 = vsub.f32 %v3239_v57, %v3249_v1 }
 0x241   : > { %v2898_v13 = vpop.eup %2897  ;;  %2909 = vpow2.f32 %v1813_v17  ;;  %v3544_v1 = vsub.f32 %v3291_v29, %v3309_v43  ;;  %v3547_v29 = vsub.f32 %v3281_v23, %v3298_v32  ;;  %v3550_v32 = vsub.f32 %v3321_v63, %v3338_v24 }
 0x242   : > { %v1811_v4 = vmul.f32 1.442695, %v1783_v30  ;;  %v2030_v52 = vpack.c.bf16 %v2898_v13, %v2896_v0  ;;  %v3537_v0 = vsub.f32 %v3204_v41, %v3217_v47  ;;  %v1667_v17 = vmul.f32 1.442695, %v3538_v21 }
 0x243   : > { %v1764_v5 = vpop.permute.xlu1 %1763  ;;  %v3541_v41 = vsub.f32 %v3261_v9, %v3278_v19  ;;  %v3542_v47 = vsub.f32 %v3271_v16, %v3289_v26  ;;  %v1679_v3 = vmul.f32 1.442695, %v3544_v1  ;;  %v1677_v16 = vmul.f32 1.442695, %v3545_v12 }
 0x244   : > { %2911 = vpow2.f32 %v1811_v4  ;;  %v1785_v22 = vsub.f32 %v3186_v34, %v1764_v5  ;;  %2828 = vmatprep.mubr.bf16.mxu1 %v2030_v52  ;;  %v1659_v25 = vmul.f32 1.442695, %v3537_v0  ;;  %v1681_v43 = vmul.f32 1.442695, %v3547_v29  ;;  %v1819_v5 = vld [vmem:[#allocation3] sm:$0xff] }
 0x245   : > { %v2900_v50 = vpop.eup %2899  ;;  %2913 = vpow2.f32 %v1817_v36  ;;  %v1669_v46 = vmul.f32 1.442695, %v3541_v41  ;;  %v1675_v57 = vmul.f32 1.442695, %v3542_v47  ;;  %v1821_v36 = vld [vmem:[#allocation3 + $0x10] sm:$0xff]  ;;  %v1826_v41 = vld [vmem:[#allocation3 + $0x38] sm:$0xff] }
 0x246   : > { %v1815_v2 = vmul.f32 1.442695, %v1785_v22  ;;  %1865 = vadd.xlane.f32.xlu1 %v2900_v50  ;;  %v2031_v39 = vpack.c.bf16 %v2900_v50, %v2894_v58  ;;  %v2902_v33 = vpop.eup %2901 }
 0x248   : > { %2915 = vpow2.f32 %v1815_v2  ;;  %2829 = vmatmul.mubr.bf16.gmra.mxu1 %v2031_v39 }
 0x249   : > { %v2904_v10 = vpop.eup %2903  ;;  %2917 = vpow2.f32 %v1661_v11 }
 0x24a   : > { %1861 = vadd.xlane.f32.xlu1 %v2898_v13  ;;  %v2032_v31 = vpack.c.bf16 %v2902_v33, %v2904_v10  ;;  %v2906_v15 = vpop.eup %2905  ;;  %2919 = vpow2.f32 %v1663_v60  ;;  %v1689_v13 = vmul.f32 1.442695, %v3550_v32 }
 0x24b   : > { %2921 = vpow2.f32 %v1659_v25  ;;  %v1823_v25 = vld [vmem:[#allocation3 + $0x20] sm:$0xff] }
 0x24c   : > { %2832 = vmatprep.mubr.bf16.mxu1 %v2032_v31  ;;  %2923 = vpow2.f32 %v1667_v17 }
 0x24d   : > { %v2908_v56 = vpop.eup %2907  ;;  %2925 = vpow2.f32 %v1665_v55 }
 0x24e   : > { %1873 = vadd.xlane.f32.xlu1 %v2906_v15  ;;  %1871 = vadd.xlane.f32.xlu0 %v2908_v56  ;;  %v2033_v27 = vpack.c.bf16 %v2906_v15, %v2908_v56  ;;  %v2910_v28 = vpop.eup %2909  ;;  %2927 = vpow2.f32 %v1671_v42  ;;  %v1820_v15 = vld [vmem:[#allocation3 + $0x8] sm:$0xff] }
 0x24f   : > { %2929 = vpow2.f32 %v1669_v46 }
 0x250   : > { %2833 = vmatmul.mubr.bf16.gmra.mxu1 %v2033_v27  ;;  %2931 = vpow2.f32 %v1675_v57 }
 0x251   : > { %v2912_v34 = vpop.eup %2911  ;;  %2933 = vpow2.f32 %v1673_v51 }
 0x252   : > { %1869 = vadd.xlane.f32.xlu1 %v2902_v33  ;;  %1867 = vadd.xlane.f32.xlu0 %v2904_v10  ;;  %v2034_v61 = vpack.c.bf16 %v2910_v28, %v2912_v34  ;;  %v2914_v58 = vpop.eup %2913  ;;  %2935 = vpow2.f32 %v1679_v3  ;;  %v1822_v10 = vld [vmem:[#allocation3 + $0x18] sm:$0xff] }
 0x253   : > { %2937 = vpow2.f32 %v1677_v16 }
 0x254   : > { %2836 = vmatprep.mubr.bf16.mxu1 %v2034_v61  ;;  %2939 = vpow2.f32 %v1683_v6 }
 0x255   : > { %v2916_v8 = vpop.eup %2915  ;;  %2941 = vpow2.f32 %v1681_v43 }
 0x256   : > { %1881 = vadd.xlane.f32.xlu1 %v2914_v58  ;;  %1875 = vadd.xlane.f32.xlu0 %v2912_v34  ;;  %v2035_v20 = vpack.c.bf16 %v2914_v58, %v2916_v8  ;;  %v3408_v59 = vpop.eup %2917  ;;  %2943 = vpow2.f32 %v1687_v53  ;;  %v1827_v53 = vld [vmem:[#allocation3 + $0x40] sm:$0xff] }
 0x257   : > { %v2920_v9 = vpop.eup %2919  ;;  %2945 = vpow2.f32 %v1685_v7  ;;  %v1836_v34 = vmul.f32 %v3408_v59, %v1820_v15  ;;  %v1832_v15 = vld [vmem:[#allocation3 + $0x68] sm:$0xff] }
 0x258   : > { %2837 = vmatmul.mubr.bf16.gmra.mxu1 %v2035_v20  ;;  %v2922_v19 = vpop.eup %2921  ;;  %2947 = vpow2.f32 %v1689_v13  ;;  %v1837_v22 = vmul.f32 %v2920_v9, %v1821_v36  ;;  %v1831_v36 = vld [vmem:[#allocation3 + $0x60] sm:$0xff] }
 0x259   : > { %v3423_v26 = vpop.eup %2923  ;;  %v1835_v39 = vmul.f32 %v2922_v19, %v1819_v5  ;;  %v1834_v5 = vld [vmem:[#allocation3 + $0x78] sm:$0xff] }
 0x25a   : > { %1877 = vadd.xlane.f32.xlu1 %v2910_v28  ;;  %1879 = vadd.xlane.f32.xlu0 %v2916_v8  ;;  %v2926_v18 = vpop.eup %2925  ;;  %v1825_v8 = vld [vmem:[#allocation3 + $0x30] sm:$0xff]  ;;  %v1839_v49 = vmul.f32 %v3423_v26, %v1823_v25 }
 0x25b   : > { %v2928_v54 = vpop.eup %2927  ;;  %v1838_v56 = vmul.f32 %v2926_v18, %v1822_v10 }
 0x25c   : > { %v3435_v30 = vpop.eup %2929  ;;  %v1841_v60 = vmul.f32 %v2928_v54, %v1825_v8 }
 0x25d   : > { %v3438_v23 = vpop.eup %2931 }
 0x25e   : > { %v2934_v14 = vpop.eup %2933  ;;  %v1843_v32 = vmul.f32 %v3438_v23, %v1827_v53 }
 0x25f   : > { %v3444_v45 = vpop.eup %2935  ;;  %v1842_v57 = vmul.f32 %v2934_v14, %v1826_v41 }
 0x260   : > { %v3446_v40 = vpop.eup %2937 }
 0x261   : > { %v3450_v35 = vpop.eup %2939 }
 0x262   : > { %v3452_v4 = vpop.eup %2941 }
 0x263   : > { %v3456_v63 = vpop.eup %2943  ;;  %v1846_v29 = vmul.f32 %v3452_v4, %v1830_v62 }
 0x264   : > { %v3458_v24 = vpop.eup %2945 }
 0x265   : > { %v3462_v52 = vpop.eup %2947 }
 0x26b   : > { %1939 = vperm.xlu1 %2868, %v3408_v59  }
 0x26f   : > { %1944 = vperm.xlu1 %2868, %v2920_v9   ;;  %v1840_v9 = vmul.f32 %v3435_v30, %v1824_v44 }
 0x270   : > { %1934 = vperm.xlu0 %2867, %v2922_v19   ;;  %v1829_v19 = vld [vmem:[#allocation3 + $0x50] sm:$0xff] }
 0x273   : > { %1954 = vperm.xlu1 %2868, %v3423_v26   ;;  %v1845_v26 = vmul.f32 %v3444_v45, %v1829_v19 }
 0x274   : > { %1949 = vperm.xlu0 %2867, %v2926_v18  }
 0x277   : > { %1964 = vperm.xlu1 %2868, %v2928_v54   ;;  %v1828_v54 = vld [vmem:[#allocation3 + $0x48] sm:$0xff] }
 0x278   : > { %1959 = vperm.xlu0 %2867, %v3435_v30   ;;  %v1844_v13 = vmul.f32 %v3446_v40, %v1828_v54 }
 0x27b   : > { %1974 = vperm.xlu1 %2868, %v3438_v23   ;;  %v1850_v23 = vmul.f32 %v3462_v52, %v1834_v5 }
 0x27c   : > { %1969 = vperm.xlu0 %2867, %v2934_v14  }
 0x27f   : > { %1984 = vperm.xlu1 %2868, %v3444_v45  }
 0x280   : > { %1979 = vperm.xlu0 %2867, %v3446_v40  }
 0x283   : > { %1994 = vperm.xlu1 %2868, %v3450_v35  }
 0x284   : > { %1989 = vperm.xlu0 %2867, %v3452_v4  }
 0x287   : > { %2004 = vperm.xlu1 %2868, %v3456_v63  }
 0x288   : > { %1999 = vperm.xlu0 %2867, %v3458_v24  }
 0x28c   : > { %2009 = vperm.xlu0 %2867, %v3462_v52  }
 0x2b5   : > { %v1856_v50 = vpop.xlane.xlu0 %1855 }
 0x2b6   : > { %v1885_v2 = vadd.f32 %v1856_v50, %v1837_v22 }
 0x2b7   : > { %v1852_v33 = vpop.xlane.xlu1 %1851 }
 0x2b8   : > { %1902 = vst.msk [vmem:[#allocation3 + $0x10] sm:$0xff] %vm323_vm0, %v1885_v2  ;;  %v1883_v31 = vadd.f32 %v1852_v33, %v1835_v39  ;;  %v1847_v39 = vmul.f32 %v3450_v35, %v1831_v36  ;;  %v1848_v35 = vmul.f32 %v3458_v24, %v1832_v15 }
 0x2ba   : > { %1900 = vst.msk [vmem:[#allocation3] sm:$0xff] %vm323_vm0, %v1883_v31  ;;  %v1833_v31 = vld [vmem:[#allocation3 + $0x70] sm:$0xff] }
 0x2bb   : > { %v1858_v27 = vpop.xlane.xlu1 %1857 }
 0x2bc   : > { %v1886_v28 = vadd.f32 %v1858_v27, %v1838_v56 }
 0x2bd   : > { %v1854_v61 = vpop.xlane.xlu0 %1853 }
 0x2be   : > { %1903 = vst.msk [vmem:[#allocation3 + $0x18] sm:$0xff] %vm323_vm0, %v1886_v28  ;;  %v1884_v58 = vadd.f32 %v1854_v61, %v1836_v34  ;;  %v1849_v61 = vmul.f32 %v3456_v63, %v1833_v31 }
 0x2bf   : > { %v2250_v20 = vld [vmem:[#allocation3 + $0x10] sm:$0xff] }
 0x2c0   : > { %1901 = vst.msk [vmem:[#allocation3 + $0x8] sm:$0xff] %vm323_vm0, %v1884_v58  ;;  %2949 = vrcp.f32 %v2250_v20 }
 0x2c1   : > { %v2248_v11 = vld [vmem:[#allocation3] sm:$0xff] }
 0x2c2   : > { %2951 = vrcp.f32 %v2248_v11 }
 0x2c3   : > { %v1864_v0 = vpop.xlane.xlu0 %1863 }
 0x2c4   : > { %v1889_v21 = vadd.f32 %v1864_v0, %v1841_v60 }
 0x2c5   : > { %v2251_v17 = vld [vmem:[#allocation3 + $0x18] sm:$0xff] }
 0x2c6   : > { %1906 = vst.msk [vmem:[#allocation3 + $0x30] sm:$0xff] %vm323_vm0, %v1889_v21  ;;  %2953 = vrcp.f32 %v2251_v17 }
 0x2c7   : > { %v1860_v55 = vpop.xlane.xlu0 %1859  ;;  %v2249_v38 = vld [vmem:[#allocation3 + $0x8] sm:$0xff] }
 0x2c8   : > { %v1887_v42 = vadd.f32 %v1860_v55, %v1839_v49  ;;  %2955 = vrcp.f32 %v2249_v38 }
 0x2ca   : > { %1904 = vst.msk [vmem:[#allocation3 + $0x20] sm:$0xff] %vm323_vm0, %v1887_v42 }
 0x2cd   : > { %v2950_v46 = vpop.eup %2949  ;;  %v2254_v47 = vld [vmem:[#allocation3 + $0x30] sm:$0xff] }
 0x2ce   : > { %2308 = vperm.xlu1 %2868, %v2950_v46   ;;  %2957 = vrcp.f32 %v2254_v47 }
 0x2cf   : > { %v1866_v59 = vpop.xlane.xlu1 %1865  ;;  %v2952_v1 = vpop.eup %2951 }
 0x2d0   : > { %v1890_v51 = vadd.f32 %v1866_v59, %v1842_v57 }
 0x2d1   : > { %v2252_v3 = vld [vmem:[#allocation3 + $0x20] sm:$0xff] }
 0x2d2   : > { %1907 = vst.msk [vmem:[#allocation3 + $0x38] sm:$0xff] %vm323_vm0, %v1890_v51  ;;  %2298 = vperm.xlu1 %2868, %v2952_v1   ;;  %2959 = vrcp.f32 %v2252_v3 }
 0x2d3   : > { %v2954_v12 = vpop.eup %2953  ;;  %v1862_v16 = vpop.xlane.xlu1 %1861 }
 0x2d4   : > { %v1888_v6 = vadd.f32 %v1862_v16, %v1840_v9  ;;  %2313 = vperm.xlu0 %2867, %v2954_v12  }
 0x2d5   : > { %v2956_v43 = vpop.eup %2955 }
 0x2d6   : > { %1905 = vst.msk [vmem:[#allocation3 + $0x28] sm:$0xff] %vm323_vm0, %v1888_v6 }
 0x2d7   : > { %v1872_v18 = vpop.xlane.xlu0 %1871  ;;  %v1874_v37 = vpop.xlane.xlu1 %1873 }
 0x2d8   : > { %v1893_v48 = vadd.f32 %v1872_v18, %v1845_v26  ;;  %v1894_v7 = vadd.f32 %v1874_v37, %v1846_v29  ;;  %2303 = vperm.xlu0 %2867, %v2956_v43  }
 0x2d9   : > { %v2255_v30 = vld [vmem:[#allocation3 + $0x38] sm:$0xff] }
 0x2da   : > { %1910 = vst.msk [vmem:[#allocation3 + $0x50] sm:$0xff] %vm323_vm0, %v1893_v48  ;;  %1911 = vst.msk [vmem:[#allocation3 + $0x58] sm:$0xff] %vm323_vm0, %v1894_v7  ;;  %2961 = vrcp.f32 %v2255_v30 }
 0x2db   : > { %v2958_v14 = vpop.eup %2957  ;;  %v1868_v45 = vpop.xlane.xlu0 %1867 }
 0x2dc   : > { %v1870_v4 = vpop.xlane.xlu1 %1869  ;;  %v1891_v22 = vadd.f32 %v1868_v45, %v1843_v32  ;;  %2328 = vperm.xlu1 %2868, %v2958_v14  }
 0x2dd   : > { %v1892_v50 = vadd.f32 %v1870_v4, %v1844_v13  ;;  %v2253_v2 = vld [vmem:[#allocation3 + $0x28] sm:$0xff] }
 0x2de   : > { %1908 = vst.msk [vmem:[#allocation3 + $0x40] sm:$0xff] %vm323_vm0, %v1891_v22  ;;  %2963 = vrcp.f32 %v2253_v2 }
 0x2df   : > { %1909 = vst.msk [vmem:[#allocation3 + $0x48] sm:$0xff] %vm323_vm0, %v1892_v50  ;;  %v2960_v40 = vpop.eup %2959  ;;  %v1876_v33 = vpop.xlane.xlu0 %1875 }
 0x2e0   : > { %v1882_v10 = vpop.xlane.xlu1 %1881  ;;  %v1895_v56 = vadd.f32 %v1876_v33, %v1847_v39  ;;  %2318 = vperm.xlu1 %2868, %v2960_v40  }
 0x2e1   : > { %v1898_v27 = vadd.f32 %v1882_v10, %v1850_v23  ;;  %v2258_v28 = vld [vmem:[#allocation3 + $0x50] sm:$0xff]  ;;  %v2259_v34 = vld [vmem:[#allocation3 + $0x58] sm:$0xff] }
 0x2e2   : > { %1912 = vst.msk [vmem:[#allocation3 + $0x60] sm:$0xff] %vm323_vm0, %v1895_v56  ;;  %2965 = vrcp.f32 %v2258_v28 }
 0x2e3   : > { %1915 = vst.msk [vmem:[#allocation3 + $0x78] sm:$0xff] %vm323_vm0, %v1898_v27  ;;  %v1880_v52 = vpop.xlane.xlu0 %1879  ;;  %2967 = vrcp.f32 %v2259_v34 }
 0x2e4   : > { %v1878_v58 = vpop.xlane.xlu1 %1877  ;;  %v1897_v8 = vadd.f32 %v1880_v52, %v1849_v61 }
 0x2e5   : > { %v1896_v20 = vadd.f32 %v1878_v58, %v1848_v35  ;;  %v2256_v11 = vld [vmem:[#allocation3 + $0x40] sm:$0xff] }
 0x2e6   : > { %v2257_v60 = vld [vmem:[#allocation3 + $0x48] sm:$0xff]  ;;  %1914 = vst.msk [vmem:[#allocation3 + $0x70] sm:$0xff] %vm323_vm0, %v1897_v8  ;;  %2969 = vrcp.f32 %v2256_v11 }
 0x2e7   : > { %1913 = vst.msk [vmem:[#allocation3 + $0x68] sm:$0xff] %vm323_vm0, %v1896_v20  ;;  %v2962_v0 = vpop.eup %2961  ;;  %2971 = vrcp.f32 %v2257_v60 }
 0x2e8   : > { %2333 = vperm.xlu0 %2867, %v2962_v0   ;;  %v1940_v59 = vpop.permute.xlu1 %1939 }
 0x2e9   : > { %v2260_v25 = vld [vmem:[#allocation3 + $0x60] sm:$0xff]  ;;  %v2013_v22 = vmul.f32 0.0, %v1940_v59 }
 0x2ea   : > { %2973 = vrcp.f32 %v2260_v25  ;;  %v2263_v55 = vld [vmem:[#allocation3 + $0x78] sm:$0xff] }
 0x2eb   : > { %v2964_v63 = vpop.eup %2963  ;;  %v1935_v44 = vpop.permute.xlu0 %1934 }
 0x2ec   : > { %2323 = vperm.xlu0 %2867, %v2964_v63   ;;  %v1945_v51 = vpop.permute.xlu1 %1944  ;;  %v2012_v50 = vmul.f32 0.0, %v1935_v44 }
 0x2ed   : > { %v2262_v24 = vld [vmem:[#allocation3 + $0x70] sm:$0xff]  ;;  %v2014_v13 = vmul.f32 0.0, %v1945_v51 }
 0x2ee   : > { %v2261_v21 = vld [vmem:[#allocation3 + $0x68] sm:$0xff]  ;;  %2975 = vrcp.f32 %v2262_v24 }
 0x2ef   : > { %v2966_v17 = vpop.eup %2965  ;;  %2977 = vrcp.f32 %v2261_v21  ;;  %v1950_v1 = vpop.permute.xlu0 %1949 }
 0x2f0   : > { %v2968_v49 = vpop.eup %2967  ;;  %2348 = vperm.xlu1 %2868, %v2966_v17   ;;  %2979 = vrcp.f32 %v2263_v55  ;;  %v1955_v3 = vpop.permute.xlu1 %1954  ;;  %v2015_v14 = vmul.f32 0.0, %v1950_v1 }
 0x2f1   : > { %2353 = vperm.xlu0 %2867, %v2968_v49   ;;  %v2016_v25 = vmul.f32 0.0, %v1955_v3 }
 0x2f3   : > { %v2970_v38 = vpop.eup %2969  ;;  %v1960_v9 = vpop.permute.xlu0 %1959 }
 0x2f4   : > { %v2972_v42 = vpop.eup %2971  ;;  %2338 = vperm.xlu1 %2868, %v2970_v38   ;;  %v1965_v12 = vpop.permute.xlu1 %1964  ;;  %v2017_v63 = vmul.f32 0.0, %v1960_v9 }
 0x2f5   : > { %2343 = vperm.xlu0 %2867, %v2972_v42   ;;  %v2018_v58 = vmul.f32 0.0, %v1965_v12 }
 0x2f7   : > { %v2974_v41 = vpop.eup %2973  ;;  %v1970_v16 = vpop.permute.xlu0 %1969 }
 0x2f8   : > { %2358 = vperm.xlu1 %2868, %v2974_v41   ;;  %v3492_v19 = vpop.permute.xlu1 %1974  ;;  %v2826_v6 = vpop.f32.mrf.mxu1  ;;  %v2019_v8 = vmul.f32 0.0, %v1970_v16 }
 0x2f9   : > { %v2199_v4 = vadd.f32 %v2826_v6, %v2014_v13  ;;  %v2020_v9 = vmul.f32 0.0, %v3492_v19 }
 0x2fa   : > { %v2134_v29 = vpop.f32.mrf.mxu1 }
 0x2fb   : > { %v2976_v46 = vpop.eup %2975  ;;  %v3494_v62 = vpop.permute.xlu0 %1979  ;;  %v2197_v33 = vadd.f32 %v2134_v29, %v2012_v50 }
 0x2fc   : > { %v2978_v47 = vpop.eup %2977  ;;  %2368 = vperm.xlu1 %2868, %v2976_v46   ;;  %v1985_v26 = vpop.permute.xlu1 %1984 }
 0x2fd   : > { %2363 = vperm.xlu0 %2867, %v2978_v47   ;;  %v2980_v57 = vpop.eup %2979  ;;  %v2827_v37 = vpop.f32.mrf.mxu1  ;;  %v2022_v46 = vmul.f32 0.0, %v1985_v26 }
 0x2fe   : > { %v2200_v36 = vadd.f32 %v2827_v37, %v2015_v14  ;;  %v2021_v37 = vmul.f32 0.0, %v3494_v62 }
 0x2ff   : > { %v1990_v43 = vpop.permute.xlu0 %1989  ;;  %v2137_v54 = vpop.f32.mrf.mxu1 }
 0x300   : > { %v3496_v18 = vpop.permute.xlu1 %1994  ;;  %v2198_v10 = vadd.f32 %v2137_v54, %v2013_v22  ;;  %v2023_v44 = vmul.f32 0.0, %v1990_v43 }
 0x301   : > { %2373 = vperm.xlu0 %2867, %v2980_v57   ;;  %v2024_v22 = vmul.f32 0.0, %v3496_v18 }
 0x303   : > { %v3498_v53 = vpop.permute.xlu0 %1999 }
 0x304   : > { %v3500_v48 = vpop.permute.xlu1 %2004  ;;  %v2025_v50 = vmul.f32 0.0, %v3498_v53 }
 0x307   : > { %v3502_v30 = vpop.permute.xlu0 %2009 }
 0x308   : > { %v2830_v7 = vpop.f32.mrf.mxu1 }
 0x309   : > { %v2203_v11 = vadd.f32 %v2830_v7, %v2018_v58 }
 0x30a   : > { %v2150_v45 = vpop.f32.mrf.mxu1 }
 0x30b   : > { %v2201_v55 = vadd.f32 %v2150_v45, %v2016_v25 }
 0x30c   : > { %v2831_v2 = vpop.f32.mrf.mxu1 }
 0x30d   : > { %v2204_v60 = vadd.f32 %v2831_v2, %v2019_v8 }
 0x30e   : > { %v2153_v56 = vpop.f32.mrf.mxu1 }
 0x30f   : > { %v2202_v38 = vadd.f32 %v2153_v56, %v2017_v63 }
 0x310   : > { %v2834_v61 = vpop.f32.mrf.mxu1 }
 0x311   : > { %v2207_v51 = vadd.f32 %v2834_v61, %v2022_v46 }
 0x312   : > { %v2166_v35 = vpop.f32.mrf.mxu1 }
 0x313   : > { %v2205_v54 = vadd.f32 %v2166_v35, %v2020_v9 }
 0x314   : > { %v2835_v20 = vpop.f32.mrf.mxu1 }
 0x315   : > { %v2208_v12 = vadd.f32 %v2835_v20, %v2023_v44 }
 0x316   : > { %v2169_v24 = vpop.f32.mrf.mxu1 }
 0x317   : > { %v2206_v7 = vadd.f32 %v2169_v24, %v2021_v37 }
 0x318   : > { %v2838_v47 = vpop.f32.mrf.mxu1 }
 0x31a   : > { %v2182_v16 = vpop.f32.mrf.mxu1 }
 0x31b   : > { %v2209_v62 = vadd.f32 %v2182_v16, %v2024_v22 }
 0x31c   : > { %v2839_v43 = vpop.f32.mrf.mxu1 }
 0x349   : > { %v2309_v32 = vpop.permute.xlu1 %2308 }
 0x34a   : > { %v2378_v39 = vmul.f32 %v2309_v32, %v2199_v4 }
 0x34d   : > { %v2299_v40 = vpop.permute.xlu1 %2298 }
 0x34e   : > { %v2376_v27 = vmul.f32 %v2299_v40, %v2197_v33  ;;  %v2027_v40 = vmul.f32 0.0, %v3502_v30 }
 0x34f   : > { %v2314_v5 = vpop.permute.xlu0 %2313 }
 0x350   : > { %v2379_v23 = vmul.f32 %v2314_v5, %v2200_v36  ;;  %v2185_v5 = vpop.f32.mrf.mxu1  ;;  %v2212_v56 = vadd.f32 %v2839_v43, %v2027_v40 }
 0x351   : > { %v2210_v2 = vadd.f32 %v2185_v5, %v2025_v50 }
 0x352   : > { %v2705_v31 = vpack.c.bf16 %v2379_v23, %v2378_v39  ;;  %v2026_v23 = vmul.f32 0.0, %v3500_v48 }
 0x353   : > { %v2304_v15 = vpop.permute.xlu0 %2303 }
 0x354   : > { %2737 = vst [vmem:[%s3508_s28 + $0x8] sm:$0xff] %v2705_v31   ;;  %v2377_v28 = vmul.f32 %v2304_v15, %v2198_v10  ;;  %v2211_v15 = vadd.f32 %v2838_v47, %v2026_v23 }
 0x356   : > { %v2700_v34 = vpack.c.bf16 %v2377_v28, %v2376_v27 }
 0x357   : > { %v2329_v52 = vpop.permute.xlu1 %2328 }
 0x358   : > { %2701 = vst [vmem:[%s3508_s28] sm:$0xff] %v2700_v34   ;;  %v2382_v21 = vmul.f32 %v2329_v52, %v2203_v11 }
 0x35b   : > { %v2319_v49 = vpop.permute.xlu1 %2318 }
 0x35c   : > { %v2380_v57 = vmul.f32 %v2319_v49, %v2201_v55 }
 0x363   : > { %v2334_v0 = vpop.permute.xlu0 %2333 }
 0x364   : > { %v2383_v17 = vmul.f32 %v2334_v0, %v2204_v60 }
 0x366   : > { %v2715_v42 = vpack.c.bf16 %v2383_v17, %v2382_v21 }
 0x367   : > { %v2324_v41 = vpop.permute.xlu0 %2323 }
 0x368   : > { %2739 = vst [vmem:[%s3508_s28 + $0x18] sm:$0xff] %v2715_v42   ;;  %v2381_v59 = vmul.f32 %v2324_v41, %v2202_v38 }
 0x36a   : > { %v2710_v1 = vpack.c.bf16 %v2381_v59, %v2380_v57 }
 0x36b   : > { %v2349_v3 = vpop.permute.xlu1 %2348 }
 0x36c   : > { %2738 = vst [vmem:[%s3508_s28 + $0x10] sm:$0xff] %v2710_v1   ;;  %v2354_v6 = vpop.permute.xlu0 %2353  ;;  %v2386_v29 = vmul.f32 %v2349_v3, %v2207_v51 }
 0x36d   : > { %v2387_v26 = vmul.f32 %v2354_v6, %v2208_v12 }
 0x36f   : > { %v2725_v32 = vpack.c.bf16 %v2387_v26, %v2386_v29  ;;  %v2339_v13 = vpop.permute.xlu1 %2338 }
 0x370   : > { %v2344_v14 = vpop.permute.xlu0 %2343  ;;  %v2384_v45 = vmul.f32 %v2339_v13, %v2205_v54 }
 0x371   : > { %2741 = vst [vmem:[%s3508_s28 + $0x28] sm:$0xff] %v2725_v32   ;;  %v2385_v4 = vmul.f32 %v2344_v14, %v2206_v7 }
 0x373   : > { %v2720_v36 = vpack.c.bf16 %v2385_v4, %v2384_v45  ;;  %v2359_v19 = vpop.permute.xlu1 %2358 }
 0x374   : > { %v2388_v33 = vmul.f32 %v2359_v19, %v2209_v62 }
 0x375   : > { %2740 = vst [vmem:[%s3508_s28 + $0x20] sm:$0xff] %v2720_v36  }
 0x377   : > { %v2369_v31 = vpop.permute.xlu1 %2368 }
 0x378   : > { %v2364_v39 = vpop.permute.xlu0 %2363  ;;  %v2390_v18 = vmul.f32 %v2369_v31, %v2211_v15 }
 0x379   : > { %v2389_v10 = vmul.f32 %v2364_v39, %v2210_v2 }
 0x37b   : > { %v2730_v27 = vpack.c.bf16 %v2389_v10, %v2388_v33 }
 0x37c   : > { %v2374_v28 = vpop.permute.xlu0 %2373 }
 0x37d   : > { %2742 = vst [vmem:[%s3508_s28 + $0x30] sm:$0xff] %v2730_v27   ;;  %v2391_v34 = vmul.f32 %v2374_v28, %v2212_v56 }
 0x37f   : > { %v2735_v53 = vpack.c.bf16 %v2391_v34, %v2390_v18 }
 0x381   : > { %2743 = vst [vmem:[%s3508_s28 + $0x38] sm:$0xff] %v2735_v53  }
 0x382 PF: > { %s13_s14 = sadd.s32 1, %s3003_s14   ;;  %s3551_s12 = smov %s2999_s13 }
 0x383   : > { %p10_p5 = scmp.ge.s32.totalorder %s13_s14, 6   ;;  %s3552_s13 = smov %s3554_s15 }
 0x385   :  { %12 = sbr.rel (!%p10_p5) target bundleno = 2 (0x2), region = 84 }

// kernel: base_agent_forward.12
= control target key start
LH: loop header
LB: loop body
LE: loop exit
PB: predicated region body
PF: predicated region fallthrough
CT: control target
= control target key end

     0   :  { %s2057_s1 = inlined_call_operand.vmem [shape: bf16[256,256], index: 1, kind: input, shape index: {}]   ;;  %s2058_s0 = inlined_call_operand.vmem [shape: bf16[256,256], index: 0, kind: input, shape index: {}]   ;;  %s2059_s2 = inlined_call_operand.vmem [shape: f32[1,256], index: 2, kind: input, shape index: {}]   ;;  %s2060_s3 = inlined_call_operand.vmem [shape: f32[256,256], index: 3, kind: input, shape index: {}]   ;;  %s2061_s4 = inlined_call_operand.vmem [shape: f32[256,256], index: 4, kind: output, shape index: {}]  }
   0x1   :  { %v1289_v0 = vld [vmem:[%s2057_s1 + $0x74] ss:$8 sps:$4 sm:$0xff]   ;;  %v1291_v1 = vld [vmem:[%s2057_s1 + $0x70] ss:$8 sps:$4 sm:$0xff]   ;;  %v1292_v2 = vld [vmem:[%s2057_s1 + $0x64] ss:$8 sps:$4 sm:$0xff]  }
   0x2   :  { %533 = vmatprep.subr.bf16.mxu0 %v1289_v0  ;;  %1257 = vmatprep.subr.bf16.mxu1 %v1289_v0  ;;  %v1294_v3 = vld [vmem:[%s2057_s1 + $0x60] ss:$8 sps:$4 sm:$0xff]   ;;  %v1295_v4 = vld [vmem:[%s2057_s1 + $0x54] ss:$8 sps:$4 sm:$0xff]   ;;  %v1297_v5 = vld [vmem:[%s2057_s1 + $0x50] ss:$8 sps:$4 sm:$0xff]   ;;  %v923_v0 = vlaneseq }
   0x3   :  { %534 = vmatpush1.bf16.msra.mxu0 %v1291_v1  ;;  %1273 = vmatpush1.bf16.msra.mxu1 %v1291_v1  ;;  %v1298_v6 = vld [vmem:[%s2057_s1 + $0x44] ss:$8 sps:$4 sm:$0xff]   ;;  %v1300_v7 = vld [vmem:[%s2057_s1 + $0x40] ss:$8 sps:$4 sm:$0xff]   ;;  %v1301_v8 = vld [vmem:[%s2057_s1 + $0x34] ss:$8 sps:$4 sm:$0xff]  }
   0x4   :  { %535 = vmatprep.subr.bf16.mxu0 %v1292_v2  ;;  %1258 = vmatprep.subr.bf16.mxu1 %v1292_v2  ;;  %v1303_v9 = vld [vmem:[%s2057_s1 + $0x30] ss:$8 sps:$4 sm:$0xff]   ;;  %v1304_v10 = vld [vmem:[%s2057_s1 + $0x24] ss:$8 sps:$4 sm:$0xff]   ;;  %v1306_v11 = vld [vmem:[%s2057_s1 + $0x20] ss:$8 sps:$4 sm:$0xff]  }
   0x5   :  { %v1307_v12 = vld [vmem:[%s2057_s1 + $0x14] ss:$8 sps:$4 sm:$0xff]   ;;  %v1339_v13 = vld [vmem:[%s2058_s0 + $0x4] ss:$8 sps:$4 sm:$0xff]   ;;  %v1309_v14 = vld [vmem:[%s2057_s1 + $0x10] ss:$8 sps:$4 sm:$0xff]  }
   0x6   :  { %v1342_v15 = vld [vmem:[%s2058_s0 + $0x84] ss:$8 sps:$4 sm:$0xff]   ;;  %565 = vmatprep.mubr.bf16.mxu0 %v1339_v13  ;;  %v1312_v17 = vld [vmem:[%s2057_s1] ss:$8 sps:$4 sm:$0xff]   ;;  %v1313_v18 = vld [vmem:[%s2057_s1 + $0xf4] ss:$8 sps:$4 sm:$0xff]  }
   0x7   :  { %536 = vmatpush1.bf16.msra.mxu0 %v1294_v3  ;;  %1274 = vmatpush1.bf16.msra.mxu1 %v1294_v3  ;;  %v1310_v16 = vld [vmem:[%s2057_s1 + $0x4] ss:$8 sps:$4 sm:$0xff]   ;;  %v1315_v19 = vld [vmem:[%s2057_s1 + $0xf0] ss:$8 sps:$4 sm:$0xff]   ;;  %v1318_v21 = vld [vmem:[%s2057_s1 + $0xe0] ss:$8 sps:$4 sm:$0xff]  }
   0x8   :  { %537 = vmatprep.subr.bf16.mxu0 %v1295_v4  ;;  %1259 = vmatprep.subr.bf16.mxu1 %v1295_v4  ;;  %v1316_v20 = vld [vmem:[%s2057_s1 + $0xe4] ss:$8 sps:$4 sm:$0xff]   ;;  %v1319_v22 = vld [vmem:[%s2057_s1 + $0xd4] ss:$8 sps:$4 sm:$0xff]   ;;  %v1321_v23 = vld [vmem:[%s2057_s1 + $0xd0] ss:$8 sps:$4 sm:$0xff]  }
   0x9   :  { %645 = vmatprep.mubr.bf16.mxu1 %v1342_v15  ;;  %v1322_v24 = vld [vmem:[%s2057_s1 + $0xc4] ss:$8 sps:$4 sm:$0xff]   ;;  %v1324_v25 = vld [vmem:[%s2057_s1 + $0xc0] ss:$8 sps:$4 sm:$0xff]   ;;  %v1325_v26 = vld [vmem:[%s2057_s1 + $0xb4] ss:$8 sps:$4 sm:$0xff]  }
   0xa   :  { %v1327_v27 = vld [vmem:[%s2057_s1 + $0xb0] ss:$8 sps:$4 sm:$0xff]   ;;  %v1328_v28 = vld [vmem:[%s2057_s1 + $0xa4] ss:$8 sps:$4 sm:$0xff]   ;;  %v1330_v29 = vld [vmem:[%s2057_s1 + $0xa0] ss:$8 sps:$4 sm:$0xff]  }
   0xb   :  { %538 = vmatpush1.bf16.msra.mxu0 %v1297_v5  ;;  %1275 = vmatpush1.bf16.msra.mxu1 %v1297_v5  ;;  %v1331_v30 = vld [vmem:[%s2057_s1 + $0x94] ss:$8 sps:$4 sm:$0xff]   ;;  %v1333_v31 = vld [vmem:[%s2057_s1 + $0x90] ss:$8 sps:$4 sm:$0xff]   ;;  %v1334_v32 = vld [vmem:[%s2057_s1 + $0x84] ss:$8 sps:$4 sm:$0xff]  }
   0xc   :  { %539 = vmatprep.subr.bf16.mxu0 %v1298_v6  ;;  %1260 = vmatprep.subr.bf16.mxu1 %v1298_v6  ;;  %v1336_v33 = vld [vmem:[%s2057_s1 + $0x80] ss:$8 sps:$4 sm:$0xff]   ;;  %v1343_v36 = vld [vmem:[%s2058_s0 + $0x14] ss:$8 sps:$4 sm:$0xff]   ;;  %v1347_v38 = vld [vmem:[%s2058_s0 + $0x10] ss:$8 sps:$4 sm:$0xff]  }
   0xd   :  { %v1337_v34 = vld [vmem:[%s2058_s0] ss:$8 sps:$4 sm:$0xff]   ;;  %v1345_v37 = vld [vmem:[%s2058_s0 + $0x94] ss:$8 sps:$4 sm:$0xff]   ;;  %v1348_v39 = vld [vmem:[%s2058_s0 + $0x90] ss:$8 sps:$4 sm:$0xff]  }
   0xe   :  { %v1340_v35 = vld [vmem:[%s2058_s0 + $0x80] ss:$8 sps:$4 sm:$0xff]   ;;  %v1349_v40 = vld [vmem:[%s2058_s0 + $0x24] ss:$8 sps:$4 sm:$0xff]   ;;  %v1355_v44 = vld [vmem:[%s2058_s0 + $0x34] ss:$8 sps:$4 sm:$0xff]  }
   0xf   :  { %540 = vmatpush1.bf16.msra.mxu0 %v1300_v7  ;;  %1276 = vmatpush1.bf16.msra.mxu1 %v1300_v7  ;;  %v1351_v41 = vld [vmem:[%s2058_s0 + $0xa4] ss:$8 sps:$4 sm:$0xff]   ;;  %v1353_v42 = vld [vmem:[%s2058_s0 + $0x20] ss:$8 sps:$4 sm:$0xff]   ;;  %v1357_v45 = vld [vmem:[%s2058_s0 + $0xb4] ss:$8 sps:$4 sm:$0xff]  }
  0x10   :  { %541 = vmatprep.subr.bf16.mxu0 %v1301_v8  ;;  %1261 = vmatprep.subr.bf16.mxu1 %v1301_v8  ;;  %v1354_v43 = vld [vmem:[%s2058_s0 + $0xa0] ss:$8 sps:$4 sm:$0xff]   ;;  %v1359_v46 = vld [vmem:[%s2058_s0 + $0x30] ss:$8 sps:$4 sm:$0xff]   ;;  %v1361_v48 = vld [vmem:[%s2058_s0 + $0x44] ss:$8 sps:$4 sm:$0xff]  }
  0x11   :  { %v1360_v47 = vld [vmem:[%s2058_s0 + $0xb0] ss:$8 sps:$4 sm:$0xff]   ;;  %v1363_v49 = vld [vmem:[%s2058_s0 + $0xc4] ss:$8 sps:$4 sm:$0xff]   ;;  %v1365_v50 = vld [vmem:[%s2058_s0 + $0x40] ss:$8 sps:$4 sm:$0xff]  }
  0x12   :  { %v1366_v51 = vld [vmem:[%s2058_s0 + $0xc0] ss:$8 sps:$4 sm:$0xff]   ;;  %v1367_v52 = vld [vmem:[%s2058_s0 + $0x54] ss:$8 sps:$4 sm:$0xff]   ;;  %v1371_v54 = vld [vmem:[%s2058_s0 + $0x50] ss:$8 sps:$4 sm:$0xff]  }
  0x13   :  { %542 = vmatpush1.bf16.msra.mxu0 %v1303_v9  ;;  %1277 = vmatpush1.bf16.msra.mxu1 %v1303_v9  ;;  %v1369_v53 = vld [vmem:[%s2058_s0 + $0xd4] ss:$8 sps:$4 sm:$0xff]   ;;  %v1372_v55 = vld [vmem:[%s2058_s0 + $0xd0] ss:$8 sps:$4 sm:$0xff]   ;;  %v1373_v56 = vld [vmem:[%s2058_s0 + $0x64] ss:$8 sps:$4 sm:$0xff]  }
  0x14   :  { %543 = vmatprep.subr.bf16.mxu0 %v1304_v10  ;;  %1262 = vmatprep.subr.bf16.mxu1 %v1304_v10  ;;  %v1375_v57 = vld [vmem:[%s2058_s0 + $0xe4] ss:$8 sps:$4 sm:$0xff]   ;;  %v1377_v58 = vld [vmem:[%s2058_s0 + $0x60] ss:$8 sps:$4 sm:$0xff]   ;;  %v1379_v60 = vld [vmem:[%s2058_s0 + $0x74] ss:$8 sps:$4 sm:$0xff]  }
  0x15   :  { %v1378_v59 = vld [vmem:[%s2058_s0 + $0xe0] ss:$8 sps:$4 sm:$0xff]   ;;  %v1381_v61 = vld [vmem:[%s2058_s0 + $0xf4] ss:$8 sps:$4 sm:$0xff]   ;;  %v1383_v62 = vld [vmem:[%s2058_s0 + $0x70] ss:$8 sps:$4 sm:$0xff]  }
  0x16   :  { %v1384_v63 = vld [vmem:[%s2058_s0 + $0xf0] ss:$8 sps:$4 sm:$0xff]   ;;  %v924_v1 = vshrl.u32 %v923_v0, 7  ;;  %v921_v3 = vld [vmem:[%s2059_s2] sm:$0x3] }
  0x17   :  { %544 = vmatpush1.bf16.msra.mxu0 %v1306_v11  ;;  %1278 = vmatpush1.bf16.msra.mxu1 %v1306_v11  ;;  %v997_v8 = vld [vmem:[%s2060_s3] sm:$0xff]  ;;  %v1036_v0 = vld [vmem:[%s2060_s3 + $0x138] sm:$0xff] }
  0x18   :  { %545 = vmatprep.subr.bf16.mxu0 %v1307_v12  ;;  %1263 = vmatprep.subr.bf16.mxu1 %v1307_v12  ;;  %v925_v2 = vsub.s32 0, %v924_v1  ;;  %v929_v4 = vsub.s32 1, %v924_v1  ;;  %v1029_v10 = vld [vmem:[%s2060_s3 + $0x100] sm:$0xff] }
  0x1a   :  { %v1605_v5 = vrot.slane %v921_v3, %v925_v2  ;;  %v1607_v6 = vrot.slane %v921_v3, %v929_v4 }
  0x1b   :  { %546 = vmatpush1.bf16.msra.mxu0 %v1309_v14  ;;  %1279 = vmatpush1.bf16.msra.mxu1 %v1309_v14  ;;  %v998_v14 = vld [vmem:[%s2060_s3 + $0x8] sm:$0xff] }
  0x1c   :  { %547 = vmatprep.subr.bf16.mxu0 %v1310_v16  ;;  %1264 = vmatprep.subr.bf16.mxu1 %v1310_v16  ;;  %v1030_v16 = vld [vmem:[%s2060_s3 + $0x108] sm:$0xff] }
  0x1f   :  { %548 = vmatpush1.bf16.msra.mxu0 %v1312_v17  ;;  %1280 = vmatpush1.bf16.msra.mxu1 %v1312_v17 }
  0x20   :  { %549 = vmatprep.subr.bf16.mxu0 %v1313_v18  ;;  %1265 = vmatprep.subr.bf16.mxu1 %v1313_v18 }
  0x23   :  { %550 = vmatpush2.bf16.msra.mxu0 %v1315_v19  ;;  %1281 = vmatpush2.bf16.msra.mxu1 %v1315_v19 }
  0x24   :  { %551 = vmatprep.subr.bf16.mxu0 %v1316_v20  ;;  %1266 = vmatprep.subr.bf16.mxu1 %v1316_v20 }
  0x27   :  { %552 = vmatpush2.bf16.msra.mxu0 %v1318_v21  ;;  %1282 = vmatpush2.bf16.msra.mxu1 %v1318_v21 }
  0x28   :  { %553 = vmatprep.subr.bf16.mxu0 %v1319_v22  ;;  %1267 = vmatprep.subr.bf16.mxu1 %v1319_v22  ;;  %v999_v22 = vld [vmem:[%s2060_s3 + $0x10] sm:$0xff] }
  0x2b   :  { %554 = vmatpush2.bf16.msra.mxu0 %v1321_v23  ;;  %1283 = vmatpush2.bf16.msra.mxu1 %v1321_v23 }
  0x2c   :  { %555 = vmatprep.subr.bf16.mxu0 %v1322_v24  ;;  %1268 = vmatprep.subr.bf16.mxu1 %v1322_v24  ;;  %v1031_v24 = vld [vmem:[%s2060_s3 + $0x110] sm:$0xff] }
  0x2f   :  { %556 = vmatpush2.bf16.msra.mxu0 %v1324_v25  ;;  %1284 = vmatpush2.bf16.msra.mxu1 %v1324_v25 }
  0x30   :  { %557 = vmatprep.subr.bf16.mxu0 %v1325_v26  ;;  %1269 = vmatprep.subr.bf16.mxu1 %v1325_v26 }
  0x33   :  { %558 = vmatpush2.bf16.msra.mxu0 %v1327_v27  ;;  %1285 = vmatpush2.bf16.msra.mxu1 %v1327_v27 }
  0x34   :  { %559 = vmatprep.subr.bf16.mxu0 %v1328_v28  ;;  %1270 = vmatprep.subr.bf16.mxu1 %v1328_v28 }
  0x37   :  { %560 = vmatpush2.bf16.msra.mxu0 %v1330_v29  ;;  %1286 = vmatpush2.bf16.msra.mxu1 %v1330_v29 }
  0x38   :  { %561 = vmatprep.subr.bf16.mxu0 %v1331_v30  ;;  %1271 = vmatprep.subr.bf16.mxu1 %v1331_v30  ;;  %v1000_v30 = vld [vmem:[%s2060_s3 + $0x18] sm:$0xff] }
  0x3b   :  { %562 = vmatpush2.bf16.msra.mxu0 %v1333_v31  ;;  %1287 = vmatpush2.bf16.msra.mxu1 %v1333_v31 }
  0x3c   :  { %563 = vmatprep.subr.bf16.mxu0 %v1334_v32  ;;  %1272 = vmatprep.subr.bf16.mxu1 %v1334_v32  ;;  %v1032_v32 = vld [vmem:[%s2060_s3 + $0x118] sm:$0xff] }
  0x3f   :  { %564 = vmatpush2.bf16.msra.mxu0 %v1336_v33  ;;  %1288 = vmatpush2.bf16.msra.mxu1 %v1336_v33 }
  0x42   :  { %566 = vmatmul.mubr.bf16.vlgmr.msra.gmra.mxu0 %v1337_v34  ;;  %646 = vmatmul.mubr.bf16.vlgmr.msra.gmra.mxu1 %v1340_v35 }
  0x43   :  { %575 = vmatprep.mubr.bf16.mxu0 %v1343_v36  ;;  %655 = vmatprep.mubr.bf16.mxu1 %v1345_v37 }
  0x4a   :  { %576 = vmatmul.mubr.bf16.gmra.mxu0 %v1347_v38  ;;  %656 = vmatmul.mubr.bf16.gmra.mxu1 %v1348_v39  ;;  %v1001_v38 = vld [vmem:[%s2060_s3 + $0x20] sm:$0xff] }
  0x4b   :  { %585 = vmatprep.mubr.bf16.mxu0 %v1349_v40  ;;  %665 = vmatprep.mubr.bf16.mxu1 %v1351_v41  ;;  %v1033_v40 = vld [vmem:[%s2060_s3 + $0x120] sm:$0xff] }
  0x52   :  { %586 = vmatmul.mubr.bf16.gmra.mxu0 %v1353_v42  ;;  %666 = vmatmul.mubr.bf16.gmra.mxu1 %v1354_v43 }
  0x53   :  { %595 = vmatprep.mubr.bf16.mxu0 %v1355_v44  ;;  %675 = vmatprep.mubr.bf16.mxu1 %v1357_v45 }
  0x5a   :  { %596 = vmatmul.mubr.bf16.gmra.mxu0 %v1359_v46  ;;  %676 = vmatmul.mubr.bf16.gmra.mxu1 %v1360_v47  ;;  %v1002_v46 = vld [vmem:[%s2060_s3 + $0x28] sm:$0xff] }
  0x5b   :  { %605 = vmatprep.mubr.bf16.mxu0 %v1361_v48  ;;  %685 = vmatprep.mubr.bf16.mxu1 %v1363_v49  ;;  %v1034_v48 = vld [vmem:[%s2060_s3 + $0x128] sm:$0xff] }
  0x62   :  { %606 = vmatmul.mubr.bf16.gmra.mxu0 %v1365_v50  ;;  %686 = vmatmul.mubr.bf16.gmra.mxu1 %v1366_v51 }
  0x63   :  { %615 = vmatprep.mubr.bf16.mxu0 %v1367_v52  ;;  %695 = vmatprep.mubr.bf16.mxu1 %v1369_v53 }
  0x6a   :  { %616 = vmatmul.mubr.bf16.gmra.mxu0 %v1371_v54  ;;  %696 = vmatmul.mubr.bf16.gmra.mxu1 %v1372_v55  ;;  %v1003_v54 = vld [vmem:[%s2060_s3 + $0x30] sm:$0xff] }
  0x6b   :  { %625 = vmatprep.mubr.bf16.mxu0 %v1373_v56  ;;  %705 = vmatprep.mubr.bf16.mxu1 %v1375_v57  ;;  %v1035_v56 = vld [vmem:[%s2060_s3 + $0x130] sm:$0xff] }
  0x72   :  { %626 = vmatmul.mubr.bf16.gmra.mxu0 %v1377_v58  ;;  %706 = vmatmul.mubr.bf16.gmra.mxu1 %v1378_v59 }
  0x73   :  { %635 = vmatprep.mubr.bf16.mxu0 %v1379_v60  ;;  %715 = vmatprep.mubr.bf16.mxu1 %v1381_v61 }
  0x7a   :  { %636 = vmatmul.mubr.bf16.gmra.mxu0 %v1383_v62  ;;  %716 = vmatmul.mubr.bf16.gmra.mxu1 %v1384_v63  ;;  %v1004_v62 = vld [vmem:[%s2060_s3 + $0x38] sm:$0xff] }
 0x102   :  { %v567_v7 = vpop.f32.mrf.mxu0  ;;  %v647_v9 = vpop.f32.mrf.mxu1 }
 0x103   :  { %v933_v11 = vadd.f32 %v1605_v5, %v567_v7  ;;  %v965_v12 = vadd.f32 %v1605_v5, %v647_v9 }
 0x104   :  { %v569_v13 = vpop.f32.mrf.mxu0  ;;  %v649_v15 = vpop.f32.mrf.mxu1 }
 0x105   :  { %v1061_v17 = vadd.f32 %v997_v8, %v933_v11  ;;  %v1093_v18 = vadd.f32 %v1029_v10, %v965_v12  ;;  %v934_v19 = vadd.f32 %v1607_v6, %v569_v13  ;;  %v966_v20 = vadd.f32 %v1607_v6, %v649_v15  ;;  %v1005_v8 = vld [vmem:[%s2060_s3 + $0x40] sm:$0xff] }
 0x106   :  { %v571_v21 = vpop.f32.mrf.mxu0  ;;  %v651_v23 = vpop.f32.mrf.mxu1  ;;  %v1037_v10 = vld [vmem:[%s2060_s3 + $0x140] sm:$0xff] }
 0x107   :  { %1125 = vst [vmem:[%s2061_s4] sm:$0xff] %v1061_v17  ;;  %1157 = vst [vmem:[%s2061_s4 + $0x100] sm:$0xff] %v1093_v18  ;;  %v1062_v25 = vadd.f32 %v998_v14, %v934_v19  ;;  %v1094_v26 = vadd.f32 %v1030_v16, %v966_v20  ;;  %v935_v27 = vadd.f32 %v1605_v5, %v571_v21  ;;  %v1006_v16 = vld [vmem:[%s2060_s3 + $0x48] sm:$0xff] }
 0x108   :  { %v967_v28 = vadd.f32 %v1605_v5, %v651_v23  ;;  %v573_v29 = vpop.f32.mrf.mxu0  ;;  %v653_v31 = vpop.f32.mrf.mxu1  ;;  %v1038_v18 = vld [vmem:[%s2060_s3 + $0x148] sm:$0xff] }
 0x109   :  { %1126 = vst [vmem:[%s2061_s4 + $0x8] sm:$0xff] %v1062_v25  ;;  %1158 = vst [vmem:[%s2061_s4 + $0x108] sm:$0xff] %v1094_v26  ;;  %v1063_v33 = vadd.f32 %v999_v22, %v935_v27  ;;  %v936_v35 = vadd.f32 %v1607_v6, %v573_v29  ;;  %v968_v36 = vadd.f32 %v1607_v6, %v653_v31  ;;  %v1039_v26 = vld [vmem:[%s2060_s3 + $0x150] sm:$0xff] }
 0x10a   :  { %v1095_v34 = vadd.f32 %v1031_v24, %v967_v28  ;;  %v577_v37 = vpop.f32.mrf.mxu0  ;;  %v657_v39 = vpop.f32.mrf.mxu1  ;;  %v1007_v24 = vld [vmem:[%s2060_s3 + $0x50] sm:$0xff] }
 0x10b   :  { %1127 = vst [vmem:[%s2061_s4 + $0x10] sm:$0xff] %v1063_v33  ;;  %v1064_v41 = vadd.f32 %v1000_v30, %v936_v35  ;;  %v1096_v42 = vadd.f32 %v1032_v32, %v968_v36  ;;  %v937_v43 = vadd.f32 %v1605_v5, %v577_v37  ;;  %v969_v44 = vadd.f32 %v1605_v5, %v657_v39  ;;  %v1008_v32 = vld [vmem:[%s2060_s3 + $0x58] sm:$0xff] }
 0x10c   :  { %1159 = vst [vmem:[%s2061_s4 + $0x110] sm:$0xff] %v1095_v34  ;;  %v579_v45 = vpop.f32.mrf.mxu0  ;;  %v659_v47 = vpop.f32.mrf.mxu1  ;;  %v1040_v34 = vld [vmem:[%s2060_s3 + $0x158] sm:$0xff] }
 0x10d   :  { %1128 = vst [vmem:[%s2061_s4 + $0x18] sm:$0xff] %v1064_v41  ;;  %1160 = vst [vmem:[%s2061_s4 + $0x118] sm:$0xff] %v1096_v42  ;;  %v1065_v49 = vadd.f32 %v1001_v38, %v937_v43  ;;  %v1097_v50 = vadd.f32 %v1033_v40, %v969_v44  ;;  %v938_v51 = vadd.f32 %v1607_v6, %v579_v45  ;;  %v1009_v40 = vld [vmem:[%s2060_s3 + $0x60] sm:$0xff] }
 0x10e   :  { %v970_v52 = vadd.f32 %v1607_v6, %v659_v47  ;;  %v581_v53 = vpop.f32.mrf.mxu0  ;;  %v661_v55 = vpop.f32.mrf.mxu1  ;;  %v1041_v42 = vld [vmem:[%s2060_s3 + $0x160] sm:$0xff] }
 0x10f   :  { %1129 = vst [vmem:[%s2061_s4 + $0x20] sm:$0xff] %v1065_v49  ;;  %1161 = vst [vmem:[%s2061_s4 + $0x120] sm:$0xff] %v1097_v50  ;;  %v1066_v57 = vadd.f32 %v1002_v46, %v938_v51  ;;  %v939_v59 = vadd.f32 %v1605_v5, %v581_v53  ;;  %v971_v60 = vadd.f32 %v1605_v5, %v661_v55  ;;  %v1042_v50 = vld [vmem:[%s2060_s3 + $0x168] sm:$0xff] }
 0x110   :  { %v1098_v58 = vadd.f32 %v1034_v48, %v970_v52  ;;  %v583_v61 = vpop.f32.mrf.mxu0  ;;  %v663_v63 = vpop.f32.mrf.mxu1  ;;  %v1010_v48 = vld [vmem:[%s2060_s3 + $0x68] sm:$0xff] }
 0x111   :  { %1130 = vst [vmem:[%s2061_s4 + $0x28] sm:$0xff] %v1066_v57  ;;  %v1067_v1 = vadd.f32 %v1003_v54, %v939_v59  ;;  %v1099_v2 = vadd.f32 %v1035_v56, %v971_v60  ;;  %v940_v3 = vadd.f32 %v1607_v6, %v583_v61  ;;  %v972_v4 = vadd.f32 %v1607_v6, %v663_v63  ;;  %v1011_v56 = vld [vmem:[%s2060_s3 + $0x70] sm:$0xff] }
 0x112   :  { %1162 = vst [vmem:[%s2061_s4 + $0x128] sm:$0xff] %v1098_v58  ;;  %v587_v7 = vpop.f32.mrf.mxu0  ;;  %v667_v9 = vpop.f32.mrf.mxu1  ;;  %v1043_v58 = vld [vmem:[%s2060_s3 + $0x170] sm:$0xff] }
 0x113   :  { %1131 = vst [vmem:[%s2061_s4 + $0x30] sm:$0xff] %v1067_v1  ;;  %1163 = vst [vmem:[%s2061_s4 + $0x130] sm:$0xff] %v1099_v2  ;;  %v1068_v11 = vadd.f32 %v1004_v62, %v940_v3  ;;  %v1100_v12 = vadd.f32 %v1036_v0, %v972_v4  ;;  %v941_v13 = vadd.f32 %v1605_v5, %v587_v7  ;;  %v1012_v0 = vld [vmem:[%s2060_s3 + $0x78] sm:$0xff] }
 0x114   :  { %v973_v14 = vadd.f32 %v1605_v5, %v667_v9  ;;  %v589_v15 = vpop.f32.mrf.mxu0  ;;  %v669_v17 = vpop.f32.mrf.mxu1  ;;  %v1044_v2 = vld [vmem:[%s2060_s3 + $0x178] sm:$0xff] }
 0x115   :  { %1132 = vst [vmem:[%s2061_s4 + $0x38] sm:$0xff] %v1068_v11  ;;  %1164 = vst [vmem:[%s2061_s4 + $0x138] sm:$0xff] %v1100_v12  ;;  %v1069_v19 = vadd.f32 %v1005_v8, %v941_v13  ;;  %v942_v21 = vadd.f32 %v1607_v6, %v589_v15  ;;  %v974_v22 = vadd.f32 %v1607_v6, %v669_v17  ;;  %v1045_v12 = vld [vmem:[%s2060_s3 + $0x180] sm:$0xff] }
 0x116   :  { %v1101_v20 = vadd.f32 %v1037_v10, %v973_v14  ;;  %v591_v23 = vpop.f32.mrf.mxu0  ;;  %v671_v25 = vpop.f32.mrf.mxu1  ;;  %v1013_v10 = vld [vmem:[%s2060_s3 + $0x80] sm:$0xff] }
 0x117   :  { %1133 = vst [vmem:[%s2061_s4 + $0x40] sm:$0xff] %v1069_v19  ;;  %v1070_v27 = vadd.f32 %v1006_v16, %v942_v21  ;;  %v1102_v28 = vadd.f32 %v1038_v18, %v974_v22  ;;  %v943_v29 = vadd.f32 %v1605_v5, %v591_v23  ;;  %v975_v30 = vadd.f32 %v1605_v5, %v671_v25  ;;  %v1014_v18 = vld [vmem:[%s2060_s3 + $0x88] sm:$0xff] }
 0x118   :  { %1165 = vst [vmem:[%s2061_s4 + $0x140] sm:$0xff] %v1101_v20  ;;  %v593_v31 = vpop.f32.mrf.mxu0  ;;  %v673_v33 = vpop.f32.mrf.mxu1  ;;  %v1046_v20 = vld [vmem:[%s2060_s3 + $0x188] sm:$0xff] }
 0x119   :  { %1134 = vst [vmem:[%s2061_s4 + $0x48] sm:$0xff] %v1070_v27  ;;  %1166 = vst [vmem:[%s2061_s4 + $0x148] sm:$0xff] %v1102_v28  ;;  %v1071_v35 = vadd.f32 %v1007_v24, %v943_v29  ;;  %v1103_v36 = vadd.f32 %v1039_v26, %v975_v30  ;;  %v944_v37 = vadd.f32 %v1607_v6, %v593_v31  ;;  %v1015_v26 = vld [vmem:[%s2060_s3 + $0x90] sm:$0xff] }
 0x11a   :  { %v976_v38 = vadd.f32 %v1607_v6, %v673_v33  ;;  %v597_v39 = vpop.f32.mrf.mxu0  ;;  %v677_v41 = vpop.f32.mrf.mxu1  ;;  %v1047_v28 = vld [vmem:[%s2060_s3 + $0x190] sm:$0xff] }
 0x11b   :  { %1135 = vst [vmem:[%s2061_s4 + $0x50] sm:$0xff] %v1071_v35  ;;  %1167 = vst [vmem:[%s2061_s4 + $0x150] sm:$0xff] %v1103_v36  ;;  %v1072_v43 = vadd.f32 %v1008_v32, %v944_v37  ;;  %v945_v45 = vadd.f32 %v1605_v5, %v597_v39  ;;  %v977_v46 = vadd.f32 %v1605_v5, %v677_v41  ;;  %v1048_v36 = vld [vmem:[%s2060_s3 + $0x198] sm:$0xff] }
 0x11c   :  { %v1104_v44 = vadd.f32 %v1040_v34, %v976_v38  ;;  %v599_v47 = vpop.f32.mrf.mxu0  ;;  %v679_v49 = vpop.f32.mrf.mxu1  ;;  %v1016_v34 = vld [vmem:[%s2060_s3 + $0x98] sm:$0xff] }
 0x11d   :  { %1136 = vst [vmem:[%s2061_s4 + $0x58] sm:$0xff] %v1072_v43  ;;  %v1073_v51 = vadd.f32 %v1009_v40, %v945_v45  ;;  %v1105_v52 = vadd.f32 %v1041_v42, %v977_v46  ;;  %v946_v53 = vadd.f32 %v1607_v6, %v599_v47  ;;  %v978_v54 = vadd.f32 %v1607_v6, %v679_v49  ;;  %v1017_v42 = vld [vmem:[%s2060_s3 + $0xa0] sm:$0xff] }
 0x11e   :  { %1168 = vst [vmem:[%s2061_s4 + $0x158] sm:$0xff] %v1104_v44  ;;  %v601_v55 = vpop.f32.mrf.mxu0  ;;  %v681_v57 = vpop.f32.mrf.mxu1  ;;  %v1049_v44 = vld [vmem:[%s2060_s3 + $0x1a0] sm:$0xff] }
 0x11f   :  { %1137 = vst [vmem:[%s2061_s4 + $0x60] sm:$0xff] %v1073_v51  ;;  %1169 = vst [vmem:[%s2061_s4 + $0x160] sm:$0xff] %v1105_v52  ;;  %v1074_v59 = vadd.f32 %v1010_v48, %v946_v53  ;;  %v1106_v60 = vadd.f32 %v1042_v50, %v978_v54  ;;  %v947_v61 = vadd.f32 %v1605_v5, %v601_v55  ;;  %v1018_v50 = vld [vmem:[%s2060_s3 + $0xa8] sm:$0xff] }
 0x120   :  { %v979_v62 = vadd.f32 %v1605_v5, %v681_v57  ;;  %v603_v63 = vpop.f32.mrf.mxu0  ;;  %v683_v1 = vpop.f32.mrf.mxu1  ;;  %v1050_v52 = vld [vmem:[%s2060_s3 + $0x1a8] sm:$0xff] }
 0x121   :  { %1138 = vst [vmem:[%s2061_s4 + $0x68] sm:$0xff] %v1074_v59  ;;  %1170 = vst [vmem:[%s2061_s4 + $0x168] sm:$0xff] %v1106_v60  ;;  %v1075_v3 = vadd.f32 %v1011_v56, %v947_v61  ;;  %v948_v7 = vadd.f32 %v1607_v6, %v603_v63  ;;  %v980_v8 = vadd.f32 %v1607_v6, %v683_v1  ;;  %v1051_v60 = vld [vmem:[%s2060_s3 + $0x1b0] sm:$0xff] }
 0x122   :  { %v1107_v4 = vadd.f32 %v1043_v58, %v979_v62  ;;  %v607_v9 = vpop.f32.mrf.mxu0  ;;  %v687_v11 = vpop.f32.mrf.mxu1  ;;  %v1019_v58 = vld [vmem:[%s2060_s3 + $0xb0] sm:$0xff] }
 0x123   :  { %1139 = vst [vmem:[%s2061_s4 + $0x70] sm:$0xff] %v1075_v3  ;;  %v1076_v13 = vadd.f32 %v1012_v0, %v948_v7  ;;  %v1108_v14 = vadd.f32 %v1044_v2, %v980_v8  ;;  %v949_v15 = vadd.f32 %v1605_v5, %v607_v9  ;;  %v981_v16 = vadd.f32 %v1605_v5, %v687_v11  ;;  %v1020_v2 = vld [vmem:[%s2060_s3 + $0xb8] sm:$0xff] }
 0x124   :  { %1171 = vst [vmem:[%s2061_s4 + $0x170] sm:$0xff] %v1107_v4  ;;  %v609_v17 = vpop.f32.mrf.mxu0  ;;  %v689_v19 = vpop.f32.mrf.mxu1  ;;  %v1052_v4 = vld [vmem:[%s2060_s3 + $0x1b8] sm:$0xff] }
 0x125   :  { %1140 = vst [vmem:[%s2061_s4 + $0x78] sm:$0xff] %v1076_v13  ;;  %1172 = vst [vmem:[%s2061_s4 + $0x178] sm:$0xff] %v1108_v14  ;;  %v1077_v21 = vadd.f32 %v1013_v10, %v949_v15  ;;  %v1109_v22 = vadd.f32 %v1045_v12, %v981_v16  ;;  %v950_v23 = vadd.f32 %v1607_v6, %v609_v17  ;;  %v1021_v12 = vld [vmem:[%s2060_s3 + $0xc0] sm:$0xff] }
 0x126   :  { %v982_v24 = vadd.f32 %v1607_v6, %v689_v19  ;;  %v611_v25 = vpop.f32.mrf.mxu0  ;;  %v691_v27 = vpop.f32.mrf.mxu1  ;;  %v1053_v14 = vld [vmem:[%s2060_s3 + $0x1c0] sm:$0xff] }
 0x127   :  { %1141 = vst [vmem:[%s2061_s4 + $0x80] sm:$0xff] %v1077_v21  ;;  %1173 = vst [vmem:[%s2061_s4 + $0x180] sm:$0xff] %v1109_v22  ;;  %v1078_v29 = vadd.f32 %v1014_v18, %v950_v23  ;;  %v951_v31 = vadd.f32 %v1605_v5, %v611_v25  ;;  %v983_v32 = vadd.f32 %v1605_v5, %v691_v27  ;;  %v1054_v22 = vld [vmem:[%s2060_s3 + $0x1c8] sm:$0xff] }
 0x128   :  { %v1110_v30 = vadd.f32 %v1046_v20, %v982_v24  ;;  %v613_v33 = vpop.f32.mrf.mxu0  ;;  %v693_v35 = vpop.f32.mrf.mxu1  ;;  %v1022_v20 = vld [vmem:[%s2060_s3 + $0xc8] sm:$0xff] }
 0x129   :  { %1142 = vst [vmem:[%s2061_s4 + $0x88] sm:$0xff] %v1078_v29  ;;  %v1079_v37 = vadd.f32 %v1015_v26, %v951_v31  ;;  %v1111_v38 = vadd.f32 %v1047_v28, %v983_v32  ;;  %v952_v39 = vadd.f32 %v1607_v6, %v613_v33  ;;  %v984_v40 = vadd.f32 %v1607_v6, %v693_v35  ;;  %v1023_v28 = vld [vmem:[%s2060_s3 + $0xd0] sm:$0xff] }
 0x12a   :  { %1174 = vst [vmem:[%s2061_s4 + $0x188] sm:$0xff] %v1110_v30  ;;  %v617_v41 = vpop.f32.mrf.mxu0  ;;  %v697_v43 = vpop.f32.mrf.mxu1  ;;  %v1055_v30 = vld [vmem:[%s2060_s3 + $0x1d0] sm:$0xff] }
 0x12b   :  { %1143 = vst [vmem:[%s2061_s4 + $0x90] sm:$0xff] %v1079_v37  ;;  %1175 = vst [vmem:[%s2061_s4 + $0x190] sm:$0xff] %v1111_v38  ;;  %v1080_v45 = vadd.f32 %v1016_v34, %v952_v39  ;;  %v1112_v46 = vadd.f32 %v1048_v36, %v984_v40  ;;  %v953_v47 = vadd.f32 %v1605_v5, %v617_v41  ;;  %v1024_v36 = vld [vmem:[%s2060_s3 + $0xd8] sm:$0xff] }
 0x12c   :  { %v985_v48 = vadd.f32 %v1605_v5, %v697_v43  ;;  %v619_v49 = vpop.f32.mrf.mxu0  ;;  %v699_v51 = vpop.f32.mrf.mxu1  ;;  %v1056_v38 = vld [vmem:[%s2060_s3 + $0x1d8] sm:$0xff] }
 0x12d   :  { %1144 = vst [vmem:[%s2061_s4 + $0x98] sm:$0xff] %v1080_v45  ;;  %1176 = vst [vmem:[%s2061_s4 + $0x198] sm:$0xff] %v1112_v46  ;;  %v1081_v53 = vadd.f32 %v1017_v42, %v953_v47  ;;  %v954_v55 = vadd.f32 %v1607_v6, %v619_v49  ;;  %v986_v56 = vadd.f32 %v1607_v6, %v699_v51  ;;  %v1057_v46 = vld [vmem:[%s2060_s3 + $0x1e0] sm:$0xff] }
 0x12e   :  { %v1113_v54 = vadd.f32 %v1049_v44, %v985_v48  ;;  %v621_v57 = vpop.f32.mrf.mxu0  ;;  %v701_v59 = vpop.f32.mrf.mxu1  ;;  %v1025_v44 = vld [vmem:[%s2060_s3 + $0xe0] sm:$0xff] }
 0x12f   :  { %1145 = vst [vmem:[%s2061_s4 + $0xa0] sm:$0xff] %v1081_v53  ;;  %v1082_v61 = vadd.f32 %v1018_v50, %v954_v55  ;;  %v1114_v62 = vadd.f32 %v1050_v52, %v986_v56  ;;  %v955_v63 = vadd.f32 %v1605_v5, %v621_v57  ;;  %v987_v0 = vadd.f32 %v1605_v5, %v701_v59  ;;  %v1026_v52 = vld [vmem:[%s2060_s3 + $0xe8] sm:$0xff] }
 0x130   :  { %1177 = vst [vmem:[%s2061_s4 + $0x1a0] sm:$0xff] %v1113_v54  ;;  %v623_v1 = vpop.f32.mrf.mxu0  ;;  %v703_v3 = vpop.f32.mrf.mxu1  ;;  %v1058_v54 = vld [vmem:[%s2060_s3 + $0x1e8] sm:$0xff] }
 0x131   :  { %1146 = vst [vmem:[%s2061_s4 + $0xa8] sm:$0xff] %v1082_v61  ;;  %1178 = vst [vmem:[%s2061_s4 + $0x1a8] sm:$0xff] %v1114_v62  ;;  %v1083_v7 = vadd.f32 %v1019_v58, %v955_v63  ;;  %v1115_v8 = vadd.f32 %v1051_v60, %v987_v0  ;;  %v956_v9 = vadd.f32 %v1607_v6, %v623_v1  ;;  %v1027_v60 = vld [vmem:[%s2060_s3 + $0xf0] sm:$0xff] }
 0x132   :  { %v988_v10 = vadd.f32 %v1607_v6, %v703_v3  ;;  %v627_v11 = vpop.f32.mrf.mxu0  ;;  %v707_v13 = vpop.f32.mrf.mxu1  ;;  %v1059_v62 = vld [vmem:[%s2060_s3 + $0x1f0] sm:$0xff] }
 0x133   :  { %1147 = vst [vmem:[%s2061_s4 + $0xb0] sm:$0xff] %v1083_v7  ;;  %1179 = vst [vmem:[%s2061_s4 + $0x1b0] sm:$0xff] %v1115_v8  ;;  %v1084_v15 = vadd.f32 %v1020_v2, %v956_v9  ;;  %v957_v17 = vadd.f32 %v1605_v5, %v627_v11  ;;  %v989_v18 = vadd.f32 %v1605_v5, %v707_v13  ;;  %v1060_v8 = vld [vmem:[%s2060_s3 + $0x1f8] sm:$0xff] }
 0x134   :  { %v1116_v16 = vadd.f32 %v1052_v4, %v988_v10  ;;  %v629_v19 = vpop.f32.mrf.mxu0  ;;  %v709_v21 = vpop.f32.mrf.mxu1  ;;  %v1028_v4 = vld [vmem:[%s2060_s3 + $0xf8] sm:$0xff] }
 0x135   :  { %1148 = vst [vmem:[%s2061_s4 + $0xb8] sm:$0xff] %v1084_v15  ;;  %v1085_v23 = vadd.f32 %v1021_v12, %v957_v17  ;;  %v1117_v24 = vadd.f32 %v1053_v14, %v989_v18  ;;  %v958_v25 = vadd.f32 %v1607_v6, %v629_v19  ;;  %v990_v26 = vadd.f32 %v1607_v6, %v709_v21 }
 0x136   :  { %1180 = vst [vmem:[%s2061_s4 + $0x1b8] sm:$0xff] %v1116_v16  ;;  %v631_v27 = vpop.f32.mrf.mxu0  ;;  %v711_v29 = vpop.f32.mrf.mxu1 }
 0x137   :  { %1149 = vst [vmem:[%s2061_s4 + $0xc0] sm:$0xff] %v1085_v23  ;;  %1181 = vst [vmem:[%s2061_s4 + $0x1c0] sm:$0xff] %v1117_v24  ;;  %v1086_v31 = vadd.f32 %v1022_v20, %v958_v25  ;;  %v1118_v32 = vadd.f32 %v1054_v22, %v990_v26  ;;  %v959_v33 = vadd.f32 %v1605_v5, %v631_v27 }
 0x138   :  { %v991_v34 = vadd.f32 %v1605_v5, %v711_v29  ;;  %v633_v35 = vpop.f32.mrf.mxu0  ;;  %v713_v37 = vpop.f32.mrf.mxu1 }
 0x139   :  { %1150 = vst [vmem:[%s2061_s4 + $0xc8] sm:$0xff] %v1086_v31  ;;  %1182 = vst [vmem:[%s2061_s4 + $0x1c8] sm:$0xff] %v1118_v32  ;;  %v1087_v39 = vadd.f32 %v1023_v28, %v959_v33  ;;  %v960_v41 = vadd.f32 %v1607_v6, %v633_v35  ;;  %v992_v42 = vadd.f32 %v1607_v6, %v713_v37 }
 0x13a   :  { %v1119_v40 = vadd.f32 %v1055_v30, %v991_v34  ;;  %v637_v43 = vpop.f32.mrf.mxu0  ;;  %v717_v45 = vpop.f32.mrf.mxu1 }
 0x13b   :  { %1151 = vst [vmem:[%s2061_s4 + $0xd0] sm:$0xff] %v1087_v39  ;;  %v1088_v47 = vadd.f32 %v1024_v36, %v960_v41  ;;  %v1120_v48 = vadd.f32 %v1056_v38, %v992_v42  ;;  %v961_v49 = vadd.f32 %v1605_v5, %v637_v43  ;;  %v993_v50 = vadd.f32 %v1605_v5, %v717_v45 }
 0x13c   :  { %1183 = vst [vmem:[%s2061_s4 + $0x1d0] sm:$0xff] %v1119_v40  ;;  %v639_v51 = vpop.f32.mrf.mxu0  ;;  %v719_v53 = vpop.f32.mrf.mxu1 }
 0x13d   :  { %1152 = vst [vmem:[%s2061_s4 + $0xd8] sm:$0xff] %v1088_v47  ;;  %1184 = vst [vmem:[%s2061_s4 + $0x1d8] sm:$0xff] %v1120_v48  ;;  %v1089_v55 = vadd.f32 %v1025_v44, %v961_v49  ;;  %v1121_v56 = vadd.f32 %v1057_v46, %v993_v50  ;;  %v962_v57 = vadd.f32 %v1607_v6, %v639_v51 }
 0x13e   :  { %v994_v58 = vadd.f32 %v1607_v6, %v719_v53  ;;  %v641_v59 = vpop.f32.mrf.mxu0  ;;  %v721_v61 = vpop.f32.mrf.mxu1 }
 0x13f   :  { %1153 = vst [vmem:[%s2061_s4 + $0xe0] sm:$0xff] %v1089_v55  ;;  %1185 = vst [vmem:[%s2061_s4 + $0x1e0] sm:$0xff] %v1121_v56  ;;  %v1090_v63 = vadd.f32 %v1026_v52, %v962_v57  ;;  %v963_v1 = vadd.f32 %v1605_v5, %v641_v59  ;;  %v995_v2 = vadd.f32 %v1605_v5, %v721_v61 }
 0x140   :  { %v1122_v0 = vadd.f32 %v1058_v54, %v994_v58  ;;  %v643_v3 = vpop.f32.mrf.mxu0  ;;  %v723_v7 = vpop.f32.mrf.mxu1 }
 0x141   :  { %1154 = vst [vmem:[%s2061_s4 + $0xe8] sm:$0xff] %v1090_v63  ;;  %v1091_v9 = vadd.f32 %v1027_v60, %v963_v1  ;;  %v1123_v5 = vadd.f32 %v1059_v62, %v995_v2  ;;  %v964_v10 = vadd.f32 %v1607_v6, %v643_v3  ;;  %v996_v11 = vadd.f32 %v1607_v6, %v723_v7 }
 0x142   :  { %1186 = vst [vmem:[%s2061_s4 + $0x1e8] sm:$0xff] %v1122_v0 }
 0x143   :  { %1155 = vst [vmem:[%s2061_s4 + $0xf0] sm:$0xff] %v1091_v9  ;;  %1187 = vst [vmem:[%s2061_s4 + $0x1f0] sm:$0xff] %v1123_v5  ;;  %v1092_v12 = vadd.f32 %v1028_v4, %v964_v10  ;;  %v1124_v13 = vadd.f32 %v1060_v8, %v996_v11 }
 0x145   :  { %1156 = vst [vmem:[%s2061_s4 + $0xf8] sm:$0xff] %v1092_v12  ;;  %1188 = vst [vmem:[%s2061_s4 + $0x1f8] sm:$0xff] %v1124_v13 }

// kernel: base_agent_forward.17
= control target key start
LH: loop header
LB: loop body
LE: loop exit
PB: predicated region body
PF: predicated region fallthrough
CT: control target
= control target key end

     0   :  { %s1276_s1 = inlined_call_operand.vmem [shape: bf16[256,128], index: 1, kind: input, shape index: {}]   ;;  %s1277_s0 = inlined_call_operand.vmem [shape: bf16[256,256], index: 0, kind: input, shape index: {}]   ;;  %s1278_s2 = inlined_call_operand.vmem [shape: f32[1,128], index: 2, kind: input, shape index: {}]   ;;  %s1279_s3 = inlined_call_operand.vmem [shape: f32[256,128], index: 3, kind: output, shape index: {}]  }
   0x1   :  { %v915_v0 = vld [vmem:[%s1276_s1 + $0x78] sm:$0xff]   ;;  %v917_v2 = vld [vmem:[%s1276_s1 + $0x70] sm:$0xff]   ;;  %v919_v4 = vld [vmem:[%s1276_s1 + $0x68] sm:$0xff]  }
   0x2   :  { %v916_v1 = vld [vmem:[%s1276_s1 + $0x38] sm:$0xff]   ;;  %787 = vmatprep.subr.bf16.mxu0 %v915_v0  ;;  %899 = vmatprep.subr.bf16.mxu1 %v915_v0  ;;  %v918_v3 = vld [vmem:[%s1276_s1 + $0x30] sm:$0xff]   ;;  %v920_v5 = vld [vmem:[%s1276_s1 + $0x28] sm:$0xff]  }
   0x3   :  { %788 = vmatpush3.bf16.msra.mxu0 %v916_v1  ;;  %907 = vmatpush3.bf16.msra.mxu1 %v916_v1  ;;  %v921_v6 = vld [vmem:[%s1276_s1 + $0x60] sm:$0xff]   ;;  %v923_v8 = vld [vmem:[%s1276_s1 + $0x58] sm:$0xff]   ;;  %v925_v10 = vld [vmem:[%s1276_s1 + $0x50] sm:$0xff]  }
   0x4   :  { %789 = vmatprep.subr.bf16.mxu0 %v917_v2  ;;  %900 = vmatprep.subr.bf16.mxu1 %v917_v2  ;;  %v922_v7 = vld [vmem:[%s1276_s1 + $0x20] sm:$0xff]   ;;  %v924_v9 = vld [vmem:[%s1276_s1 + $0x18] sm:$0xff]   ;;  %v926_v13 = vld [vmem:[%s1276_s1 + $0x10] sm:$0xff]  }
   0x5   :  { %v933_v11 = vld [vmem:[%s1277_s0 + $0x4] ss:$8 sps:$4 sm:$0xff]   ;;  %v931_v18 = vld [vmem:[%s1277_s0] ss:$8 sps:$4 sm:$0xff]   ;;  %v937_v20 = vld [vmem:[%s1277_s0 + $0x14] ss:$8 sps:$4 sm:$0xff]  }
   0x6   :  { %v936_v12 = vld [vmem:[%s1277_s0 + $0x84] ss:$8 sps:$4 sm:$0xff]   ;;  %435 = vmatprep.mubr.bf16.mxu0 %v933_v11  ;;  %v934_v19 = vld [vmem:[%s1277_s0 + $0x80] ss:$8 sps:$4 sm:$0xff]   ;;  %v939_v21 = vld [vmem:[%s1277_s0 + $0x94] ss:$8 sps:$4 sm:$0xff]  }
   0x7   :  { %790 = vmatpush3.bf16.msra.mxu0 %v918_v3  ;;  %908 = vmatpush3.bf16.msra.mxu1 %v918_v3  ;;  %v927_v14 = vld [vmem:[%s1276_s1 + $0x48] sm:$0xff]   ;;  %v929_v16 = vld [vmem:[%s1276_s1 + $0x40] sm:$0xff]   ;;  %v941_v22 = vld [vmem:[%s1277_s0 + $0x10] ss:$8 sps:$4 sm:$0xff]  }
   0x8   :  { %791 = vmatprep.subr.bf16.mxu0 %v919_v4  ;;  %901 = vmatprep.subr.bf16.mxu1 %v919_v4  ;;  %v928_v15 = vld [vmem:[%s1276_s1 + $0x8] sm:$0xff]   ;;  %v930_v17 = vld [vmem:[%s1276_s1] sm:$0xff]   ;;  %v942_v23 = vld [vmem:[%s1277_s0 + $0x90] ss:$8 sps:$4 sm:$0xff]  }
   0x9   :  { %499 = vmatprep.mubr.bf16.mxu1 %v936_v12  ;;  %v943_v24 = vld [vmem:[%s1277_s0 + $0x24] ss:$8 sps:$4 sm:$0xff]   ;;  %v947_v26 = vld [vmem:[%s1277_s0 + $0x20] ss:$8 sps:$4 sm:$0xff]   ;;  %v949_v28 = vld [vmem:[%s1277_s0 + $0x34] ss:$8 sps:$4 sm:$0xff]  }
   0xa   :  { %v945_v25 = vld [vmem:[%s1277_s0 + $0xa4] ss:$8 sps:$4 sm:$0xff]   ;;  %v948_v27 = vld [vmem:[%s1277_s0 + $0xa0] ss:$8 sps:$4 sm:$0xff]   ;;  %v951_v29 = vld [vmem:[%s1277_s0 + $0xb4] ss:$8 sps:$4 sm:$0xff]  }
   0xb   :  { %792 = vmatpush3.bf16.msra.mxu0 %v920_v5  ;;  %909 = vmatpush3.bf16.msra.mxu1 %v920_v5  ;;  %v953_v30 = vld [vmem:[%s1277_s0 + $0x30] ss:$8 sps:$4 sm:$0xff]   ;;  %v955_v32 = vld [vmem:[%s1277_s0 + $0x44] ss:$8 sps:$4 sm:$0xff]   ;;  %v959_v34 = vld [vmem:[%s1277_s0 + $0x40] ss:$8 sps:$4 sm:$0xff]  }
   0xc   :  { %793 = vmatprep.subr.bf16.mxu0 %v921_v6  ;;  %902 = vmatprep.subr.bf16.mxu1 %v921_v6  ;;  %v954_v31 = vld [vmem:[%s1277_s0 + $0xb0] ss:$8 sps:$4 sm:$0xff]   ;;  %v957_v33 = vld [vmem:[%s1277_s0 + $0xc4] ss:$8 sps:$4 sm:$0xff]   ;;  %v960_v35 = vld [vmem:[%s1277_s0 + $0xc0] ss:$8 sps:$4 sm:$0xff]  }
   0xd   :  { %v961_v36 = vld [vmem:[%s1277_s0 + $0x54] ss:$8 sps:$4 sm:$0xff]   ;;  %v965_v38 = vld [vmem:[%s1277_s0 + $0x50] ss:$8 sps:$4 sm:$0xff]   ;;  %v967_v40 = vld [vmem:[%s1277_s0 + $0x64] ss:$8 sps:$4 sm:$0xff]  }
   0xe   :  { %v963_v37 = vld [vmem:[%s1277_s0 + $0xd4] ss:$8 sps:$4 sm:$0xff]   ;;  %v966_v39 = vld [vmem:[%s1277_s0 + $0xd0] ss:$8 sps:$4 sm:$0xff]   ;;  %v969_v41 = vld [vmem:[%s1277_s0 + $0xe4] ss:$8 sps:$4 sm:$0xff]  }
   0xf   :  { %794 = vmatpush3.bf16.msra.mxu0 %v922_v7  ;;  %910 = vmatpush3.bf16.msra.mxu1 %v922_v7  ;;  %v971_v42 = vld [vmem:[%s1277_s0 + $0x60] ss:$8 sps:$4 sm:$0xff]   ;;  %v973_v44 = vld [vmem:[%s1277_s0 + $0x74] ss:$8 sps:$4 sm:$0xff]   ;;  %v977_v46 = vld [vmem:[%s1277_s0 + $0x70] ss:$8 sps:$4 sm:$0xff]  }
  0x10   :  { %795 = vmatprep.subr.bf16.mxu0 %v923_v8  ;;  %903 = vmatprep.subr.bf16.mxu1 %v923_v8  ;;  %v972_v43 = vld [vmem:[%s1277_s0 + $0xe0] ss:$8 sps:$4 sm:$0xff]   ;;  %v975_v45 = vld [vmem:[%s1277_s0 + $0xf4] ss:$8 sps:$4 sm:$0xff]   ;;  %v978_v47 = vld [vmem:[%s1277_s0 + $0xf0] ss:$8 sps:$4 sm:$0xff]  }
  0x11   :  { %v1146_v51 = vld [vmem:[%s1278_s2] ss:$0 sm:$0xff] }
  0x13   :  { %796 = vmatpush3.bf16.msra.mxu0 %v924_v9  ;;  %911 = vmatpush3.bf16.msra.mxu1 %v924_v9 }
  0x14   :  { %797 = vmatprep.subr.bf16.mxu0 %v925_v10  ;;  %904 = vmatprep.subr.bf16.mxu1 %v925_v10 }
  0x17   :  { %798 = vmatpush3.bf16.msra.mxu0 %v926_v13  ;;  %912 = vmatpush3.bf16.msra.mxu1 %v926_v13 }
  0x18   :  { %799 = vmatprep.subr.bf16.mxu0 %v927_v14  ;;  %905 = vmatprep.subr.bf16.mxu1 %v927_v14 }
  0x1b   :  { %800 = vmatpush3.bf16.msra.mxu0 %v928_v15  ;;  %913 = vmatpush3.bf16.msra.mxu1 %v928_v15 }
  0x1c   :  { %801 = vmatprep.subr.bf16.mxu0 %v929_v16  ;;  %906 = vmatprep.subr.bf16.mxu1 %v929_v16 }
  0x1f   :  { %802 = vmatpush3.bf16.msra.mxu0 %v930_v17  ;;  %914 = vmatpush3.bf16.msra.mxu1 %v930_v17 }
  0x22   :  { %436 = vmatmul.mubr.bf16.vlgmr.msra.gmra.mxu0 %v931_v18  ;;  %500 = vmatmul.mubr.bf16.vlgmr.msra.gmra.mxu1 %v934_v19 }
  0x23   :  { %443 = vmatprep.mubr.bf16.mxu0 %v937_v20  ;;  %507 = vmatprep.mubr.bf16.mxu1 %v939_v21 }
  0x2a   :  { %444 = vmatmul.mubr.bf16.gmra.mxu0 %v941_v22  ;;  %508 = vmatmul.mubr.bf16.gmra.mxu1 %v942_v23 }
  0x2b   :  { %451 = vmatprep.mubr.bf16.mxu0 %v943_v24  ;;  %515 = vmatprep.mubr.bf16.mxu1 %v945_v25 }
  0x32   :  { %452 = vmatmul.mubr.bf16.gmra.mxu0 %v947_v26  ;;  %516 = vmatmul.mubr.bf16.gmra.mxu1 %v948_v27 }
  0x33   :  { %459 = vmatprep.mubr.bf16.mxu0 %v949_v28  ;;  %523 = vmatprep.mubr.bf16.mxu1 %v951_v29 }
  0x3a   :  { %460 = vmatmul.mubr.bf16.gmra.mxu0 %v953_v30  ;;  %524 = vmatmul.mubr.bf16.gmra.mxu1 %v954_v31 }
  0x3b   :  { %467 = vmatprep.mubr.bf16.mxu0 %v955_v32  ;;  %531 = vmatprep.mubr.bf16.mxu1 %v957_v33 }
  0x42   :  { %468 = vmatmul.mubr.bf16.gmra.mxu0 %v959_v34  ;;  %532 = vmatmul.mubr.bf16.gmra.mxu1 %v960_v35 }
  0x43   :  { %475 = vmatprep.mubr.bf16.mxu0 %v961_v36  ;;  %539 = vmatprep.mubr.bf16.mxu1 %v963_v37 }
  0x4a   :  { %476 = vmatmul.mubr.bf16.gmra.mxu0 %v965_v38  ;;  %540 = vmatmul.mubr.bf16.gmra.mxu1 %v966_v39 }
  0x4b   :  { %483 = vmatprep.mubr.bf16.mxu0 %v967_v40  ;;  %547 = vmatprep.mubr.bf16.mxu1 %v969_v41 }
  0x52   :  { %484 = vmatmul.mubr.bf16.gmra.mxu0 %v971_v42  ;;  %548 = vmatmul.mubr.bf16.gmra.mxu1 %v972_v43 }
  0x53   :  { %491 = vmatprep.mubr.bf16.mxu0 %v973_v44  ;;  %555 = vmatprep.mubr.bf16.mxu1 %v975_v45 }
  0x5a   :  { %492 = vmatmul.mubr.bf16.gmra.mxu0 %v977_v46  ;;  %556 = vmatmul.mubr.bf16.gmra.mxu1 %v978_v47 }
  0xe2   :  { %v803_v48 = vpop.f32.mrf.mxu0  ;;  %v851_v49 = vpop.f32.mrf.mxu1 }
  0xe4   :  { %v804_v50 = vpop.f32.mrf.mxu0  ;;  %v852_v52 = vpop.f32.mrf.mxu1 }
  0xe5   :  { %v805_v53 = vadd.f32 %v804_v50, %v803_v48  ;;  %v853_v54 = vadd.f32 %v852_v52, %v851_v49 }
  0xe6   :  { %v806_v55 = vpop.f32.mrf.mxu0  ;;  %v854_v56 = vpop.f32.mrf.mxu1 }
  0xe7   :  { %v670_v57 = vadd.f32 %v805_v53, %v1146_v51  ;;  %v686_v58 = vadd.f32 %v853_v54, %v1146_v51 }
  0xe8   :  { %v807_v59 = vpop.f32.mrf.mxu0  ;;  %v855_v60 = vpop.f32.mrf.mxu1 }
  0xe9   :  { %702 = vst [vmem:[%s1279_s3] sm:$0xff] %v670_v57  ;;  %718 = vst [vmem:[%s1279_s3 + $0x80] sm:$0xff] %v686_v58  ;;  %v808_v61 = vadd.f32 %v807_v59, %v806_v55  ;;  %v856_v62 = vadd.f32 %v855_v60, %v854_v56 }
  0xea   :  { %v809_v63 = vpop.f32.mrf.mxu0  ;;  %v857_v0 = vpop.f32.mrf.mxu1 }
  0xeb   :  { %v671_v1 = vadd.f32 %v808_v61, %v1146_v51  ;;  %v687_v2 = vadd.f32 %v856_v62, %v1146_v51 }
  0xec   :  { %v810_v3 = vpop.f32.mrf.mxu0  ;;  %v858_v4 = vpop.f32.mrf.mxu1 }
  0xed   :  { %703 = vst [vmem:[%s1279_s3 + $0x8] sm:$0xff] %v671_v1  ;;  %719 = vst [vmem:[%s1279_s3 + $0x88] sm:$0xff] %v687_v2  ;;  %v811_v5 = vadd.f32 %v810_v3, %v809_v63  ;;  %v859_v6 = vadd.f32 %v858_v4, %v857_v0 }
  0xee   :  { %v812_v7 = vpop.f32.mrf.mxu0  ;;  %v860_v8 = vpop.f32.mrf.mxu1 }
  0xef   :  { %v672_v9 = vadd.f32 %v811_v5, %v1146_v51  ;;  %v688_v10 = vadd.f32 %v859_v6, %v1146_v51 }
  0xf0   :  { %v813_v11 = vpop.f32.mrf.mxu0  ;;  %v861_v12 = vpop.f32.mrf.mxu1 }
  0xf1   :  { %704 = vst [vmem:[%s1279_s3 + $0x10] sm:$0xff] %v672_v9  ;;  %720 = vst [vmem:[%s1279_s3 + $0x90] sm:$0xff] %v688_v10  ;;  %v814_v13 = vadd.f32 %v813_v11, %v812_v7  ;;  %v862_v14 = vadd.f32 %v861_v12, %v860_v8 }
  0xf2   :  { %v815_v15 = vpop.f32.mrf.mxu0  ;;  %v863_v16 = vpop.f32.mrf.mxu1 }
  0xf3   :  { %v673_v17 = vadd.f32 %v814_v13, %v1146_v51  ;;  %v689_v18 = vadd.f32 %v862_v14, %v1146_v51 }
  0xf4   :  { %v816_v19 = vpop.f32.mrf.mxu0  ;;  %v864_v20 = vpop.f32.mrf.mxu1 }
  0xf5   :  { %705 = vst [vmem:[%s1279_s3 + $0x18] sm:$0xff] %v673_v17  ;;  %721 = vst [vmem:[%s1279_s3 + $0x98] sm:$0xff] %v689_v18  ;;  %v817_v21 = vadd.f32 %v816_v19, %v815_v15  ;;  %v865_v22 = vadd.f32 %v864_v20, %v863_v16 }
  0xf6   :  { %v818_v23 = vpop.f32.mrf.mxu0  ;;  %v866_v24 = vpop.f32.mrf.mxu1 }
  0xf7   :  { %v674_v25 = vadd.f32 %v817_v21, %v1146_v51  ;;  %v690_v26 = vadd.f32 %v865_v22, %v1146_v51 }
  0xf8   :  { %v819_v27 = vpop.f32.mrf.mxu0  ;;  %v867_v28 = vpop.f32.mrf.mxu1 }
  0xf9   :  { %706 = vst [vmem:[%s1279_s3 + $0x20] sm:$0xff] %v674_v25  ;;  %722 = vst [vmem:[%s1279_s3 + $0xa0] sm:$0xff] %v690_v26  ;;  %v820_v29 = vadd.f32 %v819_v27, %v818_v23  ;;  %v868_v30 = vadd.f32 %v867_v28, %v866_v24 }
  0xfa   :  { %v821_v31 = vpop.f32.mrf.mxu0  ;;  %v869_v32 = vpop.f32.mrf.mxu1 }
  0xfb   :  { %v675_v33 = vadd.f32 %v820_v29, %v1146_v51  ;;  %v691_v34 = vadd.f32 %v868_v30, %v1146_v51 }
  0xfc   :  { %v822_v35 = vpop.f32.mrf.mxu0  ;;  %v870_v36 = vpop.f32.mrf.mxu1 }
  0xfd   :  { %707 = vst [vmem:[%s1279_s3 + $0x28] sm:$0xff] %v675_v33  ;;  %723 = vst [vmem:[%s1279_s3 + $0xa8] sm:$0xff] %v691_v34  ;;  %v823_v37 = vadd.f32 %v822_v35, %v821_v31  ;;  %v871_v38 = vadd.f32 %v870_v36, %v869_v32 }
  0xfe   :  { %v824_v39 = vpop.f32.mrf.mxu0  ;;  %v872_v40 = vpop.f32.mrf.mxu1 }
  0xff   :  { %v676_v41 = vadd.f32 %v823_v37, %v1146_v51  ;;  %v692_v42 = vadd.f32 %v871_v38, %v1146_v51 }
 0x100   :  { %v825_v43 = vpop.f32.mrf.mxu0  ;;  %v873_v44 = vpop.f32.mrf.mxu1 }
 0x101   :  { %708 = vst [vmem:[%s1279_s3 + $0x30] sm:$0xff] %v676_v41  ;;  %724 = vst [vmem:[%s1279_s3 + $0xb0] sm:$0xff] %v692_v42  ;;  %v826_v45 = vadd.f32 %v825_v43, %v824_v39  ;;  %v874_v46 = vadd.f32 %v873_v44, %v872_v40 }
 0x102   :  { %v827_v47 = vpop.f32.mrf.mxu0  ;;  %v875_v48 = vpop.f32.mrf.mxu1 }
 0x103   :  { %v677_v49 = vadd.f32 %v826_v45, %v1146_v51  ;;  %v693_v50 = vadd.f32 %v874_v46, %v1146_v51 }
 0x104   :  { %v828_v52 = vpop.f32.mrf.mxu0  ;;  %v876_v53 = vpop.f32.mrf.mxu1 }
 0x105   :  { %709 = vst [vmem:[%s1279_s3 + $0x38] sm:$0xff] %v677_v49  ;;  %725 = vst [vmem:[%s1279_s3 + $0xb8] sm:$0xff] %v693_v50  ;;  %v829_v54 = vadd.f32 %v828_v52, %v827_v47  ;;  %v877_v55 = vadd.f32 %v876_v53, %v875_v48 }
 0x106   :  { %v830_v56 = vpop.f32.mrf.mxu0  ;;  %v878_v57 = vpop.f32.mrf.mxu1 }
 0x107   :  { %v678_v58 = vadd.f32 %v829_v54, %v1146_v51  ;;  %v694_v59 = vadd.f32 %v877_v55, %v1146_v51 }
 0x108   :  { %v831_v60 = vpop.f32.mrf.mxu0  ;;  %v879_v61 = vpop.f32.mrf.mxu1 }
 0x109   :  { %710 = vst [vmem:[%s1279_s3 + $0x40] sm:$0xff] %v678_v58  ;;  %726 = vst [vmem:[%s1279_s3 + $0xc0] sm:$0xff] %v694_v59  ;;  %v832_v62 = vadd.f32 %v831_v60, %v830_v56  ;;  %v880_v63 = vadd.f32 %v879_v61, %v878_v57 }
 0x10a   :  { %v833_v0 = vpop.f32.mrf.mxu0  ;;  %v881_v1 = vpop.f32.mrf.mxu1 }
 0x10b   :  { %v679_v2 = vadd.f32 %v832_v62, %v1146_v51  ;;  %v695_v3 = vadd.f32 %v880_v63, %v1146_v51 }
 0x10c   :  { %v834_v4 = vpop.f32.mrf.mxu0  ;;  %v882_v5 = vpop.f32.mrf.mxu1 }
 0x10d   :  { %711 = vst [vmem:[%s1279_s3 + $0x48] sm:$0xff] %v679_v2  ;;  %727 = vst [vmem:[%s1279_s3 + $0xc8] sm:$0xff] %v695_v3  ;;  %v835_v6 = vadd.f32 %v834_v4, %v833_v0  ;;  %v883_v7 = vadd.f32 %v882_v5, %v881_v1 }
 0x10e   :  { %v836_v8 = vpop.f32.mrf.mxu0  ;;  %v884_v9 = vpop.f32.mrf.mxu1 }
 0x10f   :  { %v680_v10 = vadd.f32 %v835_v6, %v1146_v51  ;;  %v696_v11 = vadd.f32 %v883_v7, %v1146_v51 }
 0x110   :  { %v837_v12 = vpop.f32.mrf.mxu0  ;;  %v885_v13 = vpop.f32.mrf.mxu1 }
 0x111   :  { %712 = vst [vmem:[%s1279_s3 + $0x50] sm:$0xff] %v680_v10  ;;  %728 = vst [vmem:[%s1279_s3 + $0xd0] sm:$0xff] %v696_v11  ;;  %v838_v14 = vadd.f32 %v837_v12, %v836_v8  ;;  %v886_v15 = vadd.f32 %v885_v13, %v884_v9 }
 0x112   :  { %v839_v16 = vpop.f32.mrf.mxu0  ;;  %v887_v17 = vpop.f32.mrf.mxu1 }
 0x113   :  { %v681_v18 = vadd.f32 %v838_v14, %v1146_v51  ;;  %v697_v19 = vadd.f32 %v886_v15, %v1146_v51 }
 0x114   :  { %v840_v20 = vpop.f32.mrf.mxu0  ;;  %v888_v21 = vpop.f32.mrf.mxu1 }
 0x115   :  { %713 = vst [vmem:[%s1279_s3 + $0x58] sm:$0xff] %v681_v18  ;;  %729 = vst [vmem:[%s1279_s3 + $0xd8] sm:$0xff] %v697_v19  ;;  %v841_v22 = vadd.f32 %v840_v20, %v839_v16  ;;  %v889_v23 = vadd.f32 %v888_v21, %v887_v17 }
 0x116   :  { %v842_v24 = vpop.f32.mrf.mxu0  ;;  %v890_v25 = vpop.f32.mrf.mxu1 }
 0x117   :  { %v682_v26 = vadd.f32 %v841_v22, %v1146_v51  ;;  %v698_v27 = vadd.f32 %v889_v23, %v1146_v51 }
 0x118   :  { %v843_v28 = vpop.f32.mrf.mxu0  ;;  %v891_v29 = vpop.f32.mrf.mxu1 }
 0x119   :  { %714 = vst [vmem:[%s1279_s3 + $0x60] sm:$0xff] %v682_v26  ;;  %730 = vst [vmem:[%s1279_s3 + $0xe0] sm:$0xff] %v698_v27  ;;  %v844_v30 = vadd.f32 %v843_v28, %v842_v24  ;;  %v892_v31 = vadd.f32 %v891_v29, %v890_v25 }
 0x11a   :  { %v845_v32 = vpop.f32.mrf.mxu0  ;;  %v893_v33 = vpop.f32.mrf.mxu1 }
 0x11b   :  { %v683_v34 = vadd.f32 %v844_v30, %v1146_v51  ;;  %v699_v35 = vadd.f32 %v892_v31, %v1146_v51 }
 0x11c   :  { %v846_v36 = vpop.f32.mrf.mxu0  ;;  %v894_v37 = vpop.f32.mrf.mxu1 }
 0x11d   :  { %715 = vst [vmem:[%s1279_s3 + $0x68] sm:$0xff] %v683_v34  ;;  %731 = vst [vmem:[%s1279_s3 + $0xe8] sm:$0xff] %v699_v35  ;;  %v847_v38 = vadd.f32 %v846_v36, %v845_v32  ;;  %v895_v39 = vadd.f32 %v894_v37, %v893_v33 }
 0x11e   :  { %v848_v40 = vpop.f32.mrf.mxu0  ;;  %v896_v41 = vpop.f32.mrf.mxu1 }
 0x11f   :  { %v684_v42 = vadd.f32 %v847_v38, %v1146_v51  ;;  %v700_v43 = vadd.f32 %v895_v39, %v1146_v51 }
 0x120   :  { %v849_v44 = vpop.f32.mrf.mxu0  ;;  %v897_v45 = vpop.f32.mrf.mxu1 }
 0x121   :  { %716 = vst [vmem:[%s1279_s3 + $0x70] sm:$0xff] %v684_v42  ;;  %732 = vst [vmem:[%s1279_s3 + $0xf0] sm:$0xff] %v700_v43  ;;  %v850_v46 = vadd.f32 %v849_v44, %v848_v40  ;;  %v898_v47 = vadd.f32 %v897_v45, %v896_v41 }
 0x123   :  { %v685_v48 = vadd.f32 %v850_v46, %v1146_v51  ;;  %v701_v49 = vadd.f32 %v898_v47, %v1146_v51 }
 0x125   :  { %717 = vst [vmem:[%s1279_s3 + $0x78] sm:$0xff] %v685_v48  ;;  %733 = vst [vmem:[%s1279_s3 + $0xf8] sm:$0xff] %v701_v49 }

// kernel: base_agent_forward.15
= control target key start
LH: loop header
LB: loop body
LE: loop exit
PB: predicated region body
PF: predicated region fallthrough
CT: control target
= control target key end

     0   :  { %s2954_s1 = inlined_call_operand.vmem [shape: bf16[512,256], index: 1, kind: input, shape index: {}]   ;;  %s2955_s0 = inlined_call_operand.vmem [shape: bf16[256,512], index: 0, kind: input, shape index: {}]   ;;  %s2956_s2 = inlined_call_operand.vmem [shape: f32[1,256], index: 2, kind: input, shape index: {}]   ;;  %s2957_s3 = inlined_call_operand.vmem [shape: f32[256,256], index: 3, kind: input, shape index: {}]   ;;  %s2958_s4 = inlined_call_operand.vmem [shape: f32[256,256], index: 4, kind: output, shape index: {}]  }
   0x1   :  { %v1898_v0 = vld [vmem:[%s2954_s1 + $0x74] ss:$8 sps:$4 sm:$0xff]   ;;  %v1902_v2 = vld [vmem:[%s2954_s1 + $0x70] ss:$8 sps:$4 sm:$0xff]   ;;  %v1904_v4 = vld [vmem:[%s2954_s1 + $0x64] ss:$8 sps:$4 sm:$0xff]  }
   0x2   :  { %v1900_v1 = vld [vmem:[%s2954_s1 + $0x174] ss:$8 sps:$4 sm:$0xff]   ;;  %917 = vmatprep.subr.bf16.mxu0 %v1898_v0  ;;  %v1903_v3 = vld [vmem:[%s2954_s1 + $0x170] ss:$8 sps:$4 sm:$0xff]   ;;  %v1906_v5 = vld [vmem:[%s2954_s1 + $0x164] ss:$8 sps:$4 sm:$0xff]  }
   0x3   :  { %1110 = vmatprep.subr.bf16.mxu1 %v1900_v1  ;;  %918 = vmatpush1.bf16.msra.mxu0 %v1902_v2  ;;  %v1908_v6 = vld [vmem:[%s2954_s1 + $0x60] ss:$8 sps:$4 sm:$0xff]   ;;  %v1910_v8 = vld [vmem:[%s2954_s1 + $0x54] ss:$8 sps:$4 sm:$0xff]   ;;  %v1914_v10 = vld [vmem:[%s2954_s1 + $0x50] ss:$8 sps:$4 sm:$0xff]  }
   0x4   :  { %1111 = vmatpush1.bf16.msra.mxu1 %v1903_v3  ;;  %919 = vmatprep.subr.bf16.mxu0 %v1904_v4  ;;  %v1909_v7 = vld [vmem:[%s2954_s1 + $0x160] ss:$8 sps:$4 sm:$0xff]   ;;  %v1912_v9 = vld [vmem:[%s2954_s1 + $0x154] ss:$8 sps:$4 sm:$0xff]   ;;  %v1915_v11 = vld [vmem:[%s2954_s1 + $0x150] ss:$8 sps:$4 sm:$0xff]  }
   0x5   :  { %1112 = vmatprep.subr.bf16.mxu1 %v1906_v5  ;;  %v1916_v12 = vld [vmem:[%s2954_s1 + $0x44] ss:$8 sps:$4 sm:$0xff]   ;;  %v1920_v14 = vld [vmem:[%s2954_s1 + $0x40] ss:$8 sps:$4 sm:$0xff]   ;;  %v1922_v16 = vld [vmem:[%s2954_s1 + $0x34] ss:$8 sps:$4 sm:$0xff]  }
   0x6   :  { %v1918_v13 = vld [vmem:[%s2954_s1 + $0x144] ss:$8 sps:$4 sm:$0xff]   ;;  %v1921_v15 = vld [vmem:[%s2954_s1 + $0x140] ss:$8 sps:$4 sm:$0xff]   ;;  %v1924_v17 = vld [vmem:[%s2954_s1 + $0x134] ss:$8 sps:$4 sm:$0xff]  }
   0x7   :  { %920 = vmatpush1.bf16.msra.mxu0 %v1908_v6  ;;  %v1926_v18 = vld [vmem:[%s2954_s1 + $0x30] ss:$8 sps:$4 sm:$0xff]   ;;  %v1928_v20 = vld [vmem:[%s2954_s1 + $0x24] ss:$8 sps:$4 sm:$0xff]   ;;  %v1932_v22 = vld [vmem:[%s2954_s1 + $0x20] ss:$8 sps:$4 sm:$0xff]  }
   0x8   :  { %1113 = vmatpush1.bf16.msra.mxu1 %v1909_v7  ;;  %921 = vmatprep.subr.bf16.mxu0 %v1910_v8  ;;  %v1927_v19 = vld [vmem:[%s2954_s1 + $0x130] ss:$8 sps:$4 sm:$0xff]   ;;  %v1930_v21 = vld [vmem:[%s2954_s1 + $0x124] ss:$8 sps:$4 sm:$0xff]   ;;  %v1933_v23 = vld [vmem:[%s2954_s1 + $0x120] ss:$8 sps:$4 sm:$0xff]  }
   0x9   :  { %1114 = vmatprep.subr.bf16.mxu1 %v1912_v9  ;;  %v1934_v24 = vld [vmem:[%s2954_s1 + $0x14] ss:$8 sps:$4 sm:$0xff]   ;;  %v1938_v26 = vld [vmem:[%s2954_s1 + $0x10] ss:$8 sps:$4 sm:$0xff]   ;;  %v1940_v28 = vld [vmem:[%s2954_s1 + $0x4] ss:$8 sps:$4 sm:$0xff]  }
   0xa   :  { %v1936_v25 = vld [vmem:[%s2954_s1 + $0x114] ss:$8 sps:$4 sm:$0xff]   ;;  %v1939_v27 = vld [vmem:[%s2954_s1 + $0x110] ss:$8 sps:$4 sm:$0xff]   ;;  %v1942_v29 = vld [vmem:[%s2954_s1 + $0x104] ss:$8 sps:$4 sm:$0xff]  }
   0xb   :  { %922 = vmatpush1.bf16.msra.mxu0 %v1914_v10  ;;  %v1944_v30 = vld [vmem:[%s2954_s1] ss:$8 sps:$4 sm:$0xff]   ;;  %v1946_v32 = vld [vmem:[%s2954_s1 + $0xf4] ss:$8 sps:$4 sm:$0xff]   ;;  %v1950_v34 = vld [vmem:[%s2954_s1 + $0xf0] ss:$8 sps:$4 sm:$0xff]  }
   0xc   :  { %1115 = vmatpush1.bf16.msra.mxu1 %v1915_v11  ;;  %923 = vmatprep.subr.bf16.mxu0 %v1916_v12  ;;  %v1945_v31 = vld [vmem:[%s2954_s1 + $0x100] ss:$8 sps:$4 sm:$0xff]   ;;  %v1948_v33 = vld [vmem:[%s2954_s1 + $0x1f4] ss:$8 sps:$4 sm:$0xff]   ;;  %v1951_v35 = vld [vmem:[%s2954_s1 + $0x1f0] ss:$8 sps:$4 sm:$0xff]  }
   0xd   :  { %1116 = vmatprep.subr.bf16.mxu1 %v1918_v13  ;;  %v1952_v36 = vld [vmem:[%s2954_s1 + $0xe4] ss:$8 sps:$4 sm:$0xff]   ;;  %v1956_v38 = vld [vmem:[%s2954_s1 + $0xe0] ss:$8 sps:$4 sm:$0xff]   ;;  %v1958_v40 = vld [vmem:[%s2954_s1 + $0xd4] ss:$8 sps:$4 sm:$0xff]  }
   0xe   :  { %v1954_v37 = vld [vmem:[%s2954_s1 + $0x1e4] ss:$8 sps:$4 sm:$0xff]   ;;  %v1957_v39 = vld [vmem:[%s2954_s1 + $0x1e0] ss:$8 sps:$4 sm:$0xff]   ;;  %v1960_v41 = vld [vmem:[%s2954_s1 + $0x1d4] ss:$8 sps:$4 sm:$0xff]  }
   0xf   :  { %924 = vmatpush1.bf16.msra.mxu0 %v1920_v14  ;;  %v1962_v42 = vld [vmem:[%s2954_s1 + $0xd0] ss:$8 sps:$4 sm:$0xff]   ;;  %v1964_v44 = vld [vmem:[%s2954_s1 + $0xc4] ss:$8 sps:$4 sm:$0xff]   ;;  %v1968_v46 = vld [vmem:[%s2954_s1 + $0xc0] ss:$8 sps:$4 sm:$0xff]  }
  0x10   :  { %1117 = vmatpush1.bf16.msra.mxu1 %v1921_v15  ;;  %925 = vmatprep.subr.bf16.mxu0 %v1922_v16  ;;  %v1963_v43 = vld [vmem:[%s2954_s1 + $0x1d0] ss:$8 sps:$4 sm:$0xff]   ;;  %v1966_v45 = vld [vmem:[%s2954_s1 + $0x1c4] ss:$8 sps:$4 sm:$0xff]   ;;  %v1969_v47 = vld [vmem:[%s2954_s1 + $0x1c0] ss:$8 sps:$4 sm:$0xff]  }
  0x11   :  { %1118 = vmatprep.subr.bf16.mxu1 %v1924_v17  ;;  %v1970_v48 = vld [vmem:[%s2954_s1 + $0xb4] ss:$8 sps:$4 sm:$0xff]   ;;  %v1974_v52 = vld [vmem:[%s2954_s1 + $0xb0] ss:$8 sps:$4 sm:$0xff]   ;;  %v1976_v54 = vld [vmem:[%s2954_s1 + $0xa4] ss:$8 sps:$4 sm:$0xff]  }
  0x12   :  { %v1996_v49 = vld [vmem:[%s2955_s0 + $0x4] ss:$16 sps:$4 sm:$0xff]   ;;  %v1999_v51 = vld [vmem:[%s2955_s0 + $0xc] ss:$16 sps:$4 sm:$0xff]   ;;  %v1975_v53 = vld [vmem:[%s2954_s1 + $0x1b0] ss:$8 sps:$4 sm:$0xff]  }
  0x13   :  { %926 = vmatpush1.bf16.msra.mxu0 %v1926_v18  ;;  %v1972_v50 = vld [vmem:[%s2954_s1 + $0x1b4] ss:$8 sps:$4 sm:$0xff]   ;;  %949 = vmatprep.mubr.bf16.mxu0 %v1996_v49  ;;  %v1978_v55 = vld [vmem:[%s2954_s1 + $0x1a4] ss:$8 sps:$4 sm:$0xff]   ;;  %v1980_v56 = vld [vmem:[%s2954_s1 + $0xa0] ss:$8 sps:$4 sm:$0xff]  }
  0x14   :  { %1119 = vmatpush1.bf16.msra.mxu1 %v1927_v19  ;;  %927 = vmatprep.subr.bf16.mxu0 %v1928_v20  ;;  %v1981_v57 = vld [vmem:[%s2954_s1 + $0x1a0] ss:$8 sps:$4 sm:$0xff]   ;;  %v1982_v58 = vld [vmem:[%s2954_s1 + $0x94] ss:$8 sps:$4 sm:$0xff]   ;;  %v1986_v60 = vld [vmem:[%s2954_s1 + $0x90] ss:$8 sps:$4 sm:$0xff]  }
  0x15   :  { %1120 = vmatprep.subr.bf16.mxu1 %v1930_v21  ;;  %1142 = vmatprep.mubr.bf16.mxu1 %v1999_v51  ;;  %v1984_v59 = vld [vmem:[%s2954_s1 + $0x194] ss:$8 sps:$4 sm:$0xff]   ;;  %v1987_v61 = vld [vmem:[%s2954_s1 + $0x190] ss:$8 sps:$4 sm:$0xff]   ;;  %v1988_v62 = vld [vmem:[%s2954_s1 + $0x84] ss:$8 sps:$4 sm:$0xff]  }
  0x16   :  { %v1990_v63 = vld [vmem:[%s2954_s1 + $0x184] ss:$8 sps:$4 sm:$0xff]   ;;  %v1992_v0 = vld [vmem:[%s2954_s1 + $0x80] ss:$8 sps:$4 sm:$0xff]  }
  0x17   :  { %928 = vmatpush1.bf16.msra.mxu0 %v1932_v22  ;;  %v1993_v1 = vld [vmem:[%s2954_s1 + $0x180] ss:$8 sps:$4 sm:$0xff]   ;;  %v2000_v4 = vld [vmem:[%s2955_s0 + $0x24] ss:$16 sps:$4 sm:$0xff]   ;;  %v2002_v5 = vld [vmem:[%s2955_s0 + $0x2c] ss:$16 sps:$4 sm:$0xff]  }
  0x18   :  { %1121 = vmatpush1.bf16.msra.mxu1 %v1933_v23  ;;  %929 = vmatprep.subr.bf16.mxu0 %v1934_v24  ;;  %v1994_v2 = vld [vmem:[%s2955_s0] ss:$16 sps:$4 sm:$0xff]   ;;  %v1997_v3 = vld [vmem:[%s2955_s0 + $0x8] ss:$16 sps:$4 sm:$0xff]   ;;  %v2006_v8 = vld [vmem:[%s2955_s0 + $0x44] ss:$16 sps:$4 sm:$0xff]  }
  0x19   :  { %1122 = vmatprep.subr.bf16.mxu1 %v1936_v25  ;;  %v2004_v6 = vld [vmem:[%s2955_s0 + $0x20] ss:$16 sps:$4 sm:$0xff]   ;;  %v2005_v7 = vld [vmem:[%s2955_s0 + $0x28] ss:$16 sps:$4 sm:$0xff]   ;;  %v2008_v9 = vld [vmem:[%s2955_s0 + $0x4c] ss:$16 sps:$4 sm:$0xff]  }
  0x1a   :  { %v2010_v10 = vld [vmem:[%s2955_s0 + $0x40] ss:$16 sps:$4 sm:$0xff]   ;;  %v2011_v11 = vld [vmem:[%s2955_s0 + $0x48] ss:$16 sps:$4 sm:$0xff]   ;;  %v2012_v12 = vld [vmem:[%s2955_s0 + $0x64] ss:$16 sps:$4 sm:$0xff]  }
  0x1b   :  { %930 = vmatpush1.bf16.msra.mxu0 %v1938_v26  ;;  %v2014_v13 = vld [vmem:[%s2955_s0 + $0x6c] ss:$16 sps:$4 sm:$0xff]   ;;  %v2016_v14 = vld [vmem:[%s2955_s0 + $0x60] ss:$16 sps:$4 sm:$0xff]   ;;  %v2017_v15 = vld [vmem:[%s2955_s0 + $0x68] ss:$16 sps:$4 sm:$0xff]  }
  0x1c   :  { %1123 = vmatpush1.bf16.msra.mxu1 %v1939_v27  ;;  %931 = vmatprep.subr.bf16.mxu0 %v1940_v28  ;;  %v2018_v16 = vld [vmem:[%s2955_s0 + $0x84] ss:$16 sps:$4 sm:$0xff]   ;;  %v2020_v17 = vld [vmem:[%s2955_s0 + $0x8c] ss:$16 sps:$4 sm:$0xff]   ;;  %v2022_v18 = vld [vmem:[%s2955_s0 + $0x80] ss:$16 sps:$4 sm:$0xff]  }
  0x1d   :  { %1124 = vmatprep.subr.bf16.mxu1 %v1942_v29  ;;  %v2023_v19 = vld [vmem:[%s2955_s0 + $0x88] ss:$16 sps:$4 sm:$0xff]   ;;  %v2024_v20 = vld [vmem:[%s2955_s0 + $0xa4] ss:$16 sps:$4 sm:$0xff]   ;;  %v2026_v21 = vld [vmem:[%s2955_s0 + $0xac] ss:$16 sps:$4 sm:$0xff]  }
  0x1e   :  { %v2028_v22 = vld [vmem:[%s2955_s0 + $0xa0] ss:$16 sps:$4 sm:$0xff]   ;;  %v2029_v23 = vld [vmem:[%s2955_s0 + $0xa8] ss:$16 sps:$4 sm:$0xff]   ;;  %v2030_v24 = vld [vmem:[%s2955_s0 + $0xc4] ss:$16 sps:$4 sm:$0xff]  }
  0x1f   :  { %932 = vmatpush1.bf16.msra.mxu0 %v1944_v30  ;;  %v2032_v25 = vld [vmem:[%s2955_s0 + $0xcc] ss:$16 sps:$4 sm:$0xff]   ;;  %v2034_v26 = vld [vmem:[%s2955_s0 + $0xc0] ss:$16 sps:$4 sm:$0xff]   ;;  %v2035_v27 = vld [vmem:[%s2955_s0 + $0xc8] ss:$16 sps:$4 sm:$0xff]  }
  0x20   :  { %1125 = vmatpush1.bf16.msra.mxu1 %v1945_v31  ;;  %933 = vmatprep.subr.bf16.mxu0 %v1946_v32  ;;  %v2036_v28 = vld [vmem:[%s2955_s0 + $0xe4] ss:$16 sps:$4 sm:$0xff]   ;;  %v2038_v29 = vld [vmem:[%s2955_s0 + $0xec] ss:$16 sps:$4 sm:$0xff]   ;;  %v2040_v30 = vld [vmem:[%s2955_s0 + $0xe0] ss:$16 sps:$4 sm:$0xff]  }
  0x21   :  { %1126 = vmatprep.subr.bf16.mxu1 %v1948_v33  ;;  %v2041_v31 = vld [vmem:[%s2955_s0 + $0xe8] ss:$16 sps:$4 sm:$0xff]   ;;  %v2042_v32 = vld [vmem:[%s2955_s0 + $0x104] ss:$16 sps:$4 sm:$0xff]   ;;  %v2044_v33 = vld [vmem:[%s2955_s0 + $0x10c] ss:$16 sps:$4 sm:$0xff]  }
  0x22   :  { %v2068_v49 = vld [vmem:[%s2955_s0 + $0x18c] ss:$16 sps:$4 sm:$0xff]   ;;  %v2071_v51 = vld [vmem:[%s2955_s0 + $0x188] ss:$16 sps:$4 sm:$0xff]  }
  0x23   :  { %934 = vmatpush2.bf16.msra.mxu0 %v1950_v34  ;;  %v2046_v34 = vld [vmem:[%s2955_s0 + $0x100] ss:$16 sps:$4 sm:$0xff]  }
  0x24   :  { %1127 = vmatpush2.bf16.msra.mxu1 %v1951_v35  ;;  %935 = vmatprep.subr.bf16.mxu0 %v1952_v36  ;;  %v2047_v35 = vld [vmem:[%s2955_s0 + $0x108] ss:$16 sps:$4 sm:$0xff]   ;;  %v2048_v36 = vld [vmem:[%s2955_s0 + $0x124] ss:$16 sps:$4 sm:$0xff]  }
  0x25   :  { %1128 = vmatprep.subr.bf16.mxu1 %v1954_v37  ;;  %v2050_v37 = vld [vmem:[%s2955_s0 + $0x12c] ss:$16 sps:$4 sm:$0xff]  }
  0x27   :  { %936 = vmatpush2.bf16.msra.mxu0 %v1956_v38  ;;  %v2052_v38 = vld [vmem:[%s2955_s0 + $0x120] ss:$16 sps:$4 sm:$0xff]  }
  0x28   :  { %1129 = vmatpush2.bf16.msra.mxu1 %v1957_v39  ;;  %937 = vmatprep.subr.bf16.mxu0 %v1958_v40  ;;  %v2053_v39 = vld [vmem:[%s2955_s0 + $0x128] ss:$16 sps:$4 sm:$0xff]   ;;  %v2054_v40 = vld [vmem:[%s2955_s0 + $0x144] ss:$16 sps:$4 sm:$0xff]  }
  0x29   :  { %1130 = vmatprep.subr.bf16.mxu1 %v1960_v41  ;;  %v2056_v41 = vld [vmem:[%s2955_s0 + $0x14c] ss:$16 sps:$4 sm:$0xff]  }
  0x2b   :  { %938 = vmatpush2.bf16.msra.mxu0 %v1962_v42  ;;  %v2058_v42 = vld [vmem:[%s2955_s0 + $0x140] ss:$16 sps:$4 sm:$0xff]  }
  0x2c   :  { %1131 = vmatpush2.bf16.msra.mxu1 %v1963_v43  ;;  %939 = vmatprep.subr.bf16.mxu0 %v1964_v44  ;;  %v2059_v43 = vld [vmem:[%s2955_s0 + $0x148] ss:$16 sps:$4 sm:$0xff]   ;;  %v2060_v44 = vld [vmem:[%s2955_s0 + $0x164] ss:$16 sps:$4 sm:$0xff]  }
  0x2d   :  { %1132 = vmatprep.subr.bf16.mxu1 %v1966_v45  ;;  %v2062_v45 = vld [vmem:[%s2955_s0 + $0x16c] ss:$16 sps:$4 sm:$0xff]  }
  0x2f   :  { %940 = vmatpush2.bf16.msra.mxu0 %v1968_v46  ;;  %v2064_v46 = vld [vmem:[%s2955_s0 + $0x160] ss:$16 sps:$4 sm:$0xff]  }
  0x30   :  { %1133 = vmatpush2.bf16.msra.mxu1 %v1969_v47  ;;  %941 = vmatprep.subr.bf16.mxu0 %v1970_v48  ;;  %v2065_v47 = vld [vmem:[%s2955_s0 + $0x168] ss:$16 sps:$4 sm:$0xff]   ;;  %v2066_v48 = vld [vmem:[%s2955_s0 + $0x184] ss:$16 sps:$4 sm:$0xff]  }
  0x31   :  { %1134 = vmatprep.subr.bf16.mxu1 %v1972_v50  ;;  %v2070_v50 = vld [vmem:[%s2955_s0 + $0x180] ss:$16 sps:$4 sm:$0xff]  }
  0x33   :  { %942 = vmatpush2.bf16.msra.mxu0 %v1974_v52  ;;  %v2072_v52 = vld [vmem:[%s2955_s0 + $0x1a4] ss:$16 sps:$4 sm:$0xff]  }
  0x34   :  { %1135 = vmatpush2.bf16.msra.mxu1 %v1975_v53  ;;  %943 = vmatprep.subr.bf16.mxu0 %v1976_v54  ;;  %v2074_v53 = vld [vmem:[%s2955_s0 + $0x1ac] ss:$16 sps:$4 sm:$0xff]   ;;  %v2076_v54 = vld [vmem:[%s2955_s0 + $0x1a0] ss:$16 sps:$4 sm:$0xff]  }
  0x35   :  { %1136 = vmatprep.subr.bf16.mxu1 %v1978_v55  ;;  %v2077_v55 = vld [vmem:[%s2955_s0 + $0x1a8] ss:$16 sps:$4 sm:$0xff]  }
  0x37   :  { %944 = vmatpush2.bf16.msra.mxu0 %v1980_v56  ;;  %v2078_v56 = vld [vmem:[%s2955_s0 + $0x1c4] ss:$16 sps:$4 sm:$0xff]  }
  0x38   :  { %1137 = vmatpush2.bf16.msra.mxu1 %v1981_v57  ;;  %945 = vmatprep.subr.bf16.mxu0 %v1982_v58  ;;  %v2080_v57 = vld [vmem:[%s2955_s0 + $0x1cc] ss:$16 sps:$4 sm:$0xff]   ;;  %v2082_v58 = vld [vmem:[%s2955_s0 + $0x1c0] ss:$16 sps:$4 sm:$0xff]  }
  0x39   :  { %1138 = vmatprep.subr.bf16.mxu1 %v1984_v59  ;;  %v2083_v59 = vld [vmem:[%s2955_s0 + $0x1c8] ss:$16 sps:$4 sm:$0xff]  }
  0x3b   :  { %946 = vmatpush2.bf16.msra.mxu0 %v1986_v60  ;;  %v2084_v60 = vld [vmem:[%s2955_s0 + $0x1e4] ss:$16 sps:$4 sm:$0xff]  }
  0x3c   :  { %1139 = vmatpush2.bf16.msra.mxu1 %v1987_v61  ;;  %947 = vmatprep.subr.bf16.mxu0 %v1988_v62  ;;  %v2086_v61 = vld [vmem:[%s2955_s0 + $0x1ec] ss:$16 sps:$4 sm:$0xff]   ;;  %v2088_v62 = vld [vmem:[%s2955_s0 + $0x1e0] ss:$16 sps:$4 sm:$0xff]  }
  0x3d   :  { %1140 = vmatprep.subr.bf16.mxu1 %v1990_v63  ;;  %v2089_v63 = vld [vmem:[%s2955_s0 + $0x1e8] ss:$16 sps:$4 sm:$0xff]  }
  0x3f   :  { %948 = vmatpush2.bf16.msra.mxu0 %v1992_v0  ;;  %v1500_v0 = vlaneseq }
  0x40   :  { %1141 = vmatpush2.bf16.msra.mxu1 %v1993_v1 }
  0x41   :  { %v1501_v1 = vshrl.u32 %v1500_v0, 7 }
  0x42   :  { %950 = vmatmul.mubr.bf16.vlgmr.msra.gmra.mxu0 %v1994_v2 }
  0x43   :  { %1143 = vmatmul.mubr.bf16.vlgmr.msra.gmra.mxu1 %v1997_v3  ;;  %959 = vmatprep.mubr.bf16.mxu0 %v2000_v4  ;;  %v1502_v2 = vsub.s32 0, %v1501_v1  ;;  %v1498_v3 = vld [vmem:[%s2956_s2] sm:$0x3]  ;;  %v1506_v4 = vsub.s32 1, %v1501_v1 }
  0x44   :  { %1152 = vmatprep.mubr.bf16.mxu1 %v2002_v5 }
  0x45   :  { %v2502_v5 = vrot.slane %v1498_v3, %v1502_v2 }
  0x4a   :  { %960 = vmatmul.mubr.bf16.gmra.mxu0 %v2004_v6 }
  0x4b   :  { %1153 = vmatmul.mubr.bf16.gmra.mxu1 %v2005_v7  ;;  %969 = vmatprep.mubr.bf16.mxu0 %v2006_v8 }
  0x4c   :  { %1162 = vmatprep.mubr.bf16.mxu1 %v2008_v9  ;;  %v2504_v9 = vrot.slane %v1498_v3, %v1506_v4 }
  0x52   :  { %970 = vmatmul.mubr.bf16.gmra.mxu0 %v2010_v10  ;;  %v1574_v10 = vld [vmem:[%s2957_s3] sm:$0xff] }
  0x53   :  { %1163 = vmatmul.mubr.bf16.gmra.mxu1 %v2011_v11  ;;  %979 = vmatprep.mubr.bf16.mxu0 %v2012_v12 }
  0x54   :  { %1172 = vmatprep.mubr.bf16.mxu1 %v2014_v13 }
  0x5a   :  { %980 = vmatmul.mubr.bf16.gmra.mxu0 %v2016_v14 }
  0x5b   :  { %1173 = vmatmul.mubr.bf16.gmra.mxu1 %v2017_v15  ;;  %989 = vmatprep.mubr.bf16.mxu0 %v2018_v16  ;;  %v1575_v15 = vld [vmem:[%s2957_s3 + $0x8] sm:$0xff] }
  0x5c   :  { %1182 = vmatprep.mubr.bf16.mxu1 %v2020_v17 }
  0x62   :  { %990 = vmatmul.mubr.bf16.gmra.mxu0 %v2022_v18 }
  0x63   :  { %1183 = vmatmul.mubr.bf16.gmra.mxu1 %v2023_v19  ;;  %999 = vmatprep.mubr.bf16.mxu0 %v2024_v20 }
  0x64   :  { %1192 = vmatprep.mubr.bf16.mxu1 %v2026_v21  ;;  %v1576_v21 = vld [vmem:[%s2957_s3 + $0x10] sm:$0xff] }
  0x6a   :  { %1000 = vmatmul.mubr.bf16.gmra.mxu0 %v2028_v22 }
  0x6b   :  { %1193 = vmatmul.mubr.bf16.gmra.mxu1 %v2029_v23  ;;  %1009 = vmatprep.mubr.bf16.mxu0 %v2030_v24 }
  0x6c   :  { %1202 = vmatprep.mubr.bf16.mxu1 %v2032_v25 }
  0x72   :  { %1010 = vmatmul.mubr.bf16.gmra.mxu0 %v2034_v26 }
  0x73   :  { %1203 = vmatmul.mubr.bf16.gmra.mxu1 %v2035_v27  ;;  %1019 = vmatprep.mubr.bf16.mxu0 %v2036_v28  ;;  %v1577_v27 = vld [vmem:[%s2957_s3 + $0x18] sm:$0xff] }
  0x74   :  { %1212 = vmatprep.mubr.bf16.mxu1 %v2038_v29 }
  0x7a   :  { %1020 = vmatmul.mubr.bf16.gmra.mxu0 %v2040_v30 }
  0x7b   :  { %1213 = vmatmul.mubr.bf16.gmra.mxu1 %v2041_v31  ;;  %1029 = vmatprep.mubr.bf16.mxu0 %v2042_v32 }
  0x7c   :  { %1222 = vmatprep.mubr.bf16.mxu1 %v2044_v33  ;;  %v1578_v33 = vld [vmem:[%s2957_s3 + $0x20] sm:$0xff] }
  0x82   :  { %1030 = vmatmul.mubr.bf16.gmra.mxu0 %v2046_v34 }
  0x83   :  { %1223 = vmatmul.mubr.bf16.gmra.mxu1 %v2047_v35  ;;  %1039 = vmatprep.mubr.bf16.mxu0 %v2048_v36 }
  0x84   :  { %1232 = vmatprep.mubr.bf16.mxu1 %v2050_v37 }
  0x8a   :  { %1040 = vmatmul.mubr.bf16.gmra.mxu0 %v2052_v38 }
  0x8b   :  { %1233 = vmatmul.mubr.bf16.gmra.mxu1 %v2053_v39  ;;  %1049 = vmatprep.mubr.bf16.mxu0 %v2054_v40  ;;  %v1579_v39 = vld [vmem:[%s2957_s3 + $0x28] sm:$0xff] }
  0x8c   :  { %1242 = vmatprep.mubr.bf16.mxu1 %v2056_v41 }
  0x92   :  { %1050 = vmatmul.mubr.bf16.gmra.mxu0 %v2058_v42 }
  0x93   :  { %1243 = vmatmul.mubr.bf16.gmra.mxu1 %v2059_v43  ;;  %1059 = vmatprep.mubr.bf16.mxu0 %v2060_v44 }
  0x94   :  { %1252 = vmatprep.mubr.bf16.mxu1 %v2062_v45  ;;  %v1580_v45 = vld [vmem:[%s2957_s3 + $0x30] sm:$0xff] }
  0x9a   :  { %1060 = vmatmul.mubr.bf16.gmra.mxu0 %v2064_v46 }
  0x9b   :  { %1253 = vmatmul.mubr.bf16.gmra.mxu1 %v2065_v47  ;;  %1069 = vmatprep.mubr.bf16.mxu0 %v2066_v48 }
  0x9c   :  { %1262 = vmatprep.mubr.bf16.mxu1 %v2068_v49 }
  0xa2   :  { %1070 = vmatmul.mubr.bf16.gmra.mxu0 %v2070_v50 }
  0xa3   :  { %1263 = vmatmul.mubr.bf16.gmra.mxu1 %v2071_v51  ;;  %1079 = vmatprep.mubr.bf16.mxu0 %v2072_v52  ;;  %v1581_v51 = vld [vmem:[%s2957_s3 + $0x38] sm:$0xff] }
  0xa4   :  { %1272 = vmatprep.mubr.bf16.mxu1 %v2074_v53 }
  0xaa   :  { %1080 = vmatmul.mubr.bf16.gmra.mxu0 %v2076_v54 }
  0xab   :  { %1273 = vmatmul.mubr.bf16.gmra.mxu1 %v2077_v55  ;;  %1089 = vmatprep.mubr.bf16.mxu0 %v2078_v56 }
  0xac   :  { %1282 = vmatprep.mubr.bf16.mxu1 %v2080_v57  ;;  %v1582_v57 = vld [vmem:[%s2957_s3 + $0x40] sm:$0xff] }
  0xb2   :  { %1090 = vmatmul.mubr.bf16.gmra.mxu0 %v2082_v58 }
  0xb3   :  { %1283 = vmatmul.mubr.bf16.gmra.mxu1 %v2083_v59  ;;  %1099 = vmatprep.mubr.bf16.mxu0 %v2084_v60 }
  0xb4   :  { %1292 = vmatprep.mubr.bf16.mxu1 %v2086_v61 }
  0xba   :  { %1100 = vmatmul.mubr.bf16.gmra.mxu0 %v2088_v62 }
  0xbb   :  { %1293 = vmatmul.mubr.bf16.gmra.mxu1 %v2089_v63  ;;  %v1583_v63 = vld [vmem:[%s2957_s3 + $0x48] sm:$0xff] }
 0x102   :  { %v951_v6 = vpop.f32.mrf.mxu0 }
 0x103   :  { %v1144_v7 = vpop.f32.mrf.mxu1 }
 0x104   :  { %v1145_v8 = vadd.f32 %v1144_v7, %v951_v6  ;;  %v953_v11 = vpop.f32.mrf.mxu0  ;;  %v1584_v6 = vld [vmem:[%s2957_s3 + $0x50] sm:$0xff] }
 0x105   :  { %v1146_v12 = vpop.f32.mrf.mxu1 }
 0x106   :  { %v1510_v13 = vadd.f32 %v2502_v5, %v1145_v8  ;;  %v1147_v14 = vadd.f32 %v1146_v12, %v953_v11  ;;  %v955_v16 = vpop.f32.mrf.mxu0 }
 0x107   :  { %v1148_v17 = vpop.f32.mrf.mxu1 }
 0x108   :  { %v1638_v18 = vadd.f32 %v1574_v10, %v1510_v13  ;;  %v1511_v19 = vadd.f32 %v2504_v9, %v1147_v14  ;;  %v1149_v20 = vadd.f32 %v1148_v17, %v955_v16  ;;  %v957_v22 = vpop.f32.mrf.mxu0  ;;  %v1585_v13 = vld [vmem:[%s2957_s3 + $0x58] sm:$0xff] }
 0x109   :  { %v1150_v23 = vpop.f32.mrf.mxu1 }
 0x10a   :  { %1702 = vst [vmem:[%s2958_s4] sm:$0xff] %v1638_v18  ;;  %v1639_v24 = vadd.f32 %v1575_v15, %v1511_v19  ;;  %v1512_v25 = vadd.f32 %v2502_v5, %v1149_v20  ;;  %v1151_v26 = vadd.f32 %v1150_v23, %v957_v22  ;;  %v961_v28 = vpop.f32.mrf.mxu0  ;;  %v1586_v19 = vld [vmem:[%s2957_s3 + $0x60] sm:$0xff] }
 0x10b   :  { %v1154_v29 = vpop.f32.mrf.mxu1 }
 0x10c   :  { %1703 = vst [vmem:[%s2958_s4 + $0x8] sm:$0xff] %v1639_v24  ;;  %v1640_v30 = vadd.f32 %v1576_v21, %v1512_v25  ;;  %v1513_v31 = vadd.f32 %v2504_v9, %v1151_v26  ;;  %v1155_v32 = vadd.f32 %v1154_v29, %v961_v28  ;;  %v963_v34 = vpop.f32.mrf.mxu0  ;;  %v1587_v25 = vld [vmem:[%s2957_s3 + $0x68] sm:$0xff] }
 0x10d   :  { %v1156_v35 = vpop.f32.mrf.mxu1 }
 0x10e   :  { %1704 = vst [vmem:[%s2958_s4 + $0x10] sm:$0xff] %v1640_v30  ;;  %v1641_v36 = vadd.f32 %v1577_v27, %v1513_v31  ;;  %v1514_v37 = vadd.f32 %v2502_v5, %v1155_v32  ;;  %v1157_v38 = vadd.f32 %v1156_v35, %v963_v34  ;;  %v965_v40 = vpop.f32.mrf.mxu0  ;;  %v1588_v31 = vld [vmem:[%s2957_s3 + $0x70] sm:$0xff] }
 0x10f   :  { %v1158_v41 = vpop.f32.mrf.mxu1 }
 0x110   :  { %1705 = vst [vmem:[%s2958_s4 + $0x18] sm:$0xff] %v1641_v36  ;;  %v1642_v42 = vadd.f32 %v1578_v33, %v1514_v37  ;;  %v1515_v43 = vadd.f32 %v2504_v9, %v1157_v38  ;;  %v1159_v44 = vadd.f32 %v1158_v41, %v965_v40  ;;  %v967_v46 = vpop.f32.mrf.mxu0  ;;  %v1589_v37 = vld [vmem:[%s2957_s3 + $0x78] sm:$0xff] }
 0x111   :  { %v1160_v47 = vpop.f32.mrf.mxu1 }
 0x112   :  { %1706 = vst [vmem:[%s2958_s4 + $0x20] sm:$0xff] %v1642_v42  ;;  %v1643_v48 = vadd.f32 %v1579_v39, %v1515_v43  ;;  %v1516_v49 = vadd.f32 %v2502_v5, %v1159_v44  ;;  %v1161_v50 = vadd.f32 %v1160_v47, %v967_v46  ;;  %v971_v52 = vpop.f32.mrf.mxu0  ;;  %v1590_v43 = vld [vmem:[%s2957_s3 + $0x80] sm:$0xff] }
 0x113   :  { %v1164_v53 = vpop.f32.mrf.mxu1 }
 0x114   :  { %1707 = vst [vmem:[%s2958_s4 + $0x28] sm:$0xff] %v1643_v48  ;;  %v1644_v54 = vadd.f32 %v1580_v45, %v1516_v49  ;;  %v1517_v55 = vadd.f32 %v2504_v9, %v1161_v50  ;;  %v1165_v56 = vadd.f32 %v1164_v53, %v971_v52  ;;  %v973_v58 = vpop.f32.mrf.mxu0  ;;  %v1591_v49 = vld [vmem:[%s2957_s3 + $0x88] sm:$0xff] }
 0x115   :  { %v1166_v59 = vpop.f32.mrf.mxu1 }
 0x116   :  { %1708 = vst [vmem:[%s2958_s4 + $0x30] sm:$0xff] %v1644_v54  ;;  %v1645_v60 = vadd.f32 %v1581_v51, %v1517_v55  ;;  %v1518_v61 = vadd.f32 %v2502_v5, %v1165_v56  ;;  %v1167_v62 = vadd.f32 %v1166_v59, %v973_v58  ;;  %v975_v0 = vpop.f32.mrf.mxu0  ;;  %v1592_v55 = vld [vmem:[%s2957_s3 + $0x90] sm:$0xff] }
 0x117   :  { %v1168_v1 = vpop.f32.mrf.mxu1 }
 0x118   :  { %1709 = vst [vmem:[%s2958_s4 + $0x38] sm:$0xff] %v1645_v60  ;;  %v1646_v2 = vadd.f32 %v1582_v57, %v1518_v61  ;;  %v1519_v3 = vadd.f32 %v2504_v9, %v1167_v62  ;;  %v1169_v4 = vadd.f32 %v1168_v1, %v975_v0  ;;  %v977_v7 = vpop.f32.mrf.mxu0  ;;  %v1593_v61 = vld [vmem:[%s2957_s3 + $0x98] sm:$0xff] }
 0x119   :  { %v1170_v8 = vpop.f32.mrf.mxu1 }
 0x11a   :  { %1710 = vst [vmem:[%s2958_s4 + $0x40] sm:$0xff] %v1646_v2  ;;  %v1647_v10 = vadd.f32 %v1583_v63, %v1519_v3  ;;  %v1520_v11 = vadd.f32 %v2502_v5, %v1169_v4  ;;  %v1171_v12 = vadd.f32 %v1170_v8, %v977_v7  ;;  %v981_v14 = vpop.f32.mrf.mxu0  ;;  %v1594_v3 = vld [vmem:[%s2957_s3 + $0xa0] sm:$0xff] }
 0x11b   :  { %v1174_v15 = vpop.f32.mrf.mxu1 }
 0x11c   :  { %1711 = vst [vmem:[%s2958_s4 + $0x48] sm:$0xff] %v1647_v10  ;;  %v1648_v16 = vadd.f32 %v1584_v6, %v1520_v11  ;;  %v1521_v17 = vadd.f32 %v2504_v9, %v1171_v12  ;;  %v1175_v18 = vadd.f32 %v1174_v15, %v981_v14  ;;  %v983_v20 = vpop.f32.mrf.mxu0  ;;  %v1595_v11 = vld [vmem:[%s2957_s3 + $0xa8] sm:$0xff] }
 0x11d   :  { %v1176_v21 = vpop.f32.mrf.mxu1 }
 0x11e   :  { %1712 = vst [vmem:[%s2958_s4 + $0x50] sm:$0xff] %v1648_v16  ;;  %v1649_v22 = vadd.f32 %v1585_v13, %v1521_v17  ;;  %v1522_v23 = vadd.f32 %v2502_v5, %v1175_v18  ;;  %v1177_v24 = vadd.f32 %v1176_v21, %v983_v20  ;;  %v985_v26 = vpop.f32.mrf.mxu0  ;;  %v1596_v17 = vld [vmem:[%s2957_s3 + $0xb0] sm:$0xff] }
 0x11f   :  { %v1178_v27 = vpop.f32.mrf.mxu1 }
 0x120   :  { %1713 = vst [vmem:[%s2958_s4 + $0x58] sm:$0xff] %v1649_v22  ;;  %v1650_v28 = vadd.f32 %v1586_v19, %v1522_v23  ;;  %v1523_v29 = vadd.f32 %v2504_v9, %v1177_v24  ;;  %v1179_v30 = vadd.f32 %v1178_v27, %v985_v26  ;;  %v987_v32 = vpop.f32.mrf.mxu0  ;;  %v1597_v23 = vld [vmem:[%s2957_s3 + $0xb8] sm:$0xff] }
 0x121   :  { %v1180_v33 = vpop.f32.mrf.mxu1 }
 0x122   :  { %1714 = vst [vmem:[%s2958_s4 + $0x60] sm:$0xff] %v1650_v28  ;;  %v1651_v34 = vadd.f32 %v1587_v25, %v1523_v29  ;;  %v1524_v35 = vadd.f32 %v2502_v5, %v1179_v30  ;;  %v1181_v36 = vadd.f32 %v1180_v33, %v987_v32  ;;  %v991_v38 = vpop.f32.mrf.mxu0  ;;  %v1598_v29 = vld [vmem:[%s2957_s3 + $0xc0] sm:$0xff] }
 0x123   :  { %v1184_v39 = vpop.f32.mrf.mxu1 }
 0x124   :  { %1715 = vst [vmem:[%s2958_s4 + $0x68] sm:$0xff] %v1651_v34  ;;  %v1652_v40 = vadd.f32 %v1588_v31, %v1524_v35  ;;  %v1525_v41 = vadd.f32 %v2504_v9, %v1181_v36  ;;  %v1185_v42 = vadd.f32 %v1184_v39, %v991_v38  ;;  %v993_v44 = vpop.f32.mrf.mxu0  ;;  %v1599_v35 = vld [vmem:[%s2957_s3 + $0xc8] sm:$0xff] }
 0x125   :  { %v1186_v45 = vpop.f32.mrf.mxu1 }
 0x126   :  { %1716 = vst [vmem:[%s2958_s4 + $0x70] sm:$0xff] %v1652_v40  ;;  %v1653_v46 = vadd.f32 %v1589_v37, %v1525_v41  ;;  %v1526_v47 = vadd.f32 %v2502_v5, %v1185_v42  ;;  %v1187_v48 = vadd.f32 %v1186_v45, %v993_v44  ;;  %v995_v50 = vpop.f32.mrf.mxu0  ;;  %v1600_v41 = vld [vmem:[%s2957_s3 + $0xd0] sm:$0xff] }
 0x127   :  { %v1188_v51 = vpop.f32.mrf.mxu1 }
 0x128   :  { %1717 = vst [vmem:[%s2958_s4 + $0x78] sm:$0xff] %v1653_v46  ;;  %v1654_v52 = vadd.f32 %v1590_v43, %v1526_v47  ;;  %v1527_v53 = vadd.f32 %v2504_v9, %v1187_v48  ;;  %v1189_v54 = vadd.f32 %v1188_v51, %v995_v50  ;;  %v997_v56 = vpop.f32.mrf.mxu0  ;;  %v1601_v47 = vld [vmem:[%s2957_s3 + $0xd8] sm:$0xff] }
 0x129   :  { %v1190_v57 = vpop.f32.mrf.mxu1 }
 0x12a   :  { %1718 = vst [vmem:[%s2958_s4 + $0x80] sm:$0xff] %v1654_v52  ;;  %v1655_v58 = vadd.f32 %v1591_v49, %v1527_v53  ;;  %v1528_v59 = vadd.f32 %v2502_v5, %v1189_v54  ;;  %v1191_v60 = vadd.f32 %v1190_v57, %v997_v56  ;;  %v1001_v62 = vpop.f32.mrf.mxu0  ;;  %v1602_v53 = vld [vmem:[%s2957_s3 + $0xe0] sm:$0xff] }
 0x12b   :  { %v1194_v63 = vpop.f32.mrf.mxu1 }
 0x12c   :  { %1719 = vst [vmem:[%s2958_s4 + $0x88] sm:$0xff] %v1655_v58  ;;  %v1656_v0 = vadd.f32 %v1592_v55, %v1528_v59  ;;  %v1529_v1 = vadd.f32 %v2504_v9, %v1191_v60  ;;  %v1195_v2 = vadd.f32 %v1194_v63, %v1001_v62  ;;  %v1003_v4 = vpop.f32.mrf.mxu0  ;;  %v1603_v59 = vld [vmem:[%s2957_s3 + $0xe8] sm:$0xff] }
 0x12d   :  { %v1196_v6 = vpop.f32.mrf.mxu1 }
 0x12e   :  { %1720 = vst [vmem:[%s2958_s4 + $0x90] sm:$0xff] %v1656_v0  ;;  %v1657_v7 = vadd.f32 %v1593_v61, %v1529_v1  ;;  %v1530_v8 = vadd.f32 %v2502_v5, %v1195_v2  ;;  %v1197_v10 = vadd.f32 %v1196_v6, %v1003_v4  ;;  %v1005_v12 = vpop.f32.mrf.mxu0  ;;  %v1604_v1 = vld [vmem:[%s2957_s3 + $0xf0] sm:$0xff] }
 0x12f   :  { %v1198_v13 = vpop.f32.mrf.mxu1 }
 0x130   :  { %1721 = vst [vmem:[%s2958_s4 + $0x98] sm:$0xff] %v1657_v7  ;;  %v1658_v14 = vadd.f32 %v1594_v3, %v1530_v8  ;;  %v1531_v15 = vadd.f32 %v2504_v9, %v1197_v10  ;;  %v1199_v16 = vadd.f32 %v1198_v13, %v1005_v12  ;;  %v1007_v18 = vpop.f32.mrf.mxu0  ;;  %v1605_v8 = vld [vmem:[%s2957_s3 + $0xf8] sm:$0xff] }
 0x131   :  { %v1200_v19 = vpop.f32.mrf.mxu1 }
 0x132   :  { %1722 = vst [vmem:[%s2958_s4 + $0xa0] sm:$0xff] %v1658_v14  ;;  %v1659_v20 = vadd.f32 %v1595_v11, %v1531_v15  ;;  %v1532_v21 = vadd.f32 %v2502_v5, %v1199_v16  ;;  %v1201_v22 = vadd.f32 %v1200_v19, %v1007_v18  ;;  %v1011_v24 = vpop.f32.mrf.mxu0  ;;  %v1606_v15 = vld [vmem:[%s2957_s3 + $0x100] sm:$0xff] }
 0x133   :  { %v1204_v25 = vpop.f32.mrf.mxu1 }
 0x134   :  { %1723 = vst [vmem:[%s2958_s4 + $0xa8] sm:$0xff] %v1659_v20  ;;  %v1660_v26 = vadd.f32 %v1596_v17, %v1532_v21  ;;  %v1533_v27 = vadd.f32 %v2504_v9, %v1201_v22  ;;  %v1205_v28 = vadd.f32 %v1204_v25, %v1011_v24  ;;  %v1013_v30 = vpop.f32.mrf.mxu0  ;;  %v1607_v21 = vld [vmem:[%s2957_s3 + $0x108] sm:$0xff] }
 0x135   :  { %v1206_v31 = vpop.f32.mrf.mxu1 }
 0x136   :  { %1724 = vst [vmem:[%s2958_s4 + $0xb0] sm:$0xff] %v1660_v26  ;;  %v1661_v32 = vadd.f32 %v1597_v23, %v1533_v27  ;;  %v1534_v33 = vadd.f32 %v2502_v5, %v1205_v28  ;;  %v1207_v34 = vadd.f32 %v1206_v31, %v1013_v30  ;;  %v1015_v36 = vpop.f32.mrf.mxu0  ;;  %v1608_v27 = vld [vmem:[%s2957_s3 + $0x110] sm:$0xff] }
 0x137   :  { %v1208_v37 = vpop.f32.mrf.mxu1 }
 0x138   :  { %1725 = vst [vmem:[%s2958_s4 + $0xb8] sm:$0xff] %v1661_v32  ;;  %v1662_v38 = vadd.f32 %v1598_v29, %v1534_v33  ;;  %v1535_v39 = vadd.f32 %v2504_v9, %v1207_v34  ;;  %v1209_v40 = vadd.f32 %v1208_v37, %v1015_v36  ;;  %v1017_v42 = vpop.f32.mrf.mxu0  ;;  %v1609_v33 = vld [vmem:[%s2957_s3 + $0x118] sm:$0xff] }
 0x139   :  { %v1210_v43 = vpop.f32.mrf.mxu1 }
 0x13a   :  { %1726 = vst [vmem:[%s2958_s4 + $0xc0] sm:$0xff] %v1662_v38  ;;  %v1663_v44 = vadd.f32 %v1599_v35, %v1535_v39  ;;  %v1536_v45 = vadd.f32 %v2502_v5, %v1209_v40  ;;  %v1211_v46 = vadd.f32 %v1210_v43, %v1017_v42  ;;  %v1021_v48 = vpop.f32.mrf.mxu0  ;;  %v1610_v39 = vld [vmem:[%s2957_s3 + $0x120] sm:$0xff] }
 0x13b   :  { %v1214_v49 = vpop.f32.mrf.mxu1 }
 0x13c   :  { %1727 = vst [vmem:[%s2958_s4 + $0xc8] sm:$0xff] %v1663_v44  ;;  %v1664_v50 = vadd.f32 %v1600_v41, %v1536_v45  ;;  %v1537_v51 = vadd.f32 %v2504_v9, %v1211_v46  ;;  %v1215_v52 = vadd.f32 %v1214_v49, %v1021_v48  ;;  %v1023_v54 = vpop.f32.mrf.mxu0  ;;  %v1611_v45 = vld [vmem:[%s2957_s3 + $0x128] sm:$0xff] }
 0x13d   :  { %v1216_v55 = vpop.f32.mrf.mxu1 }
 0x13e   :  { %1728 = vst [vmem:[%s2958_s4 + $0xd0] sm:$0xff] %v1664_v50  ;;  %v1665_v56 = vadd.f32 %v1601_v47, %v1537_v51  ;;  %v1538_v57 = vadd.f32 %v2502_v5, %v1215_v52  ;;  %v1217_v58 = vadd.f32 %v1216_v55, %v1023_v54  ;;  %v1025_v60 = vpop.f32.mrf.mxu0  ;;  %v1612_v51 = vld [vmem:[%s2957_s3 + $0x130] sm:$0xff] }
 0x13f   :  { %v1218_v61 = vpop.f32.mrf.mxu1 }
 0x140   :  { %1729 = vst [vmem:[%s2958_s4 + $0xd8] sm:$0xff] %v1665_v56  ;;  %v1666_v62 = vadd.f32 %v1602_v53, %v1538_v57  ;;  %v1539_v63 = vadd.f32 %v2504_v9, %v1217_v58  ;;  %v1219_v0 = vadd.f32 %v1218_v61, %v1025_v60  ;;  %v1027_v2 = vpop.f32.mrf.mxu0  ;;  %v1613_v57 = vld [vmem:[%s2957_s3 + $0x138] sm:$0xff] }
 0x141   :  { %v1220_v3 = vpop.f32.mrf.mxu1 }
 0x142   :  { %1730 = vst [vmem:[%s2958_s4 + $0xe0] sm:$0xff] %v1666_v62  ;;  %v1667_v4 = vadd.f32 %v1603_v59, %v1539_v63  ;;  %v1540_v6 = vadd.f32 %v2502_v5, %v1219_v0  ;;  %v1221_v7 = vadd.f32 %v1220_v3, %v1027_v2  ;;  %v1031_v10 = vpop.f32.mrf.mxu0  ;;  %v1614_v63 = vld [vmem:[%s2957_s3 + $0x140] sm:$0xff] }
 0x143   :  { %v1224_v11 = vpop.f32.mrf.mxu1 }
 0x144   :  { %1731 = vst [vmem:[%s2958_s4 + $0xe8] sm:$0xff] %v1667_v4  ;;  %v1668_v12 = vadd.f32 %v1604_v1, %v1540_v6  ;;  %v1541_v13 = vadd.f32 %v2504_v9, %v1221_v7  ;;  %v1225_v14 = vadd.f32 %v1224_v11, %v1031_v10  ;;  %v1033_v16 = vpop.f32.mrf.mxu0  ;;  %v1615_v6 = vld [vmem:[%s2957_s3 + $0x148] sm:$0xff] }
 0x145   :  { %v1226_v17 = vpop.f32.mrf.mxu1 }
 0x146   :  { %1732 = vst [vmem:[%s2958_s4 + $0xf0] sm:$0xff] %v1668_v12  ;;  %v1669_v18 = vadd.f32 %v1605_v8, %v1541_v13  ;;  %v1542_v19 = vadd.f32 %v2502_v5, %v1225_v14  ;;  %v1227_v20 = vadd.f32 %v1226_v17, %v1033_v16  ;;  %v1035_v22 = vpop.f32.mrf.mxu0  ;;  %v1616_v13 = vld [vmem:[%s2957_s3 + $0x150] sm:$0xff] }
 0x147   :  { %v1228_v23 = vpop.f32.mrf.mxu1 }
 0x148   :  { %1733 = vst [vmem:[%s2958_s4 + $0xf8] sm:$0xff] %v1669_v18  ;;  %v1670_v24 = vadd.f32 %v1606_v15, %v1542_v19  ;;  %v1543_v25 = vadd.f32 %v2504_v9, %v1227_v20  ;;  %v1229_v26 = vadd.f32 %v1228_v23, %v1035_v22  ;;  %v1037_v28 = vpop.f32.mrf.mxu0  ;;  %v1617_v19 = vld [vmem:[%s2957_s3 + $0x158] sm:$0xff] }
 0x149   :  { %v1230_v29 = vpop.f32.mrf.mxu1 }
 0x14a   :  { %1734 = vst [vmem:[%s2958_s4 + $0x100] sm:$0xff] %v1670_v24  ;;  %v1671_v30 = vadd.f32 %v1607_v21, %v1543_v25  ;;  %v1544_v31 = vadd.f32 %v2502_v5, %v1229_v26  ;;  %v1231_v32 = vadd.f32 %v1230_v29, %v1037_v28  ;;  %v1041_v34 = vpop.f32.mrf.mxu0  ;;  %v1618_v25 = vld [vmem:[%s2957_s3 + $0x160] sm:$0xff] }
 0x14b   :  { %v1234_v35 = vpop.f32.mrf.mxu1 }
 0x14c   :  { %1735 = vst [vmem:[%s2958_s4 + $0x108] sm:$0xff] %v1671_v30  ;;  %v1672_v36 = vadd.f32 %v1608_v27, %v1544_v31  ;;  %v1545_v37 = vadd.f32 %v2504_v9, %v1231_v32  ;;  %v1235_v38 = vadd.f32 %v1234_v35, %v1041_v34  ;;  %v1043_v40 = vpop.f32.mrf.mxu0  ;;  %v1619_v31 = vld [vmem:[%s2957_s3 + $0x168] sm:$0xff] }
 0x14d   :  { %v1236_v41 = vpop.f32.mrf.mxu1 }
 0x14e   :  { %1736 = vst [vmem:[%s2958_s4 + $0x110] sm:$0xff] %v1672_v36  ;;  %v1673_v42 = vadd.f32 %v1609_v33, %v1545_v37  ;;  %v1546_v43 = vadd.f32 %v2502_v5, %v1235_v38  ;;  %v1237_v44 = vadd.f32 %v1236_v41, %v1043_v40  ;;  %v1045_v46 = vpop.f32.mrf.mxu0  ;;  %v1620_v37 = vld [vmem:[%s2957_s3 + $0x170] sm:$0xff] }
 0x14f   :  { %v1238_v47 = vpop.f32.mrf.mxu1 }
 0x150   :  { %1737 = vst [vmem:[%s2958_s4 + $0x118] sm:$0xff] %v1673_v42  ;;  %v1674_v48 = vadd.f32 %v1610_v39, %v1546_v43  ;;  %v1547_v49 = vadd.f32 %v2504_v9, %v1237_v44  ;;  %v1239_v50 = vadd.f32 %v1238_v47, %v1045_v46  ;;  %v1047_v52 = vpop.f32.mrf.mxu0  ;;  %v1621_v43 = vld [vmem:[%s2957_s3 + $0x178] sm:$0xff] }
 0x151   :  { %v1240_v53 = vpop.f32.mrf.mxu1 }
 0x152   :  { %1738 = vst [vmem:[%s2958_s4 + $0x120] sm:$0xff] %v1674_v48  ;;  %v1675_v54 = vadd.f32 %v1611_v45, %v1547_v49  ;;  %v1548_v55 = vadd.f32 %v2502_v5, %v1239_v50  ;;  %v1241_v56 = vadd.f32 %v1240_v53, %v1047_v52  ;;  %v1051_v58 = vpop.f32.mrf.mxu0  ;;  %v1622_v49 = vld [vmem:[%s2957_s3 + $0x180] sm:$0xff] }
 0x153   :  { %v1244_v59 = vpop.f32.mrf.mxu1 }
 0x154   :  { %1739 = vst [vmem:[%s2958_s4 + $0x128] sm:$0xff] %v1675_v54  ;;  %v1676_v60 = vadd.f32 %v1612_v51, %v1548_v55  ;;  %v1549_v61 = vadd.f32 %v2504_v9, %v1241_v56  ;;  %v1245_v62 = vadd.f32 %v1244_v59, %v1051_v58  ;;  %v1053_v0 = vpop.f32.mrf.mxu0  ;;  %v1623_v55 = vld [vmem:[%s2957_s3 + $0x188] sm:$0xff] }
 0x155   :  { %v1246_v1 = vpop.f32.mrf.mxu1 }
 0x156   :  { %1740 = vst [vmem:[%s2958_s4 + $0x130] sm:$0xff] %v1676_v60  ;;  %v1677_v2 = vadd.f32 %v1613_v57, %v1549_v61  ;;  %v1550_v3 = vadd.f32 %v2502_v5, %v1245_v62  ;;  %v1247_v4 = vadd.f32 %v1246_v1, %v1053_v0  ;;  %v1055_v7 = vpop.f32.mrf.mxu0  ;;  %v1624_v61 = vld [vmem:[%s2957_s3 + $0x190] sm:$0xff] }
 0x157   :  { %v1248_v8 = vpop.f32.mrf.mxu1 }
 0x158   :  { %1741 = vst [vmem:[%s2958_s4 + $0x138] sm:$0xff] %v1677_v2  ;;  %v1678_v10 = vadd.f32 %v1614_v63, %v1550_v3  ;;  %v1551_v11 = vadd.f32 %v2504_v9, %v1247_v4  ;;  %v1249_v12 = vadd.f32 %v1248_v8, %v1055_v7  ;;  %v1057_v14 = vpop.f32.mrf.mxu0  ;;  %v1625_v3 = vld [vmem:[%s2957_s3 + $0x198] sm:$0xff] }
 0x159   :  { %v1250_v15 = vpop.f32.mrf.mxu1 }
 0x15a   :  { %1742 = vst [vmem:[%s2958_s4 + $0x140] sm:$0xff] %v1678_v10  ;;  %v1679_v16 = vadd.f32 %v1615_v6, %v1551_v11  ;;  %v1552_v17 = vadd.f32 %v2502_v5, %v1249_v12  ;;  %v1251_v18 = vadd.f32 %v1250_v15, %v1057_v14  ;;  %v1061_v20 = vpop.f32.mrf.mxu0  ;;  %v1626_v11 = vld [vmem:[%s2957_s3 + $0x1a0] sm:$0xff] }
 0x15b   :  { %v1254_v21 = vpop.f32.mrf.mxu1 }
 0x15c   :  { %1743 = vst [vmem:[%s2958_s4 + $0x148] sm:$0xff] %v1679_v16  ;;  %v1680_v22 = vadd.f32 %v1616_v13, %v1552_v17  ;;  %v1553_v23 = vadd.f32 %v2504_v9, %v1251_v18  ;;  %v1255_v24 = vadd.f32 %v1254_v21, %v1061_v20  ;;  %v1063_v26 = vpop.f32.mrf.mxu0  ;;  %v1627_v17 = vld [vmem:[%s2957_s3 + $0x1a8] sm:$0xff] }
 0x15d   :  { %v1256_v27 = vpop.f32.mrf.mxu1 }
 0x15e   :  { %1744 = vst [vmem:[%s2958_s4 + $0x150] sm:$0xff] %v1680_v22  ;;  %v1681_v28 = vadd.f32 %v1617_v19, %v1553_v23  ;;  %v1554_v29 = vadd.f32 %v2502_v5, %v1255_v24  ;;  %v1257_v30 = vadd.f32 %v1256_v27, %v1063_v26  ;;  %v1065_v32 = vpop.f32.mrf.mxu0  ;;  %v1628_v23 = vld [vmem:[%s2957_s3 + $0x1b0] sm:$0xff] }
 0x15f   :  { %v1258_v33 = vpop.f32.mrf.mxu1 }
 0x160   :  { %1745 = vst [vmem:[%s2958_s4 + $0x158] sm:$0xff] %v1681_v28  ;;  %v1682_v34 = vadd.f32 %v1618_v25, %v1554_v29  ;;  %v1555_v35 = vadd.f32 %v2504_v9, %v1257_v30  ;;  %v1259_v36 = vadd.f32 %v1258_v33, %v1065_v32  ;;  %v1067_v38 = vpop.f32.mrf.mxu0  ;;  %v1629_v29 = vld [vmem:[%s2957_s3 + $0x1b8] sm:$0xff] }
 0x161   :  { %v1260_v39 = vpop.f32.mrf.mxu1 }
 0x162   :  { %1746 = vst [vmem:[%s2958_s4 + $0x160] sm:$0xff] %v1682_v34  ;;  %v1683_v40 = vadd.f32 %v1619_v31, %v1555_v35  ;;  %v1556_v41 = vadd.f32 %v2502_v5, %v1259_v36  ;;  %v1261_v42 = vadd.f32 %v1260_v39, %v1067_v38  ;;  %v1071_v44 = vpop.f32.mrf.mxu0  ;;  %v1630_v35 = vld [vmem:[%s2957_s3 + $0x1c0] sm:$0xff] }
 0x163   :  { %v1264_v45 = vpop.f32.mrf.mxu1 }
 0x164   :  { %1747 = vst [vmem:[%s2958_s4 + $0x168] sm:$0xff] %v1683_v40  ;;  %v1684_v46 = vadd.f32 %v1620_v37, %v1556_v41  ;;  %v1557_v47 = vadd.f32 %v2504_v9, %v1261_v42  ;;  %v1265_v48 = vadd.f32 %v1264_v45, %v1071_v44  ;;  %v1073_v50 = vpop.f32.mrf.mxu0  ;;  %v1631_v41 = vld [vmem:[%s2957_s3 + $0x1c8] sm:$0xff] }
 0x165   :  { %v1266_v51 = vpop.f32.mrf.mxu1 }
 0x166   :  { %1748 = vst [vmem:[%s2958_s4 + $0x170] sm:$0xff] %v1684_v46  ;;  %v1685_v52 = vadd.f32 %v1621_v43, %v1557_v47  ;;  %v1558_v53 = vadd.f32 %v2502_v5, %v1265_v48  ;;  %v1267_v54 = vadd.f32 %v1266_v51, %v1073_v50  ;;  %v1075_v56 = vpop.f32.mrf.mxu0  ;;  %v1632_v47 = vld [vmem:[%s2957_s3 + $0x1d0] sm:$0xff] }
 0x167   :  { %v1268_v57 = vpop.f32.mrf.mxu1 }
 0x168   :  { %1749 = vst [vmem:[%s2958_s4 + $0x178] sm:$0xff] %v1685_v52  ;;  %v1686_v58 = vadd.f32 %v1622_v49, %v1558_v53  ;;  %v1559_v59 = vadd.f32 %v2504_v9, %v1267_v54  ;;  %v1269_v60 = vadd.f32 %v1268_v57, %v1075_v56  ;;  %v1077_v62 = vpop.f32.mrf.mxu0  ;;  %v1633_v53 = vld [vmem:[%s2957_s3 + $0x1d8] sm:$0xff] }
 0x169   :  { %v1270_v63 = vpop.f32.mrf.mxu1 }
 0x16a   :  { %1750 = vst [vmem:[%s2958_s4 + $0x180] sm:$0xff] %v1686_v58  ;;  %v1687_v0 = vadd.f32 %v1623_v55, %v1559_v59  ;;  %v1560_v1 = vadd.f32 %v2502_v5, %v1269_v60  ;;  %v1271_v2 = vadd.f32 %v1270_v63, %v1077_v62  ;;  %v1081_v4 = vpop.f32.mrf.mxu0  ;;  %v1634_v59 = vld [vmem:[%s2957_s3 + $0x1e0] sm:$0xff] }
 0x16b   :  { %v1274_v6 = vpop.f32.mrf.mxu1 }
 0x16c   :  { %1751 = vst [vmem:[%s2958_s4 + $0x188] sm:$0xff] %v1687_v0  ;;  %v1688_v7 = vadd.f32 %v1624_v61, %v1560_v1  ;;  %v1561_v8 = vadd.f32 %v2504_v9, %v1271_v2  ;;  %v1275_v10 = vadd.f32 %v1274_v6, %v1081_v4  ;;  %v1083_v12 = vpop.f32.mrf.mxu0  ;;  %v1635_v1 = vld [vmem:[%s2957_s3 + $0x1e8] sm:$0xff] }
 0x16d   :  { %v1276_v13 = vpop.f32.mrf.mxu1 }
 0x16e   :  { %1752 = vst [vmem:[%s2958_s4 + $0x190] sm:$0xff] %v1688_v7  ;;  %v1689_v14 = vadd.f32 %v1625_v3, %v1561_v8  ;;  %v1562_v15 = vadd.f32 %v2502_v5, %v1275_v10  ;;  %v1277_v16 = vadd.f32 %v1276_v13, %v1083_v12  ;;  %v1085_v18 = vpop.f32.mrf.mxu0  ;;  %v1636_v8 = vld [vmem:[%s2957_s3 + $0x1f0] sm:$0xff] }
 0x16f   :  { %v1278_v19 = vpop.f32.mrf.mxu1 }
 0x170   :  { %1753 = vst [vmem:[%s2958_s4 + $0x198] sm:$0xff] %v1689_v14  ;;  %v1690_v20 = vadd.f32 %v1626_v11, %v1562_v15  ;;  %v1563_v21 = vadd.f32 %v2504_v9, %v1277_v16  ;;  %v1279_v22 = vadd.f32 %v1278_v19, %v1085_v18  ;;  %v1087_v24 = vpop.f32.mrf.mxu0  ;;  %v1637_v15 = vld [vmem:[%s2957_s3 + $0x1f8] sm:$0xff] }
 0x171   :  { %v1280_v25 = vpop.f32.mrf.mxu1 }
 0x172   :  { %1754 = vst [vmem:[%s2958_s4 + $0x1a0] sm:$0xff] %v1690_v20  ;;  %v1691_v26 = vadd.f32 %v1627_v17, %v1563_v21  ;;  %v1564_v27 = vadd.f32 %v2502_v5, %v1279_v22  ;;  %v1281_v28 = vadd.f32 %v1280_v25, %v1087_v24  ;;  %v1091_v30 = vpop.f32.mrf.mxu0 }
 0x173   :  { %v1284_v31 = vpop.f32.mrf.mxu1 }
 0x174   :  { %1755 = vst [vmem:[%s2958_s4 + $0x1a8] sm:$0xff] %v1691_v26  ;;  %v1692_v32 = vadd.f32 %v1628_v23, %v1564_v27  ;;  %v1565_v33 = vadd.f32 %v2504_v9, %v1281_v28  ;;  %v1285_v34 = vadd.f32 %v1284_v31, %v1091_v30  ;;  %v1093_v36 = vpop.f32.mrf.mxu0 }
 0x175   :  { %v1286_v37 = vpop.f32.mrf.mxu1 }
 0x176   :  { %1756 = vst [vmem:[%s2958_s4 + $0x1b0] sm:$0xff] %v1692_v32  ;;  %v1693_v38 = vadd.f32 %v1629_v29, %v1565_v33  ;;  %v1566_v39 = vadd.f32 %v2502_v5, %v1285_v34  ;;  %v1287_v40 = vadd.f32 %v1286_v37, %v1093_v36  ;;  %v1095_v42 = vpop.f32.mrf.mxu0 }
 0x177   :  { %v1288_v43 = vpop.f32.mrf.mxu1 }
 0x178   :  { %1757 = vst [vmem:[%s2958_s4 + $0x1b8] sm:$0xff] %v1693_v38  ;;  %v1694_v44 = vadd.f32 %v1630_v35, %v1566_v39  ;;  %v1567_v45 = vadd.f32 %v2504_v9, %v1287_v40  ;;  %v1289_v46 = vadd.f32 %v1288_v43, %v1095_v42  ;;  %v1097_v48 = vpop.f32.mrf.mxu0 }
 0x179   :  { %v1290_v49 = vpop.f32.mrf.mxu1 }
 0x17a   :  { %1758 = vst [vmem:[%s2958_s4 + $0x1c0] sm:$0xff] %v1694_v44  ;;  %v1695_v50 = vadd.f32 %v1631_v41, %v1567_v45  ;;  %v1568_v51 = vadd.f32 %v2502_v5, %v1289_v46  ;;  %v1291_v52 = vadd.f32 %v1290_v49, %v1097_v48  ;;  %v1101_v54 = vpop.f32.mrf.mxu0 }
 0x17b   :  { %v1294_v55 = vpop.f32.mrf.mxu1 }
 0x17c   :  { %1759 = vst [vmem:[%s2958_s4 + $0x1c8] sm:$0xff] %v1695_v50  ;;  %v1696_v56 = vadd.f32 %v1632_v47, %v1568_v51  ;;  %v1569_v57 = vadd.f32 %v2504_v9, %v1291_v52  ;;  %v1295_v58 = vadd.f32 %v1294_v55, %v1101_v54  ;;  %v1103_v60 = vpop.f32.mrf.mxu0 }
 0x17d   :  { %v1296_v61 = vpop.f32.mrf.mxu1 }
 0x17e   :  { %1760 = vst [vmem:[%s2958_s4 + $0x1d0] sm:$0xff] %v1696_v56  ;;  %v1697_v62 = vadd.f32 %v1633_v53, %v1569_v57  ;;  %v1570_v63 = vadd.f32 %v2502_v5, %v1295_v58  ;;  %v1297_v0 = vadd.f32 %v1296_v61, %v1103_v60  ;;  %v1105_v2 = vpop.f32.mrf.mxu0 }
 0x17f   :  { %v1298_v3 = vpop.f32.mrf.mxu1 }
 0x180   :  { %1761 = vst [vmem:[%s2958_s4 + $0x1d8] sm:$0xff] %v1697_v62  ;;  %v1698_v4 = vadd.f32 %v1634_v59, %v1570_v63  ;;  %v1571_v6 = vadd.f32 %v2504_v9, %v1297_v0  ;;  %v1299_v7 = vadd.f32 %v1298_v3, %v1105_v2  ;;  %v1107_v10 = vpop.f32.mrf.mxu0 }
 0x181   :  { %v1300_v11 = vpop.f32.mrf.mxu1 }
 0x182   :  { %1762 = vst [vmem:[%s2958_s4 + $0x1e0] sm:$0xff] %v1698_v4  ;;  %v1699_v12 = vadd.f32 %v1635_v1, %v1571_v6  ;;  %v1572_v13 = vadd.f32 %v2502_v5, %v1299_v7  ;;  %v1301_v14 = vadd.f32 %v1300_v11, %v1107_v10 }
 0x184   :  { %1763 = vst [vmem:[%s2958_s4 + $0x1e8] sm:$0xff] %v1699_v12  ;;  %v1700_v16 = vadd.f32 %v1636_v8, %v1572_v13  ;;  %v1573_v17 = vadd.f32 %v2504_v9, %v1301_v14 }
 0x186   :  { %1764 = vst [vmem:[%s2958_s4 + $0x1f0] sm:$0xff] %v1700_v16  ;;  %v1701_v18 = vadd.f32 %v1637_v15, %v1573_v17 }
 0x188   :  { %1765 = vst [vmem:[%s2958_s4 + $0x1f8] sm:$0xff] %v1701_v18 }

// kernel: base_agent_forward.14
= control target key start
LH: loop header
LB: loop body
LE: loop exit
PB: predicated region body
PF: predicated region fallthrough
CT: control target
= control target key end

     0   :  { %s5545_s1 = inlined_call_operand.vmem [shape: bf16[256,512], index: 1, kind: input, shape index: {}]   ;;  %s5546_s0 = inlined_call_operand.vmem [shape: bf16[256,256], index: 0, kind: input, shape index: {}]   ;;  %s5547_s2 = inlined_call_operand.vmem [shape: f32[1,512], index: 2, kind: input, shape index: {}]   ;;  %s5548_s3 = inlined_call_operand.vmem [shape: bf16[256,512], index: 3, kind: output, shape index: {}]  }
   0x1   :  { %v3601_v0 = vld [vmem:[%s5545_s1 + $0xe4] ss:$16 sps:$4 sm:$0xff]   ;;  %v3603_v1 = vld [vmem:[%s5545_s1 + $0xec] ss:$16 sps:$4 sm:$0xff]   ;;  %v3605_v2 = vld [vmem:[%s5545_s1 + $0xe0] ss:$16 sps:$4 sm:$0xff]  }
   0x2   :  { %850 = vmatprep.subr.bf16.mxu0 %v3601_v0  ;;  %v3606_v3 = vld [vmem:[%s5545_s1 + $0xe8] ss:$16 sps:$4 sm:$0xff]   ;;  %1043 = vmatprep.subr.bf16.mxu1 %v3603_v1  ;;  %v3607_v4 = vld [vmem:[%s5545_s1 + $0xc4] ss:$16 sps:$4 sm:$0xff]   ;;  %v3609_v5 = vld [vmem:[%s5545_s1 + $0xcc] ss:$16 sps:$4 sm:$0xff]  }
   0x3   :  { %851 = vmatpush1.bf16.msra.mxu0 %v3605_v2  ;;  %1044 = vmatpush1.bf16.msra.mxu1 %v3606_v3  ;;  %v3611_v6 = vld [vmem:[%s5545_s1 + $0xc0] ss:$16 sps:$4 sm:$0xff]   ;;  %v3612_v7 = vld [vmem:[%s5545_s1 + $0xc8] ss:$16 sps:$4 sm:$0xff]   ;;  %v3613_v8 = vld [vmem:[%s5545_s1 + $0xa4] ss:$16 sps:$4 sm:$0xff]  }
   0x4   :  { %852 = vmatprep.subr.bf16.mxu0 %v3607_v4  ;;  %1045 = vmatprep.subr.bf16.mxu1 %v3609_v5  ;;  %v3615_v9 = vld [vmem:[%s5545_s1 + $0xac] ss:$16 sps:$4 sm:$0xff]   ;;  %v3617_v10 = vld [vmem:[%s5545_s1 + $0xa0] ss:$16 sps:$4 sm:$0xff]   ;;  %v3618_v11 = vld [vmem:[%s5545_s1 + $0xa8] ss:$16 sps:$4 sm:$0xff]  }
   0x5   :  { %v3619_v12 = vld [vmem:[%s5545_s1 + $0x84] ss:$16 sps:$4 sm:$0xff]   ;;  %v3621_v13 = vld [vmem:[%s5545_s1 + $0x8c] ss:$16 sps:$4 sm:$0xff]   ;;  %v3623_v14 = vld [vmem:[%s5545_s1 + $0x80] ss:$16 sps:$4 sm:$0xff]  }
   0x6   :  { %v3624_v15 = vld [vmem:[%s5545_s1 + $0x88] ss:$16 sps:$4 sm:$0xff]   ;;  %v3625_v16 = vld [vmem:[%s5545_s1 + $0x64] ss:$16 sps:$4 sm:$0xff]   ;;  %v3627_v17 = vld [vmem:[%s5545_s1 + $0x6c] ss:$16 sps:$4 sm:$0xff]  }
   0x7   :  { %853 = vmatpush1.bf16.msra.mxu0 %v3611_v6  ;;  %1046 = vmatpush1.bf16.msra.mxu1 %v3612_v7  ;;  %v3629_v18 = vld [vmem:[%s5545_s1 + $0x60] ss:$16 sps:$4 sm:$0xff]   ;;  %v3630_v19 = vld [vmem:[%s5545_s1 + $0x68] ss:$16 sps:$4 sm:$0xff]   ;;  %v3631_v20 = vld [vmem:[%s5545_s1 + $0x44] ss:$16 sps:$4 sm:$0xff]  }
   0x8   :  { %854 = vmatprep.subr.bf16.mxu0 %v3613_v8  ;;  %1047 = vmatprep.subr.bf16.mxu1 %v3615_v9  ;;  %v3633_v21 = vld [vmem:[%s5545_s1 + $0x4c] ss:$16 sps:$4 sm:$0xff]   ;;  %v3635_v22 = vld [vmem:[%s5545_s1 + $0x40] ss:$16 sps:$4 sm:$0xff]   ;;  %v3636_v23 = vld [vmem:[%s5545_s1 + $0x48] ss:$16 sps:$4 sm:$0xff]  }
   0x9   :  { %v3637_v24 = vld [vmem:[%s5545_s1 + $0x24] ss:$16 sps:$4 sm:$0xff]   ;;  %v3639_v25 = vld [vmem:[%s5545_s1 + $0x2c] ss:$16 sps:$4 sm:$0xff]   ;;  %v3641_v26 = vld [vmem:[%s5545_s1 + $0x20] ss:$16 sps:$4 sm:$0xff]  }
   0xa   :  { %v3642_v27 = vld [vmem:[%s5545_s1 + $0x28] ss:$16 sps:$4 sm:$0xff]   ;;  %v3643_v28 = vld [vmem:[%s5545_s1 + $0x4] ss:$16 sps:$4 sm:$0xff]   ;;  %v3645_v29 = vld [vmem:[%s5545_s1 + $0xc] ss:$16 sps:$4 sm:$0xff]  }
   0xb   :  { %855 = vmatpush1.bf16.msra.mxu0 %v3617_v10  ;;  %1048 = vmatpush1.bf16.msra.mxu1 %v3618_v11  ;;  %v3647_v30 = vld [vmem:[%s5545_s1] ss:$16 sps:$4 sm:$0xff]   ;;  %v3648_v31 = vld [vmem:[%s5545_s1 + $0x8] ss:$16 sps:$4 sm:$0xff]   ;;  %v3649_v32 = vld [vmem:[%s5545_s1 + $0x1e4] ss:$16 sps:$4 sm:$0xff]  }
   0xc   :  { %856 = vmatprep.subr.bf16.mxu0 %v3619_v12  ;;  %1049 = vmatprep.subr.bf16.mxu1 %v3621_v13  ;;  %v3651_v33 = vld [vmem:[%s5545_s1 + $0x1ec] ss:$16 sps:$4 sm:$0xff]   ;;  %v3653_v34 = vld [vmem:[%s5545_s1 + $0x1e0] ss:$16 sps:$4 sm:$0xff]   ;;  %v3654_v35 = vld [vmem:[%s5545_s1 + $0x1e8] ss:$16 sps:$4 sm:$0xff]  }
   0xd   :  { %v3655_v36 = vld [vmem:[%s5545_s1 + $0x1c4] ss:$16 sps:$4 sm:$0xff]   ;;  %v3657_v37 = vld [vmem:[%s5545_s1 + $0x1cc] ss:$16 sps:$4 sm:$0xff]   ;;  %v3659_v38 = vld [vmem:[%s5545_s1 + $0x1c0] ss:$16 sps:$4 sm:$0xff]  }
   0xe   :  { %v3660_v39 = vld [vmem:[%s5545_s1 + $0x1c8] ss:$16 sps:$4 sm:$0xff]   ;;  %v3661_v40 = vld [vmem:[%s5545_s1 + $0x1a4] ss:$16 sps:$4 sm:$0xff]   ;;  %v3663_v41 = vld [vmem:[%s5545_s1 + $0x1ac] ss:$16 sps:$4 sm:$0xff]  }
   0xf   :  { %857 = vmatpush1.bf16.msra.mxu0 %v3623_v14  ;;  %1050 = vmatpush1.bf16.msra.mxu1 %v3624_v15  ;;  %v3665_v42 = vld [vmem:[%s5545_s1 + $0x1a0] ss:$16 sps:$4 sm:$0xff]   ;;  %v3666_v43 = vld [vmem:[%s5545_s1 + $0x1a8] ss:$16 sps:$4 sm:$0xff]   ;;  %v3667_v44 = vld [vmem:[%s5545_s1 + $0x184] ss:$16 sps:$4 sm:$0xff]  }
  0x10   :  { %858 = vmatprep.subr.bf16.mxu0 %v3625_v16  ;;  %1051 = vmatprep.subr.bf16.mxu1 %v3627_v17  ;;  %v3669_v45 = vld [vmem:[%s5545_s1 + $0x18c] ss:$16 sps:$4 sm:$0xff]   ;;  %v3671_v46 = vld [vmem:[%s5545_s1 + $0x180] ss:$16 sps:$4 sm:$0xff]   ;;  %v3672_v47 = vld [vmem:[%s5545_s1 + $0x188] ss:$16 sps:$4 sm:$0xff]  }
  0x11   :  { %v3699_v48 = vld [vmem:[%s5546_s0 + $0x4] ss:$8 sps:$4 sm:$0xff]   ;;  %v3677_v51 = vld [vmem:[%s5545_s1 + $0x160] ss:$16 sps:$4 sm:$0xff]   ;;  %v3678_v52 = vld [vmem:[%s5545_s1 + $0x168] ss:$16 sps:$4 sm:$0xff]  }
  0x12   :  { %v3673_v49 = vld [vmem:[%s5545_s1 + $0x164] ss:$16 sps:$4 sm:$0xff]   ;;  %v3675_v50 = vld [vmem:[%s5545_s1 + $0x16c] ss:$16 sps:$4 sm:$0xff]   ;;  %882 = vmatprep.mubr.bf16.mxu0 %v3699_v48  ;;  %1075 = vmatprep.mubr.bf16.mxu1 %v3699_v48  ;;  %v3683_v55 = vld [vmem:[%s5545_s1 + $0x140] ss:$16 sps:$4 sm:$0xff]  }
  0x13   :  { %859 = vmatpush1.bf16.msra.mxu0 %v3629_v18  ;;  %1052 = vmatpush1.bf16.msra.mxu1 %v3630_v19  ;;  %v3679_v53 = vld [vmem:[%s5545_s1 + $0x144] ss:$16 sps:$4 sm:$0xff]   ;;  %v3681_v54 = vld [vmem:[%s5545_s1 + $0x14c] ss:$16 sps:$4 sm:$0xff]   ;;  %v3684_v56 = vld [vmem:[%s5545_s1 + $0x148] ss:$16 sps:$4 sm:$0xff]  }
  0x14   :  { %860 = vmatprep.subr.bf16.mxu0 %v3631_v20  ;;  %1053 = vmatprep.subr.bf16.mxu1 %v3633_v21  ;;  %v3685_v57 = vld [vmem:[%s5545_s1 + $0x124] ss:$16 sps:$4 sm:$0xff]   ;;  %v3687_v58 = vld [vmem:[%s5545_s1 + $0x12c] ss:$16 sps:$4 sm:$0xff]   ;;  %v3689_v59 = vld [vmem:[%s5545_s1 + $0x120] ss:$16 sps:$4 sm:$0xff]  }
  0x15   :  { %v3690_v60 = vld [vmem:[%s5545_s1 + $0x128] ss:$16 sps:$4 sm:$0xff]   ;;  %v3691_v61 = vld [vmem:[%s5545_s1 + $0x104] ss:$16 sps:$4 sm:$0xff]   ;;  %v3693_v62 = vld [vmem:[%s5545_s1 + $0x10c] ss:$16 sps:$4 sm:$0xff]  }
  0x16   :  { %v3695_v63 = vld [vmem:[%s5545_s1 + $0x100] ss:$16 sps:$4 sm:$0xff]   ;;  %v3696_v0 = vld [vmem:[%s5545_s1 + $0x108] ss:$16 sps:$4 sm:$0xff]   ;;  %v3700_v2 = vld [vmem:[%s5546_s0 + $0x14] ss:$8 sps:$4 sm:$0xff]  }
  0x17   :  { %861 = vmatpush1.bf16.msra.mxu0 %v3635_v22  ;;  %1054 = vmatpush1.bf16.msra.mxu1 %v3636_v23  ;;  %v3697_v1 = vld [vmem:[%s5546_s0] ss:$8 sps:$4 sm:$0xff]   ;;  %v3702_v3 = vld [vmem:[%s5546_s0 + $0x10] ss:$8 sps:$4 sm:$0xff]   ;;  %v3703_v4 = vld [vmem:[%s5546_s0 + $0x24] ss:$8 sps:$4 sm:$0xff]  }
  0x18   :  { %862 = vmatprep.subr.bf16.mxu0 %v3637_v24  ;;  %1055 = vmatprep.subr.bf16.mxu1 %v3639_v25  ;;  %v3705_v5 = vld [vmem:[%s5546_s0 + $0x20] ss:$8 sps:$4 sm:$0xff]   ;;  %v3706_v6 = vld [vmem:[%s5546_s0 + $0x34] ss:$8 sps:$4 sm:$0xff]   ;;  %v3708_v7 = vld [vmem:[%s5546_s0 + $0x30] ss:$8 sps:$4 sm:$0xff]  }
  0x19   :  { %v3709_v8 = vld [vmem:[%s5546_s0 + $0x44] ss:$8 sps:$4 sm:$0xff]   ;;  %v3711_v9 = vld [vmem:[%s5546_s0 + $0x40] ss:$8 sps:$4 sm:$0xff]   ;;  %v3712_v10 = vld [vmem:[%s5546_s0 + $0x54] ss:$8 sps:$4 sm:$0xff]  }
  0x1a   :  { %v3714_v11 = vld [vmem:[%s5546_s0 + $0x50] ss:$8 sps:$4 sm:$0xff]   ;;  %v3715_v12 = vld [vmem:[%s5546_s0 + $0x64] ss:$8 sps:$4 sm:$0xff]   ;;  %v3717_v13 = vld [vmem:[%s5546_s0 + $0x60] ss:$8 sps:$4 sm:$0xff]  }
  0x1b   :  { %863 = vmatpush1.bf16.msra.mxu0 %v3641_v26  ;;  %1056 = vmatpush1.bf16.msra.mxu1 %v3642_v27  ;;  %v3718_v14 = vld [vmem:[%s5546_s0 + $0x74] ss:$8 sps:$4 sm:$0xff]   ;;  %v3720_v15 = vld [vmem:[%s5546_s0 + $0x70] ss:$8 sps:$4 sm:$0xff]   ;;  %v3721_v16 = vld [vmem:[%s5546_s0 + $0x84] ss:$8 sps:$4 sm:$0xff]  }
  0x1c   :  { %864 = vmatprep.subr.bf16.mxu0 %v3643_v28  ;;  %1057 = vmatprep.subr.bf16.mxu1 %v3645_v29  ;;  %v3723_v17 = vld [vmem:[%s5546_s0 + $0x80] ss:$8 sps:$4 sm:$0xff]   ;;  %v3724_v18 = vld [vmem:[%s5546_s0 + $0x94] ss:$8 sps:$4 sm:$0xff]   ;;  %v3726_v19 = vld [vmem:[%s5546_s0 + $0x90] ss:$8 sps:$4 sm:$0xff]  }
  0x1d   :  { %v3727_v20 = vld [vmem:[%s5546_s0 + $0xa4] ss:$8 sps:$4 sm:$0xff]   ;;  %v3729_v21 = vld [vmem:[%s5546_s0 + $0xa0] ss:$8 sps:$4 sm:$0xff]   ;;  %v3730_v22 = vld [vmem:[%s5546_s0 + $0xb4] ss:$8 sps:$4 sm:$0xff]  }
  0x1e   :  { %v3732_v23 = vld [vmem:[%s5546_s0 + $0xb0] ss:$8 sps:$4 sm:$0xff]   ;;  %v3733_v24 = vld [vmem:[%s5546_s0 + $0xc4] ss:$8 sps:$4 sm:$0xff]   ;;  %v3735_v25 = vld [vmem:[%s5546_s0 + $0xc0] ss:$8 sps:$4 sm:$0xff]  }
  0x1f   :  { %865 = vmatpush1.bf16.msra.mxu0 %v3647_v30  ;;  %1058 = vmatpush1.bf16.msra.mxu1 %v3648_v31  ;;  %v3736_v26 = vld [vmem:[%s5546_s0 + $0xd4] ss:$8 sps:$4 sm:$0xff]   ;;  %v3738_v27 = vld [vmem:[%s5546_s0 + $0xd0] ss:$8 sps:$4 sm:$0xff]   ;;  %v3739_v28 = vld [vmem:[%s5546_s0 + $0xe4] ss:$8 sps:$4 sm:$0xff]  }
  0x20   :  { %866 = vmatprep.subr.bf16.mxu0 %v3649_v32  ;;  %1059 = vmatprep.subr.bf16.mxu1 %v3651_v33  ;;  %v3741_v29 = vld [vmem:[%s5546_s0 + $0xe0] ss:$8 sps:$4 sm:$0xff]   ;;  %v3742_v30 = vld [vmem:[%s5546_s0 + $0xf4] ss:$8 sps:$4 sm:$0xff]   ;;  %v3744_v31 = vld [vmem:[%s5546_s0 + $0xf0] ss:$8 sps:$4 sm:$0xff]   ;;  %v1625_v32 = vlaneseq }
  0x22   :  { %v1626_v33 = vshrl.u32 %v1625_v32, 7 }
  0x23   :  { %867 = vmatpush2.bf16.msra.mxu0 %v3653_v34  ;;  %1060 = vmatpush2.bf16.msra.mxu1 %v3654_v35 }
  0x24   :  { %868 = vmatprep.subr.bf16.mxu0 %v3655_v36  ;;  %1061 = vmatprep.subr.bf16.mxu1 %v3657_v37  ;;  %v1627_v34 = vsub.s32 0, %v1626_v33  ;;  %v1635_v35 = vsub.s32 2, %v1626_v33  ;;  %v1623_v36 = vld [vmem:[%s5547_s2] sm:$0xf]  ;;  %v1631_v37 = vsub.s32 1, %v1626_v33 }
  0x27   :  { %869 = vmatpush2.bf16.msra.mxu0 %v3659_v38  ;;  %1062 = vmatpush2.bf16.msra.mxu1 %v3660_v39  ;;  %v1639_v38 = vsub.s32 3, %v1626_v33  ;;  %v4312_v39 = vrot.slane %v1623_v36, %v1627_v34 }
  0x28   :  { %870 = vmatprep.subr.bf16.mxu0 %v3661_v40  ;;  %1063 = vmatprep.subr.bf16.mxu1 %v3663_v41  ;;  %v4314_v40 = vrot.slane %v1623_v36, %v1635_v35  ;;  %v4316_v41 = vrot.slane %v1623_v36, %v1631_v37 }
  0x2b   :  { %871 = vmatpush2.bf16.msra.mxu0 %v3665_v42  ;;  %1064 = vmatpush2.bf16.msra.mxu1 %v3666_v43  ;;  %v4318_v42 = vrot.slane %v1623_v36, %v1639_v38 }
  0x2c   :  { %872 = vmatprep.subr.bf16.mxu0 %v3667_v44  ;;  %1065 = vmatprep.subr.bf16.mxu1 %v3669_v45 }
  0x2f   :  { %873 = vmatpush2.bf16.msra.mxu0 %v3671_v46  ;;  %1066 = vmatpush2.bf16.msra.mxu1 %v3672_v47 }
  0x30   :  { %874 = vmatprep.subr.bf16.mxu0 %v3673_v49  ;;  %1067 = vmatprep.subr.bf16.mxu1 %v3675_v50 }
  0x33   :  { %875 = vmatpush2.bf16.msra.mxu0 %v3677_v51  ;;  %1068 = vmatpush2.bf16.msra.mxu1 %v3678_v52 }
  0x34   :  { %876 = vmatprep.subr.bf16.mxu0 %v3679_v53  ;;  %1069 = vmatprep.subr.bf16.mxu1 %v3681_v54 }
  0x37   :  { %877 = vmatpush2.bf16.msra.mxu0 %v3683_v55  ;;  %1070 = vmatpush2.bf16.msra.mxu1 %v3684_v56 }
  0x38   :  { %878 = vmatprep.subr.bf16.mxu0 %v3685_v57  ;;  %1071 = vmatprep.subr.bf16.mxu1 %v3687_v58 }
  0x3b   :  { %879 = vmatpush2.bf16.msra.mxu0 %v3689_v59  ;;  %1072 = vmatpush2.bf16.msra.mxu1 %v3690_v60 }
  0x3c   :  { %880 = vmatprep.subr.bf16.mxu0 %v3691_v61  ;;  %1073 = vmatprep.subr.bf16.mxu1 %v3693_v62 }
  0x3f   :  { %881 = vmatpush2.bf16.msra.mxu0 %v3695_v63  ;;  %1074 = vmatpush2.bf16.msra.mxu1 %v3696_v0 }
  0x42   :  { %883 = vmatmul.mubr.bf16.vlgmr.msra.gmra.mxu0 %v3697_v1  ;;  %1076 = vmatmul.mubr.bf16.vlgmr.msra.gmra.mxu1 %v3697_v1 }
  0x43   :  { %892 = vmatprep.mubr.bf16.mxu0 %v3700_v2  ;;  %1085 = vmatprep.mubr.bf16.mxu1 %v3700_v2 }
  0x4a   :  { %893 = vmatmul.mubr.bf16.gmra.mxu0 %v3702_v3  ;;  %1086 = vmatmul.mubr.bf16.gmra.mxu1 %v3702_v3 }
  0x4b   :  { %902 = vmatprep.mubr.bf16.mxu0 %v3703_v4  ;;  %1095 = vmatprep.mubr.bf16.mxu1 %v3703_v4 }
  0x52   :  { %903 = vmatmul.mubr.bf16.gmra.mxu0 %v3705_v5  ;;  %1096 = vmatmul.mubr.bf16.gmra.mxu1 %v3705_v5 }
  0x53   :  { %912 = vmatprep.mubr.bf16.mxu0 %v3706_v6  ;;  %1105 = vmatprep.mubr.bf16.mxu1 %v3706_v6 }
  0x5a   :  { %913 = vmatmul.mubr.bf16.gmra.mxu0 %v3708_v7  ;;  %1106 = vmatmul.mubr.bf16.gmra.mxu1 %v3708_v7 }
  0x5b   :  { %922 = vmatprep.mubr.bf16.mxu0 %v3709_v8  ;;  %1115 = vmatprep.mubr.bf16.mxu1 %v3709_v8 }
  0x62   :  { %923 = vmatmul.mubr.bf16.gmra.mxu0 %v3711_v9  ;;  %1116 = vmatmul.mubr.bf16.gmra.mxu1 %v3711_v9 }
  0x63   :  { %932 = vmatprep.mubr.bf16.mxu0 %v3712_v10  ;;  %1125 = vmatprep.mubr.bf16.mxu1 %v3712_v10 }
  0x6a   :  { %933 = vmatmul.mubr.bf16.gmra.mxu0 %v3714_v11  ;;  %1126 = vmatmul.mubr.bf16.gmra.mxu1 %v3714_v11 }
  0x6b   :  { %942 = vmatprep.mubr.bf16.mxu0 %v3715_v12  ;;  %1135 = vmatprep.mubr.bf16.mxu1 %v3715_v12 }
  0x72   :  { %943 = vmatmul.mubr.bf16.gmra.mxu0 %v3717_v13  ;;  %1136 = vmatmul.mubr.bf16.gmra.mxu1 %v3717_v13 }
  0x73   :  { %952 = vmatprep.mubr.bf16.mxu0 %v3718_v14  ;;  %1145 = vmatprep.mubr.bf16.mxu1 %v3718_v14 }
  0x7a   :  { %953 = vmatmul.mubr.bf16.gmra.mxu0 %v3720_v15  ;;  %1146 = vmatmul.mubr.bf16.gmra.mxu1 %v3720_v15 }
  0x7b   :  { %962 = vmatprep.mubr.bf16.mxu0 %v3721_v16  ;;  %1155 = vmatprep.mubr.bf16.mxu1 %v3721_v16 }
  0x82   :  { %963 = vmatmul.mubr.bf16.gmra.mxu0 %v3723_v17  ;;  %1156 = vmatmul.mubr.bf16.gmra.mxu1 %v3723_v17 }
  0x83   :  { %972 = vmatprep.mubr.bf16.mxu0 %v3724_v18  ;;  %1165 = vmatprep.mubr.bf16.mxu1 %v3724_v18 }
  0x8a   :  { %973 = vmatmul.mubr.bf16.gmra.mxu0 %v3726_v19  ;;  %1166 = vmatmul.mubr.bf16.gmra.mxu1 %v3726_v19 }
  0x8b   :  { %982 = vmatprep.mubr.bf16.mxu0 %v3727_v20  ;;  %1175 = vmatprep.mubr.bf16.mxu1 %v3727_v20 }
  0x92   :  { %983 = vmatmul.mubr.bf16.gmra.mxu0 %v3729_v21  ;;  %1176 = vmatmul.mubr.bf16.gmra.mxu1 %v3729_v21 }
  0x93   :  { %992 = vmatprep.mubr.bf16.mxu0 %v3730_v22  ;;  %1185 = vmatprep.mubr.bf16.mxu1 %v3730_v22 }
  0x9a   :  { %993 = vmatmul.mubr.bf16.gmra.mxu0 %v3732_v23  ;;  %1186 = vmatmul.mubr.bf16.gmra.mxu1 %v3732_v23 }
  0x9b   :  { %1002 = vmatprep.mubr.bf16.mxu0 %v3733_v24  ;;  %1195 = vmatprep.mubr.bf16.mxu1 %v3733_v24 }
  0xa2   :  { %1003 = vmatmul.mubr.bf16.gmra.mxu0 %v3735_v25  ;;  %1196 = vmatmul.mubr.bf16.gmra.mxu1 %v3735_v25 }
  0xa3   :  { %1012 = vmatprep.mubr.bf16.mxu0 %v3736_v26  ;;  %1205 = vmatprep.mubr.bf16.mxu1 %v3736_v26 }
  0xaa   :  { %1013 = vmatmul.mubr.bf16.gmra.mxu0 %v3738_v27  ;;  %1206 = vmatmul.mubr.bf16.gmra.mxu1 %v3738_v27 }
  0xab   :  { %1022 = vmatprep.mubr.bf16.mxu0 %v3739_v28  ;;  %1215 = vmatprep.mubr.bf16.mxu1 %v3739_v28 }
  0xb2   :  { %1023 = vmatmul.mubr.bf16.gmra.mxu0 %v3741_v29  ;;  %1216 = vmatmul.mubr.bf16.gmra.mxu1 %v3741_v29 }
  0xb3   :  { %1032 = vmatprep.mubr.bf16.mxu0 %v3742_v30  ;;  %1225 = vmatprep.mubr.bf16.mxu1 %v3742_v30 }
  0xba   :  { %1033 = vmatmul.mubr.bf16.gmra.mxu0 %v3744_v31  ;;  %1226 = vmatmul.mubr.bf16.gmra.mxu1 %v3744_v31 }
 0x102   :  { %v884_v43 = vpop.f32.mrf.mxu0  ;;  %v1077_v44 = vpop.f32.mrf.mxu1 }
 0x103   :  { %v4321_v45 = vadd.f32 %v4312_v39, %v884_v43  ;;  %v4324_v46 = vadd.f32 %v4314_v40, %v1077_v44 }
 0x104   :  { %v886_v47 = vpop.f32.mrf.mxu0  ;;  %v1079_v48 = vpop.f32.mrf.mxu1 }
 0x105   :  { %v1773_v49 = vmul.f32 %v4321_v45, %v4321_v45  ;;  %v1775_v50 = vmul.f32 %v4324_v46, %v4324_v46  ;;  %v4331_v51 = vadd.f32 %v4316_v41, %v886_v47  ;;  %v4334_v52 = vadd.f32 %v4318_v42, %v1079_v48 }
 0x106   :  { %v888_v53 = vpop.f32.mrf.mxu0  ;;  %v1081_v54 = vpop.f32.mrf.mxu1 }
 0x107   :  { %v1901_v55 = vmul.f32 %v1773_v49, %v4321_v45  ;;  %v1903_v56 = vmul.f32 %v1775_v50, %v4324_v46  ;;  %v1774_v57 = vmul.f32 %v4331_v51, %v4331_v51  ;;  %v1776_v58 = vmul.f32 %v4334_v52, %v4334_v52 }
 0x108   :  { %v4343_v59 = vadd.f32 %v4312_v39, %v888_v53  ;;  %v4346_v60 = vadd.f32 %v4314_v40, %v1081_v54  ;;  %v890_v61 = vpop.f32.mrf.mxu0  ;;  %v1083_v62 = vpop.f32.mrf.mxu1 }
 0x109   :  { %v2029_v63 = vmul.f32 0.044715, %v1901_v55  ;;  %v2031_v0 = vmul.f32 0.044715, %v1903_v56  ;;  %v1902_v1 = vmul.f32 %v1774_v57, %v4331_v51  ;;  %v1904_v2 = vmul.f32 %v1776_v58, %v4334_v52 }
 0x10a   :  { %v1777_v3 = vmul.f32 %v4343_v59, %v4343_v59  ;;  %v1779_v4 = vmul.f32 %v4346_v60, %v4346_v60  ;;  %v4355_v5 = vadd.f32 %v4316_v41, %v890_v61  ;;  %v4358_v6 = vadd.f32 %v4318_v42, %v1083_v62  ;;  %v894_v7 = vpop.f32.mrf.mxu0  ;;  %v1087_v8 = vpop.f32.mrf.mxu1 }
 0x10b   :  { %v2157_v9 = vadd.f32 %v2029_v63, %v4321_v45  ;;  %v2159_v10 = vadd.f32 %v2031_v0, %v4324_v46  ;;  %v2030_v11 = vmul.f32 0.044715, %v1902_v1  ;;  %v2032_v12 = vmul.f32 0.044715, %v1904_v2 }
 0x10c   :  { %v1905_v13 = vmul.f32 %v1777_v3, %v4343_v59  ;;  %v1907_v14 = vmul.f32 %v1779_v4, %v4346_v60  ;;  %v1778_v15 = vmul.f32 %v4355_v5, %v4355_v5  ;;  %v1780_v16 = vmul.f32 %v4358_v6, %v4358_v6  ;;  %v896_v21 = vpop.f32.mrf.mxu0  ;;  %v1089_v26 = vpop.f32.mrf.mxu1 }
 0x10d   :  { %v2285_v17 = vmul.f32 0.7978846, %v2157_v9  ;;  %v2287_v18 = vmul.f32 0.7978846, %v2159_v10  ;;  %v2158_v19 = vadd.f32 %v2030_v11, %v4331_v51  ;;  %v2160_v20 = vadd.f32 %v2032_v12, %v4334_v52 }
 0x10e   :  { %v2033_v22 = vmul.f32 0.044715, %v1905_v13  ;;  %v2035_v23 = vmul.f32 0.044715, %v1907_v14  ;;  %v1906_v24 = vmul.f32 %v1778_v15, %v4355_v5  ;;  %v1908_v25 = vmul.f32 %v1780_v16, %v4358_v6  ;;  %v898_v36 = vpop.f32.mrf.mxu0  ;;  %v1091_v44 = vpop.f32.mrf.mxu1 }
 0x10f   :  { %3745 = vtanh.f32 %v2285_v17  ;;  %v2286_v27 = vmul.f32 0.7978846, %v2158_v19  ;;  %v2288_v28 = vmul.f32 0.7978846, %v2160_v20  ;;  %v4373_v29 = vadd.f32 %v4312_v39, %v894_v7 }
 0x110   :  { %3747 = vtanh.f32 %v2287_v18  ;;  %v2161_v30 = vadd.f32 %v2033_v22, %v4343_v59  ;;  %v2163_v31 = vadd.f32 %v2035_v23, %v4346_v60  ;;  %v2034_v32 = vmul.f32 0.044715, %v1906_v24  ;;  %v900_v61 = vpop.f32.mrf.mxu0  ;;  %v1093_v1 = vpop.f32.mrf.mxu1 }
 0x111   :  { %3749 = vtanh.f32 %v2286_v27  ;;  %v2036_v33 = vmul.f32 0.044715, %v1908_v25  ;;  %v1781_v34 = vmul.f32 %v4373_v29, %v4373_v29  ;;  %v4380_v35 = vadd.f32 %v4314_v40, %v1087_v8 }
 0x112   :  { %3751 = vtanh.f32 %v2288_v28  ;;  %v2289_v37 = vmul.f32 0.7978846, %v2161_v30  ;;  %v2291_v38 = vmul.f32 0.7978846, %v2163_v31  ;;  %v2162_v43 = vadd.f32 %v2034_v32, %v4355_v5  ;;  %v904_v22 = vpop.f32.mrf.mxu0 }
 0x113   :  { %v2164_v47 = vadd.f32 %v2036_v33, %v4358_v6  ;;  %v1909_v48 = vmul.f32 %v1781_v34, %v4373_v29  ;;  %v1783_v49 = vmul.f32 %v4380_v35, %v4380_v35  ;;  %v4388_v50 = vadd.f32 %v4316_v41, %v896_v21 }
 0x114   :  { %3753 = vtanh.f32 %v2289_v37  ;;  %v2290_v53 = vmul.f32 0.7978846, %v2162_v43  ;;  %v4391_v54 = vadd.f32 %v4318_v42, %v1089_v26  ;;  %v4394_v55 = vadd.f32 %v4312_v39, %v898_v36 }
 0x115   :  { %3755 = vtanh.f32 %v2291_v38  ;;  %v2292_v56 = vmul.f32 0.7978846, %v2164_v47  ;;  %v2037_v57 = vmul.f32 0.044715, %v1909_v48  ;;  %v1911_v58 = vmul.f32 %v1783_v49, %v4380_v35 }
 0x116   :  { %3757 = vtanh.f32 %v2290_v53  ;;  %v1782_v62 = vmul.f32 %v4388_v50, %v4388_v50  ;;  %v1784_v63 = vmul.f32 %v4391_v54, %v4391_v54  ;;  %v1785_v0 = vmul.f32 %v4394_v55, %v4394_v55 }
 0x117   :  { %3759 = vtanh.f32 %v2292_v56  ;;  %v2165_v2 = vadd.f32 %v2037_v57, %v4373_v29  ;;  %v2039_v3 = vmul.f32 0.044715, %v1911_v58  ;;  %v4405_v4 = vadd.f32 %v4314_v40, %v1091_v44 }
 0x118   :  { %v1910_v7 = vmul.f32 %v1782_v62, %v4388_v50  ;;  %v1912_v8 = vmul.f32 %v1784_v63, %v4391_v54  ;;  %v1913_v9 = vmul.f32 %v1785_v0, %v4394_v55  ;;  %v4411_v10 = vadd.f32 %v4316_v41, %v900_v61 }
 0x119   :  { %v2293_v11 = vmul.f32 0.7978846, %v2165_v2  ;;  %v2167_v12 = vadd.f32 %v2039_v3, %v4380_v35  ;;  %v1787_v13 = vmul.f32 %v4405_v4, %v4405_v4  ;;  %v4417_v14 = vadd.f32 %v4318_v42, %v1093_v1 }
 0x11a   :  { %v2038_v15 = vmul.f32 0.044715, %v1910_v7  ;;  %v2040_v16 = vmul.f32 0.044715, %v1912_v8  ;;  %v2041_v17 = vmul.f32 0.044715, %v1913_v9  ;;  %v1786_v18 = vmul.f32 %v4411_v10, %v4411_v10  ;;  %v1097_v7 = vpop.f32.mrf.mxu1 }
 0x11b   :  { %3761 = vtanh.f32 %v2293_v11  ;;  %v2295_v19 = vmul.f32 0.7978846, %v2167_v12  ;;  %v1915_v20 = vmul.f32 %v1787_v13, %v4405_v4  ;;  %v1788_v21 = vmul.f32 %v4417_v14, %v4417_v14 }
 0x11c   :  { %v3746_v23 = vpop.eup %3745  ;;  %v2166_v24 = vadd.f32 %v2038_v15, %v4388_v50  ;;  %v2168_v25 = vadd.f32 %v2040_v16, %v4391_v54  ;;  %v2169_v26 = vadd.f32 %v2041_v17, %v4394_v55  ;;  %v1914_v27 = vmul.f32 %v1786_v18, %v4411_v10 }
 0x11d   :  { %v3748_v28 = vpop.eup %3747  ;;  %v2541_v30 = vadd.f32 1.0, %v3746_v23  ;;  %3763 = vtanh.f32 %v2295_v19  ;;  %v2043_v31 = vmul.f32 0.044715, %v1915_v20  ;;  %v1916_v32 = vmul.f32 %v1788_v21, %v4417_v14  ;;  %v906_v21 = vpop.f32.mrf.mxu0 }
 0x11e   :  { %v3750_v33 = vpop.eup %3749  ;;  %v2543_v34 = vadd.f32 1.0, %v3748_v28  ;;  %v2294_v36 = vmul.f32 0.7978846, %v2166_v24  ;;  %v2296_v37 = vmul.f32 0.7978846, %v2168_v25  ;;  %v4430_v38 = vadd.f32 %v4312_v39, %v904_v22  ;;  %v1099_v25 = vpop.f32.mrf.mxu1 }
 0x11f   :  { %v3752_v43 = vpop.eup %3751  ;;  %v2669_v44 = vmul.f32 0.5, %v2541_v30  ;;  %v2542_v47 = vadd.f32 1.0, %v3750_v33  ;;  %v2297_v48 = vmul.f32 0.7978846, %v2169_v26  ;;  %v2171_v49 = vadd.f32 %v2043_v31, %v4405_v4 }
 0x120   :  { %v2671_v53 = vmul.f32 0.5, %v2543_v34  ;;  %v2544_v56 = vadd.f32 1.0, %v3752_v43  ;;  %3765 = vtanh.f32 %v2294_v36  ;;  %v2042_v57 = vmul.f32 0.044715, %v1914_v27 }
 0x121   :  { %v3754_v58 = vpop.eup %3753  ;;  %v2797_v61 = vmul.f32 %v2669_v44, %v4321_v45  ;;  %v2670_v62 = vmul.f32 0.5, %v2542_v47  ;;  %3767 = vtanh.f32 %v2296_v37  ;;  %v2299_v63 = vmul.f32 0.7978846, %v2171_v49  ;;  %v908_v37 = vpop.f32.mrf.mxu0 }
 0x122   :  { %v3756_v0 = vpop.eup %3755  ;;  %v2799_v1 = vmul.f32 %v2671_v53, %v4324_v46  ;;  %v2672_v2 = vmul.f32 0.5, %v2544_v56  ;;  %v2545_v3 = vadd.f32 1.0, %v3754_v58  ;;  %3769 = vtanh.f32 %v2297_v48  ;;  %v1101_v48 = vpop.f32.mrf.mxu1 }
 0x123   :  { %v3758_v8 = vpop.eup %3757  ;;  %v2798_v9 = vmul.f32 %v2670_v62, %v4331_v51  ;;  %v2547_v11 = vadd.f32 1.0, %v3756_v0  ;;  %3771 = vtanh.f32 %v2299_v63  ;;  %v2170_v12 = vadd.f32 %v2042_v57, %v4411_v10 }
 0x124   :  { %v3760_v13 = vpop.eup %3759  ;;  %v2800_v45 = vmul.f32 %v2672_v2, %v4334_v52  ;;  %v2673_v15 = vmul.f32 0.5, %v2545_v3  ;;  %v2546_v16 = vadd.f32 1.0, %v3758_v8  ;;  %v2044_v17 = vmul.f32 0.044715, %v1916_v32 }
 0x125   :  { %v3537_v18 = vpack.c.bf16 %v2798_v9, %v2797_v61  ;;  %v2675_v19 = vmul.f32 0.5, %v2547_v11  ;;  %v2548_v46 = vadd.f32 1.0, %v3760_v13  ;;  %v2298_v20 = vmul.f32 0.7978846, %v2170_v12 }
 0x126   :  { %v3538_v22 = vpack.c.bf16 %v2800_v45, %v2799_v1  ;;  %v2801_v23 = vmul.f32 %v2673_v15, %v4343_v59  ;;  %v2674_v24 = vmul.f32 0.5, %v2546_v16  ;;  %v2172_v51 = vadd.f32 %v2044_v17, %v4417_v14 }
 0x127   :  { %3309 = vst [vmem:[%s5548_s3] sm:$0xff] %v3537_v18  ;;  %v2803_v52 = vmul.f32 %v2675_v19, %v4346_v60  ;;  %v2676_v26 = vmul.f32 0.5, %v2548_v46  ;;  %3773 = vtanh.f32 %v2298_v20  ;;  %v1789_v27 = vmul.f32 %v4430_v38, %v4430_v38 }
 0x128   :  { %v3762_v28 = vpop.eup %3761  ;;  %3310 = vst [vmem:[%s5548_s3 + $0x8] sm:$0xff] %v3538_v22  ;;  %v2802_v59 = vmul.f32 %v2674_v24, %v4355_v5  ;;  %v2300_v30 = vmul.f32 0.7978846, %v2172_v51  ;;  %v4451_v31 = vadd.f32 %v4314_v40, %v1097_v7  ;;  %v4454_v32 = vadd.f32 %v4316_v41, %v906_v21  ;;  %v910_v21 = vpop.f32.mrf.mxu0 }
 0x129   :  { %v2804_v60 = vmul.f32 %v2676_v26, %v4358_v6  ;;  %v2549_v33 = vadd.f32 1.0, %v3762_v28  ;;  %v1917_v34 = vmul.f32 %v1789_v27, %v4430_v38  ;;  %v4459_v36 = vadd.f32 %v4318_v42, %v1099_v25  ;;  %v1103_v22 = vpop.f32.mrf.mxu1 }
 0x12a   :  { %v3764_v43 = vpop.eup %3763  ;;  %v3539_v44 = vpack.c.bf16 %v2802_v59, %v2801_v23  ;;  %3775 = vtanh.f32 %v2300_v30  ;;  %v1791_v5 = vmul.f32 %v4451_v31, %v4451_v31  ;;  %v1790_v47 = vmul.f32 %v4454_v32, %v4454_v32 }
 0x12b   :  { %v3540_v49 = vpack.c.bf16 %v2804_v60, %v2803_v52  ;;  %v2677_v53 = vmul.f32 0.5, %v2549_v33  ;;  %v2551_v6 = vadd.f32 1.0, %v3764_v43  ;;  %v2045_v56 = vmul.f32 0.044715, %v1917_v34  ;;  %v914_v43 = vpop.f32.mrf.mxu0 }
 0x12c   :  { %3311 = vst [vmem:[%s5548_s3 + $0x10] sm:$0xff] %v3539_v44  ;;  %v1919_v57 = vmul.f32 %v1791_v5, %v4451_v31  ;;  %v1918_v58 = vmul.f32 %v1790_v47, %v4454_v32  ;;  %v1792_v61 = vmul.f32 %v4459_v36, %v4459_v36  ;;  %v4473_v62 = vadd.f32 %v4312_v39, %v908_v37 }
 0x12d   :  { %v3766_v63 = vpop.eup %3765  ;;  %3312 = vst [vmem:[%s5548_s3 + $0x18] sm:$0xff] %v3540_v49  ;;  %v2805_v0 = vmul.f32 %v2677_v53, %v4373_v29  ;;  %v2679_v1 = vmul.f32 0.5, %v2551_v6  ;;  %v2173_v2 = vadd.f32 %v2045_v56, %v4430_v38  ;;  %v4481_v3 = vadd.f32 %v4314_v40, %v1101_v48 }
 0x12e   :  { %v3768_v7 = vpop.eup %3767  ;;  %v2550_v8 = vadd.f32 1.0, %v3766_v63  ;;  %v2047_v9 = vmul.f32 0.044715, %v1919_v57  ;;  %v2046_v11 = vmul.f32 0.044715, %v1918_v58  ;;  %v1920_v12 = vmul.f32 %v1792_v61, %v4459_v36 }
 0x12f   :  { %v3770_v13 = vpop.eup %3769  ;;  %v2807_v45 = vmul.f32 %v2679_v1, %v4380_v35  ;;  %v2552_v15 = vadd.f32 1.0, %v3768_v7  ;;  %v2301_v16 = vmul.f32 0.7978846, %v2173_v2  ;;  %v1793_v29 = vmul.f32 %v4473_v62, %v4473_v62 }
 0x130   :  { %v3772_v17 = vpop.eup %3771  ;;  %v2678_v18 = vmul.f32 0.5, %v2550_v8  ;;  %v2553_v19 = vadd.f32 1.0, %v3770_v13  ;;  %v2175_v46 = vadd.f32 %v2047_v9, %v4451_v31  ;;  %v2174_v20 = vadd.f32 %v2046_v11, %v4454_v32  ;;  %v916_v8 = vpop.f32.mrf.mxu0 }
 0x131   :  { %v2680_v23 = vmul.f32 0.5, %v2552_v15  ;;  %v2555_v24 = vadd.f32 1.0, %v3772_v17  ;;  %3777 = vtanh.f32 %v2301_v16  ;;  %v2048_v51 = vmul.f32 0.044715, %v1920_v12 }
 0x132   :  { %v2806_v35 = vmul.f32 %v2678_v18, %v4388_v50  ;;  %v2681_v25 = vmul.f32 0.5, %v2553_v19  ;;  %v2303_v52 = vmul.f32 0.7978846, %v2175_v46  ;;  %v2302_v26 = vmul.f32 0.7978846, %v2174_v20  ;;  %v1107_v50 = vpop.f32.mrf.mxu1 }
 0x133   :  { %v2808_v27 = vmul.f32 %v2680_v23, %v4391_v54  ;;  %v2683_v28 = vmul.f32 0.5, %v2555_v24  ;;  %v2176_v59 = vadd.f32 %v2048_v51, %v4459_v36  ;;  %v1921_v30 = vmul.f32 %v1793_v29, %v4473_v62  ;;  %v918_v23 = vpop.f32.mrf.mxu0 }
 0x134   :  { %v3774_v60 = vpop.eup %3773  ;;  %v3541_v33 = vpack.c.bf16 %v2806_v35, %v2805_v0  ;;  %v2809_v34 = vmul.f32 %v2681_v25, %v4394_v55  ;;  %3779 = vtanh.f32 %v2303_v52  ;;  %v1795_v37 = vmul.f32 %v4481_v3, %v4481_v3 }
 0x135   :  { %v3542_v44 = vpack.c.bf16 %v2808_v27, %v2807_v45  ;;  %v2811_v5 = vmul.f32 %v2683_v28, %v4405_v4  ;;  %v2554_v47 = vadd.f32 1.0, %v3774_v60  ;;  %3781 = vtanh.f32 %v2302_v26  ;;  %v1109_v45 = vpop.f32.mrf.mxu1 }
 0x136   :  { %3313 = vst [vmem:[%s5548_s3 + $0x20] sm:$0xff] %v3541_v33  ;;  %v2304_v54 = vmul.f32 0.7978846, %v2176_v59  ;;  %v2049_v48 = vmul.f32 0.044715, %v1921_v30  ;;  %v1923_v49 = vmul.f32 %v1795_v37, %v4481_v3  ;;  %v4502_v55 = vadd.f32 %v4316_v41, %v910_v21 }
 0x137   :  { %v3776_v53 = vpop.eup %3775  ;;  %3314 = vst [vmem:[%s5548_s3 + $0x28] sm:$0xff] %v3542_v44  ;;  %v2682_v6 = vmul.f32 0.5, %v2554_v47  ;;  %v4508_v4 = vadd.f32 %v4318_v42, %v1103_v22  ;;  %v4511_v56 = vadd.f32 %v4312_v39, %v914_v43  ;;  %v4514_v57 = vadd.f32 %v4314_v40, %v1107_v50  ;;  %v1111_v25 = vpop.f32.mrf.mxu1 }
 0x138   :  { %v2556_v58 = vadd.f32 1.0, %v3776_v53  ;;  %3783 = vtanh.f32 %v2304_v54  ;;  %v2177_v61 = vadd.f32 %v2049_v48, %v4473_v62  ;;  %v2051_v63 = vmul.f32 0.044715, %v1923_v49 }
 0x139   :  { %v2810_v0 = vmul.f32 %v2682_v6, %v4411_v10  ;;  %v1794_v1 = vmul.f32 %v4502_v55, %v4502_v55  ;;  %v1796_v2 = vmul.f32 %v4508_v4, %v4508_v4  ;;  %v1797_v7 = vmul.f32 %v4511_v56, %v4511_v56 }
 0x13a   :  { %v2684_v9 = vmul.f32 0.5, %v2556_v58  ;;  %v2305_v11 = vmul.f32 0.7978846, %v2177_v61  ;;  %v2179_v12 = vadd.f32 %v2051_v63, %v4481_v3  ;;  %v1799_v13 = vmul.f32 %v4514_v57, %v4514_v57 }
 0x13b   :  { %v3543_v15 = vpack.c.bf16 %v2810_v0, %v2809_v34  ;;  %v1922_v10 = vmul.f32 %v1794_v1, %v4502_v55  ;;  %v1924_v16 = vmul.f32 %v1796_v2, %v4508_v4  ;;  %v1925_v29 = vmul.f32 %v1797_v7, %v4511_v56  ;;  %v920_v1 = vpop.f32.mrf.mxu0 }
 0x13c   :  { %v2812_v17 = vmul.f32 %v2684_v9, %v4417_v14  ;;  %3785 = vtanh.f32 %v2305_v11  ;;  %v2307_v18 = vmul.f32 0.7978846, %v2179_v12  ;;  %v1927_v19 = vmul.f32 %v1799_v13, %v4514_v57  ;;  %v1113_v11 = vpop.f32.mrf.mxu1 }
 0x13d   :  { %3315 = vst [vmem:[%s5548_s3 + $0x30] sm:$0xff] %v3543_v15  ;;  %v2050_v46 = vmul.f32 0.044715, %v1922_v10  ;;  %v2052_v20 = vmul.f32 0.044715, %v1924_v16  ;;  %v4536_v22 = vadd.f32 %v4316_v41, %v916_v8  ;;  %v4539_v14 = vadd.f32 %v4318_v42, %v1109_v45 }
 0x13e   :  { %v2053_v21 = vmul.f32 0.044715, %v1925_v29  ;;  %v3778_v24 = vpop.eup %3777  ;;  %v3544_v51 = vpack.c.bf16 %v2812_v17, %v2811_v5  ;;  %3787 = vtanh.f32 %v2307_v18  ;;  %v2055_v35 = vmul.f32 0.044715, %v1927_v19 }
 0x13f   :  { %v2557_v52 = vadd.f32 1.0, %v3778_v24  ;;  %v2178_v26 = vadd.f32 %v2050_v46, %v4502_v55  ;;  %v2180_v27 = vadd.f32 %v2052_v20, %v4508_v4  ;;  %v1798_v30 = vmul.f32 %v4536_v22, %v4536_v22 }
 0x140   :  { %v2181_v28 = vadd.f32 %v2053_v21, %v4511_v56  ;;  %3316 = vst [vmem:[%s5548_s3 + $0x38] sm:$0xff] %v3544_v51  ;;  %v2183_v59 = vadd.f32 %v2055_v35, %v4514_v57  ;;  %v1800_v60 = vmul.f32 %v4539_v14, %v4539_v14  ;;  %v4553_v33 = vadd.f32 %v4312_v39, %v918_v23 }
 0x141   :  { %v3780_v34 = vpop.eup %3779  ;;  %v2685_v37 = vmul.f32 0.5, %v2557_v52  ;;  %v2306_v43 = vmul.f32 0.7978846, %v2178_v26  ;;  %v2308_v50 = vmul.f32 0.7978846, %v2180_v27  ;;  %v4556_v44 = vadd.f32 %v4314_v40, %v1111_v25 }
 0x142   :  { %v3782_v5 = vpop.eup %3781  ;;  %v2559_v47 = vadd.f32 1.0, %v3780_v34  ;;  %v2309_v54 = vmul.f32 0.7978846, %v2181_v28  ;;  %v2311_v48 = vmul.f32 0.7978846, %v2183_v59  ;;  %v1926_v49 = vmul.f32 %v1798_v30, %v4536_v22  ;;  %v1117_v28 = vpop.f32.mrf.mxu1 }
 0x143   :  { %v2813_v53 = vmul.f32 %v2685_v37, %v4430_v38  ;;  %v2558_v6 = vadd.f32 1.0, %v3782_v5  ;;  %3789 = vtanh.f32 %v2306_v43  ;;  %v1928_v58 = vmul.f32 %v1800_v60, %v4539_v14 }
 0x144   :  { %v2687_v61 = vmul.f32 0.5, %v2559_v47  ;;  %3791 = vtanh.f32 %v2308_v50  ;;  %v2054_v63 = vmul.f32 0.044715, %v1926_v49  ;;  %v1801_v0 = vmul.f32 %v4553_v33, %v4553_v33 }
 0x145   :  { %v3784_v2 = vpop.eup %3783  ;;  %v2686_v7 = vmul.f32 0.5, %v2558_v6  ;;  %3793 = vtanh.f32 %v2309_v54  ;;  %v2056_v8 = vmul.f32 0.044715, %v1928_v58  ;;  %v1803_v9 = vmul.f32 %v4556_v44, %v4556_v44 }
 0x146   :  { %v2815_v38 = vmul.f32 %v2687_v61, %v4451_v31  ;;  %v2560_v12 = vadd.f32 1.0, %v3784_v2  ;;  %3795 = vtanh.f32 %v2311_v48  ;;  %v2182_v13 = vadd.f32 %v2054_v63, %v4536_v22  ;;  %v924_v31 = vpop.f32.mrf.mxu0  ;;  %v1119_v61 = vpop.f32.mrf.mxu1 }
 0x147   :  { %v2814_v45 = vmul.f32 %v2686_v7, %v4454_v32  ;;  %v2184_v15 = vadd.f32 %v2056_v8, %v4539_v14  ;;  %v1929_v10 = vmul.f32 %v1801_v0, %v4553_v33  ;;  %v1931_v16 = vmul.f32 %v1803_v9, %v4556_v44 }
 0x148   :  { %v2688_v29 = vmul.f32 0.5, %v2560_v12  ;;  %v2310_v17 = vmul.f32 0.7978846, %v2182_v13  ;;  %v4572_v18 = vadd.f32 %v4316_v41, %v920_v1  ;;  %v4575_v19 = vadd.f32 %v4318_v42, %v1113_v11  ;;  %v926_v34 = vpop.f32.mrf.mxu0 }
 0x149   :  { %v3786_v46 = vpop.eup %3785  ;;  %v3545_v20 = vpack.c.bf16 %v2814_v45, %v2813_v53  ;;  %v2312_v21 = vmul.f32 0.7978846, %v2184_v15  ;;  %v2057_v23 = vmul.f32 0.044715, %v1929_v10  ;;  %v2059_v32 = vmul.f32 0.044715, %v1931_v16 }
 0x14a   :  { %v2816_v24 = vmul.f32 %v2688_v29, %v4459_v36  ;;  %v2561_v51 = vadd.f32 1.0, %v3786_v46  ;;  %3797 = vtanh.f32 %v2310_v17  ;;  %v1802_v35 = vmul.f32 %v4572_v18, %v4572_v18 }
 0x14b   :  { %v3788_v25 = vpop.eup %3787  ;;  %3317 = vst [vmem:[%s5548_s3 + $0x40] sm:$0xff] %v3545_v20  ;;  %3799 = vtanh.f32 %v2312_v21  ;;  %v2185_v52 = vadd.f32 %v2057_v23, %v4553_v33  ;;  %v2187_v26 = vadd.f32 %v2059_v32, %v4556_v44  ;;  %v1804_v27 = vmul.f32 %v4575_v19, %v4575_v19  ;;  %v928_v21 = vpop.f32.mrf.mxu0 }
 0x14c   :  { %v3546_v36 = vpack.c.bf16 %v2816_v24, %v2815_v38  ;;  %v2689_v59 = vmul.f32 0.5, %v2561_v51  ;;  %v2563_v30 = vadd.f32 1.0, %v3788_v25  ;;  %v1930_v60 = vmul.f32 %v1802_v35, %v4572_v18  ;;  %v1121_v51 = vpop.f32.mrf.mxu1 }
 0x14d   :  { %v2313_v37 = vmul.f32 0.7978846, %v2185_v52  ;;  %v2315_v43 = vmul.f32 0.7978846, %v2187_v26  ;;  %v1932_v50 = vmul.f32 %v1804_v27, %v4575_v19  ;;  %v4590_v5 = vadd.f32 %v4312_v39, %v924_v31 }
 0x14e   :  { %3318 = vst [vmem:[%s5548_s3 + $0x48] sm:$0xff] %v3546_v36  ;;  %v2817_v47 = vmul.f32 %v2689_v59, %v4473_v62  ;;  %v2691_v54 = vmul.f32 0.5, %v2563_v30  ;;  %v2058_v48 = vmul.f32 0.044715, %v1930_v60  ;;  %v4597_v49 = vadd.f32 %v4314_v40, %v1117_v28 }
 0x14f   :  { %3801 = vtanh.f32 %v2313_v37  ;;  %v2060_v53 = vmul.f32 0.044715, %v1932_v50  ;;  %v1805_v6 = vmul.f32 %v4590_v5, %v4590_v5  ;;  %v4602_v58 = vadd.f32 %v4316_v41, %v926_v34 }
 0x150   :  { %v3790_v63 = vpop.eup %3789  ;;  %v2819_v0 = vmul.f32 %v2691_v54, %v4481_v3  ;;  %3803 = vtanh.f32 %v2315_v43  ;;  %v2186_v62 = vadd.f32 %v2058_v48, %v4572_v18  ;;  %v1807_v1 = vmul.f32 %v4597_v49, %v4597_v49  ;;  %v1123_v54 = vpop.f32.mrf.mxu1 }
 0x151   :  { %v3792_v2 = vpop.eup %3791  ;;  %v2562_v7 = vadd.f32 1.0, %v3790_v63  ;;  %v2188_v8 = vadd.f32 %v2060_v53, %v4575_v19  ;;  %v1933_v9 = vmul.f32 %v1805_v6, %v4590_v5  ;;  %v1806_v11 = vmul.f32 %v4602_v58, %v4602_v58 }
 0x152   :  { %v3794_v38 = vpop.eup %3793  ;;  %v2564_v12 = vadd.f32 1.0, %v3792_v2  ;;  %v2314_v13 = vmul.f32 0.7978846, %v2186_v62  ;;  %v1935_v3 = vmul.f32 %v1807_v1, %v4597_v49  ;;  %v4614_v45 = vadd.f32 %v4318_v42, %v1119_v61 }
 0x153   :  { %v3796_v15 = vpop.eup %3795  ;;  %v2690_v10 = vmul.f32 0.5, %v2562_v7  ;;  %v2565_v16 = vadd.f32 1.0, %v3794_v38  ;;  %v2316_v29 = vmul.f32 0.7978846, %v2188_v8  ;;  %v2061_v17 = vmul.f32 0.044715, %v1933_v9 }
 0x154   :  { %v2692_v31 = vmul.f32 0.5, %v2564_v12  ;;  %v2567_v46 = vadd.f32 1.0, %v3796_v15  ;;  %3805 = vtanh.f32 %v2314_v13  ;;  %v2063_v20 = vmul.f32 0.044715, %v1935_v3 }
 0x155   :  { %v2818_v23 = vmul.f32 %v2690_v10, %v4502_v55  ;;  %v2693_v32 = vmul.f32 0.5, %v2565_v16  ;;  %3807 = vtanh.f32 %v2316_v29  ;;  %v2189_v24 = vadd.f32 %v2061_v17, %v4590_v5 }
 0x156   :  { %v2820_v35 = vmul.f32 %v2692_v31, %v4508_v4  ;;  %v2695_v25 = vmul.f32 0.5, %v2567_v46  ;;  %v2191_v52 = vadd.f32 %v2063_v20, %v4597_v49  ;;  %v1934_v26 = vmul.f32 %v1806_v11, %v4602_v58  ;;  %v930_v4 = vpop.f32.mrf.mxu0 }
 0x157   :  { %v3798_v27 = vpop.eup %3797  ;;  %v3547_v28 = vpack.c.bf16 %v2818_v23, %v2817_v47  ;;  %v2821_v36 = vmul.f32 %v2693_v32, %v4511_v56  ;;  %v2317_v59 = vmul.f32 0.7978846, %v2189_v24  ;;  %v1808_v55 = vmul.f32 %v4614_v45, %v4614_v45 }
 0x158   :  { %v3800_v30 = vpop.eup %3799  ;;  %v3548_v60 = vpack.c.bf16 %v2820_v35, %v2819_v0  ;;  %v2823_v34 = vmul.f32 %v2695_v25, %v4514_v57  ;;  %v2566_v37 = vadd.f32 1.0, %v3798_v27  ;;  %v2319_v43 = vmul.f32 0.7978846, %v2191_v52  ;;  %v934_v16 = vpop.f32.mrf.mxu0 }
 0x159   :  { %3319 = vst [vmem:[%s5548_s3 + $0x50] sm:$0xff] %v3547_v28  ;;  %v2568_v50 = vadd.f32 1.0, %v3800_v30  ;;  %3809 = vtanh.f32 %v2317_v59  ;;  %v2062_v47 = vmul.f32 0.044715, %v1934_v26  ;;  %v1936_v56 = vmul.f32 %v1808_v55, %v4614_v45  ;;  %v1127_v35 = vpop.f32.mrf.mxu1 }
 0x15a   :  { %3320 = vst [vmem:[%s5548_s3 + $0x58] sm:$0xff] %v3548_v60  ;;  %v2694_v48 = vmul.f32 0.5, %v2566_v37  ;;  %3811 = vtanh.f32 %v2319_v43  ;;  %v4633_v57 = vadd.f32 %v4312_v39, %v928_v21  ;;  %v4636_v53 = vadd.f32 %v4314_v40, %v1121_v51  ;;  %v936_v30 = vpop.f32.mrf.mxu0 }
 0x15b   :  { %v2696_v6 = vmul.f32 0.5, %v2568_v50  ;;  %v2190_v61 = vadd.f32 %v2062_v47, %v4602_v58  ;;  %v2064_v63 = vmul.f32 0.044715, %v1936_v56  ;;  %v4640_v0 = vadd.f32 %v4316_v41, %v930_v4 }
 0x15c   :  { %v3802_v62 = vpop.eup %3801  ;;  %v2822_v1 = vmul.f32 %v2694_v48, %v4536_v22  ;;  %v1809_v2 = vmul.f32 %v4633_v57, %v4633_v57  ;;  %v1811_v7 = vmul.f32 %v4636_v53, %v4636_v53  ;;  %v4648_v8 = vadd.f32 %v4318_v42, %v1123_v54 }
 0x15d   :  { %v3804_v9 = vpop.eup %3803  ;;  %v2824_v11 = vmul.f32 %v2696_v6, %v4539_v14  ;;  %v2569_v38 = vadd.f32 1.0, %v3802_v62  ;;  %v2318_v12 = vmul.f32 0.7978846, %v2190_v61  ;;  %v2192_v13 = vadd.f32 %v2064_v63, %v4614_v45 }
 0x15e   :  { %v3549_v3 = vpack.c.bf16 %v2822_v1, %v2821_v36  ;;  %v2571_v15 = vadd.f32 1.0, %v3804_v9  ;;  %v1937_v22 = vmul.f32 %v1809_v2, %v4633_v57  ;;  %v1939_v10 = vmul.f32 %v1811_v7, %v4636_v53  ;;  %v1129_v2 = vpop.f32.mrf.mxu1  ;;  %v938_v7 = vpop.f32.mrf.mxu0 }
 0x15f   :  { %v3550_v29 = vpack.c.bf16 %v2824_v11, %v2823_v34  ;;  %v2697_v17 = vmul.f32 0.5, %v2569_v38  ;;  %3813 = vtanh.f32 %v2318_v12  ;;  %v2320_v31 = vmul.f32 0.7978846, %v2192_v13 }
 0x160   :  { %3321 = vst [vmem:[%s5548_s3 + $0x60] sm:$0xff] %v3549_v3  ;;  %v2699_v14 = vmul.f32 0.5, %v2571_v15  ;;  %v2065_v46 = vmul.f32 0.044715, %v1937_v22  ;;  %v2067_v20 = vmul.f32 0.044715, %v1939_v10  ;;  %v1810_v21 = vmul.f32 %v4640_v0, %v4640_v0 }
 0x161   :  { %v3806_v23 = vpop.eup %3805  ;;  %3322 = vst [vmem:[%s5548_s3 + $0x68] sm:$0xff] %v3550_v29  ;;  %v2825_v32 = vmul.f32 %v2697_v17, %v4553_v33  ;;  %3815 = vtanh.f32 %v2320_v31  ;;  %v1812_v24 = vmul.f32 %v4648_v8, %v4648_v8  ;;  %v4666_v51 = vadd.f32 %v4312_v39, %v934_v16 }
 0x162   :  { %v3808_v25 = vpop.eup %3807  ;;  %v2827_v52 = vmul.f32 %v2699_v14, %v4556_v44  ;;  %v2570_v26 = vadd.f32 1.0, %v3806_v23  ;;  %v2193_v27 = vadd.f32 %v2065_v46, %v4633_v57  ;;  %v2195_v28 = vadd.f32 %v2067_v20, %v4636_v53  ;;  %v1131_v14 = vpop.f32.mrf.mxu1 }
 0x163   :  { %v2572_v36 = vadd.f32 1.0, %v3808_v25  ;;  %v1938_v59 = vmul.f32 %v1810_v21, %v4640_v0  ;;  %v1940_v33 = vmul.f32 %v1812_v24, %v4648_v8  ;;  %v1813_v55 = vmul.f32 %v4666_v51, %v4666_v51  ;;  %v940_v46 = vpop.f32.mrf.mxu0 }
 0x164   :  { %v2698_v60 = vmul.f32 0.5, %v2570_v26  ;;  %v2321_v34 = vmul.f32 0.7978846, %v2193_v27  ;;  %v2323_v37 = vmul.f32 0.7978846, %v2195_v28  ;;  %v4676_v43 = vadd.f32 %v4314_v40, %v1127_v35 }
 0x165   :  { %v2700_v44 = vmul.f32 0.5, %v2572_v36  ;;  %v2066_v4 = vmul.f32 0.044715, %v1938_v59  ;;  %v2068_v50 = vmul.f32 0.044715, %v1940_v33  ;;  %v1941_v47 = vmul.f32 %v1813_v55, %v4666_v51 }
 0x166   :  { %v3810_v56 = vpop.eup %3809  ;;  %v2826_v54 = vmul.f32 %v2698_v60, %v4572_v18  ;;  %3817 = vtanh.f32 %v2321_v34  ;;  %v1815_v48 = vmul.f32 %v4676_v43, %v4676_v43  ;;  %v4683_v6 = vadd.f32 %v4316_v41, %v936_v30 }
 0x167   :  { %v3812_v61 = vpop.eup %3811  ;;  %v2828_v63 = vmul.f32 %v2700_v44, %v4575_v19  ;;  %v2573_v62 = vadd.f32 1.0, %v3810_v56  ;;  %3819 = vtanh.f32 %v2323_v37  ;;  %v2194_v1 = vadd.f32 %v2066_v4, %v4640_v0  ;;  %v1133_v37 = vpop.f32.mrf.mxu1 }
 0x168   :  { %v3551_v9 = vpack.c.bf16 %v2826_v54, %v2825_v32  ;;  %v2575_v11 = vadd.f32 1.0, %v3812_v61  ;;  %v2196_v18 = vadd.f32 %v2068_v50, %v4648_v8  ;;  %v2069_v38 = vmul.f32 0.044715, %v1941_v47 }
 0x169   :  { %v3552_v12 = vpack.c.bf16 %v2828_v63, %v2827_v52  ;;  %v2701_v13 = vmul.f32 0.5, %v2573_v62  ;;  %v2322_v3 = vmul.f32 0.7978846, %v2194_v1  ;;  %v1943_v15 = vmul.f32 %v1815_v48, %v4676_v43 }
 0x16a   :  { %3323 = vst [vmem:[%s5548_s3 + $0x70] sm:$0xff] %v3551_v9  ;;  %v2703_v19 = vmul.f32 0.5, %v2575_v11  ;;  %v2324_v22 = vmul.f32 0.7978846, %v2196_v18  ;;  %v2197_v10 = vadd.f32 %v2069_v38, %v4666_v51  ;;  %v1814_v16 = vmul.f32 %v4683_v6, %v4683_v6  ;;  %v944_v18 = vpop.f32.mrf.mxu0 }
 0x16b   :  { %3324 = vst [vmem:[%s5548_s3 + $0x78] sm:$0xff] %v3552_v12  ;;  %v2829_v29 = vmul.f32 %v2701_v13, %v4590_v5  ;;  %3821 = vtanh.f32 %v2322_v3  ;;  %v2071_v17 = vmul.f32 0.044715, %v1943_v15  ;;  %v4700_v31 = vadd.f32 %v4318_v42, %v1129_v2 }
 0x16c   :  { %v3814_v20 = vpop.eup %3813  ;;  %v2831_v21 = vmul.f32 %v2703_v19, %v4597_v49  ;;  %3823 = vtanh.f32 %v2324_v22  ;;  %v2325_v23 = vmul.f32 0.7978846, %v2197_v10  ;;  %v1942_v32 = vmul.f32 %v1814_v16, %v4683_v6 }
 0x16d   :  { %v2574_v24 = vadd.f32 1.0, %v3814_v20  ;;  %v2199_v35 = vadd.f32 %v2071_v17, %v4676_v43  ;;  %v1816_v5 = vmul.f32 %v4700_v31, %v4700_v31  ;;  %v4708_v25 = vadd.f32 %v4312_v39, %v938_v7  ;;  %v1137_v17 = vpop.f32.mrf.mxu1 }
 0x16e   :  { %v3816_v52 = vpop.eup %3815  ;;  %3825 = vtanh.f32 %v2325_v23  ;;  %v2070_v26 = vmul.f32 0.044715, %v1942_v32  ;;  %v4711_v27 = vadd.f32 %v4314_v40, %v1131_v14  ;;  %v4714_v49 = vadd.f32 %v4316_v41, %v940_v46  ;;  %v946_v32 = vpop.f32.mrf.mxu0 }
 0x16f   :  { %v2702_v28 = vmul.f32 0.5, %v2574_v24  ;;  %v2576_v36 = vadd.f32 1.0, %v3816_v52  ;;  %v2327_v59 = vmul.f32 0.7978846, %v2199_v35  ;;  %v1944_v33 = vmul.f32 %v1816_v5, %v4700_v31 }
 0x170   :  { %v2198_v55 = vadd.f32 %v2070_v26, %v4683_v6  ;;  %v1817_v30 = vmul.f32 %v4708_v25, %v4708_v25  ;;  %v1819_v60 = vmul.f32 %v4711_v27, %v4711_v27  ;;  %v1818_v34 = vmul.f32 %v4714_v49, %v4714_v49 }
 0x171   :  { %v2830_v44 = vmul.f32 %v2702_v28, %v4602_v58  ;;  %v2704_v4 = vmul.f32 0.5, %v2576_v36  ;;  %3827 = vtanh.f32 %v2327_v59  ;;  %v2072_v50 = vmul.f32 0.044715, %v1944_v33 }
 0x172   :  { %v2326_v47 = vmul.f32 0.7978846, %v2198_v55  ;;  %v1945_v56 = vmul.f32 %v1817_v30, %v4708_v25  ;;  %v1947_v54 = vmul.f32 %v1819_v60, %v4711_v27  ;;  %v1946_v48 = vmul.f32 %v1818_v34, %v4714_v49 }
 0x173   :  { %v3818_v61 = vpop.eup %3817  ;;  %v3553_v63 = vpack.c.bf16 %v2830_v44, %v2829_v29  ;;  %v2832_v62 = vmul.f32 %v2704_v4, %v4614_v45  ;;  %v2200_v1 = vadd.f32 %v2072_v50, %v4700_v31  ;;  %v4731_v2 = vadd.f32 %v4318_v42, %v1133_v37 }
 0x174   :  { %v3820_v58 = vpop.eup %3819  ;;  %v2577_v7 = vadd.f32 1.0, %v3818_v61  ;;  %3829 = vtanh.f32 %v2326_v47  ;;  %v2073_v9 = vmul.f32 0.044715, %v1945_v56  ;;  %v2075_v11 = vmul.f32 0.044715, %v1947_v54 }
 0x175   :  { %3325 = vst [vmem:[%s5548_s3 + $0x80] sm:$0xff] %v3553_v63  ;;  %v3554_v38 = vpack.c.bf16 %v2832_v62, %v2831_v21  ;;  %v2579_v12 = vadd.f32 1.0, %v3820_v58  ;;  %v2328_v13 = vmul.f32 0.7978846, %v2200_v1  ;;  %v2074_v3 = vmul.f32 0.044715, %v1946_v48  ;;  %v948_v62 = vpop.f32.mrf.mxu0 }
 0x176   :  { %v2705_v45 = vmul.f32 0.5, %v2577_v7  ;;  %v2201_v15 = vadd.f32 %v2073_v9, %v4708_v25  ;;  %v2203_v19 = vadd.f32 %v2075_v11, %v4711_v27  ;;  %v1820_v22 = vmul.f32 %v4731_v2, %v4731_v2 }
 0x177   :  { %3326 = vst [vmem:[%s5548_s3 + $0x88] sm:$0xff] %v3554_v38  ;;  %v2707_v10 = vmul.f32 0.5, %v2579_v12  ;;  %3831 = vtanh.f32 %v2328_v13  ;;  %v2202_v16 = vadd.f32 %v2074_v3, %v4714_v49  ;;  %v4745_v29 = vadd.f32 %v4312_v39, %v944_v18 }
 0x178   :  { %v3822_v14 = vpop.eup %3821  ;;  %v2833_v46 = vmul.f32 %v2705_v45, %v4633_v57  ;;  %v2329_v20 = vmul.f32 0.7978846, %v2201_v15  ;;  %v2331_v21 = vmul.f32 0.7978846, %v2203_v19  ;;  %v1948_v23 = vmul.f32 %v1820_v22, %v4731_v2 }
 0x179   :  { %v3824_v24 = vpop.eup %3823  ;;  %v2835_v35 = vmul.f32 %v2707_v10, %v4636_v53  ;;  %v2578_v5 = vadd.f32 1.0, %v3822_v14  ;;  %v2330_v52 = vmul.f32 0.7978846, %v2202_v16  ;;  %v1821_v26 = vmul.f32 %v4745_v29, %v4745_v29  ;;  %v1139_v53 = vpop.f32.mrf.mxu1 }
 0x17a   :  { %v2580_v28 = vadd.f32 1.0, %v3824_v24  ;;  %3833 = vtanh.f32 %v2329_v20  ;;  %v2076_v36 = vmul.f32 0.044715, %v1948_v23  ;;  %v4753_v59 = vadd.f32 %v4314_v40, %v1137_v17  ;;  %v950_v10 = vpop.f32.mrf.mxu0 }
 0x17b   :  { %v3826_v57 = vpop.eup %3825  ;;  %v2706_v33 = vmul.f32 0.5, %v2578_v5  ;;  %3835 = vtanh.f32 %v2331_v21  ;;  %v1949_v55 = vmul.f32 %v1821_v26, %v4745_v29  ;;  %v4757_v30 = vadd.f32 %v4316_v41, %v946_v32  ;;  %v1141_v9 = vpop.f32.mrf.mxu1 }
 0x17c   :  { %v2708_v60 = vmul.f32 0.5, %v2580_v28  ;;  %v2581_v34 = vadd.f32 1.0, %v3826_v57  ;;  %3837 = vtanh.f32 %v2330_v52  ;;  %v2204_v37 = vadd.f32 %v2076_v36, %v4731_v2 }
 0x17d   :  { %v2834_v44 = vmul.f32 %v2706_v33, %v4640_v0  ;;  %v2077_v4 = vmul.f32 0.044715, %v1949_v55  ;;  %v1823_v50 = vmul.f32 %v4753_v59, %v4753_v59  ;;  %v1822_v47 = vmul.f32 %v4757_v30, %v4757_v30 }
 0x17e   :  { %v3828_v56 = vpop.eup %3827  ;;  %v2836_v54 = vmul.f32 %v2708_v60, %v4648_v8  ;;  %v2709_v48 = vmul.f32 0.5, %v2581_v34  ;;  %v2332_v61 = vmul.f32 0.7978846, %v2204_v37  ;;  %v4767_v63 = vadd.f32 %v4318_v42, %v1139_v53  ;;  %v1143_v60 = vpop.f32.mrf.mxu1 }
 0x17f   :  { %v3555_v1 = vpack.c.bf16 %v2834_v44, %v2833_v46  ;;  %v2583_v58 = vadd.f32 1.0, %v3828_v56  ;;  %v2205_v0 = vadd.f32 %v2077_v4, %v4745_v29  ;;  %v1951_v7 = vmul.f32 %v1823_v50, %v4753_v59 }
 0x180   :  { %v3556_v11 = vpack.c.bf16 %v2836_v54, %v2835_v35  ;;  %v2837_v18 = vmul.f32 %v2709_v48, %v4666_v51  ;;  %3839 = vtanh.f32 %v2332_v61  ;;  %v1950_v38 = vmul.f32 %v1822_v47, %v4757_v30  ;;  %v954_v48 = vpop.f32.mrf.mxu0 }
 0x181   :  { %v3830_v8 = vpop.eup %3829  ;;  %3327 = vst [vmem:[%s5548_s3 + $0x90] sm:$0xff] %v3555_v1  ;;  %v2711_v12 = vmul.f32 0.5, %v2583_v58  ;;  %v2333_v13 = vmul.f32 0.7978846, %v2205_v0  ;;  %v2079_v3 = vmul.f32 0.044715, %v1951_v7  ;;  %v1824_v45 = vmul.f32 %v4767_v63, %v4767_v63 }
 0x182   :  { %3328 = vst [vmem:[%s5548_s3 + $0x98] sm:$0xff] %v3556_v11  ;;  %v2582_v15 = vadd.f32 1.0, %v3830_v8  ;;  %v2078_v51 = vmul.f32 0.044715, %v1950_v38  ;;  %v4782_v19 = vadd.f32 %v4312_v39, %v948_v62  ;;  %v4785_v22 = vadd.f32 %v4314_v40, %v1141_v9 }
 0x183   :  { %v2839_v16 = vmul.f32 %v2711_v12, %v4676_v43  ;;  %3841 = vtanh.f32 %v2333_v13  ;;  %v2207_v17 = vadd.f32 %v2079_v3, %v4753_v59  ;;  %v1952_v14 = vmul.f32 %v1824_v45, %v4767_v63 }
 0x184   :  { %v3832_v46 = vpop.eup %3831  ;;  %v2710_v20 = vmul.f32 0.5, %v2582_v15  ;;  %v2206_v21 = vadd.f32 %v2078_v51, %v4757_v30  ;;  %v1825_v23 = vmul.f32 %v4782_v19, %v4782_v19  ;;  %v1827_v32 = vmul.f32 %v4785_v22, %v4785_v22  ;;  %v956_v51 = vpop.f32.mrf.mxu0 }
 0x185   :  { %v2584_v24 = vadd.f32 1.0, %v3832_v46  ;;  %v2335_v35 = vmul.f32 0.7978846, %v2207_v17  ;;  %v2080_v5 = vmul.f32 0.044715, %v1952_v14  ;;  %v4796_v43 = vadd.f32 %v4316_v41, %v950_v10 }
 0x186   :  { %v2838_v52 = vmul.f32 %v2710_v20, %v4683_v6  ;;  %v2334_v26 = vmul.f32 0.7978846, %v2206_v21  ;;  %v1953_v28 = vmul.f32 %v1825_v23, %v4782_v19  ;;  %v1955_v36 = vmul.f32 %v1827_v32, %v4785_v22 }
 0x187   :  { %v3834_v57 = vpop.eup %3833  ;;  %v2712_v33 = vmul.f32 0.5, %v2584_v24  ;;  %3843 = vtanh.f32 %v2335_v35  ;;  %v2208_v55 = vadd.f32 %v2080_v5, %v4767_v63  ;;  %v1826_v53 = vmul.f32 %v4796_v43, %v4796_v43 }
 0x188   :  { %v3836_v34 = vpop.eup %3835  ;;  %v3557_v37 = vpack.c.bf16 %v2838_v52, %v2837_v18  ;;  %v2585_v44 = vadd.f32 1.0, %v3834_v57  ;;  %3845 = vtanh.f32 %v2334_v26  ;;  %v2081_v4 = vmul.f32 0.044715, %v1953_v28  ;;  %v958_v26 = vpop.f32.mrf.mxu0 }
 0x189   :  { %v3838_v6 = vpop.eup %3837  ;;  %v2840_v50 = vmul.f32 %v2712_v33, %v4700_v31  ;;  %v2587_v47 = vadd.f32 1.0, %v3836_v34  ;;  %v2336_v56 = vmul.f32 0.7978846, %v2208_v55  ;;  %v2083_v54 = vmul.f32 0.044715, %v1955_v36  ;;  %v1147_v31 = vpop.f32.mrf.mxu1 }
 0x18a   :  { %3329 = vst [vmem:[%s5548_s3 + $0xa0] sm:$0xff] %v3557_v37  ;;  %v2713_v61 = vmul.f32 0.5, %v2585_v44  ;;  %v2586_v62 = vadd.f32 1.0, %v3838_v6  ;;  %v2209_v1 = vadd.f32 %v2081_v4, %v4782_v19  ;;  %v1954_v58 = vmul.f32 %v1826_v53, %v4796_v43 }
 0x18b   :  { %v3558_v0 = vpack.c.bf16 %v2840_v50, %v2839_v16  ;;  %v2715_v7 = vmul.f32 0.5, %v2587_v47  ;;  %3847 = vtanh.f32 %v2336_v56  ;;  %v2211_v9 = vadd.f32 %v2083_v54, %v4785_v22  ;;  %v1149_v46 = vpop.f32.mrf.mxu1 }
 0x18c   :  { %v2841_v11 = vmul.f32 %v2713_v61, %v4708_v25  ;;  %v2714_v18 = vmul.f32 0.5, %v2586_v62  ;;  %v2337_v38 = vmul.f32 0.7978846, %v2209_v1  ;;  %v2082_v8 = vmul.f32 0.044715, %v1954_v58 }
 0x18d   :  { %v3840_v12 = vpop.eup %3839  ;;  %3330 = vst [vmem:[%s5548_s3 + $0xa8] sm:$0xff] %v3558_v0  ;;  %v2843_v13 = vmul.f32 %v2715_v7, %v4711_v27  ;;  %v2339_v3 = vmul.f32 0.7978846, %v2211_v9  ;;  %v4817_v45 = vadd.f32 %v4318_v42, %v1143_v60  ;;  %v4820_v15 = vadd.f32 %v4312_v39, %v954_v48  ;;  %v1151_v48 = vpop.f32.mrf.mxu1 }
 0x18e   :  { %v2842_v25 = vmul.f32 %v2714_v18, %v4714_v49  ;;  %v2588_v10 = vadd.f32 1.0, %v3840_v12  ;;  %3849 = vtanh.f32 %v2337_v38  ;;  %v2210_v16 = vadd.f32 %v2082_v8, %v4796_v43  ;;  %v960_v12 = vpop.f32.mrf.mxu0 }
 0x18f   :  { %3851 = vtanh.f32 %v2339_v3  ;;  %v1828_v17 = vmul.f32 %v4817_v45, %v4817_v45  ;;  %v1829_v27 = vmul.f32 %v4820_v15, %v4820_v15  ;;  %v4829_v14 = vadd.f32 %v4314_v40, %v1147_v31 }
 0x190   :  { %v3842_v20 = vpop.eup %3841  ;;  %v3559_v21 = vpack.c.bf16 %v2842_v25, %v2841_v11  ;;  %v2716_v23 = vmul.f32 0.5, %v2588_v10  ;;  %v2338_v32 = vmul.f32 0.7978846, %v2210_v16  ;;  %v4832_v49 = vadd.f32 %v4316_v41, %v956_v51  ;;  %v1153_v25 = vpop.f32.mrf.mxu1 }
 0x191   :  { %v2589_v24 = vadd.f32 1.0, %v3842_v20  ;;  %v1956_v35 = vmul.f32 %v1828_v17, %v4817_v45  ;;  %v1957_v5 = vmul.f32 %v1829_v27, %v4820_v15  ;;  %v1831_v52 = vmul.f32 %v4829_v14, %v4829_v14 }
 0x192   :  { %3331 = vst [vmem:[%s5548_s3 + $0xb0] sm:$0xff] %v3559_v21  ;;  %v2844_v28 = vmul.f32 %v2716_v23, %v4731_v2  ;;  %3853 = vtanh.f32 %v2338_v32  ;;  %v1830_v36 = vmul.f32 %v4832_v49, %v4832_v49  ;;  %v4845_v57 = vadd.f32 %v4318_v42, %v1149_v46 }
 0x193   :  { %v2717_v33 = vmul.f32 0.5, %v2589_v24  ;;  %v2084_v55 = vmul.f32 0.044715, %v1956_v35  ;;  %v2085_v53 = vmul.f32 0.044715, %v1957_v5  ;;  %v1959_v60 = vmul.f32 %v1831_v52, %v4829_v14  ;;  %v964_v5 = vpop.f32.mrf.mxu0 }
 0x194   :  { %v3844_v34 = vpop.eup %3843  ;;  %v3560_v37 = vpack.c.bf16 %v2844_v28, %v2843_v13  ;;  %v1958_v44 = vmul.f32 %v1830_v36, %v4832_v49  ;;  %v1832_v4 = vmul.f32 %v4845_v57, %v4845_v57  ;;  %v4852_v2 = vadd.f32 %v4312_v39, %v958_v26  ;;  %v1157_v28 = vpop.f32.mrf.mxu1 }
 0x195   :  { %v3846_v6 = vpop.eup %3845  ;;  %v2845_v50 = vmul.f32 %v2717_v33, %v4745_v29  ;;  %v2591_v47 = vadd.f32 1.0, %v3844_v34  ;;  %v2212_v56 = vadd.f32 %v2084_v55, %v4817_v45  ;;  %v2213_v54 = vadd.f32 %v2085_v53, %v4820_v15 }
 0x196   :  { %3332 = vst [vmem:[%s5548_s3 + $0xb8] sm:$0xff] %v3560_v37  ;;  %v2590_v61 = vadd.f32 1.0, %v3846_v6  ;;  %v2087_v62 = vmul.f32 0.044715, %v1959_v60  ;;  %v2086_v1 = vmul.f32 0.044715, %v1958_v44  ;;  %v1960_v58 = vmul.f32 %v1832_v4, %v4845_v57 }
 0x197   :  { %v2719_v0 = vmul.f32 0.5, %v2591_v47  ;;  %v2340_v7 = vmul.f32 0.7978846, %v2212_v56  ;;  %v2341_v9 = vmul.f32 0.7978846, %v2213_v54  ;;  %v1833_v29 = vmul.f32 %v4852_v2, %v4852_v2  ;;  %v966_v47 = vpop.f32.mrf.mxu0 }
 0x198   :  { %v3848_v31 = vpop.eup %3847  ;;  %v2718_v11 = vmul.f32 0.5, %v2590_v61  ;;  %v2215_v18 = vadd.f32 %v2087_v62, %v4829_v14  ;;  %v2214_v38 = vadd.f32 %v2086_v1, %v4832_v49  ;;  %v2088_v8 = vmul.f32 0.044715, %v1960_v58 }
 0x199   :  { %v2847_v13 = vmul.f32 %v2719_v0, %v4753_v59  ;;  %v2592_v3 = vadd.f32 1.0, %v3848_v31  ;;  %3855 = vtanh.f32 %v2340_v7  ;;  %v1961_v51 = vmul.f32 %v1833_v29, %v4852_v2 }
 0x19a   :  { %v2846_v10 = vmul.f32 %v2718_v11, %v4757_v30  ;;  %3857 = vtanh.f32 %v2341_v9  ;;  %v2343_v16 = vmul.f32 0.7978846, %v2215_v18  ;;  %v2342_v17 = vmul.f32 0.7978846, %v2214_v38 }
 0x19b   :  { %v3850_v27 = vpop.eup %3849  ;;  %v2720_v46 = vmul.f32 0.5, %v2592_v3  ;;  %v2216_v20 = vadd.f32 %v2088_v8, %v4845_v57  ;;  %v2089_v21 = vmul.f32 0.044715, %v1961_v51  ;;  %v4870_v23 = vadd.f32 %v4314_v40, %v1151_v48 }
 0x19c   :  { %v3852_v32 = vpop.eup %3851  ;;  %v3561_v59 = vpack.c.bf16 %v2846_v10, %v2845_v50  ;;  %v2593_v24 = vadd.f32 1.0, %v3850_v27  ;;  %3859 = vtanh.f32 %v2343_v16  ;;  %v4873_v35 = vadd.f32 %v4316_v41, %v960_v12 }
 0x19d   :  { %v2848_v30 = vmul.f32 %v2720_v46, %v4767_v63  ;;  %v2595_v52 = vadd.f32 1.0, %v3852_v32  ;;  %3861 = vtanh.f32 %v2342_v17  ;;  %v2344_v26 = vmul.f32 0.7978846, %v2216_v20 }
 0x19e   :  { %3333 = vst [vmem:[%s5548_s3 + $0xc0] sm:$0xff] %v3561_v59  ;;  %v2721_v36 = vmul.f32 0.5, %v2593_v24  ;;  %v2217_v33 = vadd.f32 %v2089_v21, %v4852_v2  ;;  %v1835_v55 = vmul.f32 %v4870_v23, %v4870_v23  ;;  %v1834_v53 = vmul.f32 %v4873_v35, %v4873_v35  ;;  %v968_v24 = vpop.f32.mrf.mxu0 }
 0x19f   :  { %v3854_v60 = vpop.eup %3853  ;;  %v3562_v34 = vpack.c.bf16 %v2848_v30, %v2847_v13  ;;  %v2723_v63 = vmul.f32 0.5, %v2595_v52  ;;  %3863 = vtanh.f32 %v2344_v26  ;;  %v4885_v37 = vadd.f32 %v4318_v42, %v1153_v25 }
 0x1a0   :  { %v2849_v44 = vmul.f32 %v2721_v36, %v4782_v19  ;;  %v2594_v4 = vadd.f32 1.0, %v3854_v60  ;;  %v2345_v6 = vmul.f32 0.7978846, %v2217_v33  ;;  %v1963_v50 = vmul.f32 %v1835_v55, %v4870_v23  ;;  %v1159_v19 = vpop.f32.mrf.mxu1 }
 0x1a1   :  { %3334 = vst [vmem:[%s5548_s3 + $0xc8] sm:$0xff] %v3562_v34  ;;  %v4893_v56 = vmul.f32 %v2723_v63, %v4785_v22  ;;  %v1962_v54 = vmul.f32 %v1834_v53, %v4873_v35  ;;  %v1836_v48 = vmul.f32 %v4885_v37, %v4885_v37  ;;  %v4899_v61 = vadd.f32 %v4312_v39, %v964_v5 }
 0x1a2   :  { %v2722_v62 = vmul.f32 0.5, %v2594_v4  ;;  %3865 = vtanh.f32 %v2345_v6  ;;  %v2091_v1 = vmul.f32 0.044715, %v1963_v50  ;;  %v4902_v58 = vadd.f32 %v4314_v40, %v1157_v28  ;;  %v1161_v60 = vpop.f32.mrf.mxu1 }
 0x1a3   :  { %v2090_v0 = vmul.f32 0.044715, %v1962_v54  ;;  %v1964_v7 = vmul.f32 %v1836_v48, %v4885_v37  ;;  %v1837_v22 = vmul.f32 %v4899_v61, %v4899_v61  ;;  %v4908_v9 = vadd.f32 %v4316_v41, %v966_v47  ;;  %v970_v48 = vpop.f32.mrf.mxu0 }
 0x1a4   :  { %v2850_v29 = vmul.f32 %v2722_v62, %v4796_v43  ;;  %v2219_v31 = vadd.f32 %v2091_v1, %v4870_v23  ;;  %v1839_v11 = vmul.f32 %v4902_v58, %v4902_v58  ;;  %v4915_v18 = vadd.f32 %v4318_v42, %v1159_v19 }
 0x1a5   :  { %v2218_v38 = vadd.f32 %v2090_v0, %v4873_v35  ;;  %v2092_v8 = vmul.f32 0.044715, %v1964_v7  ;;  %v1965_v12 = vmul.f32 %v1837_v22, %v4899_v61  ;;  %v1838_v13 = vmul.f32 %v4908_v9, %v4908_v9  ;;  %v1163_v22 = vpop.f32.mrf.mxu1 }
 0x1a6   :  { %v3856_v3 = vpop.eup %3855  ;;  %v3563_v51 = vpack.c.bf16 %v2850_v29, %v2849_v44  ;;  %v2347_v25 = vmul.f32 0.7978846, %v2219_v31  ;;  %v1967_v43 = vmul.f32 %v1839_v11, %v4902_v58  ;;  %v1840_v10 = vmul.f32 %v4915_v18, %v4915_v18 }
 0x1a7   :  { %v3858_v16 = vpop.eup %3857  ;;  %v2596_v17 = vadd.f32 1.0, %v3856_v3  ;;  %v2346_v27 = vmul.f32 0.7978846, %v2218_v38  ;;  %v2220_v46 = vadd.f32 %v2092_v8, %v4885_v37  ;;  %v2093_v20 = vmul.f32 0.044715, %v1965_v12  ;;  %v974_v12 = vpop.f32.mrf.mxu0 }
 0x1a8   :  { %3335 = vst [vmem:[%s5548_s3 + $0xd0] sm:$0xff] %v3563_v51  ;;  %v2597_v21 = vadd.f32 1.0, %v3858_v16  ;;  %3867 = vtanh.f32 %v2347_v25  ;;  %v2095_v32 = vmul.f32 0.044715, %v1967_v43  ;;  %v1966_v59 = vmul.f32 %v1838_v13, %v4908_v9 }
 0x1a9   :  { %v3860_v5 = vpop.eup %3859  ;;  %v2724_v30 = vmul.f32 0.5, %v2596_v17  ;;  %3869 = vtanh.f32 %v2346_v27  ;;  %v2348_v52 = vmul.f32 0.7978846, %v2220_v46  ;;  %v2221_v26 = vadd.f32 %v2093_v20, %v4899_v61  ;;  %v1167_v17 = vpop.f32.mrf.mxu1 }
 0x1aa   :  { %v3862_v28 = vpop.eup %3861  ;;  %v2725_v36 = vmul.f32 0.5, %v2597_v21  ;;  %v2599_v33 = vadd.f32 1.0, %v3860_v5  ;;  %v2223_v55 = vadd.f32 %v2095_v32, %v4902_v58  ;;  %v2094_v53 = vmul.f32 0.044715, %v1966_v59 }
 0x1ab   :  { %v2852_v34 = vmul.f32 %v2724_v30, %v4817_v45  ;;  %v2598_v63 = vadd.f32 1.0, %v3862_v28  ;;  %3871 = vtanh.f32 %v2348_v52  ;;  %v2349_v44 = vmul.f32 0.7978846, %v2221_v26 }
 0x1ac   :  { %v3864_v4 = vpop.eup %3863  ;;  %v2853_v6 = vmul.f32 %v2725_v36, %v4820_v15  ;;  %v2727_v50 = vmul.f32 0.5, %v2599_v33  ;;  %v2351_v47 = vmul.f32 0.7978846, %v2223_v55  ;;  %v2222_v54 = vadd.f32 %v2094_v53, %v4908_v9 }
 0x1ad   :  { %v3564_v19 = vpack.c.bf16 %v2852_v34, %v4893_v56  ;;  %v2726_v62 = vmul.f32 0.5, %v2598_v63  ;;  %v2600_v1 = vadd.f32 1.0, %v3864_v4  ;;  %3873 = vtanh.f32 %v2349_v44  ;;  %v976_v44 = vpop.f32.mrf.mxu0  ;;  %v1169_v4 = vpop.f32.mrf.mxu1 }
 0x1ae   :  { %v2855_v0 = vmul.f32 %v2727_v50, %v4829_v14  ;;  %3875 = vtanh.f32 %v2351_v47  ;;  %v2350_v45 = vmul.f32 0.7978846, %v2222_v54  ;;  %v1968_v7 = vmul.f32 %v1840_v10, %v4915_v18 }
 0x1af   :  { %v3866_v29 = vpop.eup %3865  ;;  %3336 = vst [vmem:[%s5548_s3 + $0xd8] sm:$0xff] %v3564_v19  ;;  %v2854_v15 = vmul.f32 %v2726_v62, %v4832_v49  ;;  %v2728_v31 = vmul.f32 0.5, %v2600_v1  ;;  %v4942_v56 = vadd.f32 %v4312_v39, %v968_v24  ;;  %v4945_v11 = vadd.f32 %v4314_v40, %v1161_v60 }
 0x1b0   :  { %v2601_v14 = vadd.f32 1.0, %v3866_v29  ;;  %3877 = vtanh.f32 %v2350_v45  ;;  %v2096_v38 = vmul.f32 0.044715, %v1968_v7  ;;  %v4948_v8 = vadd.f32 %v4316_v41, %v970_v48 }
 0x1b1   :  { %v3565_v13 = vpack.c.bf16 %v2854_v15, %v2853_v6  ;;  %v2856_v3 = vmul.f32 %v2728_v31, %v4845_v57  ;;  %v1841_v49 = vmul.f32 %v4942_v56, %v4942_v56  ;;  %v1843_v51 = vmul.f32 %v4945_v11, %v4945_v11 }
 0x1b2   :  { %v2729_v25 = vmul.f32 0.5, %v2601_v14  ;;  %v2224_v43 = vadd.f32 %v2096_v38, %v4915_v18  ;;  %v1842_v10 = vmul.f32 %v4948_v8, %v4948_v8  ;;  %v4959_v16 = vadd.f32 %v4318_v42, %v1163_v22 }
 0x1b3   :  { %3337 = vst [vmem:[%s5548_s3 + $0xe0] sm:$0xff] %v3565_v13  ;;  %v3566_v57 = vpack.c.bf16 %v2856_v3, %v2855_v0  ;;  %v1969_v27 = vmul.f32 %v1841_v49, %v4942_v56  ;;  %v1971_v46 = vmul.f32 %v1843_v51, %v4945_v11  ;;  %v4967_v20 = vadd.f32 %v4312_v39, %v974_v12  ;;  %v978_v13 = vpop.f32.mrf.mxu0  ;;  %v1171_v3 = vpop.f32.mrf.mxu1 }
 0x1b4   :  { %v2857_v21 = vmul.f32 %v2729_v25, %v4852_v2  ;;  %v2352_v32 = vmul.f32 0.7978846, %v2224_v43  ;;  %v1970_v59 = vmul.f32 %v1842_v10, %v4948_v8  ;;  %v1844_v24 = vmul.f32 %v4959_v16, %v4959_v16 }
 0x1b5   :  { %v3868_v5 = vpop.eup %3867  ;;  %3338 = vst [vmem:[%s5548_s3 + $0xe8] sm:$0xff] %v3566_v57  ;;  %v2097_v30 = vmul.f32 0.044715, %v1969_v27  ;;  %v2099_v52 = vmul.f32 0.044715, %v1971_v46  ;;  %v1845_v26 = vmul.f32 %v4967_v20, %v4967_v20  ;;  %v4979_v28 = vadd.f32 %v4314_v40, %v1167_v17 }
 0x1b6   :  { %v3870_v2 = vpop.eup %3869  ;;  %v2603_v36 = vadd.f32 1.0, %v3868_v5  ;;  %3879 = vtanh.f32 %v2352_v32  ;;  %v2098_v33 = vmul.f32 0.044715, %v1970_v59  ;;  %v1972_v55 = vmul.f32 %v1844_v24, %v4959_v16 }
 0x1b7   :  { %v2602_v53 = vadd.f32 1.0, %v3870_v2  ;;  %v2225_v60 = vadd.f32 %v2097_v30, %v4942_v56  ;;  %v2227_v34 = vadd.f32 %v2099_v52, %v4945_v11  ;;  %v1973_v63 = vmul.f32 %v1845_v26, %v4967_v20 }
 0x1b8   :  { %v3872_v6 = vpop.eup %3871  ;;  %v2731_v50 = vmul.f32 0.5, %v2603_v36  ;;  %v2226_v47 = vadd.f32 %v2098_v33, %v4948_v8  ;;  %v2100_v54 = vmul.f32 0.044715, %v1972_v55  ;;  %v1847_v48 = vmul.f32 %v4979_v28, %v4979_v28 }
 0x1b9   :  { %v2730_v19 = vmul.f32 0.5, %v2602_v53  ;;  %v2604_v62 = vadd.f32 1.0, %v3872_v6  ;;  %v2353_v1 = vmul.f32 0.7978846, %v2225_v60  ;;  %v2355_v0 = vmul.f32 0.7978846, %v2227_v34 }
 0x1ba   :  { %v3874_v45 = vpop.eup %3873  ;;  %v2859_v7 = vmul.f32 %v2731_v50, %v4870_v23  ;;  %v2354_v22 = vmul.f32 0.7978846, %v2226_v47  ;;  %v2228_v29 = vadd.f32 %v2100_v54, %v4959_v16  ;;  %v2101_v15 = vmul.f32 0.044715, %v1973_v63 }
 0x1bb   :  { %v3876_v31 = vpop.eup %3875  ;;  %v2858_v14 = vmul.f32 %v2730_v19, %v4873_v35  ;;  %v2732_v38 = vmul.f32 0.5, %v2604_v62  ;;  %v2605_v12 = vadd.f32 1.0, %v3874_v45  ;;  %3881 = vtanh.f32 %v2353_v1 }
 0x1bc   :  { %v2607_v49 = vadd.f32 1.0, %v3876_v31  ;;  %3883 = vtanh.f32 %v2355_v0  ;;  %v2356_v51 = vmul.f32 0.7978846, %v2228_v29  ;;  %v2229_v25 = vadd.f32 %v2101_v15, %v4967_v20 }
 0x1bd   :  { %v3878_v43 = vpop.eup %3877  ;;  %v3567_v10 = vpack.c.bf16 %v2858_v14, %v2857_v21  ;;  %v2860_v23 = vmul.f32 %v2732_v38, %v4885_v37  ;;  %v2733_v17 = vmul.f32 0.5, %v2605_v12  ;;  %3885 = vtanh.f32 %v2354_v22  ;;  %v980_v21 = vpop.f32.mrf.mxu0 }
 0x1be   :  { %v2735_v57 = vmul.f32 0.5, %v2607_v49  ;;  %v2606_v27 = vadd.f32 1.0, %v3878_v43  ;;  %3887 = vtanh.f32 %v2356_v51  ;;  %v2357_v35 = vmul.f32 0.7978846, %v2229_v25  ;;  %v1173_v37 = vpop.f32.mrf.mxu1 }
 0x1bf   :  { %3339 = vst [vmem:[%s5548_s3 + $0xf0] sm:$0xff] %v3567_v10  ;;  %v3568_v46 = vpack.c.bf16 %v2860_v23, %v2859_v7  ;;  %v2861_v32 = vmul.f32 %v2733_v17, %v4899_v61  ;;  %v1975_v59 = vmul.f32 %v1847_v48, %v4979_v28  ;;  %v4999_v24 = vadd.f32 %v4316_v41, %v976_v44  ;;  %v984_v1 = vpop.f32.mrf.mxu0 }
 0x1c0   :  { %v2863_v5 = vmul.f32 %v2735_v57, %v4902_v58  ;;  %v2734_v30 = vmul.f32 0.5, %v2606_v27  ;;  %3889 = vtanh.f32 %v2357_v35  ;;  %v5003_v52 = vadd.f32 %v4318_v42, %v1169_v4  ;;  %v1177_v23 = vpop.f32.mrf.mxu1 }
 0x1c1   :  { %3340 = vst [vmem:[%s5548_s3 + $0xf8] sm:$0xff] %v3568_v46  ;;  %v2103_v26 = vmul.f32 0.044715, %v1975_v59  ;;  %v1846_v61 = vmul.f32 %v4999_v24, %v4999_v24  ;;  %v5011_v2 = vadd.f32 %v4312_v39, %v978_v13  ;;  %v5014_v36 = vadd.f32 %v4314_v40, %v1171_v3  ;;  %v986_v17 = vpop.f32.mrf.mxu0 }
 0x1c2   :  { %v2862_v58 = vmul.f32 %v2734_v30, %v4908_v9  ;;  %v1848_v33 = vmul.f32 %v5003_v52, %v5003_v52  ;;  %v5020_v55 = vadd.f32 %v4316_v41, %v980_v21  ;;  %v5023_v53 = vadd.f32 %v4318_v42, %v1173_v37 }
 0x1c3   :  { %v3880_v60 = vpop.eup %3879  ;;  %v2231_v34 = vadd.f32 %v2103_v26, %v4979_v28  ;;  %v1974_v63 = vmul.f32 %v1846_v61, %v4999_v24  ;;  %v1849_v44 = vmul.f32 %v5011_v2, %v5011_v2  ;;  %v1851_v9 = vmul.f32 %v5014_v36, %v5014_v36 }
 0x1c4   :  { %v3569_v4 = vpack.c.bf16 %v2862_v58, %v2861_v32  ;;  %v2608_v6 = vadd.f32 1.0, %v3880_v60  ;;  %v1976_v50 = vmul.f32 %v1848_v33, %v5003_v52  ;;  %v1850_v47 = vmul.f32 %v5020_v55, %v5020_v55 }
 0x1c5   :  { %v2359_v54 = vmul.f32 0.7978846, %v2231_v34  ;;  %v2102_v48 = vmul.f32 0.044715, %v1974_v63  ;;  %v1977_v19 = vmul.f32 %v1849_v44, %v5011_v2  ;;  %v1979_v62 = vmul.f32 %v1851_v9, %v5014_v36  ;;  %v1179_v34 = vpop.f32.mrf.mxu1  ;;  %v988_v63 = vpop.f32.mrf.mxu0 }
 0x1c6   :  { %3341 = vst [vmem:[%s5548_s3 + $0x100] sm:$0xff] %v3569_v4  ;;  %v2736_v0 = vmul.f32 0.5, %v2608_v6  ;;  %v2104_v45 = vmul.f32 0.044715, %v1976_v50  ;;  %v1978_v7 = vmul.f32 %v1850_v47, %v5020_v55  ;;  %v1852_v22 = vmul.f32 %v5023_v53, %v5023_v53 }
 0x1c7   :  { %3891 = vtanh.f32 %v2359_v54  ;;  %v2230_v29 = vadd.f32 %v2102_v48, %v4999_v24  ;;  %v2105_v15 = vmul.f32 0.044715, %v1977_v19  ;;  %v2107_v31 = vmul.f32 0.044715, %v1979_v62 }
 0x1c8   :  { %v3882_v14 = vpop.eup %3881  ;;  %v2864_v38 = vmul.f32 %v2736_v0, %v4915_v18  ;;  %v2232_v12 = vadd.f32 %v2104_v45, %v5003_v52  ;;  %v2106_v13 = vmul.f32 0.044715, %v1978_v7  ;;  %v1980_v3 = vmul.f32 %v1852_v22, %v5023_v53  ;;  %v990_v45 = vpop.f32.mrf.mxu0 }
 0x1c9   :  { %v3884_v49 = vpop.eup %3883  ;;  %v2609_v51 = vadd.f32 1.0, %v3882_v14  ;;  %v2358_v25 = vmul.f32 0.7978846, %v2230_v29  ;;  %v2233_v43 = vadd.f32 %v2105_v15, %v5011_v2  ;;  %v2235_v10 = vadd.f32 %v2107_v31, %v5014_v36 }
 0x1ca   :  { %v3886_v57 = vpop.eup %3885  ;;  %v3570_v27 = vpack.c.bf16 %v2864_v38, %v2863_v5  ;;  %v2611_v35 = vadd.f32 1.0, %v3884_v49  ;;  %v2360_v46 = vmul.f32 0.7978846, %v2232_v12  ;;  %v2234_v18 = vadd.f32 %v2106_v13, %v5020_v55 }
 0x1cb   :  { %v3888_v32 = vpop.eup %3887  ;;  %v2737_v59 = vmul.f32 0.5, %v2609_v51  ;;  %v2610_v21 = vadd.f32 1.0, %v3886_v57  ;;  %3893 = vtanh.f32 %v2358_v25  ;;  %v2361_v37 = vmul.f32 0.7978846, %v2233_v43 }
 0x1cc   :  { %3342 = vst [vmem:[%s5548_s3 + $0x108] sm:$0xff] %v3570_v27  ;;  %v2739_v30 = vmul.f32 0.5, %v2611_v35  ;;  %v2612_v26 = vadd.f32 1.0, %v3888_v32  ;;  %3895 = vtanh.f32 %v2360_v46  ;;  %v2363_v61 = vmul.f32 0.7978846, %v2235_v10 }
 0x1cd   :  { %v3890_v58 = vpop.eup %3889  ;;  %v2865_v5 = vmul.f32 %v2737_v59, %v4942_v56  ;;  %v2738_v33 = vmul.f32 0.5, %v2610_v21  ;;  %3897 = vtanh.f32 %v2361_v37  ;;  %v2362_v60 = vmul.f32 0.7978846, %v2234_v18 }
 0x1ce   :  { %v2867_v44 = vmul.f32 %v2739_v30, %v4945_v11  ;;  %v2740_v9 = vmul.f32 0.5, %v2612_v26  ;;  %v2613_v4 = vadd.f32 1.0, %v3890_v58  ;;  %3899 = vtanh.f32 %v2363_v61 }
 0x1cf   :  { %v2866_v6 = vmul.f32 %v2738_v33, %v4948_v8  ;;  %3901 = vtanh.f32 %v2362_v60  ;;  %v2108_v50 = vmul.f32 0.044715, %v1980_v3  ;;  %v5056_v47 = vadd.f32 %v4312_v39, %v984_v1  ;;  %v1181_v1 = vpop.f32.mrf.mxu1 }
 0x1d0   :  { %v2868_v54 = vmul.f32 %v2740_v9, %v4959_v16  ;;  %v2741_v56 = vmul.f32 0.5, %v2613_v4  ;;  %v5060_v48 = vadd.f32 %v4314_v40, %v1177_v23  ;;  %v5063_v19 = vadd.f32 %v4316_v41, %v986_v17 }
 0x1d1   :  { %v3571_v11 = vpack.c.bf16 %v2866_v6, %v2865_v5  ;;  %v2236_v62 = vadd.f32 %v2108_v50, %v5023_v53  ;;  %v1853_v8 = vmul.f32 %v5056_v47, %v5056_v47  ;;  %v5069_v0 = vadd.f32 %v4318_v42, %v1179_v34  ;;  %v1183_v60 = vpop.f32.mrf.mxu1 }
 0x1d2   :  { %v3572_v7 = vpack.c.bf16 %v2868_v54, %v2867_v44  ;;  %v5072_v16 = vmul.f32 %v2741_v56, %v4967_v20  ;;  %v1855_v22 = vmul.f32 %v5060_v48, %v5060_v48  ;;  %v1854_v29 = vmul.f32 %v5063_v19, %v5063_v19 }
 0x1d3   :  { %3343 = vst [vmem:[%s5548_s3 + $0x110] sm:$0xff] %v3571_v11  ;;  %v2364_v15 = vmul.f32 0.7978846, %v2236_v62  ;;  %v1981_v31 = vmul.f32 %v1853_v8, %v5056_v47  ;;  %v1856_v14 = vmul.f32 %v5069_v0, %v5069_v0  ;;  %v5085_v38 = vadd.f32 %v4312_v39, %v988_v63  ;;  %v994_v11 = vpop.f32.mrf.mxu0 }
 0x1d4   :  { %v3892_v20 = vpop.eup %3891  ;;  %3344 = vst [vmem:[%s5548_s3 + $0x118] sm:$0xff] %v3572_v7  ;;  %v1983_v12 = vmul.f32 %v1855_v22, %v5060_v48  ;;  %v1982_v13 = vmul.f32 %v1854_v29, %v5063_v19  ;;  %v5093_v3 = vadd.f32 %v4314_v40, %v1181_v1  ;;  %v5096_v49 = vadd.f32 %v4316_v41, %v990_v45  ;;  %v1187_v29 = vpop.f32.mrf.mxu1 }
 0x1d5   :  { %v2615_v51 = vadd.f32 1.0, %v3892_v20  ;;  %3903 = vtanh.f32 %v2364_v15  ;;  %v2109_v25 = vmul.f32 0.044715, %v1981_v31  ;;  %v1984_v43 = vmul.f32 %v1856_v14, %v5069_v0 }
 0x1d6   :  { %v2111_v10 = vmul.f32 0.044715, %v1983_v12  ;;  %v2110_v23 = vmul.f32 0.044715, %v1982_v13  ;;  %v1857_v17 = vmul.f32 %v5085_v38, %v5085_v38  ;;  %v1859_v57 = vmul.f32 %v5093_v3, %v5093_v3 }
 0x1d7   :  { %v2743_v27 = vmul.f32 0.5, %v2615_v51  ;;  %v2237_v35 = vadd.f32 %v2109_v25, %v5056_v47  ;;  %v2112_v46 = vmul.f32 0.044715, %v1984_v43  ;;  %v1858_v18 = vmul.f32 %v5096_v49, %v5096_v49  ;;  %v996_v25 = vpop.f32.mrf.mxu0 }
 0x1d8   :  { %v3894_v32 = vpop.eup %3893  ;;  %v2239_v59 = vadd.f32 %v2111_v10, %v5060_v48  ;;  %v2238_v21 = vadd.f32 %v2110_v23, %v5063_v19  ;;  %v1985_v37 = vmul.f32 %v1857_v17, %v5085_v38  ;;  %v1987_v30 = vmul.f32 %v1859_v57, %v5093_v3  ;;  %v1189_v57 = vpop.f32.mrf.mxu1 }
 0x1d9   :  { %v3896_v26 = vpop.eup %3895  ;;  %v2871_v61 = vmul.f32 %v2743_v27, %v4979_v28  ;;  %v2614_v58 = vadd.f32 1.0, %v3894_v32  ;;  %v2365_v5 = vmul.f32 0.7978846, %v2237_v35  ;;  %v2240_v33 = vadd.f32 %v2112_v46, %v5069_v0 }
 0x1da   :  { %v3898_v34 = vpop.eup %3897  ;;  %v2616_v63 = vadd.f32 1.0, %v3896_v26  ;;  %v2367_v44 = vmul.f32 0.7978846, %v2239_v59  ;;  %v2366_v9 = vmul.f32 0.7978846, %v2238_v21  ;;  %v1986_v4 = vmul.f32 %v1858_v18, %v5096_v49 }
 0x1db   :  { %v3900_v6 = vpop.eup %3899  ;;  %v2742_v50 = vmul.f32 0.5, %v2614_v58  ;;  %v2617_v54 = vadd.f32 1.0, %v3898_v34  ;;  %3905 = vtanh.f32 %v2365_v5  ;;  %v2368_v56 = vmul.f32 0.7978846, %v2240_v33 }
 0x1dc   :  { %v3902_v62 = vpop.eup %3901  ;;  %v2744_v8 = vmul.f32 0.5, %v2616_v63  ;;  %v2619_v28 = vadd.f32 1.0, %v3900_v6  ;;  %3907 = vtanh.f32 %v2367_v44  ;;  %v2113_v1 = vmul.f32 0.044715, %v1985_v37 }
 0x1dd   :  { %v2870_v45 = vmul.f32 %v2742_v50, %v4999_v24  ;;  %v2745_v7 = vmul.f32 0.5, %v2617_v54  ;;  %v2618_v22 = vadd.f32 1.0, %v3902_v62  ;;  %3909 = vtanh.f32 %v2366_v9 }
 0x1de   :  { %v2872_v15 = vmul.f32 %v2744_v8, %v5003_v52  ;;  %v2747_v31 = vmul.f32 0.5, %v2619_v28  ;;  %3911 = vtanh.f32 %v2368_v56  ;;  %v2241_v14 = vadd.f32 %v2113_v1, %v5085_v38 }
 0x1df   :  { %v3573_v20 = vpack.c.bf16 %v2870_v45, %v5072_v16  ;;  %v2873_v12 = vmul.f32 %v2745_v7, %v5011_v2  ;;  %v2746_v13 = vmul.f32 0.5, %v2618_v22  ;;  %v2115_v51 = vmul.f32 0.044715, %v1987_v30 }
 0x1e0   :  { %v3574_v43 = vpack.c.bf16 %v2872_v15, %v2871_v61  ;;  %v2875_v24 = vmul.f32 %v2747_v31, %v5014_v36  ;;  %v2369_v10 = vmul.f32 0.7978846, %v2241_v14  ;;  %v2114_v23 = vmul.f32 0.044715, %v1986_v4  ;;  %v998_v61 = vpop.f32.mrf.mxu0 }
 0x1e1   :  { %3345 = vst [vmem:[%s5548_s3 + $0x120] sm:$0xff] %v3573_v20  ;;  %v2874_v52 = vmul.f32 %v2746_v13, %v5020_v55  ;;  %v2243_v17 = vadd.f32 %v2115_v51, %v5093_v3  ;;  %v5125_v16 = vadd.f32 %v4318_v42, %v1183_v60  ;;  %v5128_v2 = vadd.f32 %v4312_v39, %v994_v11  ;;  %v1191_v60 = vpop.f32.mrf.mxu1 }
 0x1e2   :  { %v3904_v27 = vpop.eup %3903  ;;  %3346 = vst [vmem:[%s5548_s3 + $0x128] sm:$0xff] %v3574_v43  ;;  %3913 = vtanh.f32 %v2369_v10  ;;  %v2242_v36 = vadd.f32 %v2114_v23, %v5096_v49  ;;  %v5135_v35 = vadd.f32 %v4314_v40, %v1187_v29  ;;  %v5138_v55 = vadd.f32 %v4316_v41, %v996_v25 }
 0x1e3   :  { %v3575_v46 = vpack.c.bf16 %v2874_v52, %v2873_v12  ;;  %v2620_v18 = vadd.f32 1.0, %v3904_v27  ;;  %v2371_v32 = vmul.f32 0.7978846, %v2243_v17  ;;  %v1860_v59 = vmul.f32 %v5125_v16, %v5125_v16  ;;  %v1000_v27 = vpop.f32.mrf.mxu0 }
 0x1e4   :  { %v2370_v21 = vmul.f32 0.7978846, %v2242_v36  ;;  %v1861_v37 = vmul.f32 %v5128_v2, %v5128_v2  ;;  %v1863_v30 = vmul.f32 %v5135_v35, %v5135_v35  ;;  %v1862_v26 = vmul.f32 %v5138_v55, %v5138_v55 }
 0x1e5   :  { %3347 = vst [vmem:[%s5548_s3 + $0x130] sm:$0xff] %v3575_v46  ;;  %v2748_v58 = vmul.f32 0.5, %v2620_v18  ;;  %3915 = vtanh.f32 %v2371_v32  ;;  %v1988_v5 = vmul.f32 %v1860_v59, %v5125_v16  ;;  %v5153_v33 = vadd.f32 %v4318_v42, %v1189_v57  ;;  %v1193_v32 = vpop.f32.mrf.mxu1 }
 0x1e6   :  { %3917 = vtanh.f32 %v2370_v21  ;;  %v1989_v34 = vmul.f32 %v1861_v37, %v5128_v2  ;;  %v1991_v63 = vmul.f32 %v1863_v30, %v5135_v35  ;;  %v1990_v44 = vmul.f32 %v1862_v26, %v5138_v55 }
 0x1e7   :  { %v2876_v9 = vmul.f32 %v2748_v58, %v5023_v53  ;;  %v2116_v4 = vmul.f32 0.044715, %v1988_v5  ;;  %v1864_v6 = vmul.f32 %v5153_v33, %v5153_v33  ;;  %v5162_v50 = vadd.f32 %v4312_v39, %v998_v61 }
 0x1e8   :  { %v3906_v54 = vpop.eup %3905  ;;  %v2117_v56 = vmul.f32 0.044715, %v1989_v34  ;;  %v2119_v11 = vmul.f32 0.044715, %v1991_v63  ;;  %v2118_v62 = vmul.f32 0.044715, %v1990_v44  ;;  %v5165_v8 = vadd.f32 %v4314_v40, %v1191_v60 }
 0x1e9   :  { %v3908_v28 = vpop.eup %3907  ;;  %v3576_v1 = vpack.c.bf16 %v2876_v9, %v2875_v24  ;;  %v2621_v45 = vadd.f32 1.0, %v3906_v54  ;;  %v2244_v7 = vadd.f32 %v2116_v4, %v5125_v16  ;;  %v1992_v53 = vmul.f32 %v1864_v6, %v5153_v33 }
 0x1ea   :  { %v3910_v22 = vpop.eup %3909  ;;  %v2623_v29 = vadd.f32 1.0, %v3908_v28  ;;  %v2245_v15 = vadd.f32 %v2117_v56, %v5128_v2  ;;  %v2247_v31 = vadd.f32 %v2119_v11, %v5135_v35  ;;  %v2246_v14 = vadd.f32 %v2118_v62, %v5138_v55 }
 0x1eb   :  { %v3912_v20 = vpop.eup %3911  ;;  %3348 = vst [vmem:[%s5548_s3 + $0x138] sm:$0xff] %v3576_v1  ;;  %v2749_v12 = vmul.f32 0.5, %v2621_v45  ;;  %v2622_v13 = vadd.f32 1.0, %v3910_v22  ;;  %v2372_v51 = vmul.f32 0.7978846, %v2244_v7  ;;  %v1865_v37 = vmul.f32 %v5162_v50, %v5162_v50 }
 0x1ec   :  { %v2120_v25 = vmul.f32 0.044715, %v1992_v53  ;;  %v2751_v43 = vmul.f32 0.5, %v2623_v29  ;;  %v2624_v24 = vadd.f32 1.0, %v3912_v20  ;;  %v2373_v10 = vmul.f32 0.7978846, %v2245_v15 }
 0x1ed   :  { %v2375_v23 = vmul.f32 0.7978846, %v2247_v31  ;;  %v2877_v52 = vmul.f32 %v2749_v12, %v5056_v47  ;;  %v2750_v17 = vmul.f32 0.5, %v2622_v13  ;;  %3919 = vtanh.f32 %v2372_v51 }
 0x1ee   :  { %v2374_v57 = vmul.f32 0.7978846, %v2246_v14  ;;  %v2879_v36 = vmul.f32 %v2751_v43, %v5060_v48  ;;  %v2752_v46 = vmul.f32 0.5, %v2624_v24  ;;  %3921 = vtanh.f32 %v2373_v10 }
 0x1ef   :  { %v2248_v18 = vadd.f32 %v2120_v25, %v5153_v33  ;;  %v3914_v59 = vpop.eup %3913  ;;  %v2878_v21 = vmul.f32 %v2750_v17, %v5063_v19  ;;  %3923 = vtanh.f32 %v2375_v23  ;;  %v1867_v47 = vmul.f32 %v5165_v8, %v5165_v8  ;;  %v1004_v19 = vpop.f32.mrf.mxu0 }
 0x1f0   :  { %v2880_v30 = vmul.f32 %v2752_v46, %v5069_v0  ;;  %v2625_v26 = vadd.f32 1.0, %v3914_v59  ;;  %3925 = vtanh.f32 %v2374_v57  ;;  %v1993_v58 = vmul.f32 %v1865_v37, %v5162_v50  ;;  %v1197_v0 = vpop.f32.mrf.mxu1 }
 0x1f1   :  { %v2376_v48 = vmul.f32 0.7978846, %v2248_v18  ;;  %v3577_v61 = vpack.c.bf16 %v2878_v21, %v2877_v52  ;;  %v1995_v5 = vmul.f32 %v1867_v47, %v5165_v8  ;;  %v5187_v60 = vadd.f32 %v4316_v41, %v1000_v27  ;;  %v1006_v20 = vpop.f32.mrf.mxu0 }
 0x1f2   :  { %v3916_v34 = vpop.eup %3915  ;;  %v3578_v63 = vpack.c.bf16 %v2880_v30, %v2879_v36  ;;  %v2753_v44 = vmul.f32 0.5, %v2625_v26  ;;  %v5190_v9 = vadd.f32 %v4318_v42, %v1193_v32  ;;  %v2121_v54 = vmul.f32 0.044715, %v1993_v58  ;;  %v1199_v12 = vpop.f32.mrf.mxu1 }
 0x1f3   :  { %3927 = vtanh.f32 %v2376_v48  ;;  %v3918_v4 = vpop.eup %3917  ;;  %3349 = vst [vmem:[%s5548_s3 + $0x140] sm:$0xff] %v3577_v61  ;;  %v2627_v6 = vadd.f32 1.0, %v3916_v34  ;;  %v2123_v56 = vmul.f32 0.044715, %v1995_v5  ;;  %v1866_v11 = vmul.f32 %v5187_v60, %v5187_v60  ;;  %v1008_v47 = vpop.f32.mrf.mxu0 }
 0x1f4   :  { %3350 = vst [vmem:[%s5548_s3 + $0x148] sm:$0xff] %v3578_v63  ;;  %v2881_v62 = vmul.f32 %v2753_v44, %v5085_v38  ;;  %v2626_v28 = vadd.f32 1.0, %v3918_v4  ;;  %v1868_v1 = vmul.f32 %v5190_v9, %v5190_v9  ;;  %v5204_v45 = vadd.f32 %v4312_v39, %v1004_v19 }
 0x1f5   :  { %v2755_v7 = vmul.f32 0.5, %v2627_v6  ;;  %v2249_v53 = vadd.f32 %v2121_v54, %v5162_v50  ;;  %v2251_v22 = vadd.f32 %v2123_v56, %v5165_v8  ;;  %v1994_v29 = vmul.f32 %v1866_v11, %v5187_v60  ;;  %v1201_v6 = vpop.f32.mrf.mxu1 }
 0x1f6   :  { %v2754_v15 = vmul.f32 0.5, %v2626_v28  ;;  %v1996_v31 = vmul.f32 %v1868_v1, %v5190_v9  ;;  %v1869_v38 = vmul.f32 %v5204_v45, %v5204_v45  ;;  %v5213_v14 = vadd.f32 %v4314_v40, %v1197_v0  ;;  %v1010_v1 = vpop.f32.mrf.mxu0 }
 0x1f7   :  { %v2883_v13 = vmul.f32 %v2755_v7, %v5093_v3  ;;  %v2377_v51 = vmul.f32 0.7978846, %v2249_v53  ;;  %v2379_v25 = vmul.f32 0.7978846, %v2251_v22  ;;  %v2122_v43 = vmul.f32 0.044715, %v1994_v29 }
 0x1f8   :  { %v2882_v24 = vmul.f32 %v2754_v15, %v5096_v49  ;;  %v2124_v10 = vmul.f32 0.044715, %v1996_v31  ;;  %v1997_v23 = vmul.f32 %v1869_v38, %v5204_v45  ;;  %v1871_v52 = vmul.f32 %v5213_v14, %v5213_v14 }
 0x1f9   :  { %3929 = vtanh.f32 %v2377_v51  ;;  %v2250_v17 = vadd.f32 %v2122_v43, %v5187_v60  ;;  %v5222_v57 = vadd.f32 %v4316_v41, %v1006_v20  ;;  %v5225_v27 = vadd.f32 %v4318_v42, %v1199_v12 }
 0x1fa   :  { %v3920_v3 = vpop.eup %3919  ;;  %v3579_v36 = vpack.c.bf16 %v2882_v24, %v2881_v62  ;;  %3931 = vtanh.f32 %v2379_v25  ;;  %v2252_v49 = vadd.f32 %v2124_v10, %v5190_v9  ;;  %v2125_v46 = vmul.f32 0.044715, %v1997_v23  ;;  %v1203_v25 = vpop.f32.mrf.mxu1 }
 0x1fb   :  { %v3922_v18 = vpop.eup %3921  ;;  %v2628_v32 = vadd.f32 1.0, %v3920_v3  ;;  %v2378_v59 = vmul.f32 0.7978846, %v2250_v17  ;;  %v1999_v21 = vmul.f32 %v1871_v52, %v5213_v14  ;;  %v1870_v37 = vmul.f32 %v5222_v57, %v5222_v57 }
 0x1fc   :  { %v3924_v30 = vpop.eup %3923  ;;  %3351 = vst [vmem:[%s5548_s3 + $0x150] sm:$0xff] %v3579_v36  ;;  %v2629_v26 = vadd.f32 1.0, %v3922_v18  ;;  %v2380_v48 = vmul.f32 0.7978846, %v2252_v49  ;;  %v2253_v61 = vadd.f32 %v2125_v46, %v5204_v45  ;;  %v1872_v58 = vmul.f32 %v5225_v27, %v5225_v27 }
 0x1fd   :  { %v3926_v5 = vpop.eup %3925  ;;  %v2756_v19 = vmul.f32 0.5, %v2628_v32  ;;  %v2631_v34 = vadd.f32 1.0, %v3924_v30  ;;  %3933 = vtanh.f32 %v2378_v59  ;;  %v2127_v63 = vmul.f32 0.044715, %v1999_v21 }
 0x1fe   :  { %v2757_v44 = vmul.f32 0.5, %v2629_v26  ;;  %v2630_v0 = vadd.f32 1.0, %v3926_v5  ;;  %3935 = vtanh.f32 %v2380_v48  ;;  %v2381_v4 = vmul.f32 0.7978846, %v2253_v61 }
 0x1ff   :  { %v2884_v56 = vmul.f32 %v2756_v19, %v5125_v16  ;;  %v2759_v11 = vmul.f32 0.5, %v2631_v34  ;;  %v2255_v62 = vadd.f32 %v2127_v63, %v5213_v14  ;;  %v1998_v28 = vmul.f32 %v1870_v37, %v5222_v57 }
 0x200   :  { %v3928_v54 = vpop.eup %3927  ;;  %v2885_v7 = vmul.f32 %v2757_v44, %v5128_v2  ;;  %v2758_v53 = vmul.f32 0.5, %v2630_v0  ;;  %3937 = vtanh.f32 %v2381_v4  ;;  %v2000_v16 = vmul.f32 %v1872_v58, %v5225_v27  ;;  %v1207_v58 = vpop.f32.mrf.mxu1 }
 0x201   :  { %v2632_v22 = vadd.f32 1.0, %v3928_v54  ;;  %v3580_v29 = vpack.c.bf16 %v2884_v56, %v2883_v13  ;;  %v2887_v15 = vmul.f32 %v2759_v11, %v5135_v35  ;;  %v2383_v31 = vmul.f32 0.7978846, %v2255_v62 }
 0x202   :  { %v2126_v38 = vmul.f32 0.044715, %v1998_v28  ;;  %v2886_v20 = vmul.f32 %v2758_v53, %v5138_v55  ;;  %v5245_v51 = vadd.f32 %v4312_v39, %v1008_v47  ;;  %v5252_v35 = vadd.f32 %v4314_v40, %v1201_v6  ;;  %v1014_v55 = vpop.f32.mrf.mxu0 }
 0x203   :  { %v2760_v12 = vmul.f32 0.5, %v2632_v22  ;;  %3352 = vst [vmem:[%s5548_s3 + $0x158] sm:$0xff] %v3580_v29  ;;  %3939 = vtanh.f32 %v2383_v31  ;;  %v5255_v13 = vadd.f32 %v4316_v41, %v1010_v1  ;;  %v2128_v10 = vmul.f32 0.044715, %v2000_v16 }
 0x204   :  { %v2254_v2 = vadd.f32 %v2126_v38, %v5222_v57  ;;  %v3581_v43 = vpack.c.bf16 %v2886_v20, %v2885_v7  ;;  %v1873_v23 = vmul.f32 %v5245_v51, %v5245_v51  ;;  %v1875_v17 = vmul.f32 %v5252_v35, %v5252_v35  ;;  %v1016_v44 = vpop.f32.mrf.mxu0 }
 0x205   :  { %v2888_v24 = vmul.f32 %v2760_v12, %v5153_v33  ;;  %v1874_v3 = vmul.f32 %v5255_v13, %v5255_v13  ;;  %v5265_v36 = vadd.f32 %v4318_v42, %v1203_v25  ;;  %v2256_v46 = vadd.f32 %v2128_v10, %v5225_v27 }
 0x206   :  { %v2382_v52 = vmul.f32 0.7978846, %v2254_v2  ;;  %v3930_v49 = vpop.eup %3929  ;;  %3353 = vst [vmem:[%s5548_s3 + $0x160] sm:$0xff] %v3581_v43  ;;  %v2001_v18 = vmul.f32 %v1873_v23, %v5245_v51  ;;  %v5273_v32 = vadd.f32 %v4312_v39, %v1014_v55  ;;  %v2003_v37 = vmul.f32 %v1875_v17, %v5252_v35  ;;  %v1018_v25 = vpop.f32.mrf.mxu0 }
 0x207   :  { %v3582_v33 = vpack.c.bf16 %v2888_v24, %v2887_v15  ;;  %v3932_v59 = vpop.eup %3931  ;;  %v2633_v21 = vadd.f32 1.0, %v3930_v49  ;;  %v2002_v47 = vmul.f32 %v1874_v3, %v5255_v13  ;;  %v2384_v26 = vmul.f32 0.7978846, %v2256_v46  ;;  %v1209_v15 = vpop.f32.mrf.mxu1 }
 0x208   :  { %3941 = vtanh.f32 %v2382_v52  ;;  %v2635_v30 = vadd.f32 1.0, %v3932_v59  ;;  %v2129_v48 = vmul.f32 0.044715, %v2001_v18  ;;  %v1876_v61 = vmul.f32 %v5265_v36, %v5265_v36 }
 0x209   :  { %3354 = vst [vmem:[%s5548_s3 + $0x168] sm:$0xff] %v3582_v33  ;;  %v2761_v5 = vmul.f32 0.5, %v2633_v21  ;;  %v2131_v19 = vmul.f32 0.044715, %v2003_v37  ;;  %v2130_v34 = vmul.f32 0.044715, %v2002_v47  ;;  %v1877_v63 = vmul.f32 %v5273_v32, %v5273_v32  ;;  %v1211_v3 = vpop.f32.mrf.mxu1 }
 0x20a   :  { %v3934_v0 = vpop.eup %3933  ;;  %v2763_v4 = vmul.f32 0.5, %v2635_v30  ;;  %3943 = vtanh.f32 %v2384_v26  ;;  %v2257_v6 = vadd.f32 %v2129_v48, %v5245_v51  ;;  %v2004_v54 = vmul.f32 %v1876_v61, %v5265_v36 }
 0x20b   :  { %v3936_v56 = vpop.eup %3935  ;;  %v2889_v11 = vmul.f32 %v2761_v5, %v5162_v50  ;;  %v2634_v62 = vadd.f32 1.0, %v3934_v0  ;;  %v2259_v28 = vadd.f32 %v2131_v19, %v5252_v35  ;;  %v2258_v1 = vadd.f32 %v2130_v34, %v5255_v13  ;;  %v1213_v19 = vpop.f32.mrf.mxu1 }
 0x20c   :  { %v2891_v7 = vmul.f32 %v2763_v4, %v5165_v8  ;;  %v2636_v53 = vadd.f32 1.0, %v3936_v56  ;;  %v2385_v22 = vmul.f32 0.7978846, %v2257_v6  ;;  %v2132_v29 = vmul.f32 0.044715, %v2004_v54 }
 0x20d   :  { %v3938_v31 = vpop.eup %3937  ;;  %v2762_v38 = vmul.f32 0.5, %v2634_v62  ;;  %v2387_v20 = vmul.f32 0.7978846, %v2259_v28  ;;  %v2386_v12 = vmul.f32 0.7978846, %v2258_v1  ;;  %v2005_v16 = vmul.f32 %v1877_v63, %v5273_v32 }
 0x20e   :  { %v2764_v2 = vmul.f32 0.5, %v2636_v53  ;;  %v2637_v50 = vadd.f32 1.0, %v3938_v31  ;;  %3945 = vtanh.f32 %v2385_v22  ;;  %v2260_v55 = vadd.f32 %v2132_v29, %v5265_v36 }
 0x20f   :  { %v2890_v43 = vmul.f32 %v2762_v38, %v5187_v60  ;;  %3947 = vtanh.f32 %v2387_v20  ;;  %v2133_v8 = vmul.f32 0.044715, %v2005_v16  ;;  %v5294_v24 = vadd.f32 %v4314_v40, %v1207_v58  ;;  %v1020_v60 = vpop.f32.mrf.mxu0 }
 0x210   :  { %v3940_v10 = vpop.eup %3939  ;;  %v2892_v23 = vmul.f32 %v2764_v2, %v5190_v9  ;;  %v2765_v52 = vmul.f32 0.5, %v2637_v50  ;;  %3949 = vtanh.f32 %v2386_v12  ;;  %v2388_v17 = vmul.f32 0.7978846, %v2260_v55 }
 0x211   :  { %v3583_v49 = vpack.c.bf16 %v2890_v43, %v2889_v11  ;;  %v2639_v33 = vadd.f32 1.0, %v3940_v10  ;;  %v2261_v46 = vadd.f32 %v2133_v8, %v5273_v32  ;;  %v1879_v18 = vmul.f32 %v5294_v24, %v5294_v24  ;;  %v1024_v8 = vpop.f32.mrf.mxu0 }
 0x212   :  { %v3584_v59 = vpack.c.bf16 %v2892_v23, %v2891_v7  ;;  %v2893_v21 = vmul.f32 %v2765_v52, %v5204_v45  ;;  %3951 = vtanh.f32 %v2388_v17  ;;  %v5302_v37 = vadd.f32 %v4316_v41, %v1016_v44 }
 0x213   :  { %3355 = vst [vmem:[%s5548_s3 + $0x170] sm:$0xff] %v3583_v49  ;;  %v2767_v9 = vmul.f32 0.5, %v2639_v33  ;;  %v2389_v47 = vmul.f32 0.7978846, %v2261_v46  ;;  %v2007_v30 = vmul.f32 %v1879_v18, %v5294_v24  ;;  %v5309_v26 = vadd.f32 %v4318_v42, %v1209_v15 }
 0x214   :  { %3356 = vst [vmem:[%s5548_s3 + $0x178] sm:$0xff] %v3584_v59  ;;  %v1878_v45 = vmul.f32 %v5302_v37, %v5302_v37  ;;  %v5317_v61 = vadd.f32 %v4312_v39, %v1018_v25  ;;  %v5320_v58 = vadd.f32 %v4314_v40, %v1211_v3  ;;  %v5323_v5 = vadd.f32 %v4316_v41, %v1020_v60  ;;  %v1217_v60 = vpop.f32.mrf.mxu1 }
 0x215   :  { %v3942_v48 = vpop.eup %3941  ;;  %v2895_v34 = vmul.f32 %v2767_v9, %v5213_v14  ;;  %3953 = vtanh.f32 %v2389_v47  ;;  %v2135_v44 = vmul.f32 0.044715, %v2007_v30  ;;  %v1880_v4 = vmul.f32 %v5309_v26, %v5309_v26 }
 0x216   :  { %v2638_v63 = vadd.f32 1.0, %v3942_v48  ;;  %v2006_v0 = vmul.f32 %v1878_v45, %v5302_v37  ;;  %v1881_v6 = vmul.f32 %v5317_v61, %v5317_v61  ;;  %v1883_v54 = vmul.f32 %v5320_v58, %v5320_v58 }
 0x217   :  { %v3944_v56 = vpop.eup %3943  ;;  %v2263_v62 = vadd.f32 %v2135_v44, %v5294_v24  ;;  %v1882_v14 = vmul.f32 %v5323_v5, %v5323_v5  ;;  %v5337_v28 = vadd.f32 %v4318_v42, %v1213_v19  ;;  %v2008_v53 = vmul.f32 %v1880_v4, %v5309_v26  ;;  %v1026_v19 = vpop.f32.mrf.mxu0 }
 0x218   :  { %v2766_v11 = vmul.f32 0.5, %v2638_v63  ;;  %v2640_v1 = vadd.f32 1.0, %v3944_v56  ;;  %v2134_v7 = vmul.f32 0.044715, %v2006_v0  ;;  %v2009_v22 = vmul.f32 %v1881_v6, %v5317_v61  ;;  %v1219_v56 = vpop.f32.mrf.mxu1 }
 0x219   :  { %v2391_v15 = vmul.f32 0.7978846, %v2263_v62  ;;  %v2011_v31 = vmul.f32 %v1883_v54, %v5320_v58  ;;  %v2010_v38 = vmul.f32 %v1882_v14, %v5323_v5  ;;  %v2136_v16 = vmul.f32 0.044715, %v2008_v53 }
 0x21a   :  { %v2894_v29 = vmul.f32 %v2766_v11, %v5222_v57  ;;  %v2768_v20 = vmul.f32 0.5, %v2640_v1  ;;  %v2262_v12 = vadd.f32 %v2134_v7, %v5302_v37  ;;  %v2137_v25 = vmul.f32 0.044715, %v2009_v22 }
 0x21b   :  { %v3946_v2 = vpop.eup %3945  ;;  %3955 = vtanh.f32 %v2391_v15  ;;  %v2139_v55 = vmul.f32 0.044715, %v2011_v31  ;;  %v2138_v43 = vmul.f32 0.044715, %v2010_v38  ;;  %v2264_v17 = vadd.f32 %v2136_v16, %v5309_v26 }
 0x21c   :  { %v3585_v50 = vpack.c.bf16 %v2894_v29, %v2893_v21  ;;  %v3948_v10 = vpop.eup %3947  ;;  %v2896_v23 = vmul.f32 %v2768_v20, %v5225_v27  ;;  %v2641_v57 = vadd.f32 1.0, %v3946_v2  ;;  %v2390_v52 = vmul.f32 0.7978846, %v2262_v12  ;;  %v1221_v12 = vpop.f32.mrf.mxu1 }
 0x21d   :  { %v3950_v3 = vpop.eup %3949  ;;  %v2643_v49 = vadd.f32 1.0, %v3948_v10  ;;  %v2265_v33 = vadd.f32 %v2137_v25, %v5317_v61  ;;  %v2267_v46 = vadd.f32 %v2139_v55, %v5320_v58  ;;  %v2266_v18 = vadd.f32 %v2138_v43, %v5323_v5 }
 0x21e   :  { %3357 = vst [vmem:[%s5548_s3 + $0x180] sm:$0xff] %v3585_v50  ;;  %v3586_v59 = vpack.c.bf16 %v2896_v23, %v2895_v34  ;;  %v2769_v21 = vmul.f32 0.5, %v2641_v57  ;;  %v2642_v27 = vadd.f32 1.0, %v3950_v3  ;;  %3957 = vtanh.f32 %v2390_v52 }
 0x21f   :  { %v3952_v9 = vpop.eup %3951  ;;  %v2771_v47 = vmul.f32 0.5, %v2643_v49  ;;  %v2392_v30 = vmul.f32 0.7978846, %v2264_v17  ;;  %v2393_v48 = vmul.f32 0.7978846, %v2265_v33  ;;  %v1884_v45 = vmul.f32 %v5337_v28, %v5337_v28 }
 0x220   :  { %3358 = vst [vmem:[%s5548_s3 + $0x188] sm:$0xff] %v3586_v59  ;;  %v2897_v63 = vmul.f32 %v2769_v21, %v5245_v51  ;;  %v2770_v44 = vmul.f32 0.5, %v2642_v27  ;;  %v2644_v0 = vadd.f32 1.0, %v3952_v9  ;;  %v2395_v34 = vmul.f32 0.7978846, %v2267_v46 }
 0x221   :  { %v2899_v4 = vmul.f32 %v2771_v47, %v5252_v35  ;;  %3959 = vtanh.f32 %v2392_v30  ;;  %v2394_v6 = vmul.f32 0.7978846, %v2266_v18  ;;  %v2012_v54 = vmul.f32 %v1884_v45, %v5337_v28  ;;  %v1028_v35 = vpop.f32.mrf.mxu0 }
 0x222   :  { %v3954_v11 = vpop.eup %3953  ;;  %v2898_v62 = vmul.f32 %v2770_v44, %v5255_v13  ;;  %v2772_v14 = vmul.f32 0.5, %v2644_v0  ;;  %3961 = vtanh.f32 %v2393_v48  ;;  %v5363_v1 = vadd.f32 %v4312_v39, %v1024_v8  ;;  %v1223_v44 = vpop.f32.mrf.mxu1 }
 0x223   :  { %v2645_v7 = vadd.f32 1.0, %v3954_v11  ;;  %3963 = vtanh.f32 %v2395_v34  ;;  %v2140_v51 = vmul.f32 0.044715, %v2012_v54  ;;  %v5366_v53 = vadd.f32 %v4314_v40, %v1217_v60  ;;  %v1030_v17 = vpop.f32.mrf.mxu0 }
 0x224   :  { %v3587_v22 = vpack.c.bf16 %v2898_v62, %v2897_v63  ;;  %v2900_v29 = vmul.f32 %v2772_v14, %v5265_v36  ;;  %3965 = vtanh.f32 %v2394_v6  ;;  %v1885_v15 = vmul.f32 %v5363_v1, %v5363_v1 }
 0x225   :  { %v2773_v13 = vmul.f32 0.5, %v2645_v7  ;;  %v2268_v31 = vadd.f32 %v2140_v51, %v5337_v28  ;;  %v1887_v38 = vmul.f32 %v5366_v53, %v5366_v53  ;;  %v5375_v20 = vadd.f32 %v4316_v41, %v1026_v19 }
 0x226   :  { %3359 = vst [vmem:[%s5548_s3 + $0x190] sm:$0xff] %v3587_v22  ;;  %v3588_v16 = vpack.c.bf16 %v2900_v29, %v2899_v4  ;;  %v2013_v36 = vmul.f32 %v1885_v15, %v5363_v1  ;;  %v5382_v25 = vadd.f32 %v4318_v42, %v1219_v56  ;;  %v5385_v2 = vadd.f32 %v4312_v39, %v1028_v35  ;;  %v1034_v22 = vpop.f32.mrf.mxu0 }
 0x227   :  { %v5388_v50 = vmul.f32 %v2773_v13, %v5273_v32  ;;  %v2396_v55 = vmul.f32 0.7978846, %v2268_v31  ;;  %v2015_v43 = vmul.f32 %v1887_v38, %v5366_v53  ;;  %v1886_v8 = vmul.f32 %v5375_v20, %v5375_v20  ;;  %v1227_v38 = vpop.f32.mrf.mxu1 }
 0x228   :  { %v3956_v10 = vpop.eup %3955  ;;  %3360 = vst [vmem:[%s5548_s3 + $0x198] sm:$0xff] %v3588_v16  ;;  %v2141_v23 = vmul.f32 0.044715, %v2013_v36  ;;  %v1888_v57 = vmul.f32 %v5382_v25, %v5382_v25  ;;  %v1889_v52 = vmul.f32 %v5385_v2, %v5385_v2  ;;  %v5401_v32 = vadd.f32 %v4314_v40, %v1221_v12 }
 0x229   :  { %v2647_v3 = vadd.f32 1.0, %v3956_v10  ;;  %3967 = vtanh.f32 %v2396_v55  ;;  %v2143_v49 = vmul.f32 0.044715, %v2015_v43  ;;  %v2014_v33 = vmul.f32 %v1886_v8, %v5375_v20 }
 0x22a   :  { %v2269_v46 = vadd.f32 %v2141_v23, %v5363_v1  ;;  %v2016_v18 = vmul.f32 %v1888_v57, %v5382_v25  ;;  %v2017_v60 = vmul.f32 %v1889_v52, %v5385_v2  ;;  %v1891_v59 = vmul.f32 %v5401_v32, %v5401_v32  ;;  %v1036_v52 = vpop.f32.mrf.mxu0 }
 0x22b   :  { %v3958_v21 = vpop.eup %3957  ;;  %v2775_v27 = vmul.f32 0.5, %v2647_v3  ;;  %v2271_v9 = vadd.f32 %v2143_v49, %v5366_v53  ;;  %v2142_v47 = vmul.f32 0.044715, %v2014_v33  ;;  %v5411_v30 = vadd.f32 %v4316_v41, %v1030_v17  ;;  %v1229_v33 = vpop.f32.mrf.mxu1 }
 0x22c   :  { %v2646_v48 = vadd.f32 1.0, %v3958_v21  ;;  %v2397_v45 = vmul.f32 0.7978846, %v2269_v46  ;;  %v2144_v19 = vmul.f32 0.044715, %v2016_v18  ;;  %v2019_v63 = vmul.f32 %v1891_v59, %v5401_v32 }
 0x22d   :  { %v2903_v0 = vmul.f32 %v2775_v27, %v5294_v24  ;;  %v2399_v34 = vmul.f32 0.7978846, %v2271_v9  ;;  %v2270_v4 = vadd.f32 %v2142_v47, %v5375_v20  ;;  %v2145_v6 = vmul.f32 0.044715, %v2017_v60 }
 0x22e   :  { %v3960_v54 = vpop.eup %3959  ;;  %v2774_v56 = vmul.f32 0.5, %v2646_v48  ;;  %3969 = vtanh.f32 %v2397_v45  ;;  %v2272_v11 = vadd.f32 %v2144_v19, %v5382_v25  ;;  %v2147_v62 = vmul.f32 0.044715, %v2019_v63  ;;  %v1038_v48 = vpop.f32.mrf.mxu0 }
 0x22f   :  { %v3962_v14 = vpop.eup %3961  ;;  %v2648_v7 = vadd.f32 1.0, %v3960_v54  ;;  %3971 = vtanh.f32 %v2399_v34  ;;  %v2398_v51 = vmul.f32 0.7978846, %v2270_v4  ;;  %v2273_v35 = vadd.f32 %v2145_v6, %v5385_v2 }
 0x230   :  { %v3964_v29 = vpop.eup %3963  ;;  %v2902_v24 = vmul.f32 %v2774_v56, %v5302_v37  ;;  %v2649_v15 = vadd.f32 1.0, %v3962_v14  ;;  %v2400_v13 = vmul.f32 0.7978846, %v2272_v11  ;;  %v2275_v31 = vadd.f32 %v2147_v62, %v5401_v32 }
 0x231   :  { %v3966_v12 = vpop.eup %3965  ;;  %v2776_v16 = vmul.f32 0.5, %v2648_v7  ;;  %v2651_v36 = vadd.f32 1.0, %v3964_v29  ;;  %3973 = vtanh.f32 %v2398_v51  ;;  %v2401_v55 = vmul.f32 0.7978846, %v2273_v35 }
 0x232   :  { %v3589_v43 = vpack.c.bf16 %v2902_v24, %v5388_v50  ;;  %v2777_v8 = vmul.f32 0.5, %v2649_v15  ;;  %v2650_v10 = vadd.f32 1.0, %v3966_v12  ;;  %3975 = vtanh.f32 %v2400_v13 }
 0x233   :  { %v2904_v23 = vmul.f32 %v2776_v16, %v5309_v26  ;;  %v2779_v57 = vmul.f32 0.5, %v2651_v36  ;;  %3977 = vtanh.f32 %v2401_v55  ;;  %v2403_v37 = vmul.f32 0.7978846, %v2275_v31 }
 0x234   :  { %3361 = vst [vmem:[%s5548_s3 + $0x1a0] sm:$0xff] %v3589_v43  ;;  %v2905_v17 = vmul.f32 %v2777_v8, %v5317_v61  ;;  %v2778_v3 = vmul.f32 0.5, %v2650_v10  ;;  %v1890_v49 = vmul.f32 %v5411_v30, %v5411_v30  ;;  %v5429_v50 = vadd.f32 %v4318_v42, %v1223_v44 }
 0x235   :  { %v3590_v46 = vpack.c.bf16 %v2904_v23, %v2903_v0  ;;  %v2907_v26 = vmul.f32 %v2779_v57, %v5320_v58  ;;  %3979 = vtanh.f32 %v2403_v37  ;;  %v5433_v18 = vadd.f32 %v4312_v39, %v1034_v22 }
 0x236   :  { %v3968_v60 = vpop.eup %3967  ;;  %v2906_v59 = vmul.f32 %v2778_v3, %v5323_v5  ;;  %v2018_v61 = vmul.f32 %v1890_v49, %v5411_v30  ;;  %v1892_v21 = vmul.f32 %v5429_v50, %v5429_v50  ;;  %v5440_v27 = vadd.f32 %v4314_v40, %v1227_v38  ;;  %v1231_v49 = vpop.f32.mrf.mxu1 }
 0x237   :  { %3362 = vst [vmem:[%s5548_s3 + $0x1a8] sm:$0xff] %v3590_v46  ;;  %v2652_v58 = vadd.f32 1.0, %v3968_v60  ;;  %v1893_v9 = vmul.f32 %v5433_v18, %v5433_v18  ;;  %v5448_v47 = vadd.f32 %v4316_v41, %v1036_v52  ;;  %v5451_v5 = vadd.f32 %v4318_v42, %v1229_v33 }
 0x238   :  { %v3591_v45 = vpack.c.bf16 %v2906_v59, %v2905_v17  ;;  %v2146_v19 = vmul.f32 0.044715, %v2018_v61  ;;  %v2020_v63 = vmul.f32 %v1892_v21, %v5429_v50  ;;  %v1895_v44 = vmul.f32 %v5440_v27, %v5440_v27 }
 0x239   :  { %v2780_v0 = vmul.f32 0.5, %v2652_v58  ;;  %v2021_v34 = vmul.f32 %v1893_v9, %v5433_v18  ;;  %v1894_v4 = vmul.f32 %v5448_v47, %v5448_v47  ;;  %v1896_v6 = vmul.f32 %v5451_v5, %v5451_v5 }
 0x23a   :  { %3363 = vst [vmem:[%s5548_s3 + $0x1b0] sm:$0xff] %v3591_v45  ;;  %v2274_v54 = vadd.f32 %v2146_v19, %v5411_v30  ;;  %v2148_v56 = vmul.f32 0.044715, %v2020_v63  ;;  %v2023_v11 = vmul.f32 %v1895_v44, %v5440_v27  ;;  %v5467_v62 = vadd.f32 %v4312_v39, %v1038_v48  ;;  %v1040_v48 = vpop.f32.mrf.mxu0  ;;  %v1233_v44 = vpop.f32.mrf.mxu1 }
 0x23b   :  { %v3970_v14 = vpop.eup %3969  ;;  %v2908_v7 = vmul.f32 %v2780_v0, %v5337_v28  ;;  %v2149_v51 = vmul.f32 0.044715, %v2021_v34  ;;  %v2022_v35 = vmul.f32 %v1894_v4, %v5448_v47  ;;  %v2024_v22 = vmul.f32 %v1896_v6, %v5451_v5 }
 0x23c   :  { %v3972_v29 = vpop.eup %3971  ;;  %v2653_v24 = vadd.f32 1.0, %v3970_v14  ;;  %v2402_v15 = vmul.f32 0.7978846, %v2274_v54  ;;  %v2276_v13 = vadd.f32 %v2148_v56, %v5429_v50  ;;  %v2151_v31 = vmul.f32 0.044715, %v2023_v11 }
 0x23d   :  { %v3592_v38 = vpack.c.bf16 %v2908_v7, %v2907_v26  ;;  %v2655_v12 = vadd.f32 1.0, %v3972_v29  ;;  %v2277_v16 = vadd.f32 %v2149_v51, %v5433_v18  ;;  %v2150_v39 = vmul.f32 0.044715, %v2022_v35 }
 0x23e   :  { %v3974_v36 = vpop.eup %3973  ;;  %v2781_v55 = vmul.f32 0.5, %v2653_v24  ;;  %3981 = vtanh.f32 %v2402_v15  ;;  %v2404_v28 = vmul.f32 0.7978846, %v2276_v13  ;;  %v2279_v43 = vadd.f32 %v2151_v31, %v5440_v27 }
 0x23f   :  { %v3976_v8 = vpop.eup %3975  ;;  %3364 = vst [vmem:[%s5548_s3 + $0x1b8] sm:$0xff] %v3592_v38  ;;  %v2783_v10 = vmul.f32 0.5, %v2655_v12  ;;  %v2654_v23 = vadd.f32 1.0, %v3974_v36  ;;  %v2405_v57 = vmul.f32 0.7978846, %v2277_v16  ;;  %v2278_v37 = vadd.f32 %v2150_v39, %v5448_v47 }
 0x240   :  { %v3978_v52 = vpop.eup %3977  ;;  %v2656_v17 = vadd.f32 1.0, %v3976_v8  ;;  %3983 = vtanh.f32 %v2404_v28  ;;  %v2407_v3 = vmul.f32 0.7978846, %v2279_v43  ;;  %v2152_v59 = vmul.f32 0.044715, %v2024_v22 }
 0x241   :  { %v2782_v33 = vmul.f32 0.5, %v2654_v23  ;;  %3985 = vtanh.f32 %v2405_v57  ;;  %v2406_v60 = vmul.f32 0.7978846, %v2278_v37  ;;  %v2909_v61 = vmul.f32 %v2781_v55, %v5363_v1 }
 0x242   :  { %v3980_v46 = vpop.eup %3979  ;;  %v2784_v26 = vmul.f32 0.5, %v2656_v17  ;;  %3987 = vtanh.f32 %v2407_v3  ;;  %v2911_v21 = vmul.f32 %v2783_v10, %v5366_v53  ;;  %v1897_v9 = vmul.f32 %v5467_v62, %v5467_v62 }
 0x243   :  { %v2910_v58 = vmul.f32 %v2782_v33, %v5375_v20  ;;  %3989 = vtanh.f32 %v2406_v60  ;;  %v2280_v19 = vadd.f32 %v2152_v59, %v5451_v5  ;;  %v5487_v63 = vadd.f32 %v4314_v40, %v1231_v49 }
 0x244   :  { %v2912_v45 = vmul.f32 %v2784_v26, %v5382_v25  ;;  %v2025_v1 = vmul.f32 %v1897_v9, %v5467_v62  ;;  %v5493_v4 = vadd.f32 %v4316_v41, %v1040_v48  ;;  %v5499_v40 = vadd.f32 %v4318_v42, %v1233_v44 }
 0x245   :  { %v3593_v0 = vpack.c.bf16 %v2910_v58, %v2909_v61  ;;  %v2408_v53 = vmul.f32 0.7978846, %v2280_v19  ;;  %v1899_v20 = vmul.f32 %v5487_v63, %v5487_v63  ;;  %v2657_v6 = vadd.f32 1.0, %v3978_v52 }
 0x246   :  { %v3594_v34 = vpack.c.bf16 %v2912_v45, %v2911_v21  ;;  %v2153_v25 = vmul.f32 0.044715, %v2025_v1  ;;  %v1898_v41 = vmul.f32 %v5493_v4, %v5493_v4  ;;  %v2659_v56 = vadd.f32 1.0, %v3980_v46 }
 0x247   :  { %3365 = vst [vmem:[%s5548_s3 + $0x1c0] sm:$0xff] %v3593_v0  ;;  %3991 = vtanh.f32 %v2408_v53  ;;  %v2027_v54 = vmul.f32 %v1899_v20, %v5487_v63  ;;  %v1900_v14 = vmul.f32 %v5499_v40, %v5499_v40  ;;  %v2785_v29 = vmul.f32 0.5, %v2657_v6 }
 0x248   :  { %3366 = vst [vmem:[%s5548_s3 + $0x1c8] sm:$0xff] %v3594_v34  ;;  %v2281_v11 = vadd.f32 %v2153_v25, %v5467_v62  ;;  %v2026_v42 = vmul.f32 %v1898_v41, %v5493_v4  ;;  %v2787_v38 = vmul.f32 0.5, %v2659_v56 }
 0x249   :  { %v2155_v7 = vmul.f32 0.044715, %v2027_v54  ;;  %v2028_v22 = vmul.f32 %v1900_v14, %v5499_v40  ;;  %v2913_v23 = vmul.f32 %v2785_v29, %v5385_v2 }
 0x24a   :  { %v2409_v35 = vmul.f32 0.7978846, %v2281_v11  ;;  %v2154_v13 = vmul.f32 0.044715, %v2026_v42  ;;  %v2915_v17 = vmul.f32 %v2787_v38, %v5401_v32 }
 0x24b   :  { %v3982_v51 = vpop.eup %3981  ;;  %v2283_v15 = vadd.f32 %v2155_v7, %v5487_v63  ;;  %v2156_v12 = vmul.f32 0.044715, %v2028_v22 }
 0x24c   :  { %v2658_v24 = vadd.f32 1.0, %v3982_v51  ;;  %3993 = vtanh.f32 %v2409_v35  ;;  %v2282_v28 = vadd.f32 %v2154_v13, %v5493_v4 }
 0x24d   :  { %v3984_v31 = vpop.eup %3983  ;;  %v2411_v55 = vmul.f32 0.7978846, %v2283_v15  ;;  %v2284_v10 = vadd.f32 %v2156_v12, %v5499_v40 }
 0x24e   :  { %v3986_v16 = vpop.eup %3985  ;;  %v2786_v39 = vmul.f32 0.5, %v2658_v24  ;;  %v2660_v36 = vadd.f32 1.0, %v3984_v31  ;;  %v2410_v49 = vmul.f32 0.7978846, %v2282_v28 }
 0x24f   :  { %v3988_v43 = vpop.eup %3987  ;;  %v2661_v8 = vadd.f32 1.0, %v3986_v16  ;;  %3995 = vtanh.f32 %v2411_v55  ;;  %v2412_v33 = vmul.f32 0.7978846, %v2284_v10 }
 0x250   :  { %v2914_v57 = vmul.f32 %v2786_v39, %v5411_v30  ;;  %v2788_v37 = vmul.f32 0.5, %v2660_v36  ;;  %v3990_v52 = vpop.eup %3989  ;;  %v2663_v3 = vadd.f32 1.0, %v3988_v43  ;;  %3997 = vtanh.f32 %v2410_v49 }
 0x251   :  { %v2789_v60 = vmul.f32 0.5, %v2661_v8  ;;  %v2662_v59 = vadd.f32 1.0, %v3990_v52  ;;  %3999 = vtanh.f32 %v2412_v33 }
 0x252   :  { %v3595_v46 = vpack.c.bf16 %v2914_v57, %v2913_v23  ;;  %v2916_v26 = vmul.f32 %v2788_v37, %v5429_v50  ;;  %v2791_v21 = vmul.f32 0.5, %v2663_v3 }
 0x253   :  { %v2790_v30 = vmul.f32 0.5, %v2662_v59  ;;  %v2917_v32 = vmul.f32 %v2789_v60, %v5433_v18 }
 0x254   :  { %3367 = vst [vmem:[%s5548_s3 + $0x1d0] sm:$0xff] %v3595_v46  ;;  %v3596_v2 = vpack.c.bf16 %v2916_v26, %v2915_v17  ;;  %v3992_v61 = vpop.eup %3991  ;;  %v2919_v19 = vmul.f32 %v2791_v21, %v5440_v27 }
 0x255   :  { %v2918_v50 = vmul.f32 %v2790_v30, %v5448_v47  ;;  %v2664_v58 = vadd.f32 1.0, %v3992_v61 }
 0x256   :  { %3368 = vst [vmem:[%s5548_s3 + $0x1d8] sm:$0xff] %v3596_v2 }
 0x257   :  { %v3597_v9 = vpack.c.bf16 %v2918_v50, %v2917_v32  ;;  %v2792_v48 = vmul.f32 0.5, %v2664_v58 }
 0x259   :  { %v3994_v45 = vpop.eup %3993  ;;  %3369 = vst [vmem:[%s5548_s3 + $0x1e0] sm:$0xff] %v3597_v9  ;;  %v2920_v44 = vmul.f32 %v2792_v48, %v5451_v5 }
 0x25a   :  { %v2665_v34 = vadd.f32 1.0, %v3994_v45 }
 0x25b   :  { %v3598_v0 = vpack.c.bf16 %v2920_v44, %v2919_v19 }
 0x25c   :  { %v3996_v1 = vpop.eup %3995  ;;  %v2793_v20 = vmul.f32 0.5, %v2665_v34 }
 0x25d   :  { %3370 = vst [vmem:[%s5548_s3 + $0x1e8] sm:$0xff] %v3598_v0  ;;  %v2667_v18 = vadd.f32 1.0, %v3996_v1  ;;  %v3998_v47 = vpop.eup %3997 }
 0x25e   :  { %v4000_v53 = vpop.eup %3999  ;;  %v2666_v25 = vadd.f32 1.0, %v3998_v47  ;;  %v2921_v56 = vmul.f32 %v2793_v20, %v5467_v62 }
 0x25f   :  { %v2795_v6 = vmul.f32 0.5, %v2667_v18  ;;  %v2668_v27 = vadd.f32 1.0, %v4000_v53 }
 0x260   :  { %v2794_v54 = vmul.f32 0.5, %v2666_v25 }
 0x261   :  { %v2796_v41 = vmul.f32 0.5, %v2668_v27  ;;  %v2923_v11 = vmul.f32 %v2795_v6, %v5487_v63 }
 0x262   :  { %v2922_v5 = vmul.f32 %v2794_v54, %v5493_v4 }
 0x263   :  { %v2924_v14 = vmul.f32 %v2796_v41, %v5499_v40 }
 0x264   :  { %v3599_v7 = vpack.c.bf16 %v2922_v5, %v2921_v56 }
 0x265   :  { %v3600_v42 = vpack.c.bf16 %v2924_v14, %v2923_v11 }
 0x266   :  { %3371 = vst [vmem:[%s5548_s3 + $0x1f0] sm:$0xff] %v3599_v7 }
 0x267   :  { %3372 = vst [vmem:[%s5548_s3 + $0x1f8] sm:$0xff] %v3600_v42 }

</bundles_post_ra>
